<compile_context>
chip_gen: v7x
topology: tpu7x:2x2x1
jax: 0.10.0
libtpu: 0.0.40
codegen_flags: <defaults>
</compile_context>

<pallas_src>
import functools

import jax
import jax.numpy as jnp
from jax.experimental import pallas as pl
from jax.experimental.pallas import tpu as pltpu

H1 = 3000  # fc1 output size (from the PyTorch module)
H2 = 2000  # fc2 output size (from the PyTorch module)
LANE = 128


def _round_up(x, m):
    return ((x + m - 1) // m) * m


def _pad_to(a, shape):
    pads = [(0, s - d) for d, s in zip(a.shape, shape)]
    return jnp.pad(a, pads)


# ---------------------------------------------------------------------------
# Fused 3-layer MLP kernel.
# grid = (h2_p // tn2,): each step consumes one N2-block of W2 (and the matching
# K-block of W3) and produces an independent partial of the final output.
# x / W1 / b1 have constant index maps -> resident in VMEM across the grid.
# ---------------------------------------------------------------------------
def _fused_mlp_kernel(x_ref, w1_ref, b1_ref, w2_ref, b2_ref, w3_ref, o_ref):
    # Layer 1 (tiny; recomputed per step, negligible vs. the W2 DMA stream).
    h1 = jnp.dot(x_ref[...], w1_ref[...], preferred_element_type=jnp.float32)
    h1 = jnp.maximum(h1 + b1_ref[...], 0.0)

    # Layer 2: this step's N2-slice.
    h2 = jnp.dot(h1.astype(jnp.bfloat16), w2_ref[...],
                 preferred_element_type=jnp.float32)
    h2 = jnp.maximum(h2 + b2_ref[...], 0.0)

    # Layer 3: partial contribution from this N2-slice (bias b3 added outside).
    p = jnp.dot(h2.astype(jnp.bfloat16), w3_ref[...],
                preferred_element_type=jnp.float32)
    o_ref[...] = p[None]  # (1, 1, out_p)


def fused_forward(xp, w1p, b1p, w2p, b2p, w3p, *, tn2):
    M, kin_p = xp.shape
    h1_p = w1p.shape[1]
    h2_p = w2p.shape[1]
    out_p = w3p.shape[1]
    assert h2_p % tn2 == 0, (h2_p, tn2)
    nb = h2_p // tn2

    return pl.pallas_call(
        _fused_mlp_kernel,
        out_shape=jax.ShapeDtypeStruct((nb, M, out_p), jnp.float32),
        grid_spec=pltpu.PrefetchScalarGridSpec(
            num_scalar_prefetch=0,
            grid=(nb,),
            in_specs=[
                pl.BlockSpec((M, kin_p), lambda j: (0, 0)),     # x     (resident)
                pl.BlockSpec((kin_p, h1_p), lambda j: (0, 0)),  # W1    (resident)
                pl.BlockSpec((1, h1_p), lambda j: (0, 0)),      # b1    (resident)
                pl.BlockSpec((h1_p, tn2), lambda j: (0, j)),    # W2    (streamed)
                pl.BlockSpec((1, tn2), lambda j: (0, j)),       # b2
                pl.BlockSpec((tn2, out_p), lambda j: (j, 0)),   # W3    (streamed)
            ],
            out_specs=pl.BlockSpec((1, M, out_p), lambda j: (j, 0, 0)),
        ),
        compiler_params=pltpu.CompilerParams(
            dimension_semantics=("parallel",),       # megacore-shardable on v7x
            vmem_limit_bytes=48 * 1024 * 1024,       # safe on v7x (64 MiB phys)
        ),
    )(xp, w1p, b1p, w2p, b2p, w3p)


# ---------------------------------------------------------------------------
# Parameter init (deterministic, mimics nn.Linear's U(-1/sqrt(fan_in), +1/sqrt(fan_in)))
# ---------------------------------------------------------------------------
def init_linear(key, fan_in, fan_out):
    kw, kb = jax.random.split(key)
    bound = 1.0 / float(fan_in) ** 0.5
    w = jax.random.uniform(kw, (fan_in, fan_out), jnp.float32, -bound, bound)
    b = jax.random.uniform(kb, (fan_out,), jnp.float32, -bound, bound)
    return w, b


def init_forward_model(key, input_size, action_size):
    k1, k2, k3 = jax.random.split(key, 3)
    w1, b1 = init_linear(k1, input_size + action_size, H1)
    w2, b2 = init_linear(k2, H1, H2)
    w3, b3 = init_linear(k3, H2, input_size)
    return (w1, b1, w2, b2, w3, b3)


def prepare_params(params, input_size, action_size):
    """One-time padding (to 128-multiples) + bf16 cast of the weights."""
    w1, b1, w2, b2, w3, b3 = params
    kin_p = _round_up(input_size + action_size, LANE)
    h1_p = _round_up(H1, LANE)   # 3072
    h2_p = _round_up(H2, LANE)   # 2048
    out_p = _round_up(input_size, LANE)

    w1p = _pad_to(w1, (kin_p, h1_p)).astype(jnp.bfloat16)
    w2p = _pad_to(w2, (h1_p, h2_p)).astype(jnp.bfloat16)
    w3p = _pad_to(w3, (h2_p, out_p)).astype(jnp.bfloat16)
    b1p = _pad_to(b1, (h1_p,)).reshape(1, h1_p)   # biases stay f32
    b2p = _pad_to(b2, (h2_p,)).reshape(1, h2_p)
    b3p = _pad_to(b3, (out_p,)).reshape(1, out_p)
    return (w1p, b1p, w2p, b2p, w3p, b3p)


# ---------------------------------------------------------------------------
# Forward pass (jitted; concat/pad of the 1x(input+action) row fuses in)
# ---------------------------------------------------------------------------
@functools.partial(jax.jit, static_argnames=("input_size", "tn2"))
def forward_model(pparams, state, action, *, input_size, tn2=1024):
    w1p, b1p, w2p, b2p, w3p, b3p = pparams
    kin_p = w1p.shape[0]

    # action.unsqueeze(0) ; torch.cat((state, action), dim=1)
    x = jnp.concatenate([state, action[None, :]], axis=1)
    xp = _pad_to(x, (x.shape[0], kin_p)).astype(jnp.bfloat16)

    partials = fused_forward(xp, w1p, b1p, w2p, b2p, w3p, tn2=tn2)
    y = partials.sum(axis=0) + b3p
    return y[:, :input_size]


def reference_forward(pparams, state, action, input_size):
    """Pure-JAX reference using the same bf16 weights / bf16 activation casts."""
    w1p, b1p, w2p, b2p, w3p, b3p = pparams
    kin_p = w1p.shape[0]
    hi = jax.lax.Precision.HIGHEST
    f32 = jnp.float32

    x = jnp.concatenate([state, action[None, :]], axis=1)
    xp = _pad_to(x, (x.shape[0], kin_p)).astype(jnp.bfloat16)

    h1 = jnp.maximum(
        jnp.dot(xp.astype(f32), w1p.astype(f32), precision=hi) + b1p, 0.0)
    h1 = h1.astype(jnp.bfloat16)
    h2 = jnp.maximum(
        jnp.dot(h1.astype(f32), w2p.astype(f32), precision=hi) + b2p, 0.0)
    h2 = h2.astype(jnp.bfloat16)
    y = jnp.dot(h2.astype(f32), w3p.astype(f32), precision=hi) + b3p
    return y[:, :input_size]


if __name__ == "__main__":
    input_size = 32
    action_size = 4

    key = jax.random.PRNGKey(0)
    kparams, kstate, kaction = jax.random.split(key, 3)

    params = init_forward_model(kparams, input_size, action_size)
    pparams = prepare_params(params, input_size, action_size)  # one-time pad + bf16

    state = jax.random.normal(kstate, (1, input_size), jnp.float32)
    action = jax.random.normal(kaction, (action_size,), jnp.float32)

    out = forward_model(pparams, state, action, input_size=input_size)
    out = jax.block_until_ready(out)

    ref = reference_forward(pparams, state, action, input_size)
    assert out.shape == (1, input_size), out.shape
    assert jnp.allclose(out, ref, atol=1e-2, rtol=1e-2), "mismatch vs reference"

    # TODO(synk): one_hot() helper of the PyTorch module is host-side indexing, not a kernel.
    print("KERNEL_OK")
</pallas_src>

<mosaic_0001>
module attributes {stable_mosaic.version = 11 : i64} {
  func.func @_fused_mlp_kernel(%arg0: i32, %arg1: memref<1x128xbf16, #tpu.memory_space<vmem>>, %arg2: memref<128x3072xbf16, #tpu.memory_space<vmem>>, %arg3: memref<1x3072xf32, #tpu.memory_space<vmem>>, %arg4: memref<3072x1024xbf16, #tpu.memory_space<vmem>>, %arg5: memref<1x1024xf32, #tpu.memory_space<vmem>>, %arg6: memref<1024x128xbf16, #tpu.memory_space<vmem>>, %arg7: memref<1x1x128xf32, #tpu.memory_space<vmem>>) attributes {dimension_semantics = [#tpu.dimension_semantics<parallel>], iteration_bounds = array<i64: 2>, scalar_prefetch = 0 : i64, scratch_operands = 0 : i64, tpu.core_type = #tpu.core_type<tc>, window_params = [{pipeline_mode = #tpu.pipeline_mode<synchronous>, transform_indices = @transform_0, window_bounds = array<i64: 1, 128>}, {pipeline_mode = #tpu.pipeline_mode<synchronous>, transform_indices = @transform_1, window_bounds = array<i64: 128, 3072>}, {pipeline_mode = #tpu.pipeline_mode<synchronous>, transform_indices = @transform_2, window_bounds = array<i64: 1, 3072>}, {transform_indices = @transform_3, window_bounds = array<i64: 3072, 1024>}, {transform_indices = @transform_4, window_bounds = array<i64: 1, 1024>}, {transform_indices = @transform_5, window_bounds = array<i64: 1024, 128>}, {transform_indices = @transform_6, window_bounds = array<i64: 1, 1, 128>}]} {
    %c0 = arith.constant 0 : index
    %c0_0 = arith.constant 0 : index
    %0 = vector.load %arg1[%c0, %c0_0] : memref<1x128xbf16, #tpu.memory_space<vmem>>, vector<1x128xbf16>
    %c0_1 = arith.constant 0 : index
    %c0_2 = arith.constant 0 : index
    %1 = vector.load %arg2[%c0_1, %c0_2] : memref<128x3072xbf16, #tpu.memory_space<vmem>>, vector<128x3072xbf16>
    %cst = arith.constant dense<0.000000e+00> : vector<1x3072xf32>
    %2 = tpu.matmul %0, %1, %cst {dimension_numbers = #tpu.dot_dimension_numbers<[1], [0], [0], [1], [0, 0, 1, 1], [], []>} : vector<1x128xbf16>, vector<128x3072xbf16>, vector<1x3072xf32> -> vector<1x3072xf32>
    %c0_3 = arith.constant 0 : index
    %c0_4 = arith.constant 0 : index
    %3 = vector.load %arg3[%c0_3, %c0_4] : memref<1x3072xf32, #tpu.memory_space<vmem>>, vector<1x3072xf32>
    %4 = arith.addf %2, %3 : vector<1x3072xf32>
    %cst_5 = arith.constant 0.000000e+00 : f32
    %5 = vector.broadcast %cst_5 : f32 to vector<1x3072xf32>
    %6 = arith.maximumf %4, %5 : vector<1x3072xf32>
    %7 = arith.truncf %6 : vector<1x3072xf32> to vector<1x3072xbf16>
    %c0_6 = arith.constant 0 : index
    %c0_7 = arith.constant 0 : index
    %8 = vector.load %arg4[%c0_6, %c0_7] : memref<3072x1024xbf16, #tpu.memory_space<vmem>>, vector<3072x1024xbf16>
    %cst_8 = arith.constant dense<0.000000e+00> : vector<1x1024xf32>
    %9 = tpu.matmul %7, %8, %cst_8 {dimension_numbers = #tpu.dot_dimension_numbers<[1], [0], [0], [1], [0, 0, 1, 1], [], []>} : vector<1x3072xbf16>, vector<3072x1024xbf16>, vector<1x1024xf32> -> vector<1x1024xf32>
    %c0_9 = arith.constant 0 : index
    %c0_10 = arith.constant 0 : index
    %10 = vector.load %arg5[%c0_9, %c0_10] : memref<1x1024xf32, #tpu.memory_space<vmem>>, vector<1x1024xf32>
    %11 = arith.addf %9, %10 : vector<1x1024xf32>
    %cst_11 = arith.constant 0.000000e+00 : f32
    %12 = vector.broadcast %cst_11 : f32 to vector<1x1024xf32>
    %13 = arith.maximumf %11, %12 : vector<1x1024xf32>
    %14 = arith.truncf %13 : vector<1x1024xf32> to vector<1x1024xbf16>
    %c0_12 = arith.constant 0 : index
    %c0_13 = arith.constant 0 : index
    %15 = vector.load %arg6[%c0_12, %c0_13] : memref<1024x128xbf16, #tpu.memory_space<vmem>>, vector<1024x128xbf16>
    %cst_14 = arith.constant dense<0.000000e+00> : vector<1x128xf32>
    %16 = tpu.matmul %14, %15, %cst_14 {dimension_numbers = #tpu.dot_dimension_numbers<[1], [0], [0], [1], [0, 0, 1, 1], [], []>} : vector<1x1024xbf16>, vector<1024x128xbf16>, vector<1x128xf32> -> vector<1x128xf32>
    %17 = vector.shape_cast %16 : vector<1x128xf32> to vector<1x1x128xf32>
    %c0_15 = arith.constant 0 : index
    %c0_16 = arith.constant 0 : index
    %c0_17 = arith.constant 0 : index
    %18 = vector.load %arg7[%c0_15, %c0_16, %c0_17] : memref<1x1x128xf32, #tpu.memory_space<vmem>>, vector<1x1x128xf32>
    tpu.vector_store %arg7[%c0_15, %c0_16, %c0_17], %17 {strides = array<i32>} : memref<1x1x128xf32, #tpu.memory_space<vmem>>, vector<1x1x128xf32>,
    return
  }
  func.func @transform_0(%arg0: i32) -> (i32, i32) {
    %c0_i32 = arith.constant 0 : i32
    %c0_i32_0 = arith.constant 0 : i32
    %c0_i32_1 = arith.constant 0 : i32
    return %c0_i32, %c0_i32_0 : i32, i32
  }
  func.func @transform_1(%arg0: i32) -> (i32, i32) {
    %c0_i32 = arith.constant 0 : i32
    %c0_i32_0 = arith.constant 0 : i32
    %c0_i32_1 = arith.constant 0 : i32
    return %c0_i32, %c0_i32_0 : i32, i32
  }
  func.func @transform_2(%arg0: i32) -> (i32, i32) {
    %c0_i32 = arith.constant 0 : i32
    %c0_i32_0 = arith.constant 0 : i32
    %c0_i32_1 = arith.constant 0 : i32
    return %c0_i32, %c0_i32_0 : i32, i32
  }
  func.func @transform_3(%arg0: i32) -> (i32, i32) {
    %c0_i32 = arith.constant 0 : i32
    %c0_i32_0 = arith.constant 0 : i32
    return %c0_i32, %arg0 : i32, i32
  }
  func.func @transform_4(%arg0: i32) -> (i32, i32) {
    %c0_i32 = arith.constant 0 : i32
    %c0_i32_0 = arith.constant 0 : i32
    return %c0_i32, %arg0 : i32, i32
  }
  func.func @transform_5(%arg0: i32) -> (i32, i32) {
    %c0_i32 = arith.constant 0 : i32
    %c0_i32_0 = arith.constant 0 : i32
    return %arg0, %c0_i32 : i32, i32
  }
  func.func @transform_6(%arg0: i32) -> (i32, i32, i32) {
    %c0_i32 = arith.constant 0 : i32
    %c0_i32_0 = arith.constant 0 : i32
    %c0_i32_1 = arith.constant 0 : i32
    return %arg0, %c0_i32, %c0_i32_0 : i32, i32, i32
  }
}

</mosaic_0001>

<bundles_post_ra>
// kernel: forward_model.1
= control target key start
LH: loop header
LB: loop body
LE: loop exit
PB: predicated region body
PF: predicated region fallthrough
CT: control target
= control target key end

     0   :  { %11 = vsyncpa [#allocation3], 0  ;;  %s18896_s0 = inlined_call_operand.vmem [shape: bf16[1,128], index: 0, kind: input, shape index: {}]   ;;  %s18897_s1 = inlined_call_operand.hbm [shape: bf16[128,3072], index: 1, kind: input, shape index: {}]   ;;  %s18898_s2 = inlined_call_operand.hbm [shape: f32[1,3072], index: 2, kind: input, shape index: {}]   ;;  %s18899_s3 = inlined_call_operand.hbm [shape: bf16[3072,2048], index: 3, kind: input, shape index: {}]   ;;  %s18900_s4 = inlined_call_operand.hbm [shape: f32[1,2048], index: 4, kind: input, shape index: {}]   ;;  %s18901_s5 = inlined_call_operand.hbm [shape: bf16[2048,128], index: 5, kind: input, shape index: {}]   ;;  %s18902_s6 = inlined_call_operand.vmem [shape: f32[2,1,128], index: 6, kind: output, shape index: {}]  }
   0x1   :  { %12 = vsyncpa [#allocation5], 0  ;;  %s16693_s21 = smov 0   ;;  %s16695_s22 = smov 0  }
   0x2   :  { %s16697_s23 = smov 0   ;;  %s16699_s24 = smov 0  }
   0x3 LB: > { %18914 = sst [smem:[#allocation12_spill]] %s16639_s23  ;;  %s16712_s25 = sadd.s32 4294967295, %s16643_s24   ;;  %s16643_s24 = sphi %s16699_s24, %s18940_s24   ;;  %s16639_s23 = sphi %s16697_s23, %s18937_s23   ;;  %s16635_s22 = sphi %s16695_s22, %s18939_s22   ;;  %s16631_s21 = sphi %s16693_s21, %s18938_s21  }
   0x4   : > { %s16715_s26 = sadd.s32 1, %s16643_s24   ;;  %s88_s28 = sadd.s32 1, %s16639_s23 }
   0x5   : > { %s85_s27 = ssub.s32 %s16643_s24, %s16715_s26  ;;  %p95_p1 = scmp.ne.s32.totalorder %s16639_s23, %s16635_s22 }
   0x6   : > { %p86_p0 = scmp.eq.s32.totalorder %s85_s27, 0  ;;  %p96_p2 = scmp.eq.s32.totalorder %s16643_s24, 0 }
   0x7   : > { %p101_p3 = scmp.ne.s32.totalorder %s16635_s22, %s16631_s21  ;;  %p18903_p5 = scmp.eq.s32.totalorder %s16712_s25, 0 }
   0x8   : > { %s16725_s29 = scalar_select %p86_p0, %s16639_s23, %s88_s28  }
   0x9   : > { %p16727_p4 = por %p96_p2, %p95_p1  ;;  %p14222_p6 = scmp.ge.s32.totalorder %s16643_s24, 1 }
   0xa   : > { %18915 = sst [smem:[#allocation13_spill]] %s16725_s29  ;;  %p190_p7 = scmp.lt.s32.totalorder %s16643_s24, 3 }
   0xb   : > { %p16736_p8 = por %p18903_p5, %p101_p3  ;;  %s16645_s9 = smov [#allocation2]  }
   0xc   : > { %p16740_p9 = pnand %p14222_p6, %p190_p7  ;;  %s205_s10 = sshll.u32 %s16645_s9, 4  ;;  %s206_s10 = int_to_ptr.vmem [resolvable:$true] %s205_s10 }
   0xd   : > { %s18917_s7 = scalar_select %p16736_p8, 1, 0 }
   0xe   : > { %s18918_s8 = scalar_select %p16740_p9, 1, 0 }
   0xf   : > { %p16324_p10 = pneg %p16740_p9  ;;  %p16343_p12 = scmp.lt.s32.totalorder %s16643_s24, 2 }
  0x10   : > { %s16755_s13 = sand.u32 1, %s16639_s23   ;;  %s16455_s17 = scalar_lea.hbm %s18897_s1, 24576 }
  0x11   : > { %p16748_p11 = pnand %p16324_p10, %p18903_p5  ;;  %p16759_p13 = pnand %p16343_p12, %p16727_p4 }
  0x12   : > { %p16456_p0 = scmp.ne.s32.totalorder %s18897_s1, %s16455_s17  ;;  %p16462_p4 = scmp.lt.u32.totalorder %s16455_s17, %s18897_s1 }
  0x13   : > { %s18919_s11 = scalar_select %p16748_p11, 1, 0 }
  0x14   : > { %s18920_s14 = scalar_select %p16759_p13, 1, 0 }
  0x15   : > { %p18908_p1 = pneg %p16748_p11 }
  0x17   : > { %p16458_p2 = pnand %p18908_p1, %p16456_p0 }
  0x19   : > { %p16459_p3 = pneg %p16458_p2 }
  0x1b   : > { %p16464_p6 = pnand %p16462_p4, %p16459_p3 }
  0x1d   : > { %16467 = shalt.err (!%p16464_p6)
}
  0x1e   : > { %s16468_s27 = scalar_lea.vmem %s206_s10, 24576  ;;  %p16476_p5 = scmp.lt.s32.totalorder %s206_s10, %s206_s10 }
  0x1f   : > { %p16469_p7 = scmp.ne.s32.totalorder %s206_s10, %s16468_s27  ;;  %p16477_p8 = scmp.lt.s32.totalorder %s16468_s27, %s16468_s27 }
  0x21   : > { %p16471_p10 = pnand %p16469_p7, %p18908_p1  ;;  %p16478_p9 = por %p16477_p8, %p16476_p5 }
  0x23   : > { %p16472_p12 = pneg %p16471_p10 }
  0x25   : > { %p16479_p13 = pnand %p16478_p9, %p16472_p12 }
  0x27   : > { %16482 = shalt.err (!%p16479_p13)
}
  0x28   : > { %s16646_s28 = smov 1536   ;;  %s16647_s30 = smov 96  }
  0x29   : > { %16327 = dma.hbm_to_vmem [thread:$0]  (!%p16748_p11), %s18897_s1, 24576, %s206_s10, [#allocation3], %s16646_s28, %s16646_s28, %s16647_s30  }
  0x2a   : > { %s16308_s16 = smul.u32 12288, %s16755_s13  ;;  %s16033_s17 = sshll.u32 %s16643_s24, 9 }
  0x2b   : > { %s16790_s20 = scalar_lea.hbm %s18899_s3, %s16033_s17  ;;  %s14228_s12 = sshll.u32 %s16755_s13, 3 }
  0x2c   : > { %s234_s21 = scalar_lea.vmem [#allocation6], %s16308_s16  ;;  %s18921_s29 = sand.u32 1, %s16643_s24  }
  0x2d   : > { %s241_s27 = sshll.u32 %s234_s21, 4  ;;  %s16797_s23 = scalar_lea.sflag [#allocation3], %s18921_s29  ;;  %s16792_s27 = int_to_ptr.vmem [resolvable:$true] %s241_s27 }
  0x2e   : > { %s16483_s10 = scalar_lea.hbm %s16790_s20, 196608  ;;  %p18922_p8 = scmp.ne.s32.totalorder %s18920_s14, 0 }
  0x2f   : > { %p16484_p5 = scmp.ne.s32.totalorder %s16790_s20, %s16483_s10  ;;  %s16488_s15 = scalar_lea.hbm %s18899_s3, 393216 }
  0x30   : > { %p16803_p9 = pneg %p18922_p8  ;;  %p16489_p2 = scmp.lt.u32.totalorder %s16790_s20, %s18899_s3 }
  0x31   : > { %p16490_p3 = scmp.lt.u32.totalorder %s16488_s15, %s16483_s10  ;;  %p16492_p6 = scmp.lt.u32.totalorder %s16483_s10, %s16790_s20 }
  0x32   : > { %s18923_s28 = scalar_select %p16803_p9, 1, 0 }
  0x33   : > { %p16486_p13 = pnand %p16803_p9, %p16484_p5  ;;  %p16491_p4 = por %p16490_p3, %p16489_p2 }
  0x35   : > { %p16487_p0 = pneg %p16486_p13  ;;  %p16493_p7 = por %p16492_p6, %p16491_p4 }
  0x37   : > { %p16494_p10 = pnand %p16493_p7, %p16487_p0 }
  0x39   : > { %16497 = shalt.err (!%p16494_p10)
}
  0x3a   : > { %s16498_s29 = scalar_lea.vmem %s16792_s27, 196608  ;;  %s16648_s18 = smov [#allocation6]  }
  0x3b   : > { %p16499_p12 = scmp.ne.s32.totalorder %s16792_s27, %s16498_s29  ;;  %s16503_s19 = sshll.u32 %s16648_s18, 4  ;;  %s16504_s19 = int_to_ptr.vmem [resolvable:$false] %s16503_s19 }
  0x3c   : > { %s16505_s21 = scalar_lea.vmem %s16504_s19, 393216  ;;  %p16506_p1 = scmp.lt.s32.totalorder %s16792_s27, %s16504_s19 }
  0x3d   : > { %p16501_p5 = pnand %p16499_p12, %p16803_p9  ;;  %p16507_p11 = scmp.lt.s32.totalorder %s16505_s21, %s16498_s29 }
  0x3f   : > { %p16502_p13 = pneg %p16501_p5  ;;  %p16508_p2 = por %p16507_p11, %p16506_p1 }
  0x41   : > { %p16509_p3 = pnand %p16508_p2, %p16502_p13 }
  0x43   : > { %16512 = shalt.err (!%p16509_p3)
}
  0x44   : > { %s16649_s10 = smov 1024   ;;  %s16650_s30 = smov 512  }
  0x45   : > { %s16651_s9 = smov 32   ;;  %s16034_s15 = sshll.u32 %s16643_s24, 7 }
  0x46   : > { %16334 = dma.hbm_to_vmem [thread:$0]  (!%p18922_p8), %s16790_s20, 196608, %s16792_s27, %s16797_s23, %s16649_s10, %s16650_s30, %s16651_s9  }
  0x47   : > { %s16831_s29 = scalar_lea.hbm %s18900_s4, %s16034_s15  ;;  %s255_s18 = scalar_lea.vmem [#allocation7], %s14228_s12 }
  0x48   : > { %s263_s19 = sshll.u32 %s255_s18, 4  ;;  %s16513_s21 = scalar_lea.hbm %s16831_s29, 128  ;;  %s264_s19 = int_to_ptr.vmem [resolvable:$true] %s263_s19 }
  0x49   : > { %p16514_p11 = scmp.ne.s32.totalorder %s16831_s29, %s16513_s21  ;;  %s16518_s10 = scalar_lea.hbm %s18900_s4, 256 }
  0x4a   : > { %p16519_p4 = scmp.lt.u32.totalorder %s16831_s29, %s18900_s4  ;;  %p16520_p6 = scmp.lt.u32.totalorder %s16518_s10, %s16513_s21 }
  0x4b   : > { %p16516_p1 = pnand %p16514_p11, %p16803_p9  ;;  %p16522_p10 = scmp.lt.u32.totalorder %s16513_s21, %s16831_s29 }
  0x4c   : > { %p16521_p7 = por %p16520_p6, %p16519_p4 }
  0x4d   : > { %p16517_p0 = pneg %p16516_p1 }
  0x4e   : > { %p16523_p12 = por %p16522_p10, %p16521_p7 }
  0x50   : > { %p16524_p5 = pnand %p16523_p12, %p16517_p0 }
  0x52   : > { %16527 = shalt.err (!%p16524_p5)
}
  0x53   : > { %s16528_s12 = scalar_lea.vmem %s264_s19, 128  ;;  %s16652_s15 = smov [#allocation7]  }
  0x54   : > { %p16529_p13 = scmp.ne.s32.totalorder %s264_s19, %s16528_s12  ;;  %s16533_s16 = sshll.u32 %s16652_s15, 4  ;;  %s16534_s16 = int_to_ptr.vmem [resolvable:$false] %s16533_s16 }
  0x55   : > { %s16535_s17 = scalar_lea.vmem %s16534_s16, 256  ;;  %p16536_p11 = scmp.lt.s32.totalorder %s264_s19, %s16534_s16 }
  0x56   : > { %p16531_p2 = pnand %p16529_p13, %p16803_p9  ;;  %p16537_p1 = scmp.lt.s32.totalorder %s16535_s17, %s16528_s12 }
  0x58   : > { %p16532_p3 = pneg %p16531_p2  ;;  %p16538_p8 = por %p16537_p1, %p16536_p11 }
  0x5a   : > { %p16539_p4 = pnand %p16538_p8, %p16532_p3 }
  0x5c   : > { %16542 = shalt.err (!%p16539_p4)
}
  0x5d   : > { %p18924_p6 = scmp.ne.s32.totalorder %s18920_s14, 0  ;;  %s16653_s18 = smov [#allocation4]  }
  0x5e   : > { %s219_s21 = sshll.u32 %s16653_s18, 4  ;;  %s14231_s20 = sshll.u32 %s16755_s13, 9  ;;  %s220_s21 = int_to_ptr.vmem [resolvable:$true] %s219_s21 }
  0x5f   : > { %16337 = dma.hbm_to_vmem [thread:$0]  (!%p18924_p6), %s16831_s29, 128, %s264_s19, %s16797_s23  }
  0x60   : > { %s16543_s30 = scalar_lea.hbm %s18898_s2, 384  ;;  %p18925_p0 = scmp.ne.s32.totalorder %s18919_s11, 0 }
  0x61   : > { %p16544_p8 = scmp.ne.s32.totalorder %s18898_s2, %s16543_s30  ;;  %p16550_p5 = scmp.lt.u32.totalorder %s16543_s30, %s18898_s2 }
  0x62   : > { %p18926_p7 = pneg %p18925_p0 }
  0x64   : > { %p16546_p10 = pnand %p16544_p8, %p18926_p7 }
  0x66   : > { %p16547_p12 = pneg %p16546_p10 }
  0x68   : > { %p16552_p13 = pnand %p16550_p5, %p16547_p12 }
  0x6a   : > { %16555 = shalt.err (!%p16552_p13)
}
  0x6b   : > { %s16556_s13 = scalar_lea.vmem %s220_s21, 384  ;;  %p18927_p3 = pmov %p18926_p7 }
  0x6c   : > { %p16557_p2 = scmp.ne.s32.totalorder %s220_s21, %s16556_s13  ;;  %p16564_p4 = scmp.lt.s32.totalorder %s220_s21, %s220_s21 }
  0x6d   : > { %p16565_p6 = scmp.lt.s32.totalorder %s16556_s13, %s16556_s13 }
  0x6e   : > { %p16559_p11 = pnand %p16557_p2, %p18927_p3 }
  0x6f   : > { %p16566_p9 = por %p16565_p6, %p16564_p4 }
  0x70   : > { %p16560_p1 = pneg %p16559_p11 }
  0x72   : > { %p16567_p7 = pnand %p16566_p9, %p16560_p1 }
  0x74   : > { %16570 = shalt.err (!%p16567_p7)
}
  0x75   : > { %16330 = dma.hbm_to_vmem [thread:$0]  (!%p18925_p0), %s18898_s2, 384, %s220_s21, [#allocation5]  }
  0x76   : > { %s16035_s17 = sshll.u32 %s16643_s24, 13  ;;  %s274_s18 = scalar_lea.vmem [#allocation8], %s14231_s20 }
  0x77   : > { %s281_s27 = sshll.u32 %s274_s18, 4  ;;  %s16878_s9 = scalar_lea.hbm %s18901_s5, %s16035_s17  ;;  %s16880_s27 = int_to_ptr.vmem [resolvable:$true] %s281_s27 }
  0x78   : > { %s16571_s11 = scalar_lea.hbm %s16878_s9, 8192  ;;  %p18928_p6 = scmp.ne.s32.totalorder %s18923_s28, 0 }
  0x79   : > { %p16572_p9 = scmp.ne.s32.totalorder %s16878_s9, %s16571_s11  ;;  %s16576_s20 = scalar_lea.hbm %s18901_s5, 16384 }
  0x7a   : > { %p16577_p0 = scmp.lt.u32.totalorder %s16878_s9, %s18901_s5  ;;  %p16578_p12 = scmp.lt.u32.totalorder %s16576_s20, %s16571_s11 }
  0x7b   : > { %p16574_p8 = pnand %p16572_p9, %p18928_p6  ;;  %p16580_p13 = scmp.lt.u32.totalorder %s16571_s11, %s16878_s9 }
  0x7c   : > { %p16579_p5 = por %p16578_p12, %p16577_p0 }
  0x7d   : > { %p16575_p10 = pneg %p16574_p8 }
  0x7e   : > { %p16581_p2 = por %p16580_p13, %p16579_p5 }
  0x80   : > { %p16582_p3 = pnand %p16581_p2, %p16575_p10 }
  0x82   : > { %16585 = shalt.err (!%p16582_p3)
}
  0x83   : > { %s16586_s16 = scalar_lea.vmem %s16880_s27, 8192  ;;  %s16654_s13 = smov [#allocation8]  }
  0x84   : > { %p16587_p11 = scmp.ne.s32.totalorder %s16880_s27, %s16586_s16  ;;  %s16591_s29 = sshll.u32 %s16654_s13, 4  ;;  %s16592_s29 = int_to_ptr.vmem [resolvable:$false] %s16591_s29 }
  0x85   : > { %s16593_s19 = scalar_lea.vmem %s16592_s29, 16384  ;;  %p16594_p7 = scmp.lt.s32.totalorder %s16880_s27, %s16592_s29 }
  0x86   : > { %p16589_p1 = pnand %p16587_p11, %p18928_p6  ;;  %p16595_p9 = scmp.lt.s32.totalorder %s16593_s19, %s16586_s16 }
  0x88   : > { %p16590_p4 = pneg %p16589_p1  ;;  %p16596_p8 = por %p16595_p9, %p16594_p7 }
  0x8a   : > { %p16597_p0 = pnand %p16596_p8, %p16590_p4 }
  0x8c   : > { %16600 = shalt.err (!%p16597_p0)
}
  0x8d   : > { %s16655_s17 = smov 64   ;;  %s16656_s18 = smov 4  }
  0x8e   : > { %p18929_p10 = scmp.ne.s32.totalorder %s18920_s14, 0  ;;  %p18930_p6 = scmp.ne.s32.totalorder %s18918_s8, 0 }
  0x8f   : > { %p18931_p12 = scmp.eq.s32.totalorder (!%p18930_p6), %s16712_s25, 0 }
  0x90   : > { %16340 = dma.hbm_to_vmem [thread:$0]  (!%p18929_p10), %s16878_s9, 8192, %s16880_s27, %s16797_s23, %s16655_s17, %s16655_s17, %s16656_s18  }
  0x91   : > { %293 = sbr.rel (%p18930_p6) target bundleno = 2334 (0x91e), region = 44 }
  0x98   : > { %16618 = dma.done.wait (%p18931_p12), [#allocation3], 24576   ;;  %p18932_p5 = pmov %p18931_p12 }
  0x9a   : > { %16620 = vsyncadd (%p18932_p5), [#allocation3], 4294942720  ;;  %p18933_p13 = pmov %p18932_p5 }
  0x9b   : > { %p18934_p2 = pmov %p18932_p5 }
  0x9c   : > { %16622 = dma.done.wait (%p18933_p13), [#allocation5], 384  }
  0x9d   : > { %16624 = vsyncadd (%p18934_p2), [#allocation5], 4294966912  ;;  %s303_s14 = sand.u32 1, %s16712_s25   ;;  %s16916_s23 = sand.u32 1, %s16635_s22  }
  0x9e   : > { %s16309_s8 = smul.u32 12288, %s16916_s23  ;;  %s304_s28 = scalar_lea.sflag [#allocation3], %s303_s14 }
  0x9f   : > { %p18935_p3 = scmp.ne.s32.totalorder %s18917_s7, 0 }
  0xa0   : > { %s16919_s27 = scalar_lea.vmem [#allocation6], %s16309_s8 }
  0xa1   : > { %16626 = dma.done.wait (%p18935_p3), %s304_s28, 204928  }
  0xa2   : > { %16628 = vsyncadd (%p18935_p3), %s304_s28, 4294762368  ;;  %v16657_v0 = vmov 0   ;;  %v370_v1 = vld [vmem:[#allocation2] sm:$0xff]  ;;  %v371_v3 = vld [vmem:[#allocation2 + $0x8] sm:$0xff]  ;;  %s14238_s11 = sshll.u32 %s16916_s23, 9  ;;  %s14237_s24 = sshll.u32 %s16916_s23, 3 }
  0xa3   : > { %1680 = vmatprep.mubr.bf16.mxu0 %v16657_v0  ;;  %1721 = vmatprep.mubr.bf16.mxu1 %v16657_v0  ;;  %v382_v2 = vld [vmem:[#allocation2 + $0x60] sm:$0xff]  ;;  %v383_v5 = vld [vmem:[#allocation2 + $0x68] sm:$0xff]  ;;  %v372_v63 = vld [vmem:[#allocation2 + $0x10] sm:$0xff]  ;;  %s18664_s21 = scalar_lea.vmem [#allocation8], %s14238_s11  ;;  %s316_s20 = scalar_lea.vmem [#allocation7], %s14237_s24 }
  0xa4   : > { %v14240_v4 = vcombine.high %v370_v1, %v382_v2  ;;  %v14239_v6 = vcombine.low %v370_v1, %v382_v2  ;;  %v394_v7 = vld [vmem:[#allocation2 + $0xc0] sm:$0xff]  ;;  %v14242_v9 = vcombine.high %v371_v3, %v383_v5  ;;  %v14241_v10 = vcombine.low %v371_v3, %v383_v5  ;;  %v395_v12 = vld [vmem:[#allocation2 + $0xc8] sm:$0xff]  ;;  %v384_v1 = vld [vmem:[#allocation2 + $0x70] sm:$0xff]  ;;  %p365_p11 = scmp.lt.s32.totalorder %s16712_s25, 1 }
  0xa5   : > { %v406_v8 = vld [vmem:[#allocation2 + $0x120] sm:$0xff]  ;;  %v407_v13 = vld [vmem:[#allocation2 + $0x128] sm:$0xff]  ;;  %v373_v2 = vld [vmem:[#allocation2 + $0x18] sm:$0xff] }
  0xa6   : > { %v14264_v11 = vcombine.high %v394_v7, %v406_v8  ;;  %v418_v14 = vld [vmem:[#allocation2 + $0x180] sm:$0xff]  ;;  %1648 = vmatprep.subr.bf16.mxu0 %v14240_v4  ;;  %v14266_v15 = vcombine.high %v395_v12, %v407_v13  ;;  %v419_v17 = vld [vmem:[#allocation2 + $0x188] sm:$0xff]  ;;  %1689 = vmatprep.subr.bf16.mxu1 %v14242_v9  ;;  %v14263_v19 = vcombine.low %v394_v7, %v406_v8  ;;  %v385_v3 = vld [vmem:[#allocation2 + $0x78] sm:$0xff]  ;;  %s18942_s25 = smov (!%p365_p11, %s16712_s25), 1 }
  0xa7   : > { %v430_v16 = vld [vmem:[#allocation2 + $0x1e0] sm:$0xff]  ;;  %v431_v18 = vld [vmem:[#allocation2 + $0x1e8] sm:$0xff]  ;;  %1649 = vmatpush1.bf16.msra.mxu0 %v14239_v6  ;;  %1690 = vmatpush1.bf16.msra.mxu1 %v14241_v10  ;;  %v14265_v20 = vcombine.low %v395_v12, %v407_v13  ;;  %v14244_v6 = vcombine.high %v372_v63, %v384_v1  ;;  %v14246_v7 = vcombine.high %v373_v2, %v385_v3  ;;  %v396_v8 = vld [vmem:[#allocation2 + $0xd0] sm:$0xff]  ;;  %s367_s16 = scalar_lea.vmem %s18902_s6, %s18942_s25 }
  0xa8   : > { %1650 = vmatprep.subr.bf16.mxu0 %v14264_v11  ;;  %v14288_v21 = vcombine.high %v418_v14, %v430_v16  ;;  %1691 = vmatprep.subr.bf16.mxu1 %v14266_v15  ;;  %v14290_v22 = vcombine.high %v419_v17, %v431_v18  ;;  %v442_v23 = vld [vmem:[#allocation2 + $0x240] sm:$0xff]  ;;  %v443_v25 = vld [vmem:[#allocation2 + $0x248] sm:$0xff]  ;;  %v14287_v27 = vcombine.low %v418_v14, %v430_v16  ;;  %v408_v9 = vld [vmem:[#allocation2 + $0x130] sm:$0xff] }
  0xa9   : > { %v454_v24 = vld [vmem:[#allocation2 + $0x2a0] sm:$0xff]  ;;  %v455_v26 = vld [vmem:[#allocation2 + $0x2a8] sm:$0xff]  ;;  %v14289_v28 = vcombine.low %v419_v17, %v431_v18  ;;  %v397_v10 = vld [vmem:[#allocation2 + $0xd8] sm:$0xff]  ;;  %v14243_v13 = vcombine.low %v372_v63, %v384_v1  ;;  %v14245_v14 = vcombine.low %v373_v2, %v385_v3  ;;  %v14268_v15 = vcombine.high %v396_v8, %v408_v9 }
  0xaa   : > { %v14312_v29 = vcombine.high %v442_v23, %v454_v24  ;;  %v14314_v30 = vcombine.high %v443_v25, %v455_v26  ;;  %v466_v31 = vld [vmem:[#allocation2 + $0x300] sm:$0xff]  ;;  %v467_v33 = vld [vmem:[#allocation2 + $0x308] sm:$0xff]  ;;  %v14311_v35 = vcombine.low %v442_v23, %v454_v24  ;;  %v14313_v36 = vcombine.low %v443_v25, %v455_v26  ;;  %v409_v11 = vld [vmem:[#allocation2 + $0x138] sm:$0xff] }
  0xab   : > { %1651 = vmatpush1.bf16.msra.mxu0 %v14263_v19  ;;  %1692 = vmatpush1.bf16.msra.mxu1 %v14265_v20  ;;  %v478_v32 = vld [vmem:[#allocation2 + $0x360] sm:$0xff]  ;;  %v479_v34 = vld [vmem:[#allocation2 + $0x368] sm:$0xff]  ;;  %v14270_v16 = vcombine.high %v397_v10, %v409_v11  ;;  %v420_v17 = vld [vmem:[#allocation2 + $0x190] sm:$0xff] }
  0xac   : > { %1652 = vmatprep.subr.bf16.mxu0 %v14288_v21  ;;  %1693 = vmatprep.subr.bf16.mxu1 %v14290_v22  ;;  %v14336_v37 = vcombine.high %v466_v31, %v478_v32  ;;  %v14338_v38 = vcombine.high %v467_v33, %v479_v34  ;;  %v490_v39 = vld [vmem:[#allocation2 + $0x3c0] sm:$0xff]  ;;  %v491_v41 = vld [vmem:[#allocation2 + $0x3c8] sm:$0xff]  ;;  %v14335_v43 = vcombine.low %v466_v31, %v478_v32  ;;  %v432_v18 = vld [vmem:[#allocation2 + $0x1f0] sm:$0xff] }
  0xad   : > { %v502_v40 = vld [vmem:[#allocation2 + $0x420] sm:$0xff]  ;;  %v503_v42 = vld [vmem:[#allocation2 + $0x428] sm:$0xff]  ;;  %v14337_v44 = vcombine.low %v467_v33, %v479_v34  ;;  %v421_v19 = vld [vmem:[#allocation2 + $0x198] sm:$0xff]  ;;  %v14267_v21 = vcombine.low %v396_v8, %v408_v9  ;;  %v14269_v22 = vcombine.low %v397_v10, %v409_v11  ;;  %v14292_v23 = vcombine.high %v420_v17, %v432_v18 }
  0xae   : > { %v14360_v45 = vcombine.high %v490_v39, %v502_v40  ;;  %v14362_v46 = vcombine.high %v491_v41, %v503_v42  ;;  %v514_v47 = vld [vmem:[#allocation2 + $0x480] sm:$0xff]  ;;  %v515_v49 = vld [vmem:[#allocation2 + $0x488] sm:$0xff]  ;;  %v14359_v51 = vcombine.low %v490_v39, %v502_v40  ;;  %v14361_v52 = vcombine.low %v491_v41, %v503_v42  ;;  %v433_v20 = vld [vmem:[#allocation2 + $0x1f8] sm:$0xff] }
  0xaf   : > { %1653 = vmatpush1.bf16.msra.mxu0 %v14287_v27  ;;  %1694 = vmatpush1.bf16.msra.mxu1 %v14289_v28  ;;  %v526_v48 = vld [vmem:[#allocation2 + $0x4e0] sm:$0xff]  ;;  %v527_v50 = vld [vmem:[#allocation2 + $0x4e8] sm:$0xff]  ;;  %v14294_v24 = vcombine.high %v421_v19, %v433_v20  ;;  %v444_v25 = vld [vmem:[#allocation2 + $0x250] sm:$0xff] }
  0xb0   : > { %1654 = vmatprep.subr.bf16.mxu0 %v14312_v29  ;;  %1695 = vmatprep.subr.bf16.mxu1 %v14314_v30  ;;  %v14384_v53 = vcombine.high %v514_v47, %v526_v48  ;;  %v14386_v54 = vcombine.high %v515_v49, %v527_v50  ;;  %v538_v55 = vld [vmem:[#allocation2 + $0x540] sm:$0xff]  ;;  %v539_v57 = vld [vmem:[#allocation2 + $0x548] sm:$0xff]  ;;  %v14383_v59 = vcombine.low %v514_v47, %v526_v48  ;;  %v456_v26 = vld [vmem:[#allocation2 + $0x2b0] sm:$0xff] }
  0xb1   : > { %v550_v56 = vld [vmem:[#allocation2 + $0x5a0] sm:$0xff]  ;;  %v551_v58 = vld [vmem:[#allocation2 + $0x5a8] sm:$0xff]  ;;  %v14385_v60 = vcombine.low %v515_v49, %v527_v50  ;;  %v445_v27 = vld [vmem:[#allocation2 + $0x258] sm:$0xff]  ;;  %v14291_v29 = vcombine.low %v420_v17, %v432_v18  ;;  %v14293_v30 = vcombine.low %v421_v19, %v433_v20  ;;  %v14316_v31 = vcombine.high %v444_v25, %v456_v26 }
  0xb2   : > { %v14408_v61 = vcombine.high %v538_v55, %v550_v56  ;;  %v14410_v62 = vcombine.high %v539_v57, %v551_v58  ;;  %v14407_v4 = vcombine.low %v538_v55, %v550_v56  ;;  %v14409_v5 = vcombine.low %v539_v57, %v551_v58  ;;  %v16930_v12 = vld [vmem:[%s18896_s0] sm:$0x1]  ;;  %v457_v28 = vld [vmem:[#allocation2 + $0x2b8] sm:$0xff]  ;;  %v468_v33 = vld [vmem:[#allocation2 + $0x310] sm:$0xff] }
  0xb3   : > { %1655 = vmatpush1.bf16.msra.mxu0 %v14311_v35  ;;  %1696 = vmatpush1.bf16.msra.mxu1 %v14313_v36  ;;  %v14318_v32 = vcombine.high %v445_v27, %v457_v28  ;;  %v480_v34 = vld [vmem:[#allocation2 + $0x370] sm:$0xff]  ;;  %v469_v35 = vld [vmem:[#allocation2 + $0x318] sm:$0xff]  ;;  %v374_v2 = vld [vmem:[#allocation2 + $0x20] sm:$0xff] }
  0xb4   : > { %1656 = vmatprep.subr.bf16.mxu0 %v14336_v37  ;;  %1697 = vmatprep.subr.bf16.mxu1 %v14338_v38  ;;  %v481_v36 = vld [vmem:[#allocation2 + $0x378] sm:$0xff]  ;;  %v14315_v37 = vcombine.low %v444_v25, %v456_v26  ;;  %v14317_v38 = vcombine.low %v445_v27, %v457_v28  ;;  %v14340_v39 = vcombine.high %v468_v33, %v480_v34  ;;  %v492_v41 = vld [vmem:[#allocation2 + $0x3d0] sm:$0xff]  ;;  %v386_v3 = vld [vmem:[#allocation2 + $0x80] sm:$0xff] }
  0xb5   : > { %v14342_v40 = vcombine.high %v469_v35, %v481_v36  ;;  %v504_v42 = vld [vmem:[#allocation2 + $0x430] sm:$0xff]  ;;  %v14248_v8 = vcombine.high %v374_v2, %v386_v3  ;;  %v398_v10 = vld [vmem:[#allocation2 + $0xe0] sm:$0xff] }
  0xb6   : > { %v14364_v47 = vcombine.high %v492_v41, %v504_v42  ;;  %v516_v49 = vld [vmem:[#allocation2 + $0x490] sm:$0xff]  ;;  %v410_v11 = vld [vmem:[#allocation2 + $0x140] sm:$0xff] }
  0xb7   : > { %1657 = vmatpush1.bf16.msra.mxu0 %v14335_v43  ;;  %1698 = vmatpush1.bf16.msra.mxu1 %v14337_v44  ;;  %v493_v43 = vld [vmem:[#allocation2 + $0x3d8] sm:$0xff]  ;;  %v528_v50 = vld [vmem:[#allocation2 + $0x4f0] sm:$0xff]  ;;  %v14272_v17 = vcombine.high %v398_v10, %v410_v11  ;;  %v422_v19 = vld [vmem:[#allocation2 + $0x1a0] sm:$0xff] }
  0xb8   : > { %1658 = vmatprep.subr.bf16.mxu0 %v14360_v45  ;;  %1699 = vmatprep.subr.bf16.mxu1 %v14362_v46  ;;  %v505_v44 = vld [vmem:[#allocation2 + $0x438] sm:$0xff]  ;;  %v14339_v45 = vcombine.low %v468_v33, %v480_v34  ;;  %v14341_v46 = vcombine.low %v469_v35, %v481_v36  ;;  %v14388_v55 = vcombine.high %v516_v49, %v528_v50  ;;  %v540_v57 = vld [vmem:[#allocation2 + $0x550] sm:$0xff]  ;;  %v434_v20 = vld [vmem:[#allocation2 + $0x200] sm:$0xff] }
  0xb9   : > { %v14366_v48 = vcombine.high %v493_v43, %v505_v44  ;;  %v552_v58 = vld [vmem:[#allocation2 + $0x5b0] sm:$0xff]  ;;  %v14296_v25 = vcombine.high %v422_v19, %v434_v20  ;;  %v446_v27 = vld [vmem:[#allocation2 + $0x260] sm:$0xff] }
  0xba   : > { %v14412_v63 = vcombine.high %v540_v57, %v552_v58  ;;  %v458_v28 = vld [vmem:[#allocation2 + $0x2c0] sm:$0xff] }
  0xbb   : > { %1659 = vmatpush1.bf16.msra.mxu0 %v14359_v51  ;;  %1700 = vmatpush1.bf16.msra.mxu1 %v14361_v52  ;;  %v517_v51 = vld [vmem:[#allocation2 + $0x498] sm:$0xff]  ;;  %v14320_v33 = vcombine.high %v446_v27, %v458_v28  ;;  %v470_v35 = vld [vmem:[#allocation2 + $0x320] sm:$0xff] }
  0xbc   : > { %1660 = vmatprep.subr.bf16.mxu0 %v14384_v53  ;;  %1701 = vmatprep.subr.bf16.mxu1 %v14386_v54  ;;  %v529_v52 = vld [vmem:[#allocation2 + $0x4f8] sm:$0xff]  ;;  %v14363_v53 = vcombine.low %v492_v41, %v504_v42  ;;  %v14365_v54 = vcombine.low %v493_v43, %v505_v44  ;;  %v482_v36 = vld [vmem:[#allocation2 + $0x380] sm:$0xff] }
  0xbd   : > { %v14390_v56 = vcombine.high %v517_v51, %v529_v52  ;;  %v14344_v41 = vcombine.high %v470_v35, %v482_v36  ;;  %v494_v43 = vld [vmem:[#allocation2 + $0x3e0] sm:$0xff] }
  0xbe   : > { %v506_v44 = vld [vmem:[#allocation2 + $0x440] sm:$0xff] }
  0xbf   : > { %1661 = vmatpush1.bf16.msra.mxu0 %v14383_v59  ;;  %1702 = vmatpush1.bf16.msra.mxu1 %v14385_v60  ;;  %v541_v59 = vld [vmem:[#allocation2 + $0x558] sm:$0xff] }
  0xc0   : > { %1662 = vmatprep.subr.bf16.mxu0 %v14408_v61  ;;  %1703 = vmatprep.subr.bf16.mxu1 %v14410_v62  ;;  %v553_v60 = vld [vmem:[#allocation2 + $0x5b8] sm:$0xff]  ;;  %v14387_v61 = vcombine.low %v516_v49, %v528_v50  ;;  %v14389_v62 = vcombine.low %v517_v51, %v529_v52  ;;  %v14368_v49 = vcombine.high %v494_v43, %v506_v44  ;;  %v518_v51 = vld [vmem:[#allocation2 + $0x4a0] sm:$0xff] }
  0xc1   : > { %v14414_v1 = vcombine.high %v541_v59, %v553_v60  ;;  %v530_v52 = vld [vmem:[#allocation2 + $0x500] sm:$0xff] }
  0xc3   : > { %1663 = vmatpush1.bf16.msra.mxu0 %v14407_v4  ;;  %1704 = vmatpush1.bf16.msra.mxu1 %v14409_v5  ;;  %v375_v4 = vld [vmem:[#allocation2 + $0x28] sm:$0xff] }
  0xc4   : > { %1730 = vmatprep.subr.bf16.mxu0 %v14244_v6  ;;  %1771 = vmatprep.subr.bf16.mxu1 %v14246_v7  ;;  %v387_v5 = vld [vmem:[#allocation2 + $0x88] sm:$0xff]  ;;  %v14411_v6 = vcombine.low %v540_v57, %v552_v58  ;;  %v14413_v7 = vcombine.low %v541_v59, %v553_v60  ;;  %v14392_v57 = vcombine.high %v518_v51, %v530_v52  ;;  %v542_v59 = vld [vmem:[#allocation2 + $0x560] sm:$0xff] }
  0xc5   : > { %v14250_v9 = vcombine.high %v375_v4, %v387_v5  ;;  %v554_v60 = vld [vmem:[#allocation2 + $0x5c0] sm:$0xff] }
  0xc6   : > { %1681 = vmatmul.mubr.bf16.vlgmr.msra.gmra.mrb[0].mxu0 %v16930_v12  ;;  %1722 = vmatmul.mubr.bf16.vlgmr.msra.gmra.mrb[0].mxu1 %v16930_v12 }
  0xc7   : > { %1731 = vmatpush1.bf16.msra.mxu0 %v14243_v13  ;;  %1772 = vmatpush1.bf16.msra.mxu1 %v14245_v14  ;;  %v399_v13 = vld [vmem:[#allocation2 + $0xe8] sm:$0xff] }
  0xc8   : > { %1732 = vmatprep.subr.bf16.mxu0 %v14268_v15  ;;  %1773 = vmatprep.subr.bf16.mxu1 %v14270_v16  ;;  %v411_v14 = vld [vmem:[#allocation2 + $0x148] sm:$0xff]  ;;  %v14247_v15 = vcombine.low %v374_v2, %v386_v3  ;;  %v14249_v16 = vcombine.low %v375_v4, %v387_v5  ;;  %v14416_v2 = vcombine.high %v542_v59, %v554_v60  ;;  %v376_v4 = vld [vmem:[#allocation2 + $0x30] sm:$0xff] }
  0xc9   : > { %1762 = vmatprep.mubr.bf16.mxu0 %v16657_v0  ;;  %1803 = vmatprep.mubr.bf16.mxu1 %v16657_v0  ;;  %v14274_v18 = vcombine.high %v399_v13, %v411_v14  ;;  %v388_v5 = vld [vmem:[#allocation2 + $0x90] sm:$0xff] }
  0xcb   : > { %1733 = vmatpush1.bf16.msra.mxu0 %v14267_v21  ;;  %1774 = vmatpush1.bf16.msra.mxu1 %v14269_v22  ;;  %v423_v21 = vld [vmem:[#allocation2 + $0x1a8] sm:$0xff] }
  0xcc   : > { %1734 = vmatprep.subr.bf16.mxu0 %v14292_v23  ;;  %1775 = vmatprep.subr.bf16.mxu1 %v14294_v24  ;;  %v435_v22 = vld [vmem:[#allocation2 + $0x208] sm:$0xff]  ;;  %v14271_v23 = vcombine.low %v398_v10, %v410_v11  ;;  %v14273_v24 = vcombine.low %v399_v13, %v411_v14  ;;  %v14252_v10 = vcombine.high %v376_v4, %v388_v5  ;;  %v400_v13 = vld [vmem:[#allocation2 + $0xf0] sm:$0xff] }
  0xcd   : > { %v14298_v26 = vcombine.high %v423_v21, %v435_v22  ;;  %v412_v14 = vld [vmem:[#allocation2 + $0x150] sm:$0xff] }
  0xcf   : > { %1735 = vmatpush1.bf16.msra.mxu0 %v14291_v29  ;;  %1776 = vmatpush1.bf16.msra.mxu1 %v14293_v30  ;;  %v447_v29 = vld [vmem:[#allocation2 + $0x268] sm:$0xff] }
  0xd0   : > { %1736 = vmatprep.subr.bf16.mxu0 %v14316_v31  ;;  %1777 = vmatprep.subr.bf16.mxu1 %v14318_v32  ;;  %v459_v30 = vld [vmem:[#allocation2 + $0x2c8] sm:$0xff]  ;;  %v14295_v31 = vcombine.low %v422_v19, %v434_v20  ;;  %v14297_v32 = vcombine.low %v423_v21, %v435_v22  ;;  %v14276_v19 = vcombine.high %v400_v13, %v412_v14  ;;  %v424_v21 = vld [vmem:[#allocation2 + $0x1b0] sm:$0xff] }
  0xd1   : > { %v14322_v34 = vcombine.high %v447_v29, %v459_v30  ;;  %v436_v22 = vld [vmem:[#allocation2 + $0x210] sm:$0xff] }
  0xd3   : > { %1737 = vmatpush1.bf16.msra.mxu0 %v14315_v37  ;;  %1778 = vmatpush1.bf16.msra.mxu1 %v14317_v38  ;;  %v471_v37 = vld [vmem:[#allocation2 + $0x328] sm:$0xff] }
  0xd4   : > { %1738 = vmatprep.subr.bf16.mxu0 %v14340_v39  ;;  %1779 = vmatprep.subr.bf16.mxu1 %v14342_v40  ;;  %v483_v38 = vld [vmem:[#allocation2 + $0x388] sm:$0xff]  ;;  %v14319_v39 = vcombine.low %v446_v27, %v458_v28  ;;  %v14321_v40 = vcombine.low %v447_v29, %v459_v30  ;;  %v14300_v27 = vcombine.high %v424_v21, %v436_v22  ;;  %v448_v29 = vld [vmem:[#allocation2 + $0x270] sm:$0xff] }
  0xd5   : > { %v14346_v42 = vcombine.high %v471_v37, %v483_v38  ;;  %v460_v30 = vld [vmem:[#allocation2 + $0x2d0] sm:$0xff] }
  0xd7   : > { %1739 = vmatpush1.bf16.msra.mxu0 %v14339_v45  ;;  %1780 = vmatpush1.bf16.msra.mxu1 %v14341_v46  ;;  %v495_v45 = vld [vmem:[#allocation2 + $0x3e8] sm:$0xff] }
  0xd8   : > { %1740 = vmatprep.subr.bf16.mxu0 %v14364_v47  ;;  %1781 = vmatprep.subr.bf16.mxu1 %v14366_v48  ;;  %v507_v46 = vld [vmem:[#allocation2 + $0x448] sm:$0xff]  ;;  %v14343_v47 = vcombine.low %v470_v35, %v482_v36  ;;  %v14345_v48 = vcombine.low %v471_v37, %v483_v38  ;;  %v14324_v35 = vcombine.high %v448_v29, %v460_v30  ;;  %v472_v37 = vld [vmem:[#allocation2 + $0x330] sm:$0xff] }
  0xd9   : > { %v14370_v50 = vcombine.high %v495_v45, %v507_v46  ;;  %v484_v38 = vld [vmem:[#allocation2 + $0x390] sm:$0xff] }
  0xdb   : > { %1741 = vmatpush1.bf16.msra.mxu0 %v14363_v53  ;;  %1782 = vmatpush1.bf16.msra.mxu1 %v14365_v54  ;;  %v519_v53 = vld [vmem:[#allocation2 + $0x4a8] sm:$0xff] }
  0xdc   : > { %1742 = vmatprep.subr.bf16.mxu0 %v14388_v55  ;;  %1783 = vmatprep.subr.bf16.mxu1 %v14390_v56  ;;  %v531_v54 = vld [vmem:[#allocation2 + $0x508] sm:$0xff]  ;;  %v14367_v55 = vcombine.low %v494_v43, %v506_v44  ;;  %v14369_v56 = vcombine.low %v495_v45, %v507_v46  ;;  %v14348_v43 = vcombine.high %v472_v37, %v484_v38  ;;  %v496_v45 = vld [vmem:[#allocation2 + $0x3f0] sm:$0xff] }
  0xdd   : > { %v14394_v58 = vcombine.high %v519_v53, %v531_v54  ;;  %v508_v46 = vld [vmem:[#allocation2 + $0x450] sm:$0xff] }
  0xdf   : > { %1743 = vmatpush1.bf16.msra.mxu0 %v14387_v61  ;;  %1784 = vmatpush1.bf16.msra.mxu1 %v14389_v62  ;;  %v543_v61 = vld [vmem:[#allocation2 + $0x568] sm:$0xff] }
  0xe0   : > { %1744 = vmatprep.subr.bf16.mxu0 %v14412_v63  ;;  %1785 = vmatprep.subr.bf16.mxu1 %v14414_v1  ;;  %v555_v62 = vld [vmem:[#allocation2 + $0x5c8] sm:$0xff]  ;;  %v14391_v63 = vcombine.low %v518_v51, %v530_v52  ;;  %v14393_v1 = vcombine.low %v519_v53, %v531_v54  ;;  %v14372_v51 = vcombine.high %v496_v45, %v508_v46  ;;  %v520_v53 = vld [vmem:[#allocation2 + $0x4b0] sm:$0xff] }
  0xe1   : > { %v14418_v3 = vcombine.high %v543_v61, %v555_v62  ;;  %v532_v54 = vld [vmem:[#allocation2 + $0x510] sm:$0xff] }
  0xe3   : > { %1745 = vmatpush1.bf16.msra.mxu0 %v14411_v6  ;;  %1786 = vmatpush1.bf16.msra.mxu1 %v14413_v7  ;;  %v377_v6 = vld [vmem:[#allocation2 + $0x38] sm:$0xff] }
  0xe4   : > { %1812 = vmatprep.subr.bf16.mxu0 %v14248_v8  ;;  %1853 = vmatprep.subr.bf16.mxu1 %v14250_v9  ;;  %v389_v7 = vld [vmem:[#allocation2 + $0x98] sm:$0xff]  ;;  %v14415_v8 = vcombine.low %v542_v59, %v554_v60  ;;  %v14417_v9 = vcombine.low %v543_v61, %v555_v62  ;;  %v14396_v59 = vcombine.high %v520_v53, %v532_v54  ;;  %v544_v61 = vld [vmem:[#allocation2 + $0x570] sm:$0xff] }
  0xe5   : > { %v14254_v11 = vcombine.high %v377_v6, %v389_v7  ;;  %v556_v62 = vld [vmem:[#allocation2 + $0x5d0] sm:$0xff] }
  0xe6   : > { %1763 = vmatmul.mubr.bf16.vlgmr.msra.gmra.mrb[4].mxu0 %v16930_v12  ;;  %1804 = vmatmul.mubr.bf16.vlgmr.msra.gmra.mrb[4].mxu1 %v16930_v12 }
  0xe7   : > { %1813 = vmatpush1.bf16.msra.mxu0 %v14247_v15  ;;  %1854 = vmatpush1.bf16.msra.mxu1 %v14249_v16  ;;  %v401_v15 = vld [vmem:[#allocation2 + $0xf8] sm:$0xff] }
  0xe8   : > { %1814 = vmatprep.subr.bf16.mxu0 %v14272_v17  ;;  %1855 = vmatprep.subr.bf16.mxu1 %v14274_v18  ;;  %v413_v16 = vld [vmem:[#allocation2 + $0x158] sm:$0xff]  ;;  %v14251_v17 = vcombine.low %v376_v4, %v388_v5  ;;  %v14253_v18 = vcombine.low %v377_v6, %v389_v7  ;;  %v14420_v4 = vcombine.high %v544_v61, %v556_v62  ;;  %v378_v6 = vld [vmem:[#allocation2 + $0x40] sm:$0xff] }
  0xe9   : > { %1844 = vmatprep.mubr.bf16.mxu0 %v16657_v0  ;;  %1885 = vmatprep.mubr.bf16.mxu1 %v16657_v0  ;;  %v14278_v20 = vcombine.high %v401_v15, %v413_v16  ;;  %v390_v7 = vld [vmem:[#allocation2 + $0xa0] sm:$0xff] }
  0xeb   : > { %1815 = vmatpush1.bf16.msra.mxu0 %v14271_v23  ;;  %1856 = vmatpush1.bf16.msra.mxu1 %v14273_v24  ;;  %v425_v23 = vld [vmem:[#allocation2 + $0x1b8] sm:$0xff] }
  0xec   : > { %1816 = vmatprep.subr.bf16.mxu0 %v14296_v25  ;;  %1857 = vmatprep.subr.bf16.mxu1 %v14298_v26  ;;  %v437_v24 = vld [vmem:[#allocation2 + $0x218] sm:$0xff]  ;;  %v14275_v25 = vcombine.low %v400_v13, %v412_v14  ;;  %v14277_v26 = vcombine.low %v401_v15, %v413_v16  ;;  %v14256_v13 = vcombine.high %v378_v6, %v390_v7  ;;  %v402_v15 = vld [vmem:[#allocation2 + $0x100] sm:$0xff] }
  0xed   : > { %v14302_v28 = vcombine.high %v425_v23, %v437_v24  ;;  %v414_v16 = vld [vmem:[#allocation2 + $0x160] sm:$0xff] }
  0xef   : > { %1817 = vmatpush1.bf16.msra.mxu0 %v14295_v31  ;;  %1858 = vmatpush1.bf16.msra.mxu1 %v14297_v32  ;;  %v449_v31 = vld [vmem:[#allocation2 + $0x278] sm:$0xff] }
  0xf0   : > { %1818 = vmatprep.subr.bf16.mxu0 %v14320_v33  ;;  %1859 = vmatprep.subr.bf16.mxu1 %v14322_v34  ;;  %v461_v32 = vld [vmem:[#allocation2 + $0x2d8] sm:$0xff]  ;;  %v14299_v33 = vcombine.low %v424_v21, %v436_v22  ;;  %v14301_v34 = vcombine.low %v425_v23, %v437_v24  ;;  %v14280_v21 = vcombine.high %v402_v15, %v414_v16  ;;  %v426_v23 = vld [vmem:[#allocation2 + $0x1c0] sm:$0xff] }
  0xf1   : > { %v14326_v36 = vcombine.high %v449_v31, %v461_v32  ;;  %v438_v24 = vld [vmem:[#allocation2 + $0x220] sm:$0xff] }
  0xf3   : > { %1819 = vmatpush1.bf16.msra.mxu0 %v14319_v39  ;;  %1860 = vmatpush1.bf16.msra.mxu1 %v14321_v40  ;;  %v473_v39 = vld [vmem:[#allocation2 + $0x338] sm:$0xff] }
  0xf4   : > { %1820 = vmatprep.subr.bf16.mxu0 %v14344_v41  ;;  %1861 = vmatprep.subr.bf16.mxu1 %v14346_v42  ;;  %v485_v40 = vld [vmem:[#allocation2 + $0x398] sm:$0xff]  ;;  %v14323_v41 = vcombine.low %v448_v29, %v460_v30  ;;  %v14325_v42 = vcombine.low %v449_v31, %v461_v32  ;;  %v14304_v29 = vcombine.high %v426_v23, %v438_v24  ;;  %v450_v31 = vld [vmem:[#allocation2 + $0x280] sm:$0xff] }
  0xf5   : > { %v14350_v44 = vcombine.high %v473_v39, %v485_v40  ;;  %v462_v32 = vld [vmem:[#allocation2 + $0x2e0] sm:$0xff] }
  0xf7   : > { %1821 = vmatpush1.bf16.msra.mxu0 %v14343_v47  ;;  %1862 = vmatpush1.bf16.msra.mxu1 %v14345_v48  ;;  %v497_v47 = vld [vmem:[#allocation2 + $0x3f8] sm:$0xff] }
  0xf8   : > { %1822 = vmatprep.subr.bf16.mxu0 %v14368_v49  ;;  %1863 = vmatprep.subr.bf16.mxu1 %v14370_v50  ;;  %v509_v48 = vld [vmem:[#allocation2 + $0x458] sm:$0xff]  ;;  %v14347_v49 = vcombine.low %v472_v37, %v484_v38  ;;  %v14349_v50 = vcombine.low %v473_v39, %v485_v40  ;;  %v14328_v37 = vcombine.high %v450_v31, %v462_v32  ;;  %v474_v39 = vld [vmem:[#allocation2 + $0x340] sm:$0xff] }
  0xf9   : > { %v14374_v52 = vcombine.high %v497_v47, %v509_v48  ;;  %v486_v40 = vld [vmem:[#allocation2 + $0x3a0] sm:$0xff] }
  0xfb   : > { %1823 = vmatpush1.bf16.msra.mxu0 %v14367_v55  ;;  %1864 = vmatpush1.bf16.msra.mxu1 %v14369_v56  ;;  %v521_v55 = vld [vmem:[#allocation2 + $0x4b8] sm:$0xff] }
  0xfc   : > { %1824 = vmatprep.subr.bf16.mxu0 %v14392_v57  ;;  %1865 = vmatprep.subr.bf16.mxu1 %v14394_v58  ;;  %v533_v56 = vld [vmem:[#allocation2 + $0x518] sm:$0xff]  ;;  %v14371_v57 = vcombine.low %v496_v45, %v508_v46  ;;  %v14373_v58 = vcombine.low %v497_v47, %v509_v48  ;;  %v14352_v45 = vcombine.high %v474_v39, %v486_v40  ;;  %v498_v47 = vld [vmem:[#allocation2 + $0x400] sm:$0xff] }
  0xfd   : > { %v14398_v60 = vcombine.high %v521_v55, %v533_v56  ;;  %v510_v48 = vld [vmem:[#allocation2 + $0x460] sm:$0xff] }
  0xff   : > { %1825 = vmatpush1.bf16.msra.mxu0 %v14391_v63  ;;  %1866 = vmatpush1.bf16.msra.mxu1 %v14393_v1  ;;  %v545_v63 = vld [vmem:[#allocation2 + $0x578] sm:$0xff] }
 0x100   : > { %1826 = vmatprep.subr.bf16.mxu0 %v14416_v2  ;;  %1867 = vmatprep.subr.bf16.mxu1 %v14418_v3  ;;  %v557_v1 = vld [vmem:[#allocation2 + $0x5d8] sm:$0xff]  ;;  %v14395_v2 = vcombine.low %v520_v53, %v532_v54  ;;  %v14397_v3 = vcombine.low %v521_v55, %v533_v56  ;;  %v14376_v53 = vcombine.high %v498_v47, %v510_v48  ;;  %v522_v55 = vld [vmem:[#allocation2 + $0x4c0] sm:$0xff] }
 0x101   : > { %v14422_v5 = vcombine.high %v545_v63, %v557_v1  ;;  %v534_v56 = vld [vmem:[#allocation2 + $0x520] sm:$0xff] }
 0x103   : > { %1827 = vmatpush1.bf16.msra.mxu0 %v14415_v8  ;;  %1868 = vmatpush1.bf16.msra.mxu1 %v14417_v9  ;;  %v379_v8 = vld [vmem:[#allocation2 + $0x48] sm:$0xff] }
 0x104   : > { %1894 = vmatprep.subr.bf16.mxu0 %v14252_v10  ;;  %1935 = vmatprep.subr.bf16.mxu1 %v14254_v11  ;;  %v391_v9 = vld [vmem:[#allocation2 + $0xa8] sm:$0xff]  ;;  %v14419_v10 = vcombine.low %v544_v61, %v556_v62  ;;  %v14421_v11 = vcombine.low %v545_v63, %v557_v1  ;;  %v14400_v61 = vcombine.high %v522_v55, %v534_v56  ;;  %v546_v63 = vld [vmem:[#allocation2 + $0x580] sm:$0xff] }
 0x105   : > { %v14258_v14 = vcombine.high %v379_v8, %v391_v9  ;;  %v558_v1 = vld [vmem:[#allocation2 + $0x5e0] sm:$0xff] }
 0x106   : > { %1845 = vmatmul.mubr.bf16.vlgmr.msra.gmra.mrb[8].mxu0 %v16930_v12  ;;  %1886 = vmatmul.mubr.bf16.vlgmr.msra.gmra.mrb[8].mxu1 %v16930_v12 }
 0x107   : > { %1895 = vmatpush1.bf16.msra.mxu0 %v14251_v17  ;;  %1936 = vmatpush1.bf16.msra.mxu1 %v14253_v18  ;;  %v403_v17 = vld [vmem:[#allocation2 + $0x108] sm:$0xff] }
 0x108   : > { %1896 = vmatprep.subr.bf16.mxu0 %v14276_v19  ;;  %1937 = vmatprep.subr.bf16.mxu1 %v14278_v20  ;;  %v415_v18 = vld [vmem:[#allocation2 + $0x168] sm:$0xff]  ;;  %v14255_v19 = vcombine.low %v378_v6, %v390_v7  ;;  %v14257_v20 = vcombine.low %v379_v8, %v391_v9  ;;  %v14424_v6 = vcombine.high %v546_v63, %v558_v1  ;;  %v380_v8 = vld [vmem:[#allocation2 + $0x50] sm:$0xff] }
 0x109   : > { %1926 = vmatprep.mubr.bf16.mxu0 %v16657_v0  ;;  %1967 = vmatprep.mubr.bf16.mxu1 %v16657_v0  ;;  %v14282_v22 = vcombine.high %v403_v17, %v415_v18  ;;  %v392_v9 = vld [vmem:[#allocation2 + $0xb0] sm:$0xff] }
 0x10b   : > { %1897 = vmatpush1.bf16.msra.mxu0 %v14275_v25  ;;  %1938 = vmatpush1.bf16.msra.mxu1 %v14277_v26  ;;  %v427_v25 = vld [vmem:[#allocation2 + $0x1c8] sm:$0xff] }
 0x10c   : > { %1898 = vmatprep.subr.bf16.mxu0 %v14300_v27  ;;  %1939 = vmatprep.subr.bf16.mxu1 %v14302_v28  ;;  %v439_v26 = vld [vmem:[#allocation2 + $0x228] sm:$0xff]  ;;  %v14279_v27 = vcombine.low %v402_v15, %v414_v16  ;;  %v14281_v28 = vcombine.low %v403_v17, %v415_v18  ;;  %v14260_v15 = vcombine.high %v380_v8, %v392_v9  ;;  %v404_v17 = vld [vmem:[#allocation2 + $0x110] sm:$0xff] }
 0x10d   : > { %v14306_v30 = vcombine.high %v427_v25, %v439_v26  ;;  %v416_v18 = vld [vmem:[#allocation2 + $0x170] sm:$0xff] }
 0x10f   : > { %1899 = vmatpush1.bf16.msra.mxu0 %v14299_v33  ;;  %1940 = vmatpush1.bf16.msra.mxu1 %v14301_v34  ;;  %v451_v33 = vld [vmem:[#allocation2 + $0x288] sm:$0xff] }
 0x110   : > { %1900 = vmatprep.subr.bf16.mxu0 %v14324_v35  ;;  %1941 = vmatprep.subr.bf16.mxu1 %v14326_v36  ;;  %v463_v34 = vld [vmem:[#allocation2 + $0x2e8] sm:$0xff]  ;;  %v14303_v35 = vcombine.low %v426_v23, %v438_v24  ;;  %v14305_v36 = vcombine.low %v427_v25, %v439_v26  ;;  %v14284_v23 = vcombine.high %v404_v17, %v416_v18  ;;  %v428_v25 = vld [vmem:[#allocation2 + $0x1d0] sm:$0xff] }
 0x111   : > { %v14330_v38 = vcombine.high %v451_v33, %v463_v34  ;;  %v440_v26 = vld [vmem:[#allocation2 + $0x230] sm:$0xff] }
 0x113   : > { %1901 = vmatpush1.bf16.msra.mxu0 %v14323_v41  ;;  %1942 = vmatpush1.bf16.msra.mxu1 %v14325_v42  ;;  %v475_v41 = vld [vmem:[#allocation2 + $0x348] sm:$0xff] }
 0x114   : > { %1902 = vmatprep.subr.bf16.mxu0 %v14348_v43  ;;  %1943 = vmatprep.subr.bf16.mxu1 %v14350_v44  ;;  %v487_v42 = vld [vmem:[#allocation2 + $0x3a8] sm:$0xff]  ;;  %v14327_v43 = vcombine.low %v450_v31, %v462_v32  ;;  %v14329_v44 = vcombine.low %v451_v33, %v463_v34  ;;  %v14308_v31 = vcombine.high %v428_v25, %v440_v26  ;;  %v452_v33 = vld [vmem:[#allocation2 + $0x290] sm:$0xff] }
 0x115   : > { %v14354_v46 = vcombine.high %v475_v41, %v487_v42  ;;  %v464_v34 = vld [vmem:[#allocation2 + $0x2f0] sm:$0xff] }
 0x117   : > { %1903 = vmatpush1.bf16.msra.mxu0 %v14347_v49  ;;  %1944 = vmatpush1.bf16.msra.mxu1 %v14349_v50  ;;  %v499_v49 = vld [vmem:[#allocation2 + $0x408] sm:$0xff] }
 0x118   : > { %1904 = vmatprep.subr.bf16.mxu0 %v14372_v51  ;;  %1945 = vmatprep.subr.bf16.mxu1 %v14374_v52  ;;  %v511_v50 = vld [vmem:[#allocation2 + $0x468] sm:$0xff]  ;;  %v14351_v51 = vcombine.low %v474_v39, %v486_v40  ;;  %v14353_v52 = vcombine.low %v475_v41, %v487_v42  ;;  %v14332_v39 = vcombine.high %v452_v33, %v464_v34  ;;  %v476_v41 = vld [vmem:[#allocation2 + $0x350] sm:$0xff] }
 0x119   : > { %v14378_v54 = vcombine.high %v499_v49, %v511_v50  ;;  %v488_v42 = vld [vmem:[#allocation2 + $0x3b0] sm:$0xff] }
 0x11b   : > { %1905 = vmatpush1.bf16.msra.mxu0 %v14371_v57  ;;  %1946 = vmatpush1.bf16.msra.mxu1 %v14373_v58  ;;  %v523_v57 = vld [vmem:[#allocation2 + $0x4c8] sm:$0xff] }
 0x11c   : > { %1906 = vmatprep.subr.bf16.mxu0 %v14396_v59  ;;  %1947 = vmatprep.subr.bf16.mxu1 %v14398_v60  ;;  %v535_v58 = vld [vmem:[#allocation2 + $0x528] sm:$0xff]  ;;  %v14375_v59 = vcombine.low %v498_v47, %v510_v48  ;;  %v14377_v60 = vcombine.low %v499_v49, %v511_v50  ;;  %v14356_v47 = vcombine.high %v476_v41, %v488_v42  ;;  %v500_v48 = vld [vmem:[#allocation2 + $0x410] sm:$0xff]  ;;  %v501_v50 = vld [vmem:[#allocation2 + $0x418] sm:$0xff] }
 0x11d   : > { %v14402_v62 = vcombine.high %v523_v57, %v535_v58  ;;  %v512_v49 = vld [vmem:[#allocation2 + $0x470] sm:$0xff] }
 0x11f   : > { %1907 = vmatpush1.bf16.msra.mxu0 %v14395_v2  ;;  %1948 = vmatpush1.bf16.msra.mxu1 %v14397_v3  ;;  %v547_v2 = vld [vmem:[#allocation2 + $0x588] sm:$0xff] }
 0x120   : > { %1908 = vmatprep.subr.bf16.mxu0 %v14420_v4  ;;  %1949 = vmatprep.subr.bf16.mxu1 %v14422_v5  ;;  %v559_v3 = vld [vmem:[#allocation2 + $0x5e8] sm:$0xff]  ;;  %v14399_v4 = vcombine.low %v522_v55, %v534_v56  ;;  %v14401_v5 = vcombine.low %v523_v57, %v535_v58  ;;  %v524_v56 = vld [vmem:[#allocation2 + $0x4d0] sm:$0xff]  ;;  %v525_v58 = vld [vmem:[#allocation2 + $0x4d8] sm:$0xff] }
 0x121   : > { %v14426_v7 = vcombine.high %v547_v2, %v559_v3  ;;  %v536_v57 = vld [vmem:[#allocation2 + $0x530] sm:$0xff] }
 0x123   : > { %1909 = vmatpush1.bf16.msra.mxu0 %v14419_v10  ;;  %1950 = vmatpush1.bf16.msra.mxu1 %v14421_v11  ;;  %v381_v10 = vld [vmem:[#allocation2 + $0x58] sm:$0xff] }
 0x124   : > { %1976 = vmatprep.subr.bf16.mxu0 %v14256_v13  ;;  %2017 = vmatprep.subr.bf16.mxu1 %v14258_v14  ;;  %v393_v11 = vld [vmem:[#allocation2 + $0xb8] sm:$0xff]  ;;  %v14423_v13 = vcombine.low %v546_v63, %v558_v1  ;;  %v14425_v14 = vcombine.low %v547_v2, %v559_v3  ;;  %v548_v1 = vld [vmem:[#allocation2 + $0x590] sm:$0xff] }
 0x125   : > { %v14262_v16 = vcombine.high %v381_v10, %v393_v11  ;;  %v560_v2 = vld [vmem:[#allocation2 + $0x5f0] sm:$0xff]  ;;  %v549_v3 = vld [vmem:[#allocation2 + $0x598] sm:$0xff] }
 0x126   : > { %1927 = vmatmul.mubr.bf16.vlgmr.msra.gmra.mrb[12].mxu0 %v16930_v12  ;;  %1968 = vmatmul.mubr.bf16.vlgmr.msra.gmra.mrb[12].mxu1 %v16930_v12 }
 0x127   : > { %1977 = vmatpush1.bf16.msra.mxu0 %v14255_v19  ;;  %2018 = vmatpush1.bf16.msra.mxu1 %v14257_v20  ;;  %v405_v19 = vld [vmem:[#allocation2 + $0x118] sm:$0xff] }
 0x128   : > { %1978 = vmatprep.subr.bf16.mxu0 %v14280_v21  ;;  %2019 = vmatprep.subr.bf16.mxu1 %v14282_v22  ;;  %v417_v20 = vld [vmem:[#allocation2 + $0x178] sm:$0xff]  ;;  %v14259_v21 = vcombine.low %v380_v8, %v392_v9  ;;  %v14261_v22 = vcombine.low %v381_v10, %v393_v11  ;;  %v2189_v11 = vld [vmem:[%s16919_s27 + $0x8] sm:$0xff] }
 0x129   : > { %2008 = vmatprep.mubr.bf16.mxu0 %v16657_v0  ;;  %2049 = vmatprep.mubr.bf16.mxu1 %v16657_v0  ;;  %v14286_v24 = vcombine.high %v405_v19, %v417_v20  ;;  %v2188_v9 = vld [vmem:[%s16919_s27] sm:$0xff] }
 0x12a   : > { %v2192_v10 = vld [vmem:[%s16919_s27 + $0x20] sm:$0xff] }
 0x12b   : > { %1979 = vmatpush1.bf16.msra.mxu0 %v14279_v27  ;;  %2020 = vmatpush1.bf16.msra.mxu1 %v14281_v28  ;;  %v429_v27 = vld [vmem:[#allocation2 + $0x1d8] sm:$0xff] }
 0x12c   : > { %1980 = vmatprep.subr.bf16.mxu0 %v14304_v29  ;;  %2021 = vmatprep.subr.bf16.mxu1 %v14306_v30  ;;  %v441_v28 = vld [vmem:[#allocation2 + $0x238] sm:$0xff]  ;;  %v14283_v29 = vcombine.low %v404_v17, %v416_v18  ;;  %v14285_v30 = vcombine.low %v405_v19, %v417_v20  ;;  %v2197_v20 = vld [vmem:[%s16919_s27 + $0x48] sm:$0xff] }
 0x12d   : > { %v14310_v32 = vcombine.high %v429_v27, %v441_v28  ;;  %v2196_v18 = vld [vmem:[%s16919_s27 + $0x40] sm:$0xff] }
 0x12e   : > { %v2200_v19 = vld [vmem:[%s16919_s27 + $0x60] sm:$0xff] }
 0x12f   : > { %1981 = vmatpush1.bf16.msra.mxu0 %v14303_v35  ;;  %2022 = vmatpush1.bf16.msra.mxu1 %v14305_v36  ;;  %v453_v35 = vld [vmem:[#allocation2 + $0x298] sm:$0xff] }
 0x130   : > { %1982 = vmatprep.subr.bf16.mxu0 %v14328_v37  ;;  %2023 = vmatprep.subr.bf16.mxu1 %v14330_v38  ;;  %v465_v36 = vld [vmem:[#allocation2 + $0x2f8] sm:$0xff]  ;;  %v14307_v37 = vcombine.low %v428_v25, %v440_v26  ;;  %v14309_v38 = vcombine.low %v429_v27, %v441_v28  ;;  %v2205_v28 = vld [vmem:[%s16919_s27 + $0x88] sm:$0xff] }
 0x131   : > { %v14334_v40 = vcombine.high %v453_v35, %v465_v36  ;;  %v2204_v26 = vld [vmem:[%s16919_s27 + $0x80] sm:$0xff] }
 0x132   : > { %v2208_v27 = vld [vmem:[%s16919_s27 + $0xa0] sm:$0xff] }
 0x133   : > { %1983 = vmatpush1.bf16.msra.mxu0 %v14327_v43  ;;  %2024 = vmatpush1.bf16.msra.mxu1 %v14329_v44  ;;  %v477_v43 = vld [vmem:[#allocation2 + $0x358] sm:$0xff] }
 0x134   : > { %1984 = vmatprep.subr.bf16.mxu0 %v14352_v45  ;;  %2025 = vmatprep.subr.bf16.mxu1 %v14354_v46  ;;  %v489_v44 = vld [vmem:[#allocation2 + $0x3b8] sm:$0xff]  ;;  %v14331_v45 = vcombine.low %v452_v33, %v464_v34  ;;  %v14333_v46 = vcombine.low %v453_v35, %v465_v36  ;;  %v14448_v33 = vcombine.high %v2204_v26, %v2208_v27  ;;  %v2213_v36 = vld [vmem:[%s16919_s27 + $0xc8] sm:$0xff] }
 0x135   : > { %v2216_v35 = vld [vmem:[%s16919_s27 + $0xe0] sm:$0xff] }
 0x137   : > { %1985 = vmatpush1.bf16.msra.mxu0 %v14351_v51  ;;  %2026 = vmatpush1.bf16.msra.mxu1 %v14353_v52  ;;  %v513_v51 = vld [vmem:[#allocation2 + $0x478] sm:$0xff]  ;;  %v14355_v52 = vcombine.low %v476_v41, %v488_v42 }
 0x138   : > { %1986 = vmatprep.subr.bf16.mxu0 %v14376_v53  ;;  %2027 = vmatprep.subr.bf16.mxu1 %v14378_v54  ;;  %v14357_v53 = vcombine.low %v477_v43, %v489_v44  ;;  %v14380_v54 = vcombine.high %v500_v48, %v512_v49  ;;  %v14382_v55 = vcombine.high %v501_v50, %v513_v51  ;;  %v2220_v42 = vld [vmem:[%s16919_s27 + $0x100] sm:$0xff] }
 0x13b   : > { %1987 = vmatpush1.bf16.msra.mxu0 %v14375_v59  ;;  %2028 = vmatpush1.bf16.msra.mxu1 %v14377_v60  ;;  %v537_v59 = vld [vmem:[#allocation2 + $0x538] sm:$0xff]  ;;  %v14379_v60 = vcombine.low %v500_v48, %v512_v49 }
 0x13c   : > { %1988 = vmatprep.subr.bf16.mxu0 %v14400_v61  ;;  %2029 = vmatprep.subr.bf16.mxu1 %v14402_v62  ;;  %v14381_v61 = vcombine.low %v501_v50, %v513_v51  ;;  %v14404_v62 = vcombine.high %v524_v56, %v536_v57  ;;  %v14406_v63 = vcombine.high %v525_v58, %v537_v59  ;;  %v2228_v49 = vld [vmem:[%s16919_s27 + $0x140] sm:$0xff]  ;;  %v2229_v51 = vld [vmem:[%s16919_s27 + $0x148] sm:$0xff] }
 0x13d   : > { %v2232_v50 = vld [vmem:[%s16919_s27 + $0x160] sm:$0xff] }
 0x13f   : > { %1989 = vmatpush1.bf16.msra.mxu0 %v14399_v4  ;;  %2030 = vmatpush1.bf16.msra.mxu1 %v14401_v5  ;;  %v561_v4 = vld [vmem:[#allocation2 + $0x5f8] sm:$0xff]  ;;  %v14403_v5 = vcombine.low %v524_v56, %v536_v57 }
 0x140   : > { %1990 = vmatprep.subr.bf16.mxu0 %v14424_v6  ;;  %2031 = vmatprep.subr.bf16.mxu1 %v14426_v7  ;;  %v14405_v6 = vcombine.low %v525_v58, %v537_v59  ;;  %v14428_v7 = vcombine.high %v548_v1, %v560_v2  ;;  %v14430_v8 = vcombine.high %v549_v3, %v561_v4  ;;  %v2236_v57 = vld [vmem:[%s16919_s27 + $0x180] sm:$0xff]  ;;  %v2237_v59 = vld [vmem:[%s16919_s27 + $0x188] sm:$0xff] }
 0x141   : > { %v2240_v58 = vld [vmem:[%s16919_s27 + $0x1a0] sm:$0xff] }
 0x143   : > { %1991 = vmatpush1.bf16.msra.mxu0 %v14423_v13  ;;  %2032 = vmatpush1.bf16.msra.mxu1 %v14425_v14  ;;  %v2193_v13 = vld [vmem:[%s16919_s27 + $0x28] sm:$0xff]  ;;  %v14427_v14 = vcombine.low %v548_v1, %v560_v2  ;;  %v2244_v2 = vld [vmem:[%s16919_s27 + $0x1c0] sm:$0xff] }
 0x144   : > { %2058 = vmatprep.subr.bf16.mxu0 %v14260_v15  ;;  %2099 = vmatprep.subr.bf16.mxu1 %v14262_v16  ;;  %v14429_v15 = vcombine.low %v549_v3, %v561_v4  ;;  %v14432_v16 = vcombine.high %v2188_v9, %v2192_v10  ;;  %v14434_v17 = vcombine.high %v2189_v11, %v2193_v13  ;;  %v2248_v3 = vld [vmem:[%s16919_s27 + $0x1e0] sm:$0xff]  ;;  %v2245_v4 = vld [vmem:[%s16919_s27 + $0x1c8] sm:$0xff] }
 0x146   : > { %2009 = vmatmul.mubr.bf16.vlgmr.msra.gmra.mrb[16].mxu0 %v16930_v12  ;;  %2050 = vmatmul.mubr.bf16.vlgmr.msra.gmra.mrb[16].mxu1 %v16930_v12 }
 0x147   : > { %2059 = vmatpush1.bf16.msra.mxu0 %v14259_v21  ;;  %2100 = vmatpush1.bf16.msra.mxu1 %v14261_v22  ;;  %v2201_v21 = vld [vmem:[%s16919_s27 + $0x68] sm:$0xff]  ;;  %v14431_v22 = vcombine.low %v2188_v9, %v2192_v10  ;;  %v2252_v10 = vld [vmem:[%s16919_s27 + $0x200] sm:$0xff] }
 0x148   : > { %2060 = vmatprep.subr.bf16.mxu0 %v14284_v23  ;;  %2101 = vmatprep.subr.bf16.mxu1 %v14286_v24  ;;  %v14433_v23 = vcombine.low %v2189_v11, %v2193_v13  ;;  %v14440_v24 = vcombine.high %v2196_v18, %v2200_v19  ;;  %v14442_v25 = vcombine.high %v2197_v20, %v2201_v21  ;;  %v2256_v11 = vld [vmem:[%s16919_s27 + $0x220] sm:$0xff]  ;;  %v2253_v13 = vld [vmem:[%s16919_s27 + $0x208] sm:$0xff] }
 0x149   : > { %2090 = vmatprep.mubr.bf16.mxu0 %v16657_v0  ;;  %2131 = vmatprep.mubr.bf16.mxu1 %v16657_v0  ;;  %v14358_v0 = vcombine.high %v477_v43, %v489_v44  ;;  %v2224_v43 = vld [vmem:[%s16919_s27 + $0x120] sm:$0xff]  ;;  %v2221_v44 = vld [vmem:[%s16919_s27 + $0x108] sm:$0xff] }
 0x14b   : > { %2061 = vmatpush1.bf16.msra.mxu0 %v14283_v29  ;;  %2102 = vmatpush1.bf16.msra.mxu1 %v14285_v30  ;;  %v2209_v29 = vld [vmem:[%s16919_s27 + $0xa8] sm:$0xff] }
 0x14c   : > { %2062 = vmatprep.subr.bf16.mxu0 %v14308_v31  ;;  %2103 = vmatprep.subr.bf16.mxu1 %v14310_v32  ;;  %v16452_v30 = vld [vmem:[%s18896_s0] sm:$0x1]  ;;  %v14439_v31 = vcombine.low %v2196_v18, %v2200_v19  ;;  %v14441_v32 = vcombine.low %v2197_v20, %v2201_v21  ;;  %v14450_v34 = vcombine.high %v2205_v28, %v2209_v29  ;;  %v2260_v19 = vld [vmem:[%s16919_s27 + $0x240] sm:$0xff] }
 0x14d   : > { %v2264_v20 = vld [vmem:[%s16919_s27 + $0x260] sm:$0xff]  ;;  %v2261_v21 = vld [vmem:[%s16919_s27 + $0x248] sm:$0xff] }
 0x14f   : > { %2063 = vmatpush1.bf16.msra.mxu0 %v14307_v37  ;;  %2104 = vmatpush1.bf16.msra.mxu1 %v14309_v38  ;;  %v2217_v37 = vld [vmem:[%s16919_s27 + $0xe8] sm:$0xff]  ;;  %v14447_v38 = vcombine.low %v2204_v26, %v2208_v27  ;;  %v2268_v27 = vld [vmem:[%s16919_s27 + $0x280] sm:$0xff] }
 0x150   : > { %2064 = vmatprep.subr.bf16.mxu0 %v14332_v39  ;;  %2105 = vmatprep.subr.bf16.mxu1 %v14334_v40  ;;  %v14449_v39 = vcombine.low %v2205_v28, %v2209_v29  ;;  %v14458_v41 = vcombine.high %v2213_v36, %v2217_v37  ;;  %v2272_v28 = vld [vmem:[%s16919_s27 + $0x2a0] sm:$0xff]  ;;  %v2269_v29 = vld [vmem:[%s16919_s27 + $0x288] sm:$0xff] }
 0x153   : > { %2065 = vmatpush1.bf16.msra.mxu0 %v14331_v45  ;;  %2106 = vmatpush1.bf16.msra.mxu1 %v14333_v46  ;;  %v2225_v45 = vld [vmem:[%s16919_s27 + $0x128] sm:$0xff] }
 0x154   : > { %2066 = vmatprep.subr.bf16.mxu0 %v14356_v47  ;;  %2107 = vmatprep.subr.bf16.mxu1 %v14358_v0  ;;  %v14457_v47 = vcombine.low %v2213_v36, %v2217_v37  ;;  %v14464_v0 = vcombine.high %v2220_v42, %v2224_v43  ;;  %v14466_v48 = vcombine.high %v2221_v44, %v2225_v45  ;;  %v2277_v36 = vld [vmem:[%s16919_s27 + $0x2c8] sm:$0xff] }
 0x155   : > { %v2281_v37 = vld [vmem:[%s16919_s27 + $0x2e8] sm:$0xff] }
 0x157   : > { %2067 = vmatpush1.bf16.msra.mxu0 %v14355_v52  ;;  %2108 = vmatpush1.bf16.msra.mxu1 %v14357_v53  ;;  %v2233_v52 = vld [vmem:[%s16919_s27 + $0x168] sm:$0xff]  ;;  %v14463_v53 = vcombine.low %v2220_v42, %v2224_v43  ;;  %v14522_v42 = vcombine.high %v2277_v36, %v2281_v37  ;;  %v2284_v43 = vld [vmem:[%s16919_s27 + $0x300] sm:$0xff] }
 0x158   : > { %2068 = vmatprep.subr.bf16.mxu0 %v14380_v54  ;;  %2109 = vmatprep.subr.bf16.mxu1 %v14382_v55  ;;  %v14465_v54 = vcombine.low %v2221_v44, %v2225_v45  ;;  %v14472_v55 = vcombine.high %v2228_v49, %v2232_v50  ;;  %v14474_v56 = vcombine.high %v2229_v51, %v2233_v52  ;;  %v2288_v44 = vld [vmem:[%s16919_s27 + $0x320] sm:$0xff]  ;;  %v2285_v45 = vld [vmem:[%s16919_s27 + $0x308] sm:$0xff] }
 0x15b   : > { %2069 = vmatpush1.bf16.msra.mxu0 %v14379_v60  ;;  %2110 = vmatpush1.bf16.msra.mxu1 %v14381_v61  ;;  %v2241_v60 = vld [vmem:[%s16919_s27 + $0x1a8] sm:$0xff]  ;;  %v14471_v61 = vcombine.low %v2228_v49, %v2232_v50  ;;  %v14528_v49 = vcombine.high %v2284_v43, %v2288_v44 }
 0x15c   : > { %2070 = vmatprep.subr.bf16.mxu0 %v14404_v62  ;;  %2111 = vmatprep.subr.bf16.mxu1 %v14406_v63  ;;  %v14473_v62 = vcombine.low %v2229_v51, %v2233_v52  ;;  %v14480_v63 = vcombine.high %v2236_v57, %v2240_v58  ;;  %v14482_v1 = vcombine.high %v2237_v59, %v2241_v60  ;;  %v2292_v51 = vld [vmem:[%s16919_s27 + $0x340] sm:$0xff] }
 0x15d   : > { %v2296_v52 = vld [vmem:[%s16919_s27 + $0x360] sm:$0xff] }
 0x15f   : > { %2071 = vmatpush1.bf16.msra.mxu0 %v14403_v5  ;;  %2112 = vmatpush1.bf16.msra.mxu1 %v14405_v6  ;;  %v2249_v5 = vld [vmem:[%s16919_s27 + $0x1e8] sm:$0xff]  ;;  %v14479_v6 = vcombine.low %v2236_v57, %v2240_v58 }
 0x160   : > { %2072 = vmatprep.subr.bf16.mxu0 %v14428_v7  ;;  %2113 = vmatprep.subr.bf16.mxu1 %v14430_v8  ;;  %v14481_v7 = vcombine.low %v2237_v59, %v2241_v60  ;;  %v14488_v8 = vcombine.high %v2244_v2, %v2248_v3  ;;  %v14490_v9 = vcombine.high %v2245_v4, %v2249_v5  ;;  %v17020_v59 = vld [vmem:[#allocation4] sm:$0xff] }
 0x163   : > { %2073 = vmatpush1.bf16.msra.mxu0 %v14427_v14  ;;  %2114 = vmatpush1.bf16.msra.mxu1 %v14429_v15  ;;  %v2257_v14 = vld [vmem:[%s16919_s27 + $0x228] sm:$0xff]  ;;  %v14487_v15 = vcombine.low %v2244_v2, %v2248_v3 }
 0x164   : > { %11446 = vmatprep.subr.bf16.mxu0 %v14432_v16  ;;  %11938 = vmatprep.subr.bf16.mxu1 %v14434_v17  ;;  %v14489_v16 = vcombine.low %v2245_v4, %v2249_v5  ;;  %v14496_v17 = vcombine.high %v2252_v10, %v2256_v11  ;;  %v14498_v18 = vcombine.high %v2253_v13, %v2257_v14  ;;  %v2301_v3 = vld [vmem:[%s16919_s27 + $0x388] sm:$0xff] }
 0x165   : > { %v2305_v4 = vld [vmem:[%s16919_s27 + $0x3a8] sm:$0xff] }
 0x166   : > { %2091 = vmatmul.mubr.bf16.vlgmr.msra.gmra.mrb[20].mxu0 %v16930_v12  ;;  %2132 = vmatmul.mubr.bf16.vlgmr.msra.gmra.mrb[20].mxu1 %v16452_v30  ;;  %v2212_v12 = vld [vmem:[%s16919_s27 + $0xc0] sm:$0xff]  ;;  %v2273_v30 = vld [vmem:[%s16919_s27 + $0x2a8] sm:$0xff] }
 0x167   : > { %11447 = vmatpush1.bf16.msra.mxu0 %v14431_v22  ;;  %11939 = vmatpush1.bf16.msra.mxu1 %v14433_v23  ;;  %v14456_v40 = vcombine.high %v2212_v12, %v2216_v35  ;;  %v14455_v46 = vcombine.low %v2212_v12, %v2216_v35  ;;  %v2265_v22 = vld [vmem:[%s16919_s27 + $0x268] sm:$0xff]  ;;  %v14495_v23 = vcombine.low %v2252_v10, %v2256_v11  ;;  %v2276_v12 = vld [vmem:[%s16919_s27 + $0x2c0] sm:$0xff] }
 0x168   : > { %11448 = vmatprep.subr.bf16.mxu0 %v14440_v24  ;;  %11940 = vmatprep.subr.bf16.mxu1 %v14442_v25  ;;  %v14497_v24 = vcombine.low %v2253_v13, %v2257_v14  ;;  %v14504_v25 = vcombine.high %v2260_v19, %v2264_v20  ;;  %v14506_v26 = vcombine.high %v2261_v21, %v2265_v22  ;;  %v2280_v35 = vld [vmem:[%s16919_s27 + $0x2e0] sm:$0xff] }
 0x169   : > { %v14546_v13 = vcombine.high %v2301_v3, %v2305_v4  ;;  %v2308_v14 = vld [vmem:[%s16919_s27 + $0x3c0] sm:$0xff] }
 0x16b   : > { %11449 = vmatpush1.bf16.msra.mxu0 %v14439_v31  ;;  %11941 = vmatpush1.bf16.msra.mxu1 %v14441_v32  ;;  %v14503_v31 = vcombine.low %v2260_v19, %v2264_v20  ;;  %v14505_v32 = vcombine.low %v2261_v21, %v2265_v22 }
 0x16c   : > { %11450 = vmatprep.subr.bf16.mxu0 %v14448_v33  ;;  %11942 = vmatprep.subr.bf16.mxu1 %v14450_v34  ;;  %v14512_v33 = vcombine.high %v2268_v27, %v2272_v28  ;;  %v14514_v34 = vcombine.high %v2269_v29, %v2273_v30 }
 0x16f   : > { %11451 = vmatpush1.bf16.msra.mxu0 %v14447_v38  ;;  %11943 = vmatpush1.bf16.msra.mxu1 %v14449_v39  ;;  %v14511_v38 = vcombine.low %v2268_v27, %v2272_v28  ;;  %v1528_v39 = vlaneseq }
 0x170   : > { %11452 = vmatprep.subr.bf16.mxu0 %v14456_v40  ;;  %11944 = vmatprep.subr.bf16.mxu1 %v14458_v41  ;;  %v14513_v40 = vcombine.low %v2269_v29, %v2273_v30  ;;  %v14520_v41 = vcombine.high %v2276_v12, %v2280_v35  ;;  %v14545_v29 = vcombine.low %v2301_v3, %v2305_v4 }
 0x173   : > { %11453 = vmatpush1.bf16.msra.mxu0 %v14455_v46  ;;  %11945 = vmatpush1.bf16.msra.mxu1 %v14457_v47  ;;  %v2289_v46 = vld [vmem:[%s16919_s27 + $0x328] sm:$0xff]  ;;  %v14519_v47 = vcombine.low %v2276_v12, %v2280_v35 }
 0x174   : > { %11454 = vmatprep.subr.bf16.mxu0 %v14464_v0  ;;  %11946 = vmatprep.subr.bf16.mxu1 %v14466_v48  ;;  %v17008_v0 = vshrl.u32 %v1528_v39, 7  ;;  %v14521_v48 = vcombine.low %v2277_v36, %v2281_v37  ;;  %v14530_v50 = vcombine.high %v2285_v45, %v2289_v46  ;;  %v14529_v58 = vcombine.low %v2285_v45, %v2289_v46  ;;  %v2317_v36 = vld [vmem:[%s16919_s27 + $0x408] sm:$0xff]  ;;  %v2324_v45 = vld [vmem:[%s16919_s27 + $0x440] sm:$0xff] }
 0x175   : > { %v2321_v37 = vld [vmem:[%s16919_s27 + $0x428] sm:$0xff]  ;;  %v2328_v46 = vld [vmem:[%s16919_s27 + $0x460] sm:$0xff] }
 0x176   : > { %v17018_v57 = vsub.s32 1, %v17008_v0  ;;  %v17023_v60 = vsub.s32 0, %v17008_v0  ;;  %v17028_v2 = vsub.s32 3, %v17008_v0 }
 0x177   : > { %11455 = vmatpush1.bf16.msra.mxu0 %v14463_v53  ;;  %11947 = vmatpush1.bf16.msra.mxu1 %v14465_v54  ;;  %v2293_v53 = vld [vmem:[%s16919_s27 + $0x348] sm:$0xff] }
 0x178   : > { %11456 = vmatprep.subr.bf16.mxu0 %v14472_v55  ;;  %11948 = vmatprep.subr.bf16.mxu1 %v14474_v56  ;;  %v2297_v54 = vld [vmem:[%s16919_s27 + $0x368] sm:$0xff]  ;;  %v14527_v55 = vcombine.low %v2284_v43, %v2288_v44  ;;  %v17015_v56 = vsub.s32 2, %v17008_v0  ;;  %v14562_v43 = vcombine.high %v2317_v36, %v2321_v37 }
 0x17a   : > { %v1539_v5 = vrot.slane %v17020_v59, %v17015_v56 }
 0x17b   : > { %11457 = vmatpush1.bf16.msra.mxu0 %v14471_v61  ;;  %11949 = vmatpush1.bf16.msra.mxu1 %v14473_v62  ;;  %v14536_v61 = vcombine.high %v2292_v51, %v2296_v52  ;;  %v14538_v62 = vcombine.high %v2293_v53, %v2297_v54 }
 0x17c   : > { %11458 = vmatprep.subr.bf16.mxu0 %v14480_v63  ;;  %11950 = vmatprep.subr.bf16.mxu1 %v14482_v1  ;;  %v2300_v63 = vld [vmem:[%s16919_s27 + $0x380] sm:$0xff] }
 0x17d   : > { %v2304_v1 = vld [vmem:[%s16919_s27 + $0x3a0] sm:$0xff] }
 0x17e   : > { %v14544_v10 = vcombine.high %v2300_v63, %v2304_v1 }
 0x17f   : > { %11459 = vmatpush1.bf16.msra.mxu0 %v14479_v6  ;;  %11951 = vmatpush1.bf16.msra.mxu1 %v14481_v7  ;;  %v1535_v6 = vrot.slane %v17020_v59, %v17018_v57  ;;  %v14535_v7 = vcombine.low %v2292_v51, %v2296_v52  ;;  %v14561_v51 = vcombine.low %v2317_v36, %v2321_v37  ;;  %v2365_v37 = vld [vmem:[%s16919_s27 + $0x588] sm:$0xff] }
 0x180   : > { %11460 = vmatprep.subr.bf16.mxu0 %v14488_v8  ;;  %11952 = vmatprep.subr.bf16.mxu1 %v14490_v9  ;;  %v1531_v8 = vrot.slane %v17020_v59, %v17023_v60  ;;  %v14537_v9 = vcombine.low %v2293_v53, %v2297_v54  ;;  %v14568_v52 = vcombine.high %v2324_v45, %v2328_v46  ;;  %v2332_v53 = vld [vmem:[%s16919_s27 + $0x480] sm:$0xff] }
 0x181   : > { %v2336_v54 = vld [vmem:[%s16919_s27 + $0x4a0] sm:$0xff] }
 0x182   : > { %v14576_v3 = vcombine.high %v2332_v53, %v2336_v54 }
 0x183   : > { %11461 = vmatpush1.bf16.msra.mxu0 %v14487_v15  ;;  %11953 = vmatpush1.bf16.msra.mxu1 %v14489_v16  ;;  %v2312_v15 = vld [vmem:[%s16919_s27 + $0x3e0] sm:$0xff] }
 0x184   : > { %11462 = vmatprep.subr.bf16.mxu0 %v14496_v17  ;;  %11954 = vmatprep.subr.bf16.mxu1 %v14498_v18  ;;  %v1543_v18 = vrot.slane %v17020_v59, %v17028_v2  ;;  %v14552_v30 = vcombine.high %v2308_v14, %v2312_v15  ;;  %v14551_v39 = vcombine.low %v2308_v14, %v2312_v15  ;;  %v2348_v14 = vld [vmem:[%s16919_s27 + $0x500] sm:$0xff] }
 0x185   : > { %v2352_v15 = vld [vmem:[%s16919_s27 + $0x520] sm:$0xff] }
 0x187   : > { %11463 = vmatpush1.bf16.msra.mxu0 %v14495_v23  ;;  %11955 = vmatpush1.bf16.msra.mxu1 %v14497_v24  ;;  %v14543_v23 = vcombine.low %v2300_v63, %v2304_v1  ;;  %v2309_v24 = vld [vmem:[%s16919_s27 + $0x3c8] sm:$0xff]  ;;  %v14567_v63 = vcombine.low %v2324_v45, %v2328_v46 }
 0x188   : > { %11464 = vmatprep.subr.bf16.mxu0 %v14504_v25  ;;  %11956 = vmatprep.subr.bf16.mxu1 %v14506_v26  ;;  %v2313_v25 = vld [vmem:[%s16919_s27 + $0x3e8] sm:$0xff] }
 0x189   : > { %v14554_v35 = vcombine.high %v2309_v24, %v2313_v25 }
 0x18b   : > { %11465 = vmatpush1.bf16.msra.mxu0 %v14503_v31  ;;  %11957 = vmatpush1.bf16.msra.mxu1 %v14505_v32 }
 0x18c   : > { %11466 = vmatprep.subr.bf16.mxu0 %v14512_v33  ;;  %11958 = vmatprep.subr.bf16.mxu1 %v14514_v34  ;;  %v2316_v33 = vld [vmem:[%s16919_s27 + $0x400] sm:$0xff] }
 0x18d   : > { %v2320_v34 = vld [vmem:[%s16919_s27 + $0x420] sm:$0xff] }
 0x18f   : > { %11467 = vmatpush1.bf16.msra.mxu0 %v14511_v38  ;;  %11959 = vmatpush1.bf16.msra.mxu1 %v14513_v40 }
 0x190   : > { %11468 = vmatprep.subr.bf16.mxu0 %v14520_v41  ;;  %11960 = vmatprep.subr.bf16.mxu1 %v14522_v42  ;;  %v14553_v41 = vcombine.low %v2309_v24, %v2313_v25  ;;  %v14560_v42 = vcombine.high %v2316_v33, %v2320_v34  ;;  %v2360_v24 = vld [vmem:[%s16919_s27 + $0x560] sm:$0xff]  ;;  %v17081_v25 = vsub.s32 4, %v17008_v0 }
 0x192   : > { %v1547_v36 = vrot.slane %v17020_v59, %v17081_v25 }
 0x193   : > { %11469 = vmatpush1.bf16.msra.mxu0 %v14519_v47  ;;  %11961 = vmatpush1.bf16.msra.mxu1 %v14521_v48  ;;  %v14559_v47 = vcombine.low %v2316_v33, %v2320_v34  ;;  %v2325_v48 = vld [vmem:[%s16919_s27 + $0x448] sm:$0xff] }
 0x194   : > { %11470 = vmatprep.subr.bf16.mxu0 %v14528_v49  ;;  %11962 = vmatprep.subr.bf16.mxu1 %v14530_v50  ;;  %v2329_v49 = vld [vmem:[%s16919_s27 + $0x468] sm:$0xff] }
 0x195   : > { %v14569_v1 = vcombine.low %v2325_v48, %v2329_v49 }
 0x197   : > { %11471 = vmatpush1.bf16.msra.mxu0 %v14527_v55  ;;  %11963 = vmatpush1.bf16.msra.mxu1 %v14529_v58  ;;  %v14570_v58 = vcombine.high %v2325_v48, %v2329_v49  ;;  %v2376_v48 = vld [vmem:[%s16919_s27 + $0x5e0] sm:$0xff] }
 0x198   : > { %11472 = vmatprep.subr.bf16.mxu0 %v14536_v61  ;;  %11964 = vmatprep.subr.bf16.mxu1 %v14538_v62  ;;  %v2333_v61 = vld [vmem:[%s16919_s27 + $0x488] sm:$0xff] }
 0x199   : > { %v1682_v11 = vpop.f32.mrb[0].mxu0  ;;  %v1723_v16 = vpop.f32.mrb[0].mxu1  ;;  %v2337_v62 = vld [vmem:[%s16919_s27 + $0x4a8] sm:$0xff] }
 0x19a   : > { %v1684_v17 = vpop.f32.mrb[1].mxu0  ;;  %v17042_v19 = vadd.f32 %v1723_v16, %v1539_v5  ;;  %v1725_v21 = vpop.f32.mrb[1].mxu1  ;;  %v1683_v26 = vadd.f32 %v1682_v11, %v1531_v8  ;;  %v14578_v4 = vcombine.high %v2333_v61, %v2337_v62  ;;  %v2340_v5 = vld [vmem:[%s16919_s27 + $0x4c0] sm:$0xff]  ;;  %v2345_v8 = vld [vmem:[%s16919_s27 + $0x4e8] sm:$0xff] }
 0x19b   : > { %v1685_v20 = vadd.f32 %v1684_v17, %v1535_v6  ;;  %v1686_v22 = vpop.f32.mrb[2].mxu0  ;;  %11473 = vmatpush1.bf16.msra.mxu0 %v14535_v7  ;;  %v1727_v27 = vpop.f32.mrb[2].mxu1  ;;  %11965 = vmatpush1.bf16.msra.mxu1 %v14537_v9  ;;  %v1726_v12 = vadd.f32 %v1725_v21, %v1543_v18  ;;  %v2344_v6 = vld [vmem:[%s16919_s27 + $0x4e0] sm:$0xff]  ;;  %v2341_v7 = vld [vmem:[%s16919_s27 + $0x4c8] sm:$0xff]  ;;  %v14575_v9 = vcombine.low %v2332_v53, %v2336_v54 }
 0x19c   : > { %v1687_v28 = vpop.f32.mrb[3].mxu0  ;;  %11474 = vmatprep.subr.bf16.mxu0 %v14544_v10  ;;  %v1728_v32 = vpop.f32.mrb[3].mxu1  ;;  %11966 = vmatprep.subr.bf16.mxu1 %v14546_v13  ;;  %v2140_v40 = vmax.f32 %v1683_v26, 0.0  ;;  %v14577_v10 = vcombine.low %v2333_v61, %v2337_v62  ;;  %v14584_v11 = vcombine.high %v2340_v5, %v2344_v6  ;;  %v14586_v13 = vcombine.high %v2341_v7, %v2345_v8  ;;  %v2349_v16 = vld [vmem:[%s16919_s27 + $0x508] sm:$0xff] }
 0x19d   : > { %v2141_v31 = vmax.f32 %v1685_v20, 0.0  ;;  %v2143_v44 = vmax.f32 %v1726_v12, 0.0  ;;  %v2353_v17 = vld [vmem:[%s16919_s27 + $0x528] sm:$0xff]  ;;  %v14583_v18 = vcombine.low %v2340_v5, %v2344_v6  ;;  %v14585_v20 = vcombine.low %v2341_v7, %v2345_v8  ;;  %v2364_v12 = vld [vmem:[%s16919_s27 + $0x580] sm:$0xff] }
 0x19e   : > { %v17058_v50 = vpack.c.bf16 %v2140_v40, %v2140_v40  ;;  %v14592_v21 = vcombine.high %v2348_v14, %v2352_v15  ;;  %v14594_v22 = vcombine.high %v2349_v16, %v2353_v17  ;;  %v2357_v26 = vld [vmem:[%s16919_s27 + $0x548] sm:$0xff]  ;;  %v14591_v28 = vcombine.low %v2348_v14, %v2352_v15 }
 0x19f   : > { %v17050_v38 = vpack.c.bf16 %v2141_v31, %v2141_v31  ;;  %11475 = vmatpush1.bf16.msra.mxu0 %v14543_v23  ;;  %11967 = vmatpush1.bf16.msra.mxu1 %v14545_v29  ;;  %v17062_v55 = vpack.c.bf16 %v2143_v44, %v2143_v44  ;;  %v2356_v23 = vld [vmem:[%s16919_s27 + $0x540] sm:$0xff]  ;;  %v2361_v27 = vld [vmem:[%s16919_s27 + $0x568] sm:$0xff]  ;;  %v17086_v29 = vsub.s32 6, %v17008_v0  ;;  %v14593_v31 = vcombine.low %v2349_v16, %v2353_v17 }
 0x1a0   : > { %11476 = vmatprep.subr.bf16.mxu0 %v14552_v30  ;;  %11968 = vmatprep.subr.bf16.mxu1 %v14554_v35  ;;  %v17089_v30 = vsub.s32 5, %v17008_v0  ;;  %v17092_v32 = vsub.s32 7, %v17008_v0  ;;  %v14600_v33 = vcombine.high %v2356_v23, %v2360_v24  ;;  %v14602_v34 = vcombine.high %v2357_v26, %v2361_v27  ;;  %v2368_v35 = vld [vmem:[%s16919_s27 + $0x5a0] sm:$0xff]  ;;  %v2373_v53 = vld [vmem:[%s16919_s27 + $0x5c8] sm:$0xff] }
 0x1a1   : > { %11478 = vmatprep.mubr.bf16.mxu0 %v17050_v38  ;;  %11970 = vmatprep.mubr.bf16.mxu1 %v17050_v38  ;;  %v1555_v40 = vrot.slane %v17020_v59, %v17086_v29  ;;  %v14608_v44 = vcombine.high %v2364_v12, %v2368_v35  ;;  %v2377_v54 = vld [vmem:[%s16919_s27 + $0x5e8] sm:$0xff] }
 0x1a2   : > { %v1551_v0 = vrot.slane %v17020_v59, %v17089_v30  ;;  %v14618_v8 = vcombine.high %v2373_v53, %v2377_v54  ;;  %v14617_v15 = vcombine.low %v2373_v53, %v2377_v54 }
 0x1a3   : > { %11477 = vmatpush1.bf16.msra.mxu0 %v14551_v39  ;;  %11969 = vmatpush1.bf16.msra.mxu1 %v14553_v41  ;;  %v2369_v39 = vld [vmem:[%s16919_s27 + $0x5a8] sm:$0xff]  ;;  %v14599_v41 = vcombine.low %v2356_v23, %v2360_v24 }
 0x1a4   : > { %11487 = vmatprep.subr.bf16.mxu0 %v14560_v42  ;;  %11979 = vmatprep.subr.bf16.mxu1 %v14562_v43  ;;  %v1559_v42 = vrot.slane %v17020_v59, %v17092_v32  ;;  %v14601_v43 = vcombine.low %v2357_v26, %v2361_v27  ;;  %v14610_v46 = vcombine.high %v2365_v37, %v2369_v39 }
 0x1a5   : > { %v14609_v5 = vcombine.low %v2365_v37, %v2369_v39  ;;  %v2404_v39 = vld [vmem:[%s16919_s27 + $0x6c0] sm:$0xff] }
 0x1a6   : > { %11479 = vmatmul.mubr.bf16.vlgmr.msra.gmra.mrb[24].mxu0 %v17058_v50  ;;  %11971 = vmatmul.mubr.bf16.vlgmr.msra.gmra.mrb[24].mxu1 %v17058_v50 }
 0x1a7   : > { %11488 = vmatpush1.bf16.msra.mxu0 %v14559_v47  ;;  %11519 = vmatprep.mubr.bf16.mxu0 %v17062_v55  ;;  %v2372_v47 = vld [vmem:[%s16919_s27 + $0x5c0] sm:$0xff] }
 0x1a8   : > { %11980 = vmatpush1.bf16.msra.mxu1 %v14561_v51  ;;  %12011 = vmatprep.mubr.bf16.mxu1 %v17062_v55  ;;  %v14616_v6 = vcombine.high %v2372_v47, %v2376_v48  ;;  %v14615_v14 = vcombine.low %v2372_v47, %v2376_v48  ;;  %v2416_v47 = vld [vmem:[%s16919_s27 + $0x720] sm:$0xff]  ;;  %v2413_v48 = vld [vmem:[%s16919_s27 + $0x708] sm:$0xff] }
 0x1a9   : > { %11489 = vmatprep.subr.bf16.mxu0 %v14568_v52  ;;  %11981 = vmatprep.subr.bf16.mxu1 %v14570_v58 }
 0x1ab   : > { %11490 = vmatpush1.bf16.msra.mxu0 %v14567_v63  ;;  %v14607_v63 = vcombine.low %v2364_v12, %v2368_v35 }
 0x1ac   : > { %11982 = vmatpush1.bf16.msra.mxu1 %v14569_v1  ;;  %11491 = vmatprep.subr.bf16.mxu0 %v14576_v3 }
 0x1ad   : > { %11983 = vmatprep.subr.bf16.mxu1 %v14578_v4 }
 0x1af   : > { %11492 = vmatpush1.bf16.msra.mxu0 %v14575_v9  ;;  %v2380_v9 = vld [vmem:[%s16919_s27 + $0x600] sm:$0xff] }
 0x1b0   : > { %11984 = vmatpush1.bf16.msra.mxu1 %v14577_v10  ;;  %11493 = vmatprep.subr.bf16.mxu0 %v14584_v11  ;;  %v2384_v10 = vld [vmem:[%s16919_s27 + $0x620] sm:$0xff]  ;;  %v2381_v11 = vld [vmem:[%s16919_s27 + $0x608] sm:$0xff] }
 0x1b1   : > { %11985 = vmatprep.subr.bf16.mxu1 %v14586_v13  ;;  %v2385_v13 = vld [vmem:[%s16919_s27 + $0x628] sm:$0xff]  ;;  %v14624_v16 = vcombine.high %v2380_v9, %v2384_v10  ;;  %v14623_v23 = vcombine.low %v2380_v9, %v2384_v10  ;;  %v2428_v9 = vld [vmem:[%s16919_s27 + $0x780] sm:$0xff] }
 0x1b2   : > { %v14626_v17 = vcombine.high %v2381_v11, %v2385_v13  ;;  %v14625_v24 = vcombine.low %v2381_v11, %v2385_v13  ;;  %v2432_v10 = vld [vmem:[%s16919_s27 + $0x7a0] sm:$0xff]  ;;  %v17144_v11 = vld [vmem:[#allocation4 + $0x8] sm:$0xff]  ;;  %v2429_v13 = vld [vmem:[%s16919_s27 + $0x788] sm:$0xff] }
 0x1b3   : > { %11494 = vmatpush1.bf16.msra.mxu0 %v14583_v18  ;;  %v2388_v18 = vld [vmem:[%s16919_s27 + $0x640] sm:$0xff] }
 0x1b4   : > { %11986 = vmatpush1.bf16.msra.mxu1 %v14585_v20  ;;  %11495 = vmatprep.subr.bf16.mxu0 %v14592_v21  ;;  %v2392_v20 = vld [vmem:[%s16919_s27 + $0x660] sm:$0xff]  ;;  %v2389_v21 = vld [vmem:[%s16919_s27 + $0x648] sm:$0xff] }
 0x1b5   : > { %11987 = vmatprep.subr.bf16.mxu1 %v14594_v22  ;;  %v2393_v22 = vld [vmem:[%s16919_s27 + $0x668] sm:$0xff]  ;;  %v14632_v26 = vcombine.high %v2388_v18, %v2392_v20  ;;  %v14631_v12 = vcombine.low %v2388_v18, %v2392_v20  ;;  %v14672_v20 = vcombine.high %v2428_v9, %v2432_v10 }
 0x1b6   : > { %v14634_v27 = vcombine.high %v2389_v21, %v2393_v22  ;;  %v14633_v35 = vcombine.low %v2389_v21, %v2393_v22 }
 0x1b7   : > { %11496 = vmatpush1.bf16.msra.mxu0 %v14591_v28  ;;  %v2396_v28 = vld [vmem:[%s16919_s27 + $0x680] sm:$0xff] }
 0x1b8   : > { %11988 = vmatpush1.bf16.msra.mxu1 %v14593_v31  ;;  %11497 = vmatprep.subr.bf16.mxu0 %v14600_v33  ;;  %v2400_v31 = vld [vmem:[%s16919_s27 + $0x6a0] sm:$0xff]  ;;  %v2397_v33 = vld [vmem:[%s16919_s27 + $0x688] sm:$0xff] }
 0x1b9   : > { %v1764_v45 = vpop.f32.mrb[4].mxu0  ;;  %11989 = vmatprep.subr.bf16.mxu1 %v14602_v34  ;;  %v1805_v51 = vpop.f32.mrb[4].mxu1  ;;  %v2401_v34 = vld [vmem:[%s16919_s27 + $0x6a8] sm:$0xff] }
 0x1ba   : > { %v17108_v49 = vadd.f32 %v1764_v45, %v1547_v36  ;;  %v1766_v52 = vpop.f32.mrb[5].mxu0  ;;  %v17112_v58 = vadd.f32 %v1805_v51, %v1555_v40  ;;  %v1807_v59 = vpop.f32.mrb[5].mxu1  ;;  %v14640_v36 = vcombine.high %v2396_v28, %v2400_v31  ;;  %v14642_v37 = vcombine.high %v2397_v33, %v2401_v34  ;;  %v2408_v40 = vld [vmem:[%s16919_s27 + $0x6e0] sm:$0xff]  ;;  %v2417_v51 = vld [vmem:[%s16919_s27 + $0x728] sm:$0xff] }
 0x1bb   : > { %v17114_v61 = vadd.f32 %v1766_v52, %v1551_v0  ;;  %v1768_v62 = vpop.f32.mrb[6].mxu0  ;;  %11498 = vmatpush1.bf16.msra.mxu0 %v14599_v41  ;;  %v17116_v1 = vadd.f32 %v1807_v59, %v1559_v42  ;;  %v1809_v3 = vpop.f32.mrb[6].mxu1  ;;  %v2405_v0 = vld [vmem:[%s16919_s27 + $0x6c8] sm:$0xff]  ;;  %v14639_v42 = vcombine.low %v2396_v28, %v2400_v31  ;;  %v14647_v52 = vcombine.low %v2404_v39, %v2408_v40 }
 0x1bc   : > { %11990 = vmatpush1.bf16.msra.mxu1 %v14601_v43  ;;  %v1769_v4 = vpop.f32.mrb[7].mxu0  ;;  %11499 = vmatprep.subr.bf16.mxu0 %v14608_v44  ;;  %v1810_v7 = vpop.f32.mrb[7].mxu1  ;;  %v2409_v41 = vld [vmem:[%s16919_s27 + $0x6e8] sm:$0xff]  ;;  %v14641_v43 = vcombine.low %v2397_v33, %v2401_v34  ;;  %v14648_v44 = vcombine.high %v2404_v39, %v2408_v40  ;;  %v14658_v59 = vcombine.high %v2413_v48, %v2417_v51  ;;  %v2420_v62 = vld [vmem:[%s16919_s27 + $0x740] sm:$0xff] }
 0x1bd   : > { %11991 = vmatprep.subr.bf16.mxu1 %v14610_v46  ;;  %v14650_v45 = vcombine.high %v2405_v0, %v2409_v41  ;;  %v2412_v46 = vld [vmem:[%s16919_s27 + $0x700] sm:$0xff]  ;;  %v14649_v53 = vcombine.low %v2405_v0, %v2409_v41  ;;  %v2421_v3 = vld [vmem:[%s16919_s27 + $0x748] sm:$0xff] }
 0x1be   : > { %v14656_v54 = vcombine.high %v2412_v46, %v2416_v47  ;;  %v2425_v4 = vld [vmem:[%s16919_s27 + $0x768] sm:$0xff] }
 0x1bf   : > { %11500 = vmatpush1.bf16.msra.mxu0 %v14607_v63  ;;  %v2424_v63 = vld [vmem:[%s16919_s27 + $0x760] sm:$0xff]  ;;  %v14665_v18 = vcombine.low %v2421_v3, %v2425_v4  ;;  %v2437_v28 = vld [vmem:[%s16919_s27 + $0x7c8] sm:$0xff] }
 0x1c0   : > { %11992 = vmatpush1.bf16.msra.mxu1 %v14609_v5  ;;  %11501 = vmatprep.subr.bf16.mxu0 %v14616_v6  ;;  %v14655_v5 = vcombine.low %v2412_v46, %v2416_v47  ;;  %v14657_v6 = vcombine.low %v2413_v48, %v2417_v51  ;;  %v14664_v7 = vcombine.high %v2420_v62, %v2424_v63  ;;  %v2441_v31 = vld [vmem:[%s16919_s27 + $0x7e8] sm:$0xff]  ;;  %v2142_v48 = vmax.f32 %v17042_v19, 0.0 }
 0x1c1   : > { %11993 = vmatprep.subr.bf16.mxu1 %v14618_v8  ;;  %v14666_v8 = vcombine.high %v2421_v3, %v2425_v4  ;;  %v2449_v46 = vld [vmem:[%s16919_s27 + $0x828] sm:$0xff]  ;;  %v14681_v51 = vcombine.low %v2437_v28, %v2441_v31 }
 0x1c2   : > { %v2453_v3 = vld [vmem:[%s16919_s27 + $0x848] sm:$0xff] }
 0x1c3   : > { %11502 = vmatpush1.bf16.msra.mxu0 %v14615_v14  ;;  %v2433_v14 = vld [vmem:[%s16919_s27 + $0x7a8] sm:$0xff] }
 0x1c4   : > { %11994 = vmatpush1.bf16.msra.mxu1 %v14617_v15  ;;  %11503 = vmatprep.subr.bf16.mxu0 %v14624_v16  ;;  %v1571_v15 = vrot.slane %v17144_v11, %v17015_v56  ;;  %v14663_v16 = vcombine.low %v2420_v62, %v2424_v63  ;;  %v14674_v22 = vcombine.high %v2429_v13, %v2433_v14  ;;  %v2456_v62 = vld [vmem:[%s16919_s27 + $0x860] sm:$0xff]  ;;  %v2457_v4 = vld [vmem:[%s16919_s27 + $0x868] sm:$0xff] }
 0x1c5   : > { %11995 = vmatprep.subr.bf16.mxu1 %v14626_v17  ;;  %v1575_v17 = vrot.slane %v17144_v11, %v17028_v2  ;;  %v14673_v40 = vcombine.low %v2429_v13, %v2433_v14  ;;  %v2465_v13 = vld [vmem:[%s16919_s27 + $0x8a8] sm:$0xff] }
 0x1c7   : > { %11504 = vmatpush1.bf16.msra.mxu0 %v14623_v23  ;;  %v2436_v23 = vld [vmem:[%s16919_s27 + $0x7c0] sm:$0xff] }
 0x1c8   : > { %11996 = vmatpush1.bf16.msra.mxu1 %v14625_v24  ;;  %11505 = vmatprep.subr.bf16.mxu0 %v14632_v26  ;;  %v2440_v24 = vld [vmem:[%s16919_s27 + $0x7e0] sm:$0xff] }
 0x1c9   : > { %11997 = vmatprep.subr.bf16.mxu1 %v14634_v27  ;;  %v14680_v0 = vcombine.high %v2436_v23, %v2440_v24  ;;  %v14679_v47 = vcombine.low %v2436_v23, %v2440_v24  ;;  %v2473_v23 = vld [vmem:[%s16919_s27 + $0x8e8] sm:$0xff] }
 0x1cb   : > { %11506 = vmatpush1.bf16.msra.mxu0 %v14631_v12 }
 0x1cc   : > { %11998 = vmatpush1.bf16.msra.mxu1 %v14633_v35  ;;  %11507 = vmatprep.subr.bf16.mxu0 %v14640_v36  ;;  %v14671_v35 = vcombine.low %v2428_v9, %v2432_v10  ;;  %v2461_v10 = vld [vmem:[%s16919_s27 + $0x888] sm:$0xff] }
 0x1cd   : > { %11999 = vmatprep.subr.bf16.mxu1 %v14642_v37 }
 0x1cf   : > { %11508 = vmatpush1.bf16.msra.mxu0 %v14639_v42  ;;  %v14682_v42 = vcombine.high %v2437_v28, %v2441_v31 }
 0x1d0   : > { %12000 = vmatpush1.bf16.msra.mxu1 %v14641_v43  ;;  %11509 = vmatprep.subr.bf16.mxu0 %v14648_v44  ;;  %v2444_v43 = vld [vmem:[%s16919_s27 + $0x800] sm:$0xff] }
 0x1d1   : > { %12001 = vmatprep.subr.bf16.mxu1 %v14650_v45  ;;  %v2448_v44 = vld [vmem:[%s16919_s27 + $0x820] sm:$0xff]  ;;  %v2445_v45 = vld [vmem:[%s16919_s27 + $0x808] sm:$0xff] }
 0x1d2   : > { %v14687_v63 = vcombine.low %v2444_v43, %v2448_v44  ;;  %v14689_v19 = vcombine.low %v2445_v45, %v2449_v46 }
 0x1d3   : > { %11510 = vmatpush1.bf16.msra.mxu0 %v14647_v52  ;;  %v14688_v52 = vcombine.high %v2444_v43, %v2448_v44  ;;  %v2488_v43 = vld [vmem:[%s16919_s27 + $0x960] sm:$0xff]  ;;  %v2485_v44 = vld [vmem:[%s16919_s27 + $0x948] sm:$0xff] }
 0x1d4   : > { %12002 = vmatpush1.bf16.msra.mxu1 %v14649_v53  ;;  %11511 = vmatprep.subr.bf16.mxu0 %v14656_v54  ;;  %v14690_v53 = vcombine.high %v2445_v45, %v2449_v46  ;;  %v2145_v54 = vmax.f32 %v17114_v61, 0.0  ;;  %v14698_v61 = vcombine.high %v2453_v3, %v2457_v4  ;;  %v2489_v45 = vld [vmem:[%s16919_s27 + $0x968] sm:$0xff] }
 0x1d5   : > { %12003 = vmatprep.subr.bf16.mxu1 %v14658_v59  ;;  %v2452_v59 = vld [vmem:[%s16919_s27 + $0x840] sm:$0xff] }
 0x1d6   : > { %v17178_v9 = vpack.c.bf16 %v2145_v54, %v2145_v54  ;;  %v14695_v14 = vcombine.low %v2452_v59, %v2456_v62  ;;  %v1579_v54 = vrot.slane %v17144_v11, %v17081_v25 }
 0x1d7   : > { %11512 = vmatpush1.bf16.msra.mxu0 %v14655_v5  ;;  %v17174_v5 = vpack.c.bf16 %v2142_v48, %v2142_v48 }
 0x1d8   : > { %12004 = vmatpush1.bf16.msra.mxu1 %v14657_v6  ;;  %11513 = vmatprep.subr.bf16.mxu0 %v14664_v7  ;;  %v14696_v6 = vcombine.high %v2452_v59, %v2456_v62  ;;  %v2460_v7 = vld [vmem:[%s16919_s27 + $0x880] sm:$0xff]  ;;  %v2493_v59 = vld [vmem:[%s16919_s27 + $0x988] sm:$0xff] }
 0x1d9   : > { %v17152_v21 = vpop.f32.mrb[8].mxu0  ;;  %12005 = vmatprep.subr.bf16.mxu1 %v14666_v8  ;;  %v1887_v26 = vpop.f32.mrb[8].mxu1  ;;  %v2464_v8 = vld [vmem:[%s16919_s27 + $0x8a0] sm:$0xff]  ;;  %v2497_v62 = vld [vmem:[%s16919_s27 + $0x9a8] sm:$0xff] }
 0x1da   : > { %v17156_v27 = vpop.f32.mrb[9].mxu0  ;;  %v17160_v33 = vadd.f32 %v1887_v26, %v1571_v15  ;;  %v1889_v34 = vpop.f32.mrb[9].mxu1  ;;  %v14697_v15 = vcombine.low %v2453_v3, %v2457_v4  ;;  %v14703_v24 = vcombine.low %v2460_v7, %v2464_v8  ;;  %v14705_v26 = vcombine.low %v2461_v10, %v2465_v13 }
 0x1db   : > { %v1850_v12 = vpop.f32.mrb[10].mxu0  ;;  %11514 = vmatpush1.bf16.msra.mxu0 %v14663_v16  ;;  %v17162_v36 = vadd.f32 %v1889_v34, %v1575_v17  ;;  %v1891_v37 = vpop.f32.mrb[10].mxu1  ;;  %v14704_v16 = vcombine.high %v2460_v7, %v2464_v8  ;;  %v14706_v17 = vcombine.high %v2461_v10, %v2465_v13  ;;  %v2476_v34 = vld [vmem:[%s16919_s27 + $0x900] sm:$0xff]  ;;  %v1583_v3 = vrot.slane %v17144_v11, %v17089_v30 }
 0x1dc   : > { %12006 = vmatpush1.bf16.msra.mxu1 %v14665_v18  ;;  %v1851_v39 = vpop.f32.mrb[11].mxu0  ;;  %11515 = vmatprep.subr.bf16.mxu0 %v14672_v20  ;;  %v1892_v41 = vpop.f32.mrb[11].mxu1  ;;  %v2468_v18 = vld [vmem:[%s16919_s27 + $0x8c0] sm:$0xff]  ;;  %v2481_v37 = vld [vmem:[%s16919_s27 + $0x928] sm:$0xff] }
 0x1dd   : > { %12007 = vmatprep.subr.bf16.mxu1 %v14674_v22  ;;  %v2472_v20 = vld [vmem:[%s16919_s27 + $0x8e0] sm:$0xff]  ;;  %v2469_v22 = vld [vmem:[%s16919_s27 + $0x8c8] sm:$0xff] }
 0x1de   : > { %v14712_v28 = vcombine.high %v2468_v18, %v2472_v20  ;;  %v14714_v31 = vcombine.high %v2469_v22, %v2473_v23  ;;  %v2480_v12 = vld [vmem:[%s16919_s27 + $0x920] sm:$0xff]  ;;  %v14711_v39 = vcombine.low %v2468_v18, %v2472_v20  ;;  %v2505_v18 = vld [vmem:[%s16919_s27 + $0x9e8] sm:$0xff] }
 0x1df   : > { %11516 = vmatpush1.bf16.msra.mxu0 %v14671_v35  ;;  %v2477_v35 = vld [vmem:[%s16919_s27 + $0x908] sm:$0xff]  ;;  %v14719_v46 = vcombine.low %v2476_v34, %v2480_v12  ;;  %v2500_v10 = vld [vmem:[%s16919_s27 + $0x9c0] sm:$0xff] }
 0x1e0   : > { %12008 = vmatpush1.bf16.msra.mxu1 %v14673_v40  ;;  %11517 = vmatprep.subr.bf16.mxu0 %v14680_v0  ;;  %v14713_v40 = vcombine.low %v2469_v22, %v2473_v23  ;;  %v14720_v0 = vcombine.high %v2476_v34, %v2480_v12  ;;  %v14722_v41 = vcombine.high %v2477_v35, %v2481_v37  ;;  %v2504_v13 = vld [vmem:[%s16919_s27 + $0x9e0] sm:$0xff] }
 0x1e1   : > { %12009 = vmatprep.subr.bf16.mxu1 %v14682_v42  ;;  %v2484_v42 = vld [vmem:[%s16919_s27 + $0x940] sm:$0xff]  ;;  %v14737_v12 = vcombine.low %v2493_v59, %v2497_v62 }
 0x1e2   : > { %v14728_v48 = vcombine.high %v2484_v42, %v2488_v43  ;;  %v14727_v4 = vcombine.low %v2484_v42, %v2488_v43  ;;  %v2513_v42 = vld [vmem:[%s16919_s27 + $0xa28] sm:$0xff]  ;;  %v14743_v43 = vcombine.low %v2500_v10, %v2504_v13 }
 0x1e3   : > { %11518 = vmatpush1.bf16.msra.mxu0 %v14679_v47  ;;  %v14721_v47 = vcombine.low %v2477_v35, %v2481_v37  ;;  %v14744_v35 = vcombine.high %v2500_v10, %v2504_v13  ;;  %v2532_v10 = vld [vmem:[%s16919_s27 + $0xac0] sm:$0xff] }
 0x1e4   : > { %12010 = vmatpush1.bf16.msra.mxu1 %v14681_v51  ;;  %11528 = vmatprep.subr.bf16.mxu0 %v14688_v52  ;;  %v14730_v51 = vcombine.high %v2485_v44, %v2489_v45  ;;  %v2492_v52 = vld [vmem:[%s16919_s27 + $0x980] sm:$0xff] }
 0x1e5   : > { %12020 = vmatprep.subr.bf16.mxu1 %v14690_v53  ;;  %v2496_v53 = vld [vmem:[%s16919_s27 + $0x9a0] sm:$0xff] }
 0x1e6   : > { %11520 = vmatmul.mubr.bf16.vlgmr.msra.gmra.mrb[24].mxu0 %v17174_v5  ;;  %v14736_v7 = vcombine.high %v2492_v52, %v2496_v53  ;;  %v2536_v13 = vld [vmem:[%s16919_s27 + $0xae0] sm:$0xff] }
 0x1e7   : > { %12012 = vmatmul.mubr.bf16.vlgmr.msra.gmra.mrb[24].mxu1 %v17174_v5  ;;  %11529 = vmatpush1.bf16.msra.mxu0 %v14687_v63  ;;  %v1587_v63 = vrot.slane %v17144_v11, %v17086_v29 }
 0x1e8   : > { %11560 = vmatprep.mubr.bf16.mxu0 %v17178_v9  ;;  %12021 = vmatpush1.bf16.msra.mxu1 %v14689_v19  ;;  %v1591_v19 = vrot.slane %v17144_v11, %v17092_v32 }
 0x1e9   : > { %12052 = vmatprep.mubr.bf16.mxu1 %v17178_v9  ;;  %11530 = vmatprep.subr.bf16.mxu0 %v14696_v6  ;;  %v14729_v6 = vcombine.low %v2485_v44, %v2489_v45 }
 0x1ea   : > { %12022 = vmatprep.subr.bf16.mxu1 %v14698_v61  ;;  %v14738_v61 = vcombine.high %v2493_v59, %v2497_v62 }
 0x1eb   : > { %11531 = vmatpush1.bf16.msra.mxu0 %v14695_v14 }
 0x1ec   : > { %12023 = vmatpush1.bf16.msra.mxu1 %v14697_v15  ;;  %11532 = vmatprep.subr.bf16.mxu0 %v14704_v16 }
 0x1ed   : > { %12024 = vmatprep.subr.bf16.mxu1 %v14706_v17  ;;  %v2501_v17 = vld [vmem:[%s16919_s27 + $0x9c8] sm:$0xff] }
 0x1ee   : > { %v14745_v44 = vcombine.low %v2501_v17, %v2505_v18 }
 0x1ef   : > { %11533 = vmatpush1.bf16.msra.mxu0 %v14703_v24 }
 0x1f0   : > { %12025 = vmatpush1.bf16.msra.mxu1 %v14705_v26  ;;  %11534 = vmatprep.subr.bf16.mxu0 %v14712_v28  ;;  %v14735_v26 = vcombine.low %v2492_v52, %v2496_v53  ;;  %v2521_v52 = vld [vmem:[%s16919_s27 + $0xa68] sm:$0xff] }
 0x1f1   : > { %12026 = vmatprep.subr.bf16.mxu1 %v14714_v31 }
 0x1f3   : > { %11535 = vmatpush1.bf16.msra.mxu0 %v14711_v39  ;;  %v14746_v39 = vcombine.high %v2501_v17, %v2505_v18 }
 0x1f4   : > { %12027 = vmatpush1.bf16.msra.mxu1 %v14713_v40  ;;  %11536 = vmatprep.subr.bf16.mxu0 %v14720_v0  ;;  %v2508_v40 = vld [vmem:[%s16919_s27 + $0xa00] sm:$0xff] }
 0x1f5   : > { %12028 = vmatprep.subr.bf16.mxu1 %v14722_v41  ;;  %v2512_v0 = vld [vmem:[%s16919_s27 + $0xa20] sm:$0xff]  ;;  %v2509_v41 = vld [vmem:[%s16919_s27 + $0xa08] sm:$0xff] }
 0x1f6   : > { %v14752_v45 = vcombine.high %v2508_v40, %v2512_v0  ;;  %v14751_v53 = vcombine.low %v2508_v40, %v2512_v0  ;;  %v2548_v0 = vld [vmem:[%s16919_s27 + $0xb40] sm:$0xff] }
 0x1f7   : > { %11537 = vmatpush1.bf16.msra.mxu0 %v14719_v46  ;;  %v14754_v46 = vcombine.high %v2509_v41, %v2513_v42 }
 0x1f8   : > { %12029 = vmatpush1.bf16.msra.mxu1 %v14721_v47  ;;  %11538 = vmatprep.subr.bf16.mxu0 %v14728_v48  ;;  %v2516_v47 = vld [vmem:[%s16919_s27 + $0xa40] sm:$0xff] }
 0x1f9   : > { %v1928_v8 = vpop.f32.mrb[12].mxu0  ;;  %12030 = vmatprep.subr.bf16.mxu1 %v14730_v51  ;;  %v1969_v15 = vpop.f32.mrb[12].mxu1  ;;  %v2520_v48 = vld [vmem:[%s16919_s27 + $0xa60] sm:$0xff]  ;;  %v2517_v51 = vld [vmem:[%s16919_s27 + $0xa48] sm:$0xff] }
 0x1fa   : > { %v17212_v14 = vadd.f32 %v1928_v8, %v1579_v54  ;;  %v1930_v16 = vpop.f32.mrb[13].mxu0  ;;  %v17216_v20 = vadd.f32 %v1969_v15, %v1587_v63  ;;  %v1971_v23 = vpop.f32.mrb[13].mxu1  ;;  %v14753_v54 = vcombine.low %v2509_v41, %v2513_v42  ;;  %v14760_v59 = vcombine.high %v2516_v47, %v2520_v48  ;;  %v2524_v63 = vld [vmem:[%s16919_s27 + $0xa80] sm:$0xff]  ;;  %v2533_v15 = vld [vmem:[%s16919_s27 + $0xac8] sm:$0xff] }
 0x1fb   : > { %v17218_v22 = vadd.f32 %v1930_v16, %v1583_v3  ;;  %v1932_v24 = vpop.f32.mrb[14].mxu0  ;;  %11539 = vmatpush1.bf16.msra.mxu0 %v14727_v4  ;;  %v17220_v28 = vadd.f32 %v1971_v23, %v1591_v19  ;;  %v1973_v31 = vpop.f32.mrb[14].mxu1  ;;  %v14762_v62 = vcombine.high %v2517_v51, %v2521_v52  ;;  %v2528_v3 = vld [vmem:[%s16919_s27 + $0xaa0] sm:$0xff]  ;;  %v2525_v4 = vld [vmem:[%s16919_s27 + $0xa88] sm:$0xff]  ;;  %v14776_v23 = vcombine.high %v2532_v10, %v2536_v13 }
 0x1fc   : > { %12031 = vmatpush1.bf16.msra.mxu1 %v14729_v6  ;;  %v1933_v34 = vpop.f32.mrb[15].mxu0  ;;  %11540 = vmatprep.subr.bf16.mxu0 %v14736_v7  ;;  %v1974_v37 = vpop.f32.mrb[15].mxu1  ;;  %v2529_v19 = vld [vmem:[%s16919_s27 + $0xaa8] sm:$0xff]  ;;  %v14759_v6 = vcombine.low %v2516_v47, %v2520_v48  ;;  %v14761_v7 = vcombine.low %v2517_v51, %v2521_v52  ;;  %v14768_v8 = vcombine.high %v2524_v63, %v2528_v3  ;;  %v2544_v31 = vld [vmem:[%s16919_s27 + $0xb20] sm:$0xff]  ;;  %v17248_v52 = vld [vmem:[#allocation4 + $0x10] sm:$0xff] }
 0x1fd   : > { %12032 = vmatprep.subr.bf16.mxu1 %v14738_v61  ;;  %v14770_v61 = vcombine.high %v2525_v4, %v2529_v19  ;;  %v2537_v16 = vld [vmem:[%s16919_s27 + $0xae8] sm:$0xff]  ;;  %v14767_v17 = vcombine.low %v2524_v63, %v2528_v3  ;;  %v14769_v18 = vcombine.low %v2525_v4, %v2529_v19  ;;  %v2552_v41 = vld [vmem:[%s16919_s27 + $0xb60] sm:$0xff]  ;;  %v1607_v63 = vrot.slane %v17248_v52, %v17028_v2 }
 0x1fe   : > { %v14778_v24 = vcombine.high %v2533_v15, %v2537_v16  ;;  %v2541_v34 = vld [vmem:[%s16919_s27 + $0xb08] sm:$0xff]  ;;  %v14777_v37 = vcombine.low %v2533_v15, %v2537_v16  ;;  %v2556_v48 = vld [vmem:[%s16919_s27 + $0xb80] sm:$0xff] }
 0x1ff   : > { %11541 = vmatpush1.bf16.msra.mxu0 %v14735_v26  ;;  %v2540_v26 = vld [vmem:[%s16919_s27 + $0xb00] sm:$0xff]  ;;  %v2549_v42 = vld [vmem:[%s16919_s27 + $0xb48] sm:$0xff] }
 0x200   : > { %12033 = vmatpush1.bf16.msra.mxu1 %v14737_v12  ;;  %11542 = vmatprep.subr.bf16.mxu0 %v14744_v35  ;;  %v2545_v12 = vld [vmem:[%s16919_s27 + $0xb28] sm:$0xff]  ;;  %v14775_v35 = vcombine.low %v2532_v10, %v2536_v13  ;;  %v2560_v51 = vld [vmem:[%s16919_s27 + $0xba0] sm:$0xff] }
 0x201   : > { %12034 = vmatprep.subr.bf16.mxu1 %v14746_v39  ;;  %v14784_v39 = vcombine.high %v2540_v26, %v2544_v31  ;;  %v14786_v40 = vcombine.high %v2541_v34, %v2545_v12  ;;  %v14800_v4 = vcombine.high %v2556_v48, %v2560_v51  ;;  %v2565_v13 = vld [vmem:[%s16919_s27 + $0xbc8] sm:$0xff] }
 0x202   : > { %v2569_v15 = vld [vmem:[%s16919_s27 + $0xbe8] sm:$0xff] }
 0x203   : > { %11543 = vmatpush1.bf16.msra.mxu0 %v14743_v43  ;;  %v2553_v43 = vld [vmem:[%s16919_s27 + $0xb68] sm:$0xff] }
 0x204   : > { %12035 = vmatpush1.bf16.msra.mxu1 %v14745_v44  ;;  %11544 = vmatprep.subr.bf16.mxu0 %v14752_v45  ;;  %v14783_v44 = vcombine.low %v2540_v26, %v2544_v31  ;;  %v14785_v45 = vcombine.low %v2541_v34, %v2545_v12  ;;  %v14794_v47 = vcombine.high %v2549_v42, %v2553_v43 }
 0x205   : > { %12036 = vmatprep.subr.bf16.mxu1 %v14754_v46  ;;  %v14792_v46 = vcombine.high %v2548_v0, %v2552_v41  ;;  %v14793_v3 = vcombine.low %v2549_v42, %v2553_v43  ;;  %v2144_v43 = vmax.f32 %v17108_v49, 0.0 }
 0x207   : > { %11545 = vmatpush1.bf16.msra.mxu0 %v14751_v53  ;;  %v2557_v53 = vld [vmem:[%s16919_s27 + $0xb88] sm:$0xff] }
 0x208   : > { %12037 = vmatpush1.bf16.msra.mxu1 %v14753_v54  ;;  %11546 = vmatprep.subr.bf16.mxu0 %v14760_v59  ;;  %v2561_v54 = vld [vmem:[%s16919_s27 + $0xba8] sm:$0xff]  ;;  %v1603_v59 = vrot.slane %v17248_v52, %v17015_v56 }
 0x209   : > { %12038 = vmatprep.subr.bf16.mxu1 %v14762_v62  ;;  %v14791_v62 = vcombine.low %v2548_v0, %v2552_v41  ;;  %v14801_v34 = vcombine.low %v2557_v53, %v2561_v54  ;;  %v2573_v0 = vld [vmem:[%s16919_s27 + $0xc08] sm:$0xff] }
 0x20a   : > { %v2577_v41 = vld [vmem:[%s16919_s27 + $0xc28] sm:$0xff] }
 0x20b   : > { %11547 = vmatpush1.bf16.msra.mxu0 %v14759_v6  ;;  %v14802_v6 = vcombine.high %v2557_v53, %v2561_v54  ;;  %v2581_v54 = vld [vmem:[%s16919_s27 + $0xc48] sm:$0xff]  ;;  %v14817_v49 = vcombine.low %v2573_v0, %v2577_v41 }
 0x20c   : > { %12039 = vmatpush1.bf16.msra.mxu1 %v14761_v7  ;;  %11548 = vmatprep.subr.bf16.mxu0 %v14768_v8  ;;  %v2564_v7 = vld [vmem:[%s16919_s27 + $0xbc0] sm:$0xff] }
 0x20d   : > { %12040 = vmatprep.subr.bf16.mxu1 %v14770_v61  ;;  %v2568_v8 = vld [vmem:[%s16919_s27 + $0xbe0] sm:$0xff] }
 0x20e   : > { %v14808_v12 = vcombine.high %v2564_v7, %v2568_v8  ;;  %v14807_v42 = vcombine.low %v2564_v7, %v2568_v8  ;;  %v2589_v7 = vld [vmem:[%s16919_s27 + $0xc88] sm:$0xff] }
 0x20f   : > { %11549 = vmatpush1.bf16.msra.mxu0 %v14767_v17  ;;  %v2593_v8 = vld [vmem:[%s16919_s27 + $0xca8] sm:$0xff] }
 0x210   : > { %12041 = vmatpush1.bf16.msra.mxu1 %v14769_v18  ;;  %11550 = vmatprep.subr.bf16.mxu0 %v14776_v23  ;;  %v14799_v23 = vcombine.low %v2556_v48, %v2560_v51  ;;  %v2580_v48 = vld [vmem:[%s16919_s27 + $0xc40] sm:$0xff] }
 0x211   : > { %12042 = vmatprep.subr.bf16.mxu1 %v14778_v24  ;;  %v2584_v51 = vld [vmem:[%s16919_s27 + $0xc60] sm:$0xff] }
 0x213   : > { %11551 = vmatpush1.bf16.msra.mxu0 %v14775_v35 }
 0x214   : > { %12043 = vmatpush1.bf16.msra.mxu1 %v14777_v37  ;;  %11552 = vmatprep.subr.bf16.mxu0 %v14784_v39  ;;  %v14810_v37 = vcombine.high %v2565_v13, %v2569_v15  ;;  %v2572_v39 = vld [vmem:[%s16919_s27 + $0xc00] sm:$0xff] }
 0x215   : > { %12044 = vmatprep.subr.bf16.mxu1 %v14786_v40  ;;  %v2576_v40 = vld [vmem:[%s16919_s27 + $0xc20] sm:$0xff] }
 0x216   : > { %v14815_v53 = vcombine.low %v2572_v39, %v2576_v40 }
 0x217   : > { %11553 = vmatpush1.bf16.msra.mxu0 %v14783_v44  ;;  %v14809_v44 = vcombine.low %v2565_v13, %v2569_v15 }
 0x218   : > { %12045 = vmatpush1.bf16.msra.mxu1 %v14785_v45  ;;  %11554 = vmatprep.subr.bf16.mxu0 %v14792_v46  ;;  %v14816_v45 = vcombine.high %v2572_v39, %v2576_v40  ;;  %v14818_v46 = vcombine.high %v2573_v0, %v2577_v41  ;;  %v2604_v39 = vld [vmem:[%s16919_s27 + $0xd00] sm:$0xff]  ;;  %v2605_v0 = vld [vmem:[%s16919_s27 + $0xd08] sm:$0xff] }
 0x219   : > { %v17256_v19 = vpop.f32.mrb[16].mxu0  ;;  %12046 = vmatprep.subr.bf16.mxu1 %v14794_v47  ;;  %v2051_v61 = vpop.f32.mrb[16].mxu1  ;;  %v2147_v47 = vmax.f32 %v17116_v1, 0.0  ;;  %v2608_v40 = vld [vmem:[%s16919_s27 + $0xd20] sm:$0xff]  ;;  %v2609_v41 = vld [vmem:[%s16919_s27 + $0xd28] sm:$0xff] }
 0x21a   : > { %v17260_v10 = vpop.f32.mrb[17].mxu0  ;;  %v17264_v16 = vadd.f32 %v2051_v61, %v1603_v59  ;;  %v2053_v17 = vpop.f32.mrb[17].mxu1  ;;  %v2585_v59 = vld [vmem:[%s16919_s27 + $0xc68] sm:$0xff]  ;;  %v14823_v61 = vcombine.low %v2580_v48, %v2584_v51 }
 0x21b   : > { %v2014_v18 = vpop.f32.mrb[18].mxu0  ;;  %11555 = vmatpush1.bf16.msra.mxu0 %v14791_v62  ;;  %v17266_v24 = vadd.f32 %v2053_v17, %v1607_v63  ;;  %v2055_v26 = vpop.f32.mrb[18].mxu1  ;;  %v17278_v62 = vpack.c.bf16 %v2144_v43, %v2144_v43  ;;  %v14824_v63 = vcombine.high %v2580_v48, %v2584_v51  ;;  %v14826_v1 = vcombine.high %v2581_v54, %v2585_v59  ;;  %v2613_v48 = vld [vmem:[%s16919_s27 + $0xd48] sm:$0xff] }
 0x21c   : > { %12047 = vmatpush1.bf16.msra.mxu1 %v14793_v3  ;;  %v2015_v31 = vpop.f32.mrb[19].mxu0  ;;  %11556 = vmatprep.subr.bf16.mxu0 %v14800_v4  ;;  %v2056_v35 = vpop.f32.mrb[19].mxu1  ;;  %v2588_v3 = vld [vmem:[%s16919_s27 + $0xc80] sm:$0xff]  ;;  %v14825_v13 = vcombine.low %v2581_v54, %v2585_v59  ;;  %v14834_v17 = vcombine.high %v2589_v7, %v2593_v8  ;;  %v2597_v26 = vld [vmem:[%s16919_s27 + $0xcc8] sm:$0xff]  ;;  %v14849_v54 = vcombine.low %v2605_v0, %v2609_v41 }
 0x21d   : > { %12048 = vmatprep.subr.bf16.mxu1 %v14802_v6  ;;  %v2592_v4 = vld [vmem:[%s16919_s27 + $0xca0] sm:$0xff]  ;;  %v17282_v6 = vpack.c.bf16 %v2147_v47, %v2147_v47  ;;  %v2601_v31 = vld [vmem:[%s16919_s27 + $0xce8] sm:$0xff] }
 0x21e   : > { %v14832_v15 = vcombine.high %v2588_v3, %v2592_v4  ;;  %v2596_v18 = vld [vmem:[%s16919_s27 + $0xcc0] sm:$0xff]  ;;  %v14841_v43 = vcombine.low %v2597_v26, %v2601_v31  ;;  %v2617_v51 = vld [vmem:[%s16919_s27 + $0xd68] sm:$0xff] }
 0x21f   : > { %11557 = vmatpush1.bf16.msra.mxu0 %v14799_v23  ;;  %v2600_v23 = vld [vmem:[%s16919_s27 + $0xce0] sm:$0xff] }
 0x220   : > { %12049 = vmatpush1.bf16.msra.mxu1 %v14801_v34  ;;  %11558 = vmatprep.subr.bf16.mxu0 %v14808_v12  ;;  %v14831_v34 = vcombine.low %v2588_v3, %v2592_v4  ;;  %v14833_v12 = vcombine.low %v2589_v7, %v2593_v8  ;;  %v14840_v35 = vcombine.high %v2596_v18, %v2600_v23  ;;  %v2616_v47 = vld [vmem:[%s16919_s27 + $0xd60] sm:$0xff]  ;;  %v2625_v7 = vld [vmem:[%s16919_s27 + $0xda8] sm:$0xff] }
 0x221   : > { %12050 = vmatprep.subr.bf16.mxu1 %v14810_v37  ;;  %v14842_v37 = vcombine.high %v2597_v26, %v2601_v31  ;;  %v2624_v3 = vld [vmem:[%s16919_s27 + $0xda0] sm:$0xff]  ;;  %v1611_v4 = vrot.slane %v17248_v52, %v17081_v25  ;;  %v1619_v8 = vrot.slane %v17248_v52, %v17086_v29 }
 0x222   : > { %v2628_v31 = vld [vmem:[%s16919_s27 + $0xdc0] sm:$0xff] }
 0x223   : > { %11559 = vmatpush1.bf16.msra.mxu0 %v14807_v42  ;;  %v14839_v42 = vcombine.low %v2596_v18, %v2600_v23 }
 0x224   : > { %12051 = vmatpush1.bf16.msra.mxu1 %v14809_v44  ;;  %11569 = vmatprep.subr.bf16.mxu0 %v14816_v45  ;;  %v14848_v44 = vcombine.high %v2604_v39, %v2608_v40  ;;  %v14850_v45 = vcombine.high %v2605_v0, %v2609_v41 }
 0x225   : > { %12061 = vmatprep.subr.bf16.mxu1 %v14818_v46  ;;  %v2612_v46 = vld [vmem:[%s16919_s27 + $0xd40] sm:$0xff] }
 0x226   : > { %11561 = vmatmul.mubr.bf16.vlgmr.msra.gmra.mrb[24].mxu0 %v17278_v62  ;;  %v14856_v59 = vcombine.high %v2612_v46, %v2616_v47 }
 0x227   : > { %12053 = vmatmul.mubr.bf16.vlgmr.msra.gmra.mrb[24].mxu1 %v17278_v62  ;;  %11570 = vmatpush1.bf16.msra.mxu0 %v14815_v53  ;;  %v14847_v53 = vcombine.low %v2604_v39, %v2608_v40  ;;  %v2629_v39 = vld [vmem:[%s16919_s27 + $0xdc8] sm:$0xff] }
 0x228   : > { %11601 = vmatprep.mubr.bf16.mxu0 %v17282_v6  ;;  %12062 = vmatpush1.bf16.msra.mxu1 %v14817_v49  ;;  %v14858_v49 = vcombine.high %v2613_v48, %v2617_v51  ;;  %v2633_v40 = vld [vmem:[%s16919_s27 + $0xde8] sm:$0xff] }
 0x229   : > { %12093 = vmatprep.mubr.bf16.mxu1 %v17282_v6  ;;  %11571 = vmatprep.subr.bf16.mxu0 %v14824_v63  ;;  %v2620_v63 = vld [vmem:[%s16919_s27 + $0xd80] sm:$0xff] }
 0x22a   : > { %12063 = vmatprep.subr.bf16.mxu1 %v14826_v1  ;;  %v2621_v1 = vld [vmem:[%s16919_s27 + $0xd88] sm:$0xff]  ;;  %v14864_v18 = vcombine.high %v2620_v63, %v2624_v3 }
 0x22b   : > { %11572 = vmatpush1.bf16.msra.mxu0 %v14823_v61  ;;  %v1615_v61 = vrot.slane %v17248_v52, %v17089_v30  ;;  %v14866_v26 = vcombine.high %v2621_v1, %v2625_v7 }
 0x22c   : > { %12064 = vmatpush1.bf16.msra.mxu1 %v14825_v13  ;;  %11573 = vmatprep.subr.bf16.mxu0 %v14832_v15  ;;  %v14855_v13 = vcombine.low %v2612_v46, %v2616_v47  ;;  %v1623_v15 = vrot.slane %v17248_v52, %v17092_v32  ;;  %v14865_v47 = vcombine.low %v2621_v1, %v2625_v7  ;;  %v2644_v7 = vld [vmem:[%s16919_s27 + $0xe40] sm:$0xff] }
 0x22d   : > { %12065 = vmatprep.subr.bf16.mxu1 %v14834_v17  ;;  %v14857_v17 = vcombine.low %v2613_v48, %v2617_v51 }
 0x22f   : > { %11574 = vmatpush1.bf16.msra.mxu0 %v14831_v34  ;;  %v2632_v34 = vld [vmem:[%s16919_s27 + $0xde0] sm:$0xff] }
 0x230   : > { %12066 = vmatpush1.bf16.msra.mxu1 %v14833_v12  ;;  %11575 = vmatprep.subr.bf16.mxu0 %v14840_v35  ;;  %v14872_v48 = vcombine.high %v2628_v31, %v2632_v34 }
 0x231   : > { %12067 = vmatprep.subr.bf16.mxu1 %v14842_v37 }
 0x233   : > { %11576 = vmatpush1.bf16.msra.mxu0 %v14839_v42 }
 0x234   : > { %12068 = vmatpush1.bf16.msra.mxu1 %v14841_v43  ;;  %11577 = vmatprep.subr.bf16.mxu0 %v14848_v44  ;;  %v14863_v43 = vcombine.low %v2620_v63, %v2624_v3  ;;  %v14871_v63 = vcombine.low %v2628_v31, %v2632_v34  ;;  %v14873_v3 = vcombine.low %v2629_v39, %v2633_v40  ;;  %v2652_v31 = vld [vmem:[%s16919_s27 + $0xe80] sm:$0xff] }
 0x235   : > { %12069 = vmatprep.subr.bf16.mxu1 %v14850_v45  ;;  %v2656_v34 = vld [vmem:[%s16919_s27 + $0xea0] sm:$0xff] }
 0x237   : > { %11578 = vmatpush1.bf16.msra.mxu0 %v14847_v53  ;;  %v14874_v53 = vcombine.high %v2629_v39, %v2633_v40 }
 0x238   : > { %12070 = vmatpush1.bf16.msra.mxu1 %v14849_v54  ;;  %11579 = vmatprep.subr.bf16.mxu0 %v14856_v59  ;;  %v2636_v54 = vld [vmem:[%s16919_s27 + $0xe00] sm:$0xff] }
 0x239   : > { %v2092_v23 = vpop.f32.mrb[20].mxu0  ;;  %12071 = vmatprep.subr.bf16.mxu1 %v14858_v49  ;;  %v2133_v35 = vpop.f32.mrb[20].mxu1  ;;  %v2640_v59 = vld [vmem:[%s16919_s27 + $0xe20] sm:$0xff]  ;;  %v2637_v49 = vld [vmem:[%s16919_s27 + $0xe08] sm:$0xff] }
 0x23a   : > { %v17316_v12 = vadd.f32 %v2092_v23, %v1611_v4  ;;  %v2094_v37 = vpop.f32.mrb[21].mxu0  ;;  %v17320_v0 = vadd.f32 %v2133_v35, %v1619_v8  ;;  %v2135_v52 = vpop.f32.mrb[21].mxu1  ;;  %v2641_v4 = vld [vmem:[%s16919_s27 + $0xe28] sm:$0xff]  ;;  %v14880_v8 = vcombine.high %v2636_v54, %v2640_v59 }
 0x23b   : > { %v17322_v41 = vadd.f32 %v2094_v37, %v1615_v61  ;;  %v2096_v42 = vpop.f32.mrb[22].mxu0  ;;  %11580 = vmatpush1.bf16.msra.mxu0 %v14855_v13  ;;  %v17324_v44 = vadd.f32 %v2135_v52, %v1623_v15  ;;  %v2137_v45 = vpop.f32.mrb[22].mxu1  ;;  %v14882_v1 = vcombine.high %v2637_v49, %v2641_v4  ;;  %v2648_v61 = vld [vmem:[%s16919_s27 + $0xe60] sm:$0xff]  ;;  %v2645_v13 = vld [vmem:[%s16919_s27 + $0xe48] sm:$0xff]  ;;  %v14896_v52 = vcombine.high %v2652_v31, %v2656_v34 }
 0x23c   : > { %12072 = vmatpush1.bf16.msra.mxu1 %v14857_v17  ;;  %v2097_v46 = vpop.f32.mrb[23].mxu0  ;;  %11581 = vmatprep.subr.bf16.mxu0 %v14864_v18  ;;  %v2138_v51 = vpop.f32.mrb[23].mxu1  ;;  %v2649_v15 = vld [vmem:[%s16919_s27 + $0xe68] sm:$0xff]  ;;  %v14879_v17 = vcombine.low %v2636_v54, %v2640_v59  ;;  %v14881_v18 = vcombine.low %v2637_v49, %v2641_v4  ;;  %v14888_v23 = vcombine.high %v2644_v7, %v2648_v61  ;;  %v2664_v45 = vld [vmem:[%s16919_s27 + $0xee0] sm:$0xff] }
 0x23d   : > { %12073 = vmatprep.subr.bf16.mxu1 %v14866_v26  ;;  %v14890_v26 = vcombine.high %v2645_v13, %v2649_v15  ;;  %v2653_v35 = vld [vmem:[%s16919_s27 + $0xe88] sm:$0xff]  ;;  %v14887_v39 = vcombine.low %v2644_v7, %v2648_v61  ;;  %v14889_v40 = vcombine.low %v2645_v13, %v2649_v15  ;;  %v2668_v59 = vld [vmem:[%s16919_s27 + $0xf00] sm:$0xff] }
 0x23e   : > { %v2657_v37 = vld [vmem:[%s16919_s27 + $0xea8] sm:$0xff]  ;;  %v2672_v49 = vld [vmem:[%s16919_s27 + $0xf20] sm:$0xff] }
 0x23f   : > { %11582 = vmatpush1.bf16.msra.mxu0 %v14863_v43  ;;  %v14898_v42 = vcombine.high %v2653_v35, %v2657_v37  ;;  %v2660_v43 = vld [vmem:[%s16919_s27 + $0xec0] sm:$0xff]  ;;  %v2661_v46 = vld [vmem:[%s16919_s27 + $0xec8] sm:$0xff]  ;;  %v14897_v51 = vcombine.low %v2653_v35, %v2657_v37 }
 0x240   : > { %12074 = vmatpush1.bf16.msra.mxu1 %v14865_v47  ;;  %11583 = vmatprep.subr.bf16.mxu0 %v14872_v48  ;;  %v2665_v47 = vld [vmem:[%s16919_s27 + $0xee8] sm:$0xff]  ;;  %v14895_v48 = vcombine.low %v2652_v31, %v2656_v34  ;;  %v2676_v61 = vld [vmem:[%s16919_s27 + $0xf40] sm:$0xff] }
 0x241   : > { %12075 = vmatprep.subr.bf16.mxu1 %v14874_v53  ;;  %v14904_v53 = vcombine.high %v2660_v43, %v2664_v45  ;;  %v14906_v54 = vcombine.high %v2661_v46, %v2665_v47  ;;  %v2669_v4 = vld [vmem:[%s16919_s27 + $0xf08] sm:$0xff]  ;;  %v2680_v13 = vld [vmem:[%s16919_s27 + $0xf60] sm:$0xff] }
 0x242   : > { %v2677_v15 = vld [vmem:[%s16919_s27 + $0xf48] sm:$0xff]  ;;  %v2684_v34 = vld [vmem:[%s16919_s27 + $0xf80] sm:$0xff] }
 0x243   : > { %11584 = vmatpush1.bf16.msra.mxu0 %v14871_v63  ;;  %v2673_v63 = vld [vmem:[%s16919_s27 + $0xf28] sm:$0xff]  ;;  %v2688_v35 = vld [vmem:[%s16919_s27 + $0xfa0] sm:$0xff] }
 0x244   : > { %12076 = vmatpush1.bf16.msra.mxu1 %v14873_v3  ;;  %11585 = vmatprep.subr.bf16.mxu0 %v14880_v8  ;;  %v14903_v3 = vcombine.low %v2660_v43, %v2664_v45  ;;  %v14905_v8 = vcombine.low %v2661_v46, %v2665_v47  ;;  %v14914_v7 = vcombine.high %v2669_v4, %v2673_v63  ;;  %v2685_v37 = vld [vmem:[%s16919_s27 + $0xf88] sm:$0xff]  ;;  %v2692_v45 = vld [vmem:[%s16919_s27 + $0xfc0] sm:$0xff] }
 0x245   : > { %12077 = vmatprep.subr.bf16.mxu1 %v14882_v1  ;;  %v14912_v1 = vcombine.high %v2668_v59, %v2672_v49  ;;  %v2696_v46 = vld [vmem:[%s16919_s27 + $0xfe0] sm:$0xff]  ;;  %v1567_v47 = vrot.slane %v17144_v11, %v17018_v57 }
 0x246   : > { %v14935_v11 = vcombine.low %v2692_v45, %v2696_v46 }
 0x247   : > { %11586 = vmatpush1.bf16.msra.mxu0 %v14879_v17  ;;  %v2681_v17 = vld [vmem:[%s16919_s27 + $0xf68] sm:$0xff] }
 0x248   : > { %12078 = vmatpush1.bf16.msra.mxu1 %v14881_v18  ;;  %11587 = vmatprep.subr.bf16.mxu0 %v14888_v23  ;;  %v14911_v18 = vcombine.low %v2668_v59, %v2672_v49  ;;  %v14913_v23 = vcombine.low %v2669_v4, %v2673_v63  ;;  %v14922_v31 = vcombine.high %v2677_v15, %v2681_v17  ;;  %v2700_v4 = vld [vmem:[%s16919_s27 + $0x1000] sm:$0xff] }
 0x249   : > { %12079 = vmatprep.subr.bf16.mxu1 %v14890_v26  ;;  %v14920_v26 = vcombine.high %v2676_v61, %v2680_v13  ;;  %v14936_v59 = vcombine.high %v2692_v45, %v2696_v46  ;;  %v2704_v63 = vld [vmem:[%s16919_s27 + $0x1020] sm:$0xff] }
 0x24b   : > { %11588 = vmatpush1.bf16.msra.mxu0 %v14887_v39  ;;  %v2689_v39 = vld [vmem:[%s16919_s27 + $0xfa8] sm:$0xff] }
 0x24c   : > { %12080 = vmatpush1.bf16.msra.mxu1 %v14889_v40  ;;  %11589 = vmatprep.subr.bf16.mxu0 %v14896_v52  ;;  %v14919_v40 = vcombine.low %v2676_v61, %v2680_v13  ;;  %v14921_v52 = vcombine.low %v2677_v15, %v2681_v17  ;;  %v14930_v43 = vcombine.high %v2685_v37, %v2689_v39 }
 0x24d   : > { %12081 = vmatprep.subr.bf16.mxu1 %v14898_v42  ;;  %v14928_v42 = vcombine.high %v2684_v34, %v2688_v35  ;;  %v14944_v13 = vcombine.high %v2700_v4, %v2704_v63 }
 0x24f   : > { %11590 = vmatpush1.bf16.msra.mxu0 %v14895_v48  ;;  %v2693_v48 = vld [vmem:[%s16919_s27 + $0xfc8] sm:$0xff] }
 0x250   : > { %12082 = vmatpush1.bf16.msra.mxu1 %v14897_v51  ;;  %11591 = vmatprep.subr.bf16.mxu0 %v14904_v53  ;;  %v2697_v51 = vld [vmem:[%s16919_s27 + $0xfe8] sm:$0xff]  ;;  %v14927_v53 = vcombine.low %v2684_v34, %v2688_v35 }
 0x251   : > { %12083 = vmatprep.subr.bf16.mxu1 %v14906_v54  ;;  %v14929_v54 = vcombine.low %v2685_v37, %v2689_v39  ;;  %v14938_v49 = vcombine.high %v2693_v48, %v2697_v51  ;;  %v14937_v61 = vcombine.low %v2693_v48, %v2697_v51  ;;  %v2716_v37 = vld [vmem:[%s16919_s27 + $0x1080] sm:$0xff] }
 0x252   : > { %v2720_v39 = vld [vmem:[%s16919_s27 + $0x10a0] sm:$0xff] }
 0x253   : > { %11592 = vmatpush1.bf16.msra.mxu0 %v14903_v3  ;;  %v1849_v3 = vadd.f32 %v17156_v27, %v1567_v47  ;;  %v14943_v27 = vcombine.low %v2700_v4, %v2704_v63  ;;  %v14960_v47 = vcombine.high %v2716_v37, %v2720_v39  ;;  %v2724_v51 = vld [vmem:[%s16919_s27 + $0x10c0] sm:$0xff] }
 0x254   : > { %12084 = vmatpush1.bf16.msra.mxu1 %v14905_v8  ;;  %11593 = vmatprep.subr.bf16.mxu0 %v14912_v1  ;;  %v2701_v8 = vld [vmem:[%s16919_s27 + $0x1008] sm:$0xff] }
 0x255   : > { %12085 = vmatprep.subr.bf16.mxu1 %v14914_v7  ;;  %v2705_v1 = vld [vmem:[%s16919_s27 + $0x1028] sm:$0xff]  ;;  %v2146_v7 = vmax.f32 %v17112_v58, 0.0  ;;  %v2149_v17 = vmax.f32 %v1849_v3, 0.0 }
 0x256   : > { %v14946_v15 = vcombine.high %v2701_v8, %v2705_v1  ;;  %v14945_v58 = vcombine.low %v2701_v8, %v2705_v1  ;;  %v2732_v8 = vld [vmem:[%s16919_s27 + $0x1100] sm:$0xff] }
 0x257   : > { %11594 = vmatpush1.bf16.msra.mxu0 %v14911_v18  ;;  %v2708_v18 = vld [vmem:[%s16919_s27 + $0x1040] sm:$0xff]  ;;  %v17370_v34 = vpack.c.bf16 %v2146_v7, %v2146_v7  ;;  %v2737_v7 = vld [vmem:[%s16919_s27 + $0x1128] sm:$0xff] }
 0x258   : > { %12086 = vmatpush1.bf16.msra.mxu1 %v14913_v23  ;;  %11595 = vmatprep.subr.bf16.mxu0 %v14920_v26  ;;  %v2712_v23 = vld [vmem:[%s16919_s27 + $0x1060] sm:$0xff]  ;;  %v2709_v26 = vld [vmem:[%s16919_s27 + $0x1048] sm:$0xff] }
 0x259   : > { %12087 = vmatprep.subr.bf16.mxu1 %v14922_v31  ;;  %v2713_v31 = vld [vmem:[%s16919_s27 + $0x1068] sm:$0xff]  ;;  %v14952_v35 = vcombine.high %v2708_v18, %v2712_v23  ;;  %v14951_v45 = vcombine.low %v2708_v18, %v2712_v23  ;;  %v2736_v1 = vld [vmem:[%s16919_s27 + $0x1120] sm:$0xff] }
 0x25a   : > { %v14953_v46 = vcombine.low %v2709_v26, %v2713_v31  ;;  %v2740_v18 = vld [vmem:[%s16919_s27 + $0x1140] sm:$0xff] }
 0x25b   : > { %11596 = vmatpush1.bf16.msra.mxu0 %v14919_v40  ;;  %v17374_v40 = vpack.c.bf16 %v2149_v17, %v2149_v17  ;;  %v2744_v23 = vld [vmem:[%s16919_s27 + $0x1160] sm:$0xff] }
 0x25c   : > { %12088 = vmatpush1.bf16.msra.mxu1 %v14921_v52  ;;  %11597 = vmatprep.subr.bf16.mxu0 %v14928_v42  ;;  %v14954_v52 = vcombine.high %v2709_v26, %v2713_v31  ;;  %v2717_v42 = vld [vmem:[%s16919_s27 + $0x1088] sm:$0xff]  ;;  %v14975_v31 = vcombine.low %v2732_v8, %v2736_v1 }
 0x25d   : > { %12089 = vmatprep.subr.bf16.mxu1 %v14930_v43  ;;  %v2721_v43 = vld [vmem:[%s16919_s27 + $0x10a8] sm:$0xff] }
 0x25e   : > { %v14962_v48 = vcombine.high %v2717_v42, %v2721_v43  ;;  %v14961_v4 = vcombine.low %v2717_v42, %v2721_v43  ;;  %v2745_v26 = vld [vmem:[%s16919_s27 + $0x1168] sm:$0xff] }
 0x25f   : > { %11598 = vmatpush1.bf16.msra.mxu0 %v14927_v53  ;;  %v2728_v53 = vld [vmem:[%s16919_s27 + $0x10e0] sm:$0xff]  ;;  %v2749_v42 = vld [vmem:[%s16919_s27 + $0x1188] sm:$0xff] }
 0x260   : > { %12090 = vmatpush1.bf16.msra.mxu1 %v14929_v54  ;;  %11599 = vmatprep.subr.bf16.mxu0 %v14936_v59  ;;  %v2725_v54 = vld [vmem:[%s16919_s27 + $0x10c8] sm:$0xff]  ;;  %v14968_v63 = vcombine.high %v2724_v51, %v2728_v53 }
 0x261   : > { %12091 = vmatprep.subr.bf16.mxu1 %v14938_v49  ;;  %v2729_v59 = vld [vmem:[%s16919_s27 + $0x10e8] sm:$0xff]  ;;  %v14959_v49 = vcombine.low %v2716_v37, %v2720_v39  ;;  %v2748_v39 = vld [vmem:[%s16919_s27 + $0x1180] sm:$0xff] }
 0x262   : > { %v14970_v3 = vcombine.high %v2725_v54, %v2729_v59  ;;  %v2753_v43 = vld [vmem:[%s16919_s27 + $0x11a8] sm:$0xff] }
 0x263   : > { %11600 = vmatpush1.bf16.msra.mxu0 %v14935_v11  ;;  %v2733_v11 = vld [vmem:[%s16919_s27 + $0x1108] sm:$0xff] }
 0x264   : > { %12092 = vmatpush1.bf16.msra.mxu1 %v14937_v61  ;;  %11610 = vmatprep.subr.bf16.mxu0 %v14944_v13  ;;  %v14967_v61 = vcombine.low %v2724_v51, %v2728_v53  ;;  %v14969_v13 = vcombine.low %v2725_v54, %v2729_v59  ;;  %v14978_v17 = vcombine.high %v2733_v11, %v2737_v7  ;;  %v2756_v51 = vld [vmem:[%s16919_s27 + $0x11c0] sm:$0xff]  ;;  %v2757_v54 = vld [vmem:[%s16919_s27 + $0x11c8] sm:$0xff] }
 0x265   : > { %12102 = vmatprep.subr.bf16.mxu1 %v14946_v15  ;;  %v14976_v15 = vcombine.high %v2732_v8, %v2736_v1  ;;  %v2760_v53 = vld [vmem:[%s16919_s27 + $0x11e0] sm:$0xff]  ;;  %v2761_v59 = vld [vmem:[%s16919_s27 + $0x11e8] sm:$0xff] }
 0x266   : > { %11602 = vmatmul.mubr.bf16.vlgmr.msra.gmra.mrb[24].mxu0 %v17370_v34  ;;  %v2764_v8 = vld [vmem:[%s16919_s27 + $0x1200] sm:$0xff] }
 0x267   : > { %12094 = vmatmul.mubr.bf16.vlgmr.msra.gmra.mrb[24].mxu1 %v17370_v34  ;;  %11611 = vmatpush1.bf16.msra.mxu0 %v14943_v27  ;;  %v2741_v27 = vld [vmem:[%s16919_s27 + $0x1148] sm:$0xff]  ;;  %v2768_v1 = vld [vmem:[%s16919_s27 + $0x1220] sm:$0xff] }
 0x268   : > { %11642 = vmatprep.mubr.bf16.mxu0 %v17374_v40  ;;  %12103 = vmatpush1.bf16.msra.mxu1 %v14945_v58  ;;  %v14977_v58 = vcombine.low %v2733_v11, %v2737_v7  ;;  %v14986_v37 = vcombine.high %v2741_v27, %v2745_v26  ;;  %v2765_v11 = vld [vmem:[%s16919_s27 + $0x1208] sm:$0xff] }
 0x269   : > { %12134 = vmatprep.mubr.bf16.mxu1 %v17374_v40  ;;  %11612 = vmatprep.subr.bf16.mxu0 %v14952_v35  ;;  %v14984_v35 = vcombine.high %v2740_v18, %v2744_v23  ;;  %v2769_v7 = vld [vmem:[%s16919_s27 + $0x1228] sm:$0xff] }
 0x26a   : > { %12104 = vmatprep.subr.bf16.mxu1 %v14954_v52  ;;  %v2752_v52 = vld [vmem:[%s16919_s27 + $0x11a0] sm:$0xff] }
 0x26b   : > { %11613 = vmatpush1.bf16.msra.mxu0 %v14951_v45  ;;  %v14983_v45 = vcombine.low %v2740_v18, %v2744_v23  ;;  %v2772_v18 = vld [vmem:[%s16919_s27 + $0x1240] sm:$0xff] }
 0x26c   : > { %12105 = vmatpush1.bf16.msra.mxu1 %v14953_v46  ;;  %11614 = vmatprep.subr.bf16.mxu0 %v14960_v47  ;;  %v14985_v46 = vcombine.low %v2741_v27, %v2745_v26  ;;  %v14992_v47 = vcombine.high %v2748_v39, %v2752_v52  ;;  %v2776_v23 = vld [vmem:[%s16919_s27 + $0x1260] sm:$0xff]  ;;  %v2773_v27 = vld [vmem:[%s16919_s27 + $0x1248] sm:$0xff] }
 0x26d   : > { %12106 = vmatprep.subr.bf16.mxu1 %v14962_v48  ;;  %v14994_v48 = vcombine.high %v2749_v42, %v2753_v43  ;;  %v2777_v26 = vld [vmem:[%s16919_s27 + $0x1268] sm:$0xff] }
 0x26f   : > { %11615 = vmatpush1.bf16.msra.mxu0 %v14959_v49  ;;  %v14991_v49 = vcombine.low %v2748_v39, %v2752_v52  ;;  %v2780_v39 = vld [vmem:[%s16919_s27 + $0x1280] sm:$0xff] }
 0x270   : > { %12107 = vmatpush1.bf16.msra.mxu1 %v14961_v4  ;;  %11616 = vmatprep.subr.bf16.mxu0 %v14968_v63  ;;  %v14993_v4 = vcombine.low %v2749_v42, %v2753_v43  ;;  %v15000_v63 = vcombine.high %v2756_v51, %v2760_v53  ;;  %v2784_v52 = vld [vmem:[%s16919_s27 + $0x12a0] sm:$0xff]  ;;  %v2781_v42 = vld [vmem:[%s16919_s27 + $0x1288] sm:$0xff] }
 0x271   : > { %12108 = vmatprep.subr.bf16.mxu1 %v14970_v3  ;;  %v15002_v3 = vcombine.high %v2757_v54, %v2761_v59  ;;  %v2785_v43 = vld [vmem:[%s16919_s27 + $0x12a8] sm:$0xff] }
 0x273   : > { %11617 = vmatpush1.bf16.msra.mxu0 %v14967_v61  ;;  %v14999_v61 = vcombine.low %v2756_v51, %v2760_v53  ;;  %v2788_v51 = vld [vmem:[%s16919_s27 + $0x12c0] sm:$0xff] }
 0x274   : > { %12109 = vmatpush1.bf16.msra.mxu1 %v14969_v13  ;;  %11618 = vmatprep.subr.bf16.mxu0 %v14976_v15  ;;  %v15001_v13 = vcombine.low %v2757_v54, %v2761_v59  ;;  %v15008_v15 = vcombine.high %v2764_v8, %v2768_v1  ;;  %v2792_v53 = vld [vmem:[%s16919_s27 + $0x12e0] sm:$0xff]  ;;  %v2789_v54 = vld [vmem:[%s16919_s27 + $0x12c8] sm:$0xff] }
 0x275   : > { %12110 = vmatprep.subr.bf16.mxu1 %v14978_v17  ;;  %v15010_v17 = vcombine.high %v2765_v11, %v2769_v7  ;;  %v2793_v59 = vld [vmem:[%s16919_s27 + $0x12e8] sm:$0xff] }
 0x277   : > { %11619 = vmatpush1.bf16.msra.mxu0 %v14975_v31  ;;  %v15007_v31 = vcombine.low %v2764_v8, %v2768_v1  ;;  %v2796_v8 = vld [vmem:[%s16919_s27 + $0x1300] sm:$0xff] }
 0x278   : > { %12111 = vmatpush1.bf16.msra.mxu1 %v14977_v58  ;;  %11620 = vmatprep.subr.bf16.mxu0 %v14984_v35  ;;  %v15009_v58 = vcombine.low %v2765_v11, %v2769_v7  ;;  %v15016_v35 = vcombine.high %v2772_v18, %v2776_v23  ;;  %v2800_v1 = vld [vmem:[%s16919_s27 + $0x1320] sm:$0xff]  ;;  %v2797_v11 = vld [vmem:[%s16919_s27 + $0x1308] sm:$0xff] }
 0x279   : > { %12112 = vmatprep.subr.bf16.mxu1 %v14986_v37  ;;  %v15018_v37 = vcombine.high %v2773_v27, %v2777_v26  ;;  %v2801_v7 = vld [vmem:[%s16919_s27 + $0x1328] sm:$0xff] }
 0x27b   : > { %11621 = vmatpush1.bf16.msra.mxu0 %v14983_v45  ;;  %v15015_v45 = vcombine.low %v2772_v18, %v2776_v23  ;;  %v2804_v18 = vld [vmem:[%s16919_s27 + $0x1340] sm:$0xff] }
 0x27c   : > { %12113 = vmatpush1.bf16.msra.mxu1 %v14985_v46  ;;  %11622 = vmatprep.subr.bf16.mxu0 %v14992_v47  ;;  %v15017_v46 = vcombine.low %v2773_v27, %v2777_v26  ;;  %v15024_v47 = vcombine.high %v2780_v39, %v2784_v52  ;;  %v2808_v23 = vld [vmem:[%s16919_s27 + $0x1360] sm:$0xff]  ;;  %v2805_v27 = vld [vmem:[%s16919_s27 + $0x1348] sm:$0xff] }
 0x27d   : > { %12114 = vmatprep.subr.bf16.mxu1 %v14994_v48  ;;  %v15026_v48 = vcombine.high %v2781_v42, %v2785_v43  ;;  %v2809_v26 = vld [vmem:[%s16919_s27 + $0x1368] sm:$0xff] }
 0x27f   : > { %11623 = vmatpush1.bf16.msra.mxu0 %v14991_v49  ;;  %v15023_v49 = vcombine.low %v2780_v39, %v2784_v52  ;;  %v2812_v39 = vld [vmem:[%s16919_s27 + $0x1380] sm:$0xff] }
 0x280   : > { %12115 = vmatpush1.bf16.msra.mxu1 %v14993_v4  ;;  %11624 = vmatprep.subr.bf16.mxu0 %v15000_v63  ;;  %v15025_v4 = vcombine.low %v2781_v42, %v2785_v43  ;;  %v15032_v63 = vcombine.high %v2788_v51, %v2792_v53  ;;  %v2816_v52 = vld [vmem:[%s16919_s27 + $0x13a0] sm:$0xff]  ;;  %v2813_v42 = vld [vmem:[%s16919_s27 + $0x1388] sm:$0xff] }
 0x281   : > { %12116 = vmatprep.subr.bf16.mxu1 %v15002_v3  ;;  %v15034_v3 = vcombine.high %v2789_v54, %v2793_v59  ;;  %v2817_v43 = vld [vmem:[%s16919_s27 + $0x13a8] sm:$0xff] }
 0x283   : > { %11625 = vmatpush1.bf16.msra.mxu0 %v14999_v61  ;;  %v15031_v61 = vcombine.low %v2788_v51, %v2792_v53  ;;  %v15056_v51 = vcombine.high %v2812_v39, %v2816_v52  ;;  %v15058_v53 = vcombine.high %v2813_v42, %v2817_v43 }
 0x284   : > { %12117 = vmatpush1.bf16.msra.mxu1 %v15001_v13  ;;  %11626 = vmatprep.subr.bf16.mxu0 %v15008_v15  ;;  %v15033_v13 = vcombine.low %v2789_v54, %v2793_v59  ;;  %v15040_v15 = vcombine.high %v2796_v8, %v2800_v1  ;;  %v2820_v54 = vld [vmem:[%s16919_s27 + $0x13c0] sm:$0xff] }
 0x285   : > { %12118 = vmatprep.subr.bf16.mxu1 %v15010_v17  ;;  %v15042_v17 = vcombine.high %v2797_v11, %v2801_v7  ;;  %v2824_v59 = vld [vmem:[%s16919_s27 + $0x13e0] sm:$0xff] }
 0x287   : > { %11627 = vmatpush1.bf16.msra.mxu0 %v15007_v31  ;;  %v15039_v31 = vcombine.low %v2796_v8, %v2800_v1  ;;  %v15057_v8 = vcombine.low %v2813_v42, %v2817_v43  ;;  %v15064_v1 = vcombine.high %v2820_v54, %v2824_v59 }
 0x288   : > { %12119 = vmatpush1.bf16.msra.mxu1 %v15009_v58  ;;  %11628 = vmatprep.subr.bf16.mxu0 %v15016_v35  ;;  %v15041_v58 = vcombine.low %v2797_v11, %v2801_v7  ;;  %v15048_v35 = vcombine.high %v2804_v18, %v2808_v23  ;;  %v2828_v7 = vld [vmem:[%s16919_s27 + $0x1400] sm:$0xff] }
 0x289   : > { %12120 = vmatprep.subr.bf16.mxu1 %v15018_v37  ;;  %v15050_v37 = vcombine.high %v2805_v27, %v2809_v26 }
 0x28b   : > { %11629 = vmatpush1.bf16.msra.mxu0 %v15015_v45  ;;  %v15047_v45 = vcombine.low %v2804_v18, %v2808_v23 }
 0x28c   : > { %12121 = vmatpush1.bf16.msra.mxu1 %v15017_v46  ;;  %11630 = vmatprep.subr.bf16.mxu0 %v15024_v47  ;;  %v16453_v46 = vld [vmem:[#allocation4 + $0x8] sm:$0xff] }
 0x28d   : > { %12122 = vmatprep.subr.bf16.mxu1 %v15026_v48  ;;  %v1563_v47 = vrot.slane %v16453_v46, %v17023_v60  ;;  %v15049_v48 = vcombine.low %v2805_v27, %v2809_v26  ;;  %v2151_v26 = vmax.f32 %v17162_v36, 0.0  ;;  %v2848_v46 = vld [vmem:[%s16919_s27 + $0x14a0] sm:$0xff] }
 0x28f   : > { %11631 = vmatpush1.bf16.msra.mxu0 %v15023_v49  ;;  %v2821_v49 = vld [vmem:[%s16919_s27 + $0x13c8] sm:$0xff] }
 0x290   : > { %12123 = vmatpush1.bf16.msra.mxu1 %v15025_v4  ;;  %11632 = vmatprep.subr.bf16.mxu0 %v15032_v63  ;;  %v2825_v4 = vld [vmem:[%s16919_s27 + $0x13e8] sm:$0xff]  ;;  %v15055_v63 = vcombine.low %v2812_v39, %v2816_v52 }
 0x291   : > { %12124 = vmatprep.subr.bf16.mxu1 %v15034_v3  ;;  %v1847_v3 = vadd.f32 %v17152_v21, %v1563_v47  ;;  %v15066_v11 = vcombine.high %v2821_v49, %v2825_v4  ;;  %v15065_v21 = vcombine.low %v2821_v49, %v2825_v4  ;;  %v2841_v39 = vld [vmem:[%s16919_s27 + $0x1468] sm:$0xff]  ;;  %v17449_v47 = vpack.c.bf16 %v2151_v26, %v2151_v26  ;;  %v2852_v4 = vld [vmem:[%s16919_s27 + $0x14c0] sm:$0xff] }
 0x293   : > { %11633 = vmatpush1.bf16.msra.mxu0 %v15031_v61  ;;  %v2832_v61 = vld [vmem:[%s16919_s27 + $0x1420] sm:$0xff]  ;;  %v2148_v18 = vmax.f32 %v1847_v3, 0.0  ;;  %v2853_v3 = vld [vmem:[%s16919_s27 + $0x14c8] sm:$0xff] }
 0x294   : > { %12125 = vmatpush1.bf16.msra.mxu1 %v15033_v13  ;;  %11634 = vmatprep.subr.bf16.mxu0 %v15040_v15  ;;  %v2829_v13 = vld [vmem:[%s16919_s27 + $0x1408] sm:$0xff]  ;;  %v15072_v23 = vcombine.high %v2828_v7, %v2832_v61 }
 0x295   : > { %12126 = vmatprep.subr.bf16.mxu1 %v15042_v17  ;;  %v2833_v15 = vld [vmem:[%s16919_s27 + $0x1428] sm:$0xff]  ;;  %v15063_v17 = vcombine.low %v2820_v54, %v2824_v59  ;;  %v17445_v52 = vpack.c.bf16 %v2148_v18, %v2148_v18 }
 0x296   : > { %v15074_v27 = vcombine.high %v2829_v13, %v2833_v15  ;;  %v15073_v42 = vcombine.low %v2829_v13, %v2833_v15  ;;  %v2860_v13 = vld [vmem:[%s16919_s27 + $0x1500] sm:$0xff]  ;;  %v2865_v18 = vld [vmem:[%s16919_s27 + $0x1528] sm:$0xff] }
 0x297   : > { %11635 = vmatpush1.bf16.msra.mxu0 %v15039_v31  ;;  %v2836_v31 = vld [vmem:[%s16919_s27 + $0x1440] sm:$0xff] }
 0x298   : > { %12127 = vmatpush1.bf16.msra.mxu1 %v15041_v58  ;;  %11636 = vmatprep.subr.bf16.mxu0 %v15048_v35  ;;  %v2840_v58 = vld [vmem:[%s16919_s27 + $0x1460] sm:$0xff]  ;;  %v15071_v35 = vcombine.low %v2828_v7, %v2832_v61 }
 0x299   : > { %12128 = vmatprep.subr.bf16.mxu1 %v15050_v37  ;;  %v2837_v37 = vld [vmem:[%s16919_s27 + $0x1448] sm:$0xff]  ;;  %v15080_v43 = vcombine.high %v2836_v31, %v2840_v58  ;;  %v2864_v15 = vld [vmem:[%s16919_s27 + $0x1520] sm:$0xff] }
 0x29a   : > { %v15082_v36 = vcombine.high %v2837_v37, %v2841_v39  ;;  %v15081_v54 = vcombine.low %v2837_v37, %v2841_v39  ;;  %v2873_v37 = vld [vmem:[%s16919_s27 + $0x1568] sm:$0xff]  ;;  %v15103_v39 = vcombine.low %v2860_v13, %v2864_v15 }
 0x29b   : > { %11637 = vmatpush1.bf16.msra.mxu0 %v15047_v45  ;;  %v2844_v45 = vld [vmem:[%s16919_s27 + $0x1480] sm:$0xff] }
 0x29c   : > { %12129 = vmatpush1.bf16.msra.mxu1 %v15049_v48  ;;  %11638 = vmatprep.subr.bf16.mxu0 %v15056_v51  ;;  %v2845_v48 = vld [vmem:[%s16919_s27 + $0x1488] sm:$0xff]  ;;  %v15088_v59 = vcombine.high %v2844_v45, %v2848_v46 }
 0x29d   : > { %12130 = vmatprep.subr.bf16.mxu1 %v15058_v53  ;;  %v2849_v51 = vld [vmem:[%s16919_s27 + $0x14a8] sm:$0xff]  ;;  %v15079_v53 = vcombine.low %v2836_v31, %v2840_v58  ;;  %v2868_v31 = vld [vmem:[%s16919_s27 + $0x1540] sm:$0xff] }
 0x29e   : > { %v15090_v49 = vcombine.high %v2845_v48, %v2849_v51  ;;  %v2872_v58 = vld [vmem:[%s16919_s27 + $0x1560] sm:$0xff] }
 0x29f   : > { %11639 = vmatpush1.bf16.msra.mxu0 %v15055_v63  ;;  %v2856_v63 = vld [vmem:[%s16919_s27 + $0x14e0] sm:$0xff] }
 0x2a0   : > { %12131 = vmatpush1.bf16.msra.mxu1 %v15057_v8  ;;  %11640 = vmatprep.subr.bf16.mxu0 %v15064_v1  ;;  %v2857_v8 = vld [vmem:[%s16919_s27 + $0x14e8] sm:$0xff]  ;;  %v15087_v1 = vcombine.low %v2844_v45, %v2848_v46  ;;  %v15096_v7 = vcombine.high %v2852_v4, %v2856_v63  ;;  %v2876_v46 = vld [vmem:[%s16919_s27 + $0x1580] sm:$0xff] }
 0x2a1   : > { %12132 = vmatprep.subr.bf16.mxu1 %v15066_v11  ;;  %v15089_v11 = vcombine.low %v2845_v48, %v2849_v51  ;;  %v15098_v61 = vcombine.high %v2853_v3, %v2857_v8  ;;  %v2877_v48 = vld [vmem:[%s16919_s27 + $0x1588] sm:$0xff] }
 0x2a2   : > { %v2881_v51 = vld [vmem:[%s16919_s27 + $0x15a8] sm:$0xff] }
 0x2a3   : > { %11641 = vmatpush1.bf16.msra.mxu0 %v15063_v17  ;;  %v2861_v17 = vld [vmem:[%s16919_s27 + $0x1508] sm:$0xff] }
 0x2a4   : > { %12133 = vmatpush1.bf16.msra.mxu1 %v15065_v21  ;;  %11651 = vmatprep.subr.bf16.mxu0 %v15072_v23  ;;  %v15095_v21 = vcombine.low %v2852_v4, %v2856_v63  ;;  %v15097_v23 = vcombine.low %v2853_v3, %v2857_v8  ;;  %v15106_v26 = vcombine.high %v2861_v17, %v2865_v18  ;;  %v2884_v4 = vld [vmem:[%s16919_s27 + $0x15c0] sm:$0xff]  ;;  %v2885_v3 = vld [vmem:[%s16919_s27 + $0x15c8] sm:$0xff] }
 0x2a5   : > { %12143 = vmatprep.subr.bf16.mxu1 %v15074_v27  ;;  %v15104_v27 = vcombine.high %v2860_v13, %v2864_v15  ;;  %v2888_v63 = vld [vmem:[%s16919_s27 + $0x15e0] sm:$0xff]  ;;  %v2889_v8 = vld [vmem:[%s16919_s27 + $0x15e8] sm:$0xff] }
 0x2a6   : > { %11643 = vmatmul.mubr.bf16.vlgmr.msra.gmra.mrb[24].mxu0 %v17445_v52  ;;  %v2892_v13 = vld [vmem:[%s16919_s27 + $0x1600] sm:$0xff] }
 0x2a7   : > { %12135 = vmatmul.mubr.bf16.vlgmr.msra.gmra.mrb[24].mxu1 %v17445_v52  ;;  %11652 = vmatpush1.bf16.msra.mxu0 %v15071_v35  ;;  %v2869_v35 = vld [vmem:[%s16919_s27 + $0x1548] sm:$0xff]  ;;  %v2896_v15 = vld [vmem:[%s16919_s27 + $0x1620] sm:$0xff] }
 0x2a8   : > { %11683 = vmatprep.mubr.bf16.mxu0 %v17449_v47  ;;  %12144 = vmatpush1.bf16.msra.mxu1 %v15073_v42  ;;  %v15105_v42 = vcombine.low %v2861_v17, %v2865_v18  ;;  %v15114_v45 = vcombine.high %v2869_v35, %v2873_v37  ;;  %v2893_v17 = vld [vmem:[%s16919_s27 + $0x1608] sm:$0xff] }
 0x2a9   : > { %12175 = vmatprep.mubr.bf16.mxu1 %v17449_v47  ;;  %11653 = vmatprep.subr.bf16.mxu0 %v15080_v43  ;;  %v15112_v43 = vcombine.high %v2868_v31, %v2872_v58  ;;  %v2897_v18 = vld [vmem:[%s16919_s27 + $0x1628] sm:$0xff] }
 0x2aa   : > { %12145 = vmatprep.subr.bf16.mxu1 %v15082_v36  ;;  %v2880_v36 = vld [vmem:[%s16919_s27 + $0x15a0] sm:$0xff] }
 0x2ab   : > { %11654 = vmatpush1.bf16.msra.mxu0 %v15079_v53  ;;  %v15111_v53 = vcombine.low %v2868_v31, %v2872_v58  ;;  %v2900_v31 = vld [vmem:[%s16919_s27 + $0x1640] sm:$0xff] }
 0x2ac   : > { %12146 = vmatpush1.bf16.msra.mxu1 %v15081_v54  ;;  %11655 = vmatprep.subr.bf16.mxu0 %v15088_v59  ;;  %v15113_v54 = vcombine.low %v2869_v35, %v2873_v37  ;;  %v15120_v59 = vcombine.high %v2876_v46, %v2880_v36  ;;  %v2904_v58 = vld [vmem:[%s16919_s27 + $0x1660] sm:$0xff]  ;;  %v2901_v35 = vld [vmem:[%s16919_s27 + $0x1648] sm:$0xff] }
 0x2ad   : > { %12147 = vmatprep.subr.bf16.mxu1 %v15090_v49  ;;  %v15122_v49 = vcombine.high %v2877_v48, %v2881_v51  ;;  %v2905_v37 = vld [vmem:[%s16919_s27 + $0x1668] sm:$0xff] }
 0x2af   : > { %11656 = vmatpush1.bf16.msra.mxu0 %v15087_v1  ;;  %v15119_v1 = vcombine.low %v2876_v46, %v2880_v36  ;;  %v2908_v46 = vld [vmem:[%s16919_s27 + $0x1680] sm:$0xff] }
 0x2b0   : > { %12148 = vmatpush1.bf16.msra.mxu1 %v15089_v11  ;;  %11657 = vmatprep.subr.bf16.mxu0 %v15096_v7  ;;  %v15121_v11 = vcombine.low %v2877_v48, %v2881_v51  ;;  %v15128_v7 = vcombine.high %v2884_v4, %v2888_v63  ;;  %v2912_v36 = vld [vmem:[%s16919_s27 + $0x16a0] sm:$0xff]  ;;  %v2909_v48 = vld [vmem:[%s16919_s27 + $0x1688] sm:$0xff] }
 0x2b1   : > { %12149 = vmatprep.subr.bf16.mxu1 %v15098_v61  ;;  %v15130_v61 = vcombine.high %v2885_v3, %v2889_v8  ;;  %v2913_v51 = vld [vmem:[%s16919_s27 + $0x16a8] sm:$0xff] }
 0x2b3   : > { %11658 = vmatpush1.bf16.msra.mxu0 %v15095_v21  ;;  %v15127_v21 = vcombine.low %v2884_v4, %v2888_v63  ;;  %v2916_v4 = vld [vmem:[%s16919_s27 + $0x16c0] sm:$0xff] }
 0x2b4   : > { %12150 = vmatpush1.bf16.msra.mxu1 %v15097_v23  ;;  %11659 = vmatprep.subr.bf16.mxu0 %v15104_v27  ;;  %v15129_v23 = vcombine.low %v2885_v3, %v2889_v8  ;;  %v15136_v27 = vcombine.high %v2892_v13, %v2896_v15  ;;  %v2920_v63 = vld [vmem:[%s16919_s27 + $0x16e0] sm:$0xff]  ;;  %v2917_v3 = vld [vmem:[%s16919_s27 + $0x16c8] sm:$0xff] }
 0x2b5   : > { %12151 = vmatprep.subr.bf16.mxu1 %v15106_v26  ;;  %v15138_v26 = vcombine.high %v2893_v17, %v2897_v18  ;;  %v2921_v8 = vld [vmem:[%s16919_s27 + $0x16e8] sm:$0xff] }
 0x2b7   : > { %11660 = vmatpush1.bf16.msra.mxu0 %v15103_v39  ;;  %v15135_v39 = vcombine.low %v2892_v13, %v2896_v15  ;;  %v2924_v13 = vld [vmem:[%s16919_s27 + $0x1700] sm:$0xff] }
 0x2b8   : > { %12152 = vmatpush1.bf16.msra.mxu1 %v15105_v42  ;;  %11661 = vmatprep.subr.bf16.mxu0 %v15112_v43  ;;  %v15137_v42 = vcombine.low %v2893_v17, %v2897_v18  ;;  %v15144_v43 = vcombine.high %v2900_v31, %v2904_v58  ;;  %v2928_v15 = vld [vmem:[%s16919_s27 + $0x1720] sm:$0xff]  ;;  %v2925_v17 = vld [vmem:[%s16919_s27 + $0x1708] sm:$0xff] }
 0x2b9   : > { %12153 = vmatprep.subr.bf16.mxu1 %v15114_v45  ;;  %v15146_v45 = vcombine.high %v2901_v35, %v2905_v37  ;;  %v2929_v18 = vld [vmem:[%s16919_s27 + $0x1728] sm:$0xff] }
 0x2bb   : > { %11662 = vmatpush1.bf16.msra.mxu0 %v15111_v53  ;;  %v15143_v53 = vcombine.low %v2900_v31, %v2904_v58  ;;  %v2932_v31 = vld [vmem:[%s16919_s27 + $0x1740] sm:$0xff] }
 0x2bc   : > { %12154 = vmatpush1.bf16.msra.mxu1 %v15113_v54  ;;  %11663 = vmatprep.subr.bf16.mxu0 %v15120_v59  ;;  %v15145_v54 = vcombine.low %v2901_v35, %v2905_v37  ;;  %v15152_v59 = vcombine.high %v2908_v46, %v2912_v36  ;;  %v2936_v58 = vld [vmem:[%s16919_s27 + $0x1760] sm:$0xff]  ;;  %v2933_v35 = vld [vmem:[%s16919_s27 + $0x1748] sm:$0xff] }
 0x2bd   : > { %12155 = vmatprep.subr.bf16.mxu1 %v15122_v49  ;;  %v15154_v49 = vcombine.high %v2909_v48, %v2913_v51  ;;  %v2937_v37 = vld [vmem:[%s16919_s27 + $0x1768] sm:$0xff] }
 0x2bf   : > { %11664 = vmatpush1.bf16.msra.mxu0 %v15119_v1  ;;  %v15151_v1 = vcombine.low %v2908_v46, %v2912_v36  ;;  %v2940_v46 = vld [vmem:[%s16919_s27 + $0x1780] sm:$0xff] }
 0x2c0   : > { %12156 = vmatpush1.bf16.msra.mxu1 %v15121_v11  ;;  %11665 = vmatprep.subr.bf16.mxu0 %v15128_v7  ;;  %v15153_v11 = vcombine.low %v2909_v48, %v2913_v51  ;;  %v15160_v7 = vcombine.high %v2916_v4, %v2920_v63  ;;  %v2944_v36 = vld [vmem:[%s16919_s27 + $0x17a0] sm:$0xff]  ;;  %v2941_v48 = vld [vmem:[%s16919_s27 + $0x1788] sm:$0xff] }
 0x2c1   : > { %12157 = vmatprep.subr.bf16.mxu1 %v15130_v61  ;;  %v15162_v61 = vcombine.high %v2917_v3, %v2921_v8  ;;  %v2945_v51 = vld [vmem:[%s16919_s27 + $0x17a8] sm:$0xff] }
 0x2c3   : > { %11666 = vmatpush1.bf16.msra.mxu0 %v15127_v21  ;;  %v15159_v21 = vcombine.low %v2916_v4, %v2920_v63  ;;  %v2948_v4 = vld [vmem:[%s16919_s27 + $0x17c0] sm:$0xff] }
 0x2c4   : > { %12158 = vmatpush1.bf16.msra.mxu1 %v15129_v23  ;;  %11667 = vmatprep.subr.bf16.mxu0 %v15136_v27  ;;  %v15161_v23 = vcombine.low %v2917_v3, %v2921_v8  ;;  %v15168_v27 = vcombine.high %v2924_v13, %v2928_v15  ;;  %v2952_v63 = vld [vmem:[%s16919_s27 + $0x17e0] sm:$0xff]  ;;  %v2949_v3 = vld [vmem:[%s16919_s27 + $0x17c8] sm:$0xff] }
 0x2c5   : > { %12159 = vmatprep.subr.bf16.mxu1 %v15138_v26  ;;  %v15170_v26 = vcombine.high %v2925_v17, %v2929_v18  ;;  %v2953_v8 = vld [vmem:[%s16919_s27 + $0x17e8] sm:$0xff] }
 0x2c7   : > { %11668 = vmatpush1.bf16.msra.mxu0 %v15135_v39  ;;  %v15167_v39 = vcombine.low %v2924_v13, %v2928_v15  ;;  %v2956_v13 = vld [vmem:[%s16919_s27 + $0x1800] sm:$0xff] }
 0x2c8   : > { %12160 = vmatpush1.bf16.msra.mxu1 %v15137_v42  ;;  %11669 = vmatprep.subr.bf16.mxu0 %v15144_v43  ;;  %v15169_v42 = vcombine.low %v2925_v17, %v2929_v18  ;;  %v15176_v43 = vcombine.high %v2932_v31, %v2936_v58  ;;  %v2960_v15 = vld [vmem:[%s16919_s27 + $0x1820] sm:$0xff]  ;;  %v2957_v17 = vld [vmem:[%s16919_s27 + $0x1808] sm:$0xff] }
 0x2c9   : > { %12161 = vmatprep.subr.bf16.mxu1 %v15146_v45  ;;  %v15178_v45 = vcombine.high %v2933_v35, %v2937_v37  ;;  %v2961_v18 = vld [vmem:[%s16919_s27 + $0x1828] sm:$0xff] }
 0x2cb   : > { %11670 = vmatpush1.bf16.msra.mxu0 %v15143_v53  ;;  %v15175_v53 = vcombine.low %v2932_v31, %v2936_v58  ;;  %v15202_v31 = vcombine.high %v2957_v17, %v2961_v18  ;;  %v2153_v58 = vmax.f32 %v17218_v22, 0.0 }
 0x2cc   : > { %12162 = vmatpush1.bf16.msra.mxu1 %v15145_v54  ;;  %11671 = vmatprep.subr.bf16.mxu0 %v15152_v59  ;;  %v15177_v54 = vcombine.low %v2933_v35, %v2937_v37  ;;  %v15184_v59 = vcombine.high %v2940_v46, %v2944_v36  ;;  %v2964_v35 = vld [vmem:[%s16919_s27 + $0x1840] sm:$0xff] }
 0x2cd   : > { %12163 = vmatprep.subr.bf16.mxu1 %v15154_v49  ;;  %v15186_v49 = vcombine.high %v2941_v48, %v2945_v51  ;;  %v2968_v37 = vld [vmem:[%s16919_s27 + $0x1860] sm:$0xff] }
 0x2cf   : > { %11672 = vmatpush1.bf16.msra.mxu0 %v15151_v1  ;;  %v15183_v1 = vcombine.low %v2940_v46, %v2944_v36  ;;  %v15208_v46 = vcombine.high %v2964_v35, %v2968_v37  ;;  %v2972_v36 = vld [vmem:[%s16919_s27 + $0x1880] sm:$0xff] }
 0x2d0   : > { %12164 = vmatpush1.bf16.msra.mxu1 %v15153_v11  ;;  %11673 = vmatprep.subr.bf16.mxu0 %v15160_v7  ;;  %v15185_v11 = vcombine.low %v2941_v48, %v2945_v51  ;;  %v15192_v7 = vcombine.high %v2948_v4, %v2952_v63  ;;  %v2976_v48 = vld [vmem:[%s16919_s27 + $0x18a0] sm:$0xff]  ;;  %v17523_v51 = vpack.c.bf16 %v2153_v58, %v2153_v58 }
 0x2d1   : > { %12165 = vmatprep.subr.bf16.mxu1 %v15162_v61  ;;  %v15194_v61 = vcombine.high %v2949_v3, %v2953_v8 }
 0x2d3   : > { %11674 = vmatpush1.bf16.msra.mxu0 %v15159_v21  ;;  %v15191_v21 = vcombine.low %v2948_v4, %v2952_v63  ;;  %v15216_v4 = vcombine.high %v2972_v36, %v2976_v48 }
 0x2d4   : > { %12166 = vmatpush1.bf16.msra.mxu1 %v15161_v23  ;;  %11675 = vmatprep.subr.bf16.mxu0 %v15168_v27  ;;  %v2150_v23 = vmax.f32 %v17160_v33, 0.0  ;;  %v15193_v27 = vcombine.low %v2949_v3, %v2953_v8  ;;  %v15201_v33 = vcombine.low %v2957_v17, %v2961_v18  ;;  %v2980_v3 = vld [vmem:[%s16919_s27 + $0x18c0] sm:$0xff] }
 0x2d5   : > { %12167 = vmatprep.subr.bf16.mxu1 %v15170_v26  ;;  %v15200_v26 = vcombine.high %v2956_v13, %v2960_v15  ;;  %v2984_v8 = vld [vmem:[%s16919_s27 + $0x18e0] sm:$0xff] }
 0x2d6   : > { %v2988_v17 = vld [vmem:[%s16919_s27 + $0x1900] sm:$0xff] }
 0x2d7   : > { %11676 = vmatpush1.bf16.msra.mxu0 %v15167_v39  ;;  %v15199_v39 = vcombine.low %v2956_v13, %v2960_v15  ;;  %v15224_v13 = vcombine.high %v2980_v3, %v2984_v8  ;;  %v2992_v18 = vld [vmem:[%s16919_s27 + $0x1920] sm:$0xff] }
 0x2d8   : > { %12168 = vmatpush1.bf16.msra.mxu1 %v15169_v42  ;;  %11677 = vmatprep.subr.bf16.mxu0 %v15176_v43  ;;  %v2965_v42 = vld [vmem:[%s16919_s27 + $0x1848] sm:$0xff] }
 0x2d9   : > { %12169 = vmatprep.subr.bf16.mxu1 %v15178_v45  ;;  %v2969_v43 = vld [vmem:[%s16919_s27 + $0x1868] sm:$0xff]  ;;  %v17519_v45 = vpack.c.bf16 %v2150_v23, %v2150_v23 }
 0x2da   : > { %v15210_v22 = vcombine.high %v2965_v42, %v2969_v43  ;;  %v2993_v23 = vld [vmem:[%s16919_s27 + $0x1928] sm:$0xff] }
 0x2db   : > { %11678 = vmatpush1.bf16.msra.mxu0 %v15175_v53  ;;  %v2973_v53 = vld [vmem:[%s16919_s27 + $0x1888] sm:$0xff] }
 0x2dc   : > { %12170 = vmatpush1.bf16.msra.mxu1 %v15177_v54  ;;  %11679 = vmatprep.subr.bf16.mxu0 %v15184_v59  ;;  %v2977_v54 = vld [vmem:[%s16919_s27 + $0x18a8] sm:$0xff]  ;;  %v15207_v59 = vcombine.low %v2964_v35, %v2968_v37  ;;  %v2996_v35 = vld [vmem:[%s16919_s27 + $0x1940] sm:$0xff] }
 0x2dd   : > { %12171 = vmatprep.subr.bf16.mxu1 %v15186_v49  ;;  %v15209_v49 = vcombine.low %v2965_v42, %v2969_v43  ;;  %v15218_v63 = vcombine.high %v2973_v53, %v2977_v54  ;;  %v3000_v37 = vld [vmem:[%s16919_s27 + $0x1960] sm:$0xff]  ;;  %v3001_v42 = vld [vmem:[%s16919_s27 + $0x1968] sm:$0xff]  ;;  %v15231_v43 = vcombine.low %v2988_v17, %v2992_v18 }
 0x2df   : > { %11680 = vmatpush1.bf16.msra.mxu0 %v15183_v1  ;;  %v2981_v1 = vld [vmem:[%s16919_s27 + $0x18c8] sm:$0xff] }
 0x2e0   : > { %12172 = vmatpush1.bf16.msra.mxu1 %v15185_v11  ;;  %11681 = vmatprep.subr.bf16.mxu0 %v15192_v7  ;;  %v2985_v11 = vld [vmem:[%s16919_s27 + $0x18e8] sm:$0xff]  ;;  %v15215_v7 = vcombine.low %v2972_v36, %v2976_v48  ;;  %v3004_v48 = vld [vmem:[%s16919_s27 + $0x1980] sm:$0xff] }
 0x2e1   : > { %12173 = vmatprep.subr.bf16.mxu1 %v15194_v61  ;;  %v15217_v61 = vcombine.low %v2973_v53, %v2977_v54  ;;  %v15226_v15 = vcombine.high %v2981_v1, %v2985_v11  ;;  %v3005_v53 = vld [vmem:[%s16919_s27 + $0x1988] sm:$0xff] }
 0x2e2   : > { %v3009_v54 = vld [vmem:[%s16919_s27 + $0x19a8] sm:$0xff] }
 0x2e3   : > { %11682 = vmatpush1.bf16.msra.mxu0 %v15191_v21  ;;  %v2989_v21 = vld [vmem:[%s16919_s27 + $0x1908] sm:$0xff] }
 0x2e4   : > { %12174 = vmatpush1.bf16.msra.mxu1 %v15193_v27  ;;  %11692 = vmatprep.subr.bf16.mxu0 %v15200_v26  ;;  %v15223_v27 = vcombine.low %v2980_v3, %v2984_v8  ;;  %v15225_v26 = vcombine.low %v2981_v1, %v2985_v11  ;;  %v15234_v58 = vcombine.high %v2989_v21, %v2993_v23  ;;  %v3012_v3 = vld [vmem:[%s16919_s27 + $0x19c0] sm:$0xff]  ;;  %v3013_v1 = vld [vmem:[%s16919_s27 + $0x19c8] sm:$0xff] }
 0x2e5   : > { %12184 = vmatprep.subr.bf16.mxu1 %v15202_v31  ;;  %v15232_v31 = vcombine.high %v2988_v17, %v2992_v18  ;;  %v3016_v8 = vld [vmem:[%s16919_s27 + $0x19e0] sm:$0xff]  ;;  %v3017_v11 = vld [vmem:[%s16919_s27 + $0x19e8] sm:$0xff] }
 0x2e6   : > { %11684 = vmatmul.mubr.bf16.vlgmr.msra.gmra.mrb[24].mxu0 %v17519_v45  ;;  %v3020_v17 = vld [vmem:[%s16919_s27 + $0x1a00] sm:$0xff] }
 0x2e7   : > { %12176 = vmatmul.mubr.bf16.vlgmr.msra.gmra.mrb[24].mxu1 %v17519_v45  ;;  %11693 = vmatpush1.bf16.msra.mxu0 %v15199_v39  ;;  %v2997_v39 = vld [vmem:[%s16919_s27 + $0x1948] sm:$0xff]  ;;  %v3024_v18 = vld [vmem:[%s16919_s27 + $0x1a20] sm:$0xff] }
 0x2e8   : > { %11724 = vmatprep.mubr.bf16.mxu0 %v17523_v51  ;;  %12185 = vmatpush1.bf16.msra.mxu1 %v15201_v33  ;;  %v15233_v33 = vcombine.low %v2989_v21, %v2993_v23  ;;  %v15242_v36 = vcombine.high %v2997_v39, %v3001_v42  ;;  %v3021_v21 = vld [vmem:[%s16919_s27 + $0x1a08] sm:$0xff] }
 0x2e9   : > { %12216 = vmatprep.mubr.bf16.mxu1 %v17523_v51  ;;  %11694 = vmatprep.subr.bf16.mxu0 %v15208_v46  ;;  %v15240_v46 = vcombine.high %v2996_v35, %v3000_v37  ;;  %v3025_v23 = vld [vmem:[%s16919_s27 + $0x1a28] sm:$0xff] }
 0x2ea   : > { %12186 = vmatprep.subr.bf16.mxu1 %v15210_v22  ;;  %v3008_v22 = vld [vmem:[%s16919_s27 + $0x19a0] sm:$0xff] }
 0x2eb   : > { %11695 = vmatpush1.bf16.msra.mxu0 %v15207_v59  ;;  %v15239_v59 = vcombine.low %v2996_v35, %v3000_v37  ;;  %v3028_v35 = vld [vmem:[%s16919_s27 + $0x1a40] sm:$0xff] }
 0x2ec   : > { %12187 = vmatpush1.bf16.msra.mxu1 %v15209_v49  ;;  %11696 = vmatprep.subr.bf16.mxu0 %v15216_v4  ;;  %v15241_v49 = vcombine.low %v2997_v39, %v3001_v42  ;;  %v15248_v4 = vcombine.high %v3004_v48, %v3008_v22  ;;  %v3032_v37 = vld [vmem:[%s16919_s27 + $0x1a60] sm:$0xff]  ;;  %v3029_v39 = vld [vmem:[%s16919_s27 + $0x1a48] sm:$0xff] }
 0x2ed   : > { %12188 = vmatprep.subr.bf16.mxu1 %v15218_v63  ;;  %v15250_v63 = vcombine.high %v3005_v53, %v3009_v54  ;;  %v3033_v42 = vld [vmem:[%s16919_s27 + $0x1a68] sm:$0xff] }
 0x2ef   : > { %11697 = vmatpush1.bf16.msra.mxu0 %v15215_v7  ;;  %v15247_v7 = vcombine.low %v3004_v48, %v3008_v22  ;;  %v3036_v48 = vld [vmem:[%s16919_s27 + $0x1a80] sm:$0xff] }
 0x2f0   : > { %12189 = vmatpush1.bf16.msra.mxu1 %v15217_v61  ;;  %11698 = vmatprep.subr.bf16.mxu0 %v15224_v13  ;;  %v15249_v61 = vcombine.low %v3005_v53, %v3009_v54  ;;  %v15256_v13 = vcombine.high %v3012_v3, %v3016_v8  ;;  %v3040_v22 = vld [vmem:[%s16919_s27 + $0x1aa0] sm:$0xff]  ;;  %v3037_v53 = vld [vmem:[%s16919_s27 + $0x1a88] sm:$0xff] }
 0x2f1   : > { %12190 = vmatprep.subr.bf16.mxu1 %v15226_v15  ;;  %v15258_v15 = vcombine.high %v3013_v1, %v3017_v11  ;;  %v3041_v54 = vld [vmem:[%s16919_s27 + $0x1aa8] sm:$0xff] }
 0x2f3   : > { %11699 = vmatpush1.bf16.msra.mxu0 %v15223_v27  ;;  %v15255_v27 = vcombine.low %v3012_v3, %v3016_v8  ;;  %v3044_v3 = vld [vmem:[%s16919_s27 + $0x1ac0] sm:$0xff] }
 0x2f4   : > { %12191 = vmatpush1.bf16.msra.mxu1 %v15225_v26  ;;  %11700 = vmatprep.subr.bf16.mxu0 %v15232_v31  ;;  %v15257_v26 = vcombine.low %v3013_v1, %v3017_v11  ;;  %v15264_v31 = vcombine.high %v3020_v17, %v3024_v18  ;;  %v3048_v8 = vld [vmem:[%s16919_s27 + $0x1ae0] sm:$0xff]  ;;  %v3045_v1 = vld [vmem:[%s16919_s27 + $0x1ac8] sm:$0xff] }
 0x2f5   : > { %12192 = vmatprep.subr.bf16.mxu1 %v15234_v58  ;;  %v15266_v58 = vcombine.high %v3021_v21, %v3025_v23  ;;  %v3049_v11 = vld [vmem:[%s16919_s27 + $0x1ae8] sm:$0xff] }
 0x2f7   : > { %11701 = vmatpush1.bf16.msra.mxu0 %v15231_v43  ;;  %v15263_v43 = vcombine.low %v3020_v17, %v3024_v18  ;;  %v3052_v17 = vld [vmem:[%s16919_s27 + $0x1b00] sm:$0xff] }
 0x2f8   : > { %12193 = vmatpush1.bf16.msra.mxu1 %v15233_v33  ;;  %11702 = vmatprep.subr.bf16.mxu0 %v15240_v46  ;;  %v15265_v33 = vcombine.low %v3021_v21, %v3025_v23  ;;  %v15272_v46 = vcombine.high %v3028_v35, %v3032_v37  ;;  %v3056_v18 = vld [vmem:[%s16919_s27 + $0x1b20] sm:$0xff]  ;;  %v3053_v21 = vld [vmem:[%s16919_s27 + $0x1b08] sm:$0xff] }
 0x2f9   : > { %12194 = vmatprep.subr.bf16.mxu1 %v15242_v36  ;;  %v15274_v36 = vcombine.high %v3029_v39, %v3033_v42  ;;  %v3057_v23 = vld [vmem:[%s16919_s27 + $0x1b28] sm:$0xff] }
 0x2fb   : > { %11703 = vmatpush1.bf16.msra.mxu0 %v15239_v59  ;;  %v15271_v59 = vcombine.low %v3028_v35, %v3032_v37  ;;  %v3060_v35 = vld [vmem:[%s16919_s27 + $0x1b40] sm:$0xff] }
 0x2fc   : > { %12195 = vmatpush1.bf16.msra.mxu1 %v15241_v49  ;;  %11704 = vmatprep.subr.bf16.mxu0 %v15248_v4  ;;  %v15273_v49 = vcombine.low %v3029_v39, %v3033_v42  ;;  %v15280_v4 = vcombine.high %v3036_v48, %v3040_v22  ;;  %v3064_v37 = vld [vmem:[%s16919_s27 + $0x1b60] sm:$0xff]  ;;  %v3061_v39 = vld [vmem:[%s16919_s27 + $0x1b48] sm:$0xff] }
 0x2fd   : > { %12196 = vmatprep.subr.bf16.mxu1 %v15250_v63  ;;  %v15282_v63 = vcombine.high %v3037_v53, %v3041_v54  ;;  %v3065_v42 = vld [vmem:[%s16919_s27 + $0x1b68] sm:$0xff] }
 0x2ff   : > { %11705 = vmatpush1.bf16.msra.mxu0 %v15247_v7  ;;  %v15279_v7 = vcombine.low %v3036_v48, %v3040_v22  ;;  %v3068_v48 = vld [vmem:[%s16919_s27 + $0x1b80] sm:$0xff] }
 0x300   : > { %12197 = vmatpush1.bf16.msra.mxu1 %v15249_v61  ;;  %11706 = vmatprep.subr.bf16.mxu0 %v15256_v13  ;;  %v15281_v61 = vcombine.low %v3037_v53, %v3041_v54  ;;  %v15288_v13 = vcombine.high %v3044_v3, %v3048_v8  ;;  %v3072_v22 = vld [vmem:[%s16919_s27 + $0x1ba0] sm:$0xff]  ;;  %v3069_v53 = vld [vmem:[%s16919_s27 + $0x1b88] sm:$0xff] }
 0x301   : > { %12198 = vmatprep.subr.bf16.mxu1 %v15258_v15  ;;  %v15290_v15 = vcombine.high %v3045_v1, %v3049_v11  ;;  %v3073_v54 = vld [vmem:[%s16919_s27 + $0x1ba8] sm:$0xff] }
 0x303   : > { %11707 = vmatpush1.bf16.msra.mxu0 %v15255_v27  ;;  %v15287_v27 = vcombine.low %v3044_v3, %v3048_v8  ;;  %v3076_v3 = vld [vmem:[%s16919_s27 + $0x1bc0] sm:$0xff] }
 0x304   : > { %12199 = vmatpush1.bf16.msra.mxu1 %v15257_v26  ;;  %11708 = vmatprep.subr.bf16.mxu0 %v15264_v31  ;;  %v15289_v26 = vcombine.low %v3045_v1, %v3049_v11  ;;  %v15296_v31 = vcombine.high %v3052_v17, %v3056_v18  ;;  %v3080_v8 = vld [vmem:[%s16919_s27 + $0x1be0] sm:$0xff]  ;;  %v3077_v1 = vld [vmem:[%s16919_s27 + $0x1bc8] sm:$0xff] }
 0x305   : > { %12200 = vmatprep.subr.bf16.mxu1 %v15266_v58  ;;  %v15298_v58 = vcombine.high %v3053_v21, %v3057_v23  ;;  %v3081_v11 = vld [vmem:[%s16919_s27 + $0x1be8] sm:$0xff] }
 0x307   : > { %11709 = vmatpush1.bf16.msra.mxu0 %v15263_v43  ;;  %v15295_v43 = vcombine.low %v3052_v17, %v3056_v18  ;;  %v3084_v17 = vld [vmem:[%s16919_s27 + $0x1c00] sm:$0xff] }
 0x308   : > { %12201 = vmatpush1.bf16.msra.mxu1 %v15265_v33  ;;  %11710 = vmatprep.subr.bf16.mxu0 %v15272_v46  ;;  %v15297_v33 = vcombine.low %v3053_v21, %v3057_v23  ;;  %v15304_v46 = vcombine.high %v3060_v35, %v3064_v37  ;;  %v3088_v18 = vld [vmem:[%s16919_s27 + $0x1c20] sm:$0xff]  ;;  %v3085_v21 = vld [vmem:[%s16919_s27 + $0x1c08] sm:$0xff] }
 0x309   : > { %12202 = vmatprep.subr.bf16.mxu1 %v15274_v36  ;;  %v15306_v36 = vcombine.high %v3061_v39, %v3065_v42  ;;  %v3089_v23 = vld [vmem:[%s16919_s27 + $0x1c28] sm:$0xff] }
 0x30b   : > { %11711 = vmatpush1.bf16.msra.mxu0 %v15271_v59  ;;  %v15303_v59 = vcombine.low %v3060_v35, %v3064_v37  ;;  %v15330_v35 = vcombine.high %v3085_v21, %v3089_v23  ;;  %v2155_v37 = vmax.f32 %v17220_v28, 0.0 }
 0x30c   : > { %12203 = vmatpush1.bf16.msra.mxu1 %v15273_v49  ;;  %11712 = vmatprep.subr.bf16.mxu0 %v15280_v4  ;;  %v15305_v49 = vcombine.low %v3061_v39, %v3065_v42  ;;  %v15312_v4 = vcombine.high %v3068_v48, %v3072_v22  ;;  %v3092_v39 = vld [vmem:[%s16919_s27 + $0x1c40] sm:$0xff] }
 0x30d   : > { %12204 = vmatprep.subr.bf16.mxu1 %v15282_v63  ;;  %v15314_v63 = vcombine.high %v3069_v53, %v3073_v54  ;;  %v3096_v42 = vld [vmem:[%s16919_s27 + $0x1c60] sm:$0xff] }
 0x30f   : > { %11713 = vmatpush1.bf16.msra.mxu0 %v15279_v7  ;;  %v15311_v7 = vcombine.low %v3068_v48, %v3072_v22  ;;  %v15336_v48 = vcombine.high %v3092_v39, %v3096_v42  ;;  %v3100_v22 = vld [vmem:[%s16919_s27 + $0x1c80] sm:$0xff] }
 0x310   : > { %12205 = vmatpush1.bf16.msra.mxu1 %v15281_v61  ;;  %11714 = vmatprep.subr.bf16.mxu0 %v15288_v13  ;;  %v15313_v61 = vcombine.low %v3069_v53, %v3073_v54  ;;  %v15320_v13 = vcombine.high %v3076_v3, %v3080_v8  ;;  %v3104_v53 = vld [vmem:[%s16919_s27 + $0x1ca0] sm:$0xff]  ;;  %v17597_v54 = vpack.c.bf16 %v2155_v37, %v2155_v37 }
 0x311   : > { %12206 = vmatprep.subr.bf16.mxu1 %v15290_v15  ;;  %v15322_v15 = vcombine.high %v3077_v1, %v3081_v11 }
 0x313   : > { %11715 = vmatpush1.bf16.msra.mxu0 %v15287_v27  ;;  %v15319_v27 = vcombine.low %v3076_v3, %v3080_v8  ;;  %v15344_v3 = vcombine.high %v3100_v22, %v3104_v53 }
 0x314   : > { %12207 = vmatpush1.bf16.msra.mxu1 %v15289_v26  ;;  %11716 = vmatprep.subr.bf16.mxu0 %v15296_v31  ;;  %v2152_v26 = vmax.f32 %v17212_v14, 0.0  ;;  %v15321_v31 = vcombine.low %v3077_v1, %v3081_v11  ;;  %v15329_v14 = vcombine.low %v3085_v21, %v3089_v23  ;;  %v3108_v1 = vld [vmem:[%s16919_s27 + $0x1cc0] sm:$0xff] }
 0x315   : > { %12208 = vmatprep.subr.bf16.mxu1 %v15298_v58  ;;  %v15328_v58 = vcombine.high %v3084_v17, %v3088_v18  ;;  %v3112_v11 = vld [vmem:[%s16919_s27 + $0x1ce0] sm:$0xff] }
 0x316   : > { %v3116_v21 = vld [vmem:[%s16919_s27 + $0x1d00] sm:$0xff] }
 0x317   : > { %11717 = vmatpush1.bf16.msra.mxu0 %v15295_v43  ;;  %v15327_v43 = vcombine.low %v3084_v17, %v3088_v18  ;;  %v15352_v17 = vcombine.high %v3108_v1, %v3112_v11  ;;  %v3120_v23 = vld [vmem:[%s16919_s27 + $0x1d20] sm:$0xff] }
 0x318   : > { %12209 = vmatpush1.bf16.msra.mxu1 %v15297_v33  ;;  %11718 = vmatprep.subr.bf16.mxu0 %v15304_v46  ;;  %v3093_v33 = vld [vmem:[%s16919_s27 + $0x1c48] sm:$0xff] }
 0x319   : > { %12210 = vmatprep.subr.bf16.mxu1 %v15306_v36  ;;  %v3097_v46 = vld [vmem:[%s16919_s27 + $0x1c68] sm:$0xff]  ;;  %v17593_v36 = vpack.c.bf16 %v2152_v26, %v2152_v26 }
 0x31a   : > { %v15338_v28 = vcombine.high %v3093_v33, %v3097_v46  ;;  %v3121_v26 = vld [vmem:[%s16919_s27 + $0x1d28] sm:$0xff] }
 0x31b   : > { %11719 = vmatpush1.bf16.msra.mxu0 %v15303_v59  ;;  %v3101_v59 = vld [vmem:[%s16919_s27 + $0x1c88] sm:$0xff] }
 0x31c   : > { %12211 = vmatpush1.bf16.msra.mxu1 %v15305_v49  ;;  %11720 = vmatprep.subr.bf16.mxu0 %v15312_v4  ;;  %v3105_v49 = vld [vmem:[%s16919_s27 + $0x1ca8] sm:$0xff]  ;;  %v15335_v4 = vcombine.low %v3092_v39, %v3096_v42  ;;  %v3124_v39 = vld [vmem:[%s16919_s27 + $0x1d40] sm:$0xff] }
 0x31d   : > { %12212 = vmatprep.subr.bf16.mxu1 %v15314_v63  ;;  %v15337_v63 = vcombine.low %v3093_v33, %v3097_v46  ;;  %v15346_v8 = vcombine.high %v3101_v59, %v3105_v49  ;;  %v3128_v42 = vld [vmem:[%s16919_s27 + $0x1d60] sm:$0xff]  ;;  %v3129_v33 = vld [vmem:[%s16919_s27 + $0x1d68] sm:$0xff]  ;;  %v15359_v46 = vcombine.low %v3116_v21, %v3120_v23 }
 0x31f   : > { %11721 = vmatpush1.bf16.msra.mxu0 %v15311_v7  ;;  %v3109_v7 = vld [vmem:[%s16919_s27 + $0x1cc8] sm:$0xff] }
 0x320   : > { %12213 = vmatpush1.bf16.msra.mxu1 %v15313_v61  ;;  %11722 = vmatprep.subr.bf16.mxu0 %v15320_v13  ;;  %v3113_v61 = vld [vmem:[%s16919_s27 + $0x1ce8] sm:$0xff]  ;;  %v15343_v13 = vcombine.low %v3100_v22, %v3104_v53  ;;  %v3132_v53 = vld [vmem:[%s16919_s27 + $0x1d80] sm:$0xff] }
 0x321   : > { %12214 = vmatprep.subr.bf16.mxu1 %v15322_v15  ;;  %v15345_v15 = vcombine.low %v3101_v59, %v3105_v49  ;;  %v15354_v18 = vcombine.high %v3109_v7, %v3113_v61  ;;  %v3133_v59 = vld [vmem:[%s16919_s27 + $0x1d88] sm:$0xff] }
 0x322   : > { %v3137_v49 = vld [vmem:[%s16919_s27 + $0x1da8] sm:$0xff] }
 0x323   : > { %11723 = vmatpush1.bf16.msra.mxu0 %v15319_v27  ;;  %v3117_v27 = vld [vmem:[%s16919_s27 + $0x1d08] sm:$0xff] }
 0x324   : > { %12215 = vmatpush1.bf16.msra.mxu1 %v15321_v31  ;;  %11733 = vmatprep.subr.bf16.mxu0 %v15328_v58  ;;  %v15351_v31 = vcombine.low %v3108_v1, %v3112_v11  ;;  %v15353_v58 = vcombine.low %v3109_v7, %v3113_v61  ;;  %v15362_v37 = vcombine.high %v3117_v27, %v3121_v26  ;;  %v3140_v1 = vld [vmem:[%s16919_s27 + $0x1dc0] sm:$0xff]  ;;  %v3141_v7 = vld [vmem:[%s16919_s27 + $0x1dc8] sm:$0xff] }
 0x325   : > { %12225 = vmatprep.subr.bf16.mxu1 %v15330_v35  ;;  %v15360_v35 = vcombine.high %v3116_v21, %v3120_v23  ;;  %v3144_v11 = vld [vmem:[%s16919_s27 + $0x1de0] sm:$0xff]  ;;  %v3145_v61 = vld [vmem:[%s16919_s27 + $0x1de8] sm:$0xff] }
 0x326   : > { %11725 = vmatmul.mubr.bf16.vlgmr.msra.gmra.mrb[24].mxu0 %v17593_v36  ;;  %v3148_v21 = vld [vmem:[%s16919_s27 + $0x1e00] sm:$0xff] }
 0x327   : > { %12217 = vmatmul.mubr.bf16.vlgmr.msra.gmra.mrb[24].mxu1 %v17593_v36  ;;  %11734 = vmatpush1.bf16.msra.mxu0 %v15327_v43  ;;  %v3125_v43 = vld [vmem:[%s16919_s27 + $0x1d48] sm:$0xff]  ;;  %v3152_v23 = vld [vmem:[%s16919_s27 + $0x1e20] sm:$0xff] }
 0x328   : > { %11765 = vmatprep.mubr.bf16.mxu0 %v17597_v54  ;;  %12226 = vmatpush1.bf16.msra.mxu1 %v15329_v14  ;;  %v15361_v14 = vcombine.low %v3117_v27, %v3121_v26  ;;  %v15370_v22 = vcombine.high %v3125_v43, %v3129_v33  ;;  %v3149_v27 = vld [vmem:[%s16919_s27 + $0x1e08] sm:$0xff] }
 0x329   : > { %12257 = vmatprep.mubr.bf16.mxu1 %v17597_v54  ;;  %11735 = vmatprep.subr.bf16.mxu0 %v15336_v48  ;;  %v15368_v48 = vcombine.high %v3124_v39, %v3128_v42  ;;  %v3153_v26 = vld [vmem:[%s16919_s27 + $0x1e28] sm:$0xff] }
 0x32a   : > { %12227 = vmatprep.subr.bf16.mxu1 %v15338_v28  ;;  %v3136_v28 = vld [vmem:[%s16919_s27 + $0x1da0] sm:$0xff] }
 0x32b   : > { %11736 = vmatpush1.bf16.msra.mxu0 %v15335_v4  ;;  %v15367_v4 = vcombine.low %v3124_v39, %v3128_v42  ;;  %v3156_v39 = vld [vmem:[%s16919_s27 + $0x1e40] sm:$0xff] }
 0x32c   : > { %12228 = vmatpush1.bf16.msra.mxu1 %v15337_v63  ;;  %11737 = vmatprep.subr.bf16.mxu0 %v15344_v3  ;;  %v15369_v63 = vcombine.low %v3125_v43, %v3129_v33  ;;  %v15376_v3 = vcombine.high %v3132_v53, %v3136_v28  ;;  %v3160_v42 = vld [vmem:[%s16919_s27 + $0x1e60] sm:$0xff]  ;;  %v3157_v43 = vld [vmem:[%s16919_s27 + $0x1e48] sm:$0xff] }
 0x32d   : > { %12229 = vmatprep.subr.bf16.mxu1 %v15346_v8  ;;  %v15378_v8 = vcombine.high %v3133_v59, %v3137_v49  ;;  %v3161_v33 = vld [vmem:[%s16919_s27 + $0x1e68] sm:$0xff] }
 0x32f   : > { %11738 = vmatpush1.bf16.msra.mxu0 %v15343_v13  ;;  %v15375_v13 = vcombine.low %v3132_v53, %v3136_v28  ;;  %v3164_v53 = vld [vmem:[%s16919_s27 + $0x1e80] sm:$0xff] }
 0x330   : > { %12230 = vmatpush1.bf16.msra.mxu1 %v15345_v15  ;;  %11739 = vmatprep.subr.bf16.mxu0 %v15352_v17  ;;  %v15377_v15 = vcombine.low %v3133_v59, %v3137_v49  ;;  %v15384_v17 = vcombine.high %v3140_v1, %v3144_v11  ;;  %v3168_v28 = vld [vmem:[%s16919_s27 + $0x1ea0] sm:$0xff]  ;;  %v3165_v59 = vld [vmem:[%s16919_s27 + $0x1e88] sm:$0xff] }
 0x331   : > { %12231 = vmatprep.subr.bf16.mxu1 %v15354_v18  ;;  %v15386_v18 = vcombine.high %v3141_v7, %v3145_v61  ;;  %v3169_v49 = vld [vmem:[%s16919_s27 + $0x1ea8] sm:$0xff] }
 0x333   : > { %11740 = vmatpush1.bf16.msra.mxu0 %v15351_v31  ;;  %v15383_v31 = vcombine.low %v3140_v1, %v3144_v11  ;;  %v3172_v1 = vld [vmem:[%s16919_s27 + $0x1ec0] sm:$0xff] }
 0x334   : > { %12232 = vmatpush1.bf16.msra.mxu1 %v15353_v58  ;;  %11741 = vmatprep.subr.bf16.mxu0 %v15360_v35  ;;  %v15385_v58 = vcombine.low %v3141_v7, %v3145_v61  ;;  %v15392_v35 = vcombine.high %v3148_v21, %v3152_v23  ;;  %v3176_v11 = vld [vmem:[%s16919_s27 + $0x1ee0] sm:$0xff]  ;;  %v3173_v7 = vld [vmem:[%s16919_s27 + $0x1ec8] sm:$0xff] }
 0x335   : > { %12233 = vmatprep.subr.bf16.mxu1 %v15362_v37  ;;  %v15394_v37 = vcombine.high %v3149_v27, %v3153_v26  ;;  %v3177_v61 = vld [vmem:[%s16919_s27 + $0x1ee8] sm:$0xff] }
 0x337   : > { %11742 = vmatpush1.bf16.msra.mxu0 %v15359_v46  ;;  %v15391_v46 = vcombine.low %v3148_v21, %v3152_v23  ;;  %v3180_v21 = vld [vmem:[%s16919_s27 + $0x1f00] sm:$0xff] }
 0x338   : > { %12234 = vmatpush1.bf16.msra.mxu1 %v15361_v14  ;;  %11743 = vmatprep.subr.bf16.mxu0 %v15368_v48  ;;  %v15393_v14 = vcombine.low %v3149_v27, %v3153_v26  ;;  %v15400_v48 = vcombine.high %v3156_v39, %v3160_v42  ;;  %v3184_v23 = vld [vmem:[%s16919_s27 + $0x1f20] sm:$0xff]  ;;  %v3181_v27 = vld [vmem:[%s16919_s27 + $0x1f08] sm:$0xff] }
 0x339   : > { %12235 = vmatprep.subr.bf16.mxu1 %v15370_v22  ;;  %v15402_v22 = vcombine.high %v3157_v43, %v3161_v33  ;;  %v3185_v26 = vld [vmem:[%s16919_s27 + $0x1f28] sm:$0xff] }
 0x33b   : > { %11744 = vmatpush1.bf16.msra.mxu0 %v15367_v4  ;;  %v15399_v4 = vcombine.low %v3156_v39, %v3160_v42  ;;  %v3188_v39 = vld [vmem:[%s16919_s27 + $0x1f40] sm:$0xff] }
 0x33c   : > { %12236 = vmatpush1.bf16.msra.mxu1 %v15369_v63  ;;  %11745 = vmatprep.subr.bf16.mxu0 %v15376_v3  ;;  %v15401_v63 = vcombine.low %v3157_v43, %v3161_v33  ;;  %v15408_v3 = vcombine.high %v3164_v53, %v3168_v28  ;;  %v3192_v42 = vld [vmem:[%s16919_s27 + $0x1f60] sm:$0xff]  ;;  %v3189_v43 = vld [vmem:[%s16919_s27 + $0x1f48] sm:$0xff] }
 0x33d   : > { %12237 = vmatprep.subr.bf16.mxu1 %v15378_v8  ;;  %v15410_v8 = vcombine.high %v3165_v59, %v3169_v49  ;;  %v3193_v33 = vld [vmem:[%s16919_s27 + $0x1f68] sm:$0xff] }
 0x33f   : > { %11746 = vmatpush1.bf16.msra.mxu0 %v15375_v13  ;;  %v15407_v13 = vcombine.low %v3164_v53, %v3168_v28  ;;  %v3196_v53 = vld [vmem:[%s16919_s27 + $0x1f80] sm:$0xff] }
 0x340   : > { %12238 = vmatpush1.bf16.msra.mxu1 %v15377_v15  ;;  %11747 = vmatprep.subr.bf16.mxu0 %v15384_v17  ;;  %v15409_v15 = vcombine.low %v3165_v59, %v3169_v49  ;;  %v15416_v17 = vcombine.high %v3172_v1, %v3176_v11  ;;  %v3200_v28 = vld [vmem:[%s16919_s27 + $0x1fa0] sm:$0xff]  ;;  %v3197_v59 = vld [vmem:[%s16919_s27 + $0x1f88] sm:$0xff] }
 0x341   : > { %12239 = vmatprep.subr.bf16.mxu1 %v15386_v18  ;;  %v15418_v18 = vcombine.high %v3173_v7, %v3177_v61  ;;  %v3201_v49 = vld [vmem:[%s16919_s27 + $0x1fa8] sm:$0xff] }
 0x343   : > { %11748 = vmatpush1.bf16.msra.mxu0 %v15383_v31  ;;  %v15415_v31 = vcombine.low %v3172_v1, %v3176_v11  ;;  %v3204_v1 = vld [vmem:[%s16919_s27 + $0x1fc0] sm:$0xff] }
 0x344   : > { %12240 = vmatpush1.bf16.msra.mxu1 %v15385_v58  ;;  %11749 = vmatprep.subr.bf16.mxu0 %v15392_v35  ;;  %v15417_v58 = vcombine.low %v3173_v7, %v3177_v61  ;;  %v15424_v35 = vcombine.high %v3180_v21, %v3184_v23  ;;  %v3208_v11 = vld [vmem:[%s16919_s27 + $0x1fe0] sm:$0xff]  ;;  %v17655_v7 = vld [vmem:[#allocation4 + $0x10] sm:$0xff] }
 0x345   : > { %12241 = vmatprep.subr.bf16.mxu1 %v15394_v37  ;;  %v15426_v37 = vcombine.high %v3181_v27, %v3185_v26  ;;  %v1599_v61 = vrot.slane %v17655_v7, %v17018_v57 }
 0x347   : > { %11750 = vmatpush1.bf16.msra.mxu0 %v15391_v46  ;;  %v15423_v46 = vcombine.low %v3180_v21, %v3184_v23  ;;  %v15448_v21 = vcombine.high %v3204_v1, %v3208_v11 }
 0x348   : > { %12242 = vmatpush1.bf16.msra.mxu1 %v15393_v14  ;;  %11751 = vmatprep.subr.bf16.mxu0 %v15400_v48  ;;  %v15425_v14 = vcombine.low %v3181_v27, %v3185_v26  ;;  %v15432_v48 = vcombine.high %v3188_v39, %v3192_v42  ;;  %v3212_v27 = vld [vmem:[%s16919_s27 + $0x2000] sm:$0xff] }
 0x349   : > { %12243 = vmatprep.subr.bf16.mxu1 %v15402_v22  ;;  %v15434_v22 = vcombine.high %v3189_v43, %v3193_v33  ;;  %v3216_v26 = vld [vmem:[%s16919_s27 + $0x2020] sm:$0xff] }
 0x34b   : > { %11752 = vmatpush1.bf16.msra.mxu0 %v15399_v4  ;;  %v15431_v4 = vcombine.low %v3188_v39, %v3192_v42  ;;  %v2154_v39 = vmax.f32 %v17216_v20, 0.0 }
 0x34c   : > { %12244 = vmatpush1.bf16.msra.mxu1 %v15401_v63  ;;  %11753 = vmatprep.subr.bf16.mxu0 %v15408_v3  ;;  %v15433_v63 = vcombine.low %v3189_v43, %v3193_v33  ;;  %v15440_v3 = vcombine.high %v3196_v53, %v3200_v28  ;;  %v15456_v43 = vcombine.high %v3212_v27, %v3216_v26 }
 0x34d   : > { %12245 = vmatprep.subr.bf16.mxu1 %v15410_v8  ;;  %v15442_v8 = vcombine.high %v3197_v59, %v3201_v49 }
 0x34f   : > { %11754 = vmatpush1.bf16.msra.mxu0 %v15407_v13  ;;  %v3205_v13 = vld [vmem:[%s16919_s27 + $0x1fc8] sm:$0xff] }
 0x350   : > { %12246 = vmatpush1.bf16.msra.mxu1 %v15409_v15  ;;  %11755 = vmatprep.subr.bf16.mxu0 %v15416_v17  ;;  %v3209_v15 = vld [vmem:[%s16919_s27 + $0x1fe8] sm:$0xff]  ;;  %v15439_v17 = vcombine.low %v3196_v53, %v3200_v28  ;;  %v17671_v28 = vpack.c.bf16 %v2154_v39, %v2154_v39 }
 0x351   : > { %12247 = vmatprep.subr.bf16.mxu1 %v15418_v18  ;;  %v15441_v18 = vcombine.low %v3197_v59, %v3201_v49  ;;  %v15450_v23 = vcombine.high %v3205_v13, %v3209_v15  ;;  %v15449_v42 = vcombine.low %v3205_v13, %v3209_v15  ;;  %v3225_v53 = vld [vmem:[%s16919_s27 + $0x2068] sm:$0xff]  ;;  %v3228_v49 = vld [vmem:[%s16919_s27 + $0x2080] sm:$0xff] }
 0x352   : > { %v3245_v39 = vld [vmem:[%s16919_s27 + $0x2108] sm:$0xff] }
 0x353   : > { %11756 = vmatpush1.bf16.msra.mxu0 %v15415_v31  ;;  %v2013_v31 = vadd.f32 %v17260_v10, %v1599_v61  ;;  %v15455_v10 = vcombine.low %v3212_v27, %v3216_v26 }
 0x354   : > { %12248 = vmatpush1.bf16.msra.mxu1 %v15417_v58  ;;  %11757 = vmatprep.subr.bf16.mxu0 %v15424_v35  ;;  %v3213_v58 = vld [vmem:[%s16919_s27 + $0x2008] sm:$0xff] }
 0x355   : > { %12249 = vmatprep.subr.bf16.mxu1 %v15426_v37  ;;  %v3217_v35 = vld [vmem:[%s16919_s27 + $0x2028] sm:$0xff]  ;;  %v15447_v37 = vcombine.low %v3204_v1, %v3208_v11 }
 0x356   : > { %v15458_v33 = vcombine.high %v3213_v58, %v3217_v35  ;;  %v15457_v20 = vcombine.low %v3213_v58, %v3217_v35  ;;  %v3233_v1 = vld [vmem:[%s16919_s27 + $0x20a8] sm:$0xff]  ;;  %v3244_v35 = vld [vmem:[%s16919_s27 + $0x2100] sm:$0xff] }
 0x357   : > { %11758 = vmatpush1.bf16.msra.mxu0 %v15423_v46  ;;  %v2157_v46 = vmax.f32 %v2013_v31, 0.0 }
 0x358   : > { %12250 = vmatpush1.bf16.msra.mxu1 %v15425_v14  ;;  %11759 = vmatprep.subr.bf16.mxu0 %v15432_v48  ;;  %v3220_v14 = vld [vmem:[%s16919_s27 + $0x2040] sm:$0xff] }
 0x359   : > { %12251 = vmatprep.subr.bf16.mxu1 %v15434_v22  ;;  %v3224_v48 = vld [vmem:[%s16919_s27 + $0x2060] sm:$0xff]  ;;  %v3221_v22 = vld [vmem:[%s16919_s27 + $0x2048] sm:$0xff] }
 0x35a   : > { %v15464_v59 = vcombine.high %v3220_v14, %v3224_v48  ;;  %v15463_v11 = vcombine.low %v3220_v14, %v3224_v48  ;;  %v15465_v61 = vcombine.low %v3221_v22, %v3225_v53  ;;  %v3252_v48 = vld [vmem:[%s16919_s27 + $0x2140] sm:$0xff] }
 0x35b   : > { %11760 = vmatpush1.bf16.msra.mxu0 %v15431_v4  ;;  %v3232_v4 = vld [vmem:[%s16919_s27 + $0x20a0] sm:$0xff] }
 0x35c   : > { %12252 = vmatpush1.bf16.msra.mxu1 %v15433_v63  ;;  %11761 = vmatprep.subr.bf16.mxu0 %v15440_v3  ;;  %v17675_v63 = vpack.c.bf16 %v2157_v46, %v2157_v46  ;;  %v15466_v3 = vcombine.high %v3221_v22, %v3225_v53  ;;  %v15472_v13 = vcombine.high %v3228_v49, %v3232_v4  ;;  %v3253_v22 = vld [vmem:[%s16919_s27 + $0x2148] sm:$0xff] }
 0x35d   : > { %12253 = vmatprep.subr.bf16.mxu1 %v15442_v8  ;;  %v3229_v8 = vld [vmem:[%s16919_s27 + $0x2088] sm:$0xff]  ;;  %v15471_v27 = vcombine.low %v3228_v49, %v3232_v4 }
 0x35e   : > { %v15474_v15 = vcombine.high %v3229_v8, %v3233_v1  ;;  %v15473_v26 = vcombine.low %v3229_v8, %v3233_v1  ;;  %v3257_v53 = vld [vmem:[%s16919_s27 + $0x2168] sm:$0xff]  ;;  %v3264_v8 = vld [vmem:[%s16919_s27 + $0x21a0] sm:$0xff] }
 0x35f   : > { %11762 = vmatpush1.bf16.msra.mxu0 %v15439_v17  ;;  %v3236_v17 = vld [vmem:[%s16919_s27 + $0x20c0] sm:$0xff]  ;;  %v15498_v4 = vcombine.high %v3253_v22, %v3257_v53  ;;  %v3261_v1 = vld [vmem:[%s16919_s27 + $0x2188] sm:$0xff] }
 0x360   : > { %12254 = vmatpush1.bf16.msra.mxu1 %v15441_v18  ;;  %11763 = vmatprep.subr.bf16.mxu0 %v15448_v21  ;;  %v3240_v18 = vld [vmem:[%s16919_s27 + $0x20e0] sm:$0xff]  ;;  %v3237_v21 = vld [vmem:[%s16919_s27 + $0x20c8] sm:$0xff] }
 0x361   : > { %12255 = vmatprep.subr.bf16.mxu1 %v15450_v23  ;;  %v3241_v23 = vld [vmem:[%s16919_s27 + $0x20e8] sm:$0xff]  ;;  %v15480_v31 = vcombine.high %v3236_v17, %v3240_v18 }
 0x362   : > { %v15482_v58 = vcombine.high %v3237_v21, %v3241_v23 }
 0x363   : > { %11764 = vmatpush1.bf16.msra.mxu0 %v15447_v37  ;;  %v3248_v37 = vld [vmem:[%s16919_s27 + $0x2120] sm:$0xff] }
 0x364   : > { %12256 = vmatpush1.bf16.msra.mxu1 %v15449_v42  ;;  %11774 = vmatprep.subr.bf16.mxu0 %v15456_v43  ;;  %v3249_v42 = vld [vmem:[%s16919_s27 + $0x2128] sm:$0xff]  ;;  %v15479_v43 = vcombine.low %v3236_v17, %v3240_v18  ;;  %v15488_v46 = vcombine.high %v3244_v35, %v3248_v37  ;;  %v3268_v18 = vld [vmem:[%s16919_s27 + $0x21c0] sm:$0xff] }
 0x365   : > { %12266 = vmatprep.subr.bf16.mxu1 %v15458_v33  ;;  %v15481_v33 = vcombine.low %v3237_v21, %v3241_v23  ;;  %v15490_v14 = vcombine.high %v3245_v39, %v3249_v42  ;;  %v3272_v21 = vld [vmem:[%s16919_s27 + $0x21e0] sm:$0xff]  ;;  %v3269_v23 = vld [vmem:[%s16919_s27 + $0x21c8] sm:$0xff] }
 0x366   : > { %11766 = vmatmul.mubr.bf16.vlgmr.msra.gmra.mrb[24].mxu0 %v17671_v28 }
 0x367   : > { %12258 = vmatmul.mubr.bf16.vlgmr.msra.gmra.mrb[24].mxu1 %v17671_v28  ;;  %11775 = vmatpush1.bf16.msra.mxu0 %v15455_v10  ;;  %v3256_v10 = vld [vmem:[%s16919_s27 + $0x2160] sm:$0xff] }
 0x368   : > { %11806 = vmatprep.mubr.bf16.mxu0 %v17675_v63  ;;  %12267 = vmatpush1.bf16.msra.mxu1 %v15457_v20  ;;  %v15487_v20 = vcombine.low %v3244_v35, %v3248_v37  ;;  %v15496_v49 = vcombine.high %v3252_v48, %v3256_v10  ;;  %v3276_v37 = vld [vmem:[%s16919_s27 + $0x2200] sm:$0xff] }
 0x369   : > { %12298 = vmatprep.mubr.bf16.mxu1 %v17675_v63  ;;  %11776 = vmatprep.subr.bf16.mxu0 %v15464_v59  ;;  %v15489_v59 = vcombine.low %v3245_v39, %v3249_v42  ;;  %v3280_v39 = vld [vmem:[%s16919_s27 + $0x2220] sm:$0xff]  ;;  %v3277_v42 = vld [vmem:[%s16919_s27 + $0x2208] sm:$0xff] }
 0x36a   : > { %12268 = vmatprep.subr.bf16.mxu1 %v15466_v3  ;;  %v3260_v3 = vld [vmem:[%s16919_s27 + $0x2180] sm:$0xff] }
 0x36b   : > { %11777 = vmatpush1.bf16.msra.mxu0 %v15463_v11  ;;  %v3265_v11 = vld [vmem:[%s16919_s27 + $0x21a8] sm:$0xff] }
 0x36c   : > { %12269 = vmatpush1.bf16.msra.mxu1 %v15465_v61  ;;  %11778 = vmatprep.subr.bf16.mxu0 %v15472_v13  ;;  %v15495_v61 = vcombine.low %v3252_v48, %v3256_v10  ;;  %v15497_v13 = vcombine.low %v3253_v22, %v3257_v53  ;;  %v15506_v17 = vcombine.high %v3261_v1, %v3265_v11  ;;  %v3284_v10 = vld [vmem:[%s16919_s27 + $0x2240] sm:$0xff]  ;;  %v3285_v53 = vld [vmem:[%s16919_s27 + $0x2248] sm:$0xff] }
 0x36d   : > { %12270 = vmatprep.subr.bf16.mxu1 %v15474_v15  ;;  %v15504_v15 = vcombine.high %v3260_v3, %v3264_v8  ;;  %v3288_v22 = vld [vmem:[%s16919_s27 + $0x2260] sm:$0xff] }
 0x36f   : > { %11779 = vmatpush1.bf16.msra.mxu0 %v15471_v27  ;;  %v3273_v27 = vld [vmem:[%s16919_s27 + $0x21e8] sm:$0xff] }
 0x370   : > { %12271 = vmatpush1.bf16.msra.mxu1 %v15473_v26  ;;  %11780 = vmatprep.subr.bf16.mxu0 %v15480_v31  ;;  %v15503_v26 = vcombine.low %v3260_v3, %v3264_v8  ;;  %v15505_v31 = vcombine.low %v3261_v1, %v3265_v11  ;;  %v15514_v35 = vcombine.high %v3269_v23, %v3273_v27  ;;  %v3292_v8 = vld [vmem:[%s16919_s27 + $0x2280] sm:$0xff]  ;;  %v3293_v11 = vld [vmem:[%s16919_s27 + $0x2288] sm:$0xff] }
 0x371   : > { %12272 = vmatprep.subr.bf16.mxu1 %v15482_v58  ;;  %v15512_v58 = vcombine.high %v3268_v18, %v3272_v21  ;;  %v3296_v1 = vld [vmem:[%s16919_s27 + $0x22a0] sm:$0xff] }
 0x373   : > { %11781 = vmatpush1.bf16.msra.mxu0 %v15479_v43  ;;  %v3281_v43 = vld [vmem:[%s16919_s27 + $0x2228] sm:$0xff] }
 0x374   : > { %12273 = vmatpush1.bf16.msra.mxu1 %v15481_v33  ;;  %11782 = vmatprep.subr.bf16.mxu0 %v15488_v46  ;;  %v15511_v33 = vcombine.low %v3268_v18, %v3272_v21  ;;  %v15513_v46 = vcombine.low %v3269_v23, %v3273_v27  ;;  %v15522_v48 = vcombine.high %v3277_v42, %v3281_v43  ;;  %v3300_v21 = vld [vmem:[%s16919_s27 + $0x22c0] sm:$0xff]  ;;  %v3301_v27 = vld [vmem:[%s16919_s27 + $0x22c8] sm:$0xff] }
 0x375   : > { %12274 = vmatprep.subr.bf16.mxu1 %v15490_v14  ;;  %v15520_v14 = vcombine.high %v3276_v37, %v3280_v39  ;;  %v3304_v23 = vld [vmem:[%s16919_s27 + $0x22e0] sm:$0xff] }
 0x377   : > { %11783 = vmatpush1.bf16.msra.mxu0 %v15487_v20  ;;  %v3289_v20 = vld [vmem:[%s16919_s27 + $0x2268] sm:$0xff] }
 0x378   : > { %12275 = vmatpush1.bf16.msra.mxu1 %v15489_v59  ;;  %11784 = vmatprep.subr.bf16.mxu0 %v15496_v49  ;;  %v15519_v59 = vcombine.low %v3276_v37, %v3280_v39  ;;  %v15521_v49 = vcombine.low %v3277_v42, %v3281_v43  ;;  %v15530_v3 = vcombine.high %v3285_v53, %v3289_v20  ;;  %v3308_v39 = vld [vmem:[%s16919_s27 + $0x2300] sm:$0xff]  ;;  %v3309_v43 = vld [vmem:[%s16919_s27 + $0x2308] sm:$0xff] }
 0x379   : > { %12276 = vmatprep.subr.bf16.mxu1 %v15498_v4  ;;  %v15528_v4 = vcombine.high %v3284_v10, %v3288_v22  ;;  %v3312_v42 = vld [vmem:[%s16919_s27 + $0x2320] sm:$0xff] }
 0x37b   : > { %11785 = vmatpush1.bf16.msra.mxu0 %v15495_v61  ;;  %v3297_v61 = vld [vmem:[%s16919_s27 + $0x22a8] sm:$0xff] }
 0x37c   : > { %12277 = vmatpush1.bf16.msra.mxu1 %v15497_v13  ;;  %11786 = vmatprep.subr.bf16.mxu0 %v15504_v15  ;;  %v15527_v13 = vcombine.low %v3284_v10, %v3288_v22  ;;  %v15529_v15 = vcombine.low %v3285_v53, %v3289_v20  ;;  %v15538_v18 = vcombine.high %v3293_v11, %v3297_v61  ;;  %v3316_v22 = vld [vmem:[%s16919_s27 + $0x2340] sm:$0xff]  ;;  %v3317_v20 = vld [vmem:[%s16919_s27 + $0x2348] sm:$0xff] }
 0x37d   : > { %12278 = vmatprep.subr.bf16.mxu1 %v15506_v17  ;;  %v15536_v17 = vcombine.high %v3292_v8, %v3296_v1  ;;  %v3320_v53 = vld [vmem:[%s16919_s27 + $0x2360] sm:$0xff] }
 0x37f   : > { %11787 = vmatpush1.bf16.msra.mxu0 %v15503_v26  ;;  %v3305_v26 = vld [vmem:[%s16919_s27 + $0x22e8] sm:$0xff] }
 0x380   : > { %12279 = vmatpush1.bf16.msra.mxu1 %v15505_v31  ;;  %11788 = vmatprep.subr.bf16.mxu0 %v15512_v58  ;;  %v15535_v31 = vcombine.low %v3292_v8, %v3296_v1  ;;  %v15537_v58 = vcombine.low %v3293_v11, %v3297_v61  ;;  %v15546_v37 = vcombine.high %v3301_v27, %v3305_v26  ;;  %v3324_v1 = vld [vmem:[%s16919_s27 + $0x2380] sm:$0xff]  ;;  %v3325_v61 = vld [vmem:[%s16919_s27 + $0x2388] sm:$0xff] }
 0x381   : > { %12280 = vmatprep.subr.bf16.mxu1 %v15514_v35  ;;  %v15544_v35 = vcombine.high %v3300_v21, %v3304_v23  ;;  %v3328_v11 = vld [vmem:[%s16919_s27 + $0x23a0] sm:$0xff] }
 0x383   : > { %11789 = vmatpush1.bf16.msra.mxu0 %v15511_v33  ;;  %v3313_v33 = vld [vmem:[%s16919_s27 + $0x2328] sm:$0xff] }
 0x384   : > { %12281 = vmatpush1.bf16.msra.mxu1 %v15513_v46  ;;  %11790 = vmatprep.subr.bf16.mxu0 %v15520_v14  ;;  %v15543_v46 = vcombine.low %v3300_v21, %v3304_v23  ;;  %v15545_v14 = vcombine.low %v3301_v27, %v3305_v26  ;;  %v15554_v10 = vcombine.high %v3309_v43, %v3313_v33  ;;  %v3332_v27 = vld [vmem:[%s16919_s27 + $0x23c0] sm:$0xff] }
 0x385   : > { %12282 = vmatprep.subr.bf16.mxu1 %v15522_v48  ;;  %v15552_v48 = vcombine.high %v3308_v39, %v3312_v42  ;;  %v15568_v21 = vcombine.high %v3324_v1, %v3328_v11  ;;  %v3336_v26 = vld [vmem:[%s16919_s27 + $0x23e0] sm:$0xff] }
 0x387   : > { %11791 = vmatpush1.bf16.msra.mxu0 %v15519_v59  ;;  %v3321_v59 = vld [vmem:[%s16919_s27 + $0x2368] sm:$0xff] }
 0x388   : > { %12283 = vmatpush1.bf16.msra.mxu1 %v15521_v49  ;;  %11792 = vmatprep.subr.bf16.mxu0 %v15528_v4  ;;  %v15551_v49 = vcombine.low %v3308_v39, %v3312_v42  ;;  %v15553_v4 = vcombine.low %v3309_v43, %v3313_v33  ;;  %v15562_v8 = vcombine.high %v3317_v20, %v3321_v59  ;;  %v3340_v43 = vld [vmem:[%s16919_s27 + $0x2400] sm:$0xff] }
 0x389   : > { %12284 = vmatprep.subr.bf16.mxu1 %v15530_v3  ;;  %v15560_v3 = vcombine.high %v3316_v22, %v3320_v53  ;;  %v15576_v39 = vcombine.high %v3332_v27, %v3336_v26  ;;  %v3344_v33 = vld [vmem:[%s16919_s27 + $0x2420] sm:$0xff] }
 0x38b   : > { %11793 = vmatpush1.bf16.msra.mxu0 %v15527_v13  ;;  %v3329_v13 = vld [vmem:[%s16919_s27 + $0x23a8] sm:$0xff] }
 0x38c   : > { %12285 = vmatpush1.bf16.msra.mxu1 %v15529_v15  ;;  %11794 = vmatprep.subr.bf16.mxu0 %v15536_v17  ;;  %v15559_v15 = vcombine.low %v3316_v22, %v3320_v53  ;;  %v1595_v17 = vrot.slane %v17655_v7, %v17023_v60  ;;  %v15570_v23 = vcombine.high %v3325_v61, %v3329_v13 }
 0x38d   : > { %12286 = vmatprep.subr.bf16.mxu1 %v15538_v18  ;;  %v15561_v18 = vcombine.low %v3317_v20, %v3321_v59  ;;  %v15569_v7 = vcombine.low %v3325_v61, %v3329_v13  ;;  %v15584_v22 = vcombine.high %v3340_v43, %v3344_v33  ;;  %v2159_v20 = vmax.f32 %v17266_v24, 0.0  ;;  %v3348_v59 = vld [vmem:[%s16919_s27 + $0x2440] sm:$0xff] }
 0x38e   : > { %v3356_v13 = vld [vmem:[%s16919_s27 + $0x2480] sm:$0xff] }
 0x38f   : > { %11795 = vmatpush1.bf16.msra.mxu0 %v15535_v31  ;;  %v3333_v31 = vld [vmem:[%s16919_s27 + $0x23c8] sm:$0xff] }
 0x390   : > { %12287 = vmatpush1.bf16.msra.mxu1 %v15537_v58  ;;  %11796 = vmatprep.subr.bf16.mxu0 %v15544_v35  ;;  %v3337_v58 = vld [vmem:[%s16919_s27 + $0x23e8] sm:$0xff]  ;;  %v15567_v35 = vcombine.low %v3324_v1, %v3328_v11 }
 0x391   : > { %12288 = vmatprep.subr.bf16.mxu1 %v15546_v37  ;;  %v2011_v37 = vadd.f32 %v17256_v19, %v1595_v17  ;;  %v15578_v42 = vcombine.high %v3333_v31, %v3337_v58  ;;  %v15577_v19 = vcombine.low %v3333_v31, %v3337_v58  ;;  %v17751_v17 = vpack.c.bf16 %v2159_v20, %v2159_v20  ;;  %v3364_v58 = vld [vmem:[%s16919_s27 + $0x24c0] sm:$0xff] }
 0x393   : > { %11797 = vmatpush1.bf16.msra.mxu0 %v15543_v46  ;;  %v3341_v46 = vld [vmem:[%s16919_s27 + $0x2408] sm:$0xff] }
 0x394   : > { %12289 = vmatpush1.bf16.msra.mxu1 %v15545_v14  ;;  %11798 = vmatprep.subr.bf16.mxu0 %v15552_v48  ;;  %v3345_v14 = vld [vmem:[%s16919_s27 + $0x2428] sm:$0xff]  ;;  %v15575_v48 = vcombine.low %v3332_v27, %v3336_v26 }
 0x395   : > { %12290 = vmatprep.subr.bf16.mxu1 %v15554_v10  ;;  %v2156_v10 = vmax.f32 %v2011_v37, 0.0  ;;  %v15586_v53 = vcombine.high %v3341_v46, %v3345_v14  ;;  %v15585_v11 = vcombine.low %v3341_v46, %v3345_v14  ;;  %v3365_v37 = vld [vmem:[%s16919_s27 + $0x24c8] sm:$0xff]  ;;  %v3372_v46 = vld [vmem:[%s16919_s27 + $0x2500] sm:$0xff] }
 0x396   : > { %v3376_v14 = vld [vmem:[%s16919_s27 + $0x2520] sm:$0xff] }
 0x397   : > { %11799 = vmatpush1.bf16.msra.mxu0 %v15551_v49  ;;  %v3352_v49 = vld [vmem:[%s16919_s27 + $0x2460] sm:$0xff]  ;;  %v17747_v1 = vpack.c.bf16 %v2156_v10, %v2156_v10  ;;  %v3377_v10 = vld [vmem:[%s16919_s27 + $0x2528] sm:$0xff] }
 0x398   : > { %12291 = vmatpush1.bf16.msra.mxu1 %v15553_v4  ;;  %11800 = vmatprep.subr.bf16.mxu0 %v15560_v3  ;;  %v15583_v4 = vcombine.low %v3340_v43, %v3344_v33  ;;  %v3349_v3 = vld [vmem:[%s16919_s27 + $0x2448] sm:$0xff]  ;;  %v15592_v61 = vcombine.high %v3348_v59, %v3352_v49 }
 0x399   : > { %12292 = vmatprep.subr.bf16.mxu1 %v15562_v8  ;;  %v3353_v8 = vld [vmem:[%s16919_s27 + $0x2468] sm:$0xff] }
 0x39a   : > { %v15594_v24 = vcombine.high %v3349_v3, %v3353_v8  ;;  %v15593_v27 = vcombine.low %v3349_v3, %v3353_v8  ;;  %v3385_v3 = vld [vmem:[%s16919_s27 + $0x2568] sm:$0xff]  ;;  %v15615_v8 = vcombine.low %v3372_v46, %v3376_v14 }
 0x39b   : > { %11801 = vmatpush1.bf16.msra.mxu0 %v15559_v15  ;;  %v3360_v15 = vld [vmem:[%s16919_s27 + $0x24a0] sm:$0xff] }
 0x39c   : > { %12293 = vmatpush1.bf16.msra.mxu1 %v15561_v18  ;;  %11802 = vmatprep.subr.bf16.mxu0 %v15568_v21  ;;  %v3357_v18 = vld [vmem:[%s16919_s27 + $0x2488] sm:$0xff]  ;;  %v15600_v26 = vcombine.high %v3356_v13, %v3360_v15 }
 0x39d   : > { %12294 = vmatprep.subr.bf16.mxu1 %v15570_v23  ;;  %v3361_v21 = vld [vmem:[%s16919_s27 + $0x24a8] sm:$0xff]  ;;  %v15591_v23 = vcombine.low %v3348_v59, %v3352_v49  ;;  %v3380_v59 = vld [vmem:[%s16919_s27 + $0x2540] sm:$0xff] }
 0x39e   : > { %v15602_v31 = vcombine.high %v3357_v18, %v3361_v21  ;;  %v3384_v49 = vld [vmem:[%s16919_s27 + $0x2560] sm:$0xff] }
 0x39f   : > { %11803 = vmatpush1.bf16.msra.mxu0 %v15567_v35  ;;  %v3368_v35 = vld [vmem:[%s16919_s27 + $0x24e0] sm:$0xff] }
 0x3a0   : > { %12295 = vmatpush1.bf16.msra.mxu1 %v15569_v7  ;;  %11804 = vmatprep.subr.bf16.mxu0 %v15576_v39  ;;  %v3369_v7 = vld [vmem:[%s16919_s27 + $0x24e8] sm:$0xff]  ;;  %v15599_v39 = vcombine.low %v3356_v13, %v3360_v15  ;;  %v15608_v43 = vcombine.high %v3364_v58, %v3368_v35  ;;  %v3388_v15 = vld [vmem:[%s16919_s27 + $0x2580] sm:$0xff] }
 0x3a1   : > { %12296 = vmatprep.subr.bf16.mxu1 %v15578_v42  ;;  %v15601_v42 = vcombine.low %v3357_v18, %v3361_v21  ;;  %v15610_v33 = vcombine.high %v3365_v37, %v3369_v7  ;;  %v3389_v18 = vld [vmem:[%s16919_s27 + $0x2588] sm:$0xff] }
 0x3a2   : > { %v3393_v21 = vld [vmem:[%s16919_s27 + $0x25a8] sm:$0xff] }
 0x3a3   : > { %11805 = vmatpush1.bf16.msra.mxu0 %v15575_v48  ;;  %v3373_v48 = vld [vmem:[%s16919_s27 + $0x2508] sm:$0xff] }
 0x3a4   : > { %12297 = vmatpush1.bf16.msra.mxu1 %v15577_v19  ;;  %11815 = vmatprep.subr.bf16.mxu0 %v15584_v22  ;;  %v15607_v19 = vcombine.low %v3364_v58, %v3368_v35  ;;  %v15609_v22 = vcombine.low %v3365_v37, %v3369_v7  ;;  %v15618_v20 = vcombine.high %v3373_v48, %v3377_v10  ;;  %v3396_v58 = vld [vmem:[%s16919_s27 + $0x25c0] sm:$0xff]  ;;  %v3397_v37 = vld [vmem:[%s16919_s27 + $0x25c8] sm:$0xff] }
 0x3a5   : > { %12307 = vmatprep.subr.bf16.mxu1 %v15586_v53  ;;  %v15616_v53 = vcombine.high %v3372_v46, %v3376_v14  ;;  %v3400_v35 = vld [vmem:[%s16919_s27 + $0x25e0] sm:$0xff]  ;;  %v3401_v7 = vld [vmem:[%s16919_s27 + $0x25e8] sm:$0xff] }
 0x3a6   : > { %11807 = vmatmul.mubr.bf16.vlgmr.msra.gmra.mrb[24].mxu0 %v17747_v1  ;;  %v3404_v46 = vld [vmem:[%s16919_s27 + $0x2600] sm:$0xff] }
 0x3a7   : > { %12299 = vmatmul.mubr.bf16.vlgmr.msra.gmra.mrb[24].mxu1 %v17747_v1  ;;  %11816 = vmatpush1.bf16.msra.mxu0 %v15583_v4  ;;  %v3381_v4 = vld [vmem:[%s16919_s27 + $0x2548] sm:$0xff]  ;;  %v3408_v14 = vld [vmem:[%s16919_s27 + $0x2620] sm:$0xff] }
 0x3a8   : > { %11847 = vmatprep.mubr.bf16.mxu0 %v17751_v17  ;;  %12308 = vmatpush1.bf16.msra.mxu1 %v15585_v11  ;;  %v15617_v11 = vcombine.low %v3373_v48, %v3377_v10  ;;  %v15626_v13 = vcombine.high %v3381_v4, %v3385_v3  ;;  %v3405_v48 = vld [vmem:[%s16919_s27 + $0x2608] sm:$0xff] }
 0x3a9   : > { %12339 = vmatprep.mubr.bf16.mxu1 %v17751_v17  ;;  %11817 = vmatprep.subr.bf16.mxu0 %v15592_v61  ;;  %v15624_v61 = vcombine.high %v3380_v59, %v3384_v49  ;;  %v3409_v10 = vld [vmem:[%s16919_s27 + $0x2628] sm:$0xff] }
 0x3aa   : > { %12309 = vmatprep.subr.bf16.mxu1 %v15594_v24  ;;  %v3392_v24 = vld [vmem:[%s16919_s27 + $0x25a0] sm:$0xff] }
 0x3ab   : > { %11818 = vmatpush1.bf16.msra.mxu0 %v15591_v23  ;;  %v15623_v23 = vcombine.low %v3380_v59, %v3384_v49  ;;  %v3412_v59 = vld [vmem:[%s16919_s27 + $0x2640] sm:$0xff] }
 0x3ac   : > { %12310 = vmatpush1.bf16.msra.mxu1 %v15593_v27  ;;  %11819 = vmatprep.subr.bf16.mxu0 %v15600_v26  ;;  %v15625_v27 = vcombine.low %v3381_v4, %v3385_v3  ;;  %v15632_v26 = vcombine.high %v3388_v15, %v3392_v24  ;;  %v3416_v49 = vld [vmem:[%s16919_s27 + $0x2660] sm:$0xff]  ;;  %v3413_v4 = vld [vmem:[%s16919_s27 + $0x2648] sm:$0xff] }
 0x3ad   : > { %12311 = vmatprep.subr.bf16.mxu1 %v15602_v31  ;;  %v15634_v31 = vcombine.high %v3389_v18, %v3393_v21  ;;  %v3417_v3 = vld [vmem:[%s16919_s27 + $0x2668] sm:$0xff] }
 0x3af   : > { %11820 = vmatpush1.bf16.msra.mxu0 %v15599_v39  ;;  %v15631_v39 = vcombine.low %v3388_v15, %v3392_v24  ;;  %v3420_v15 = vld [vmem:[%s16919_s27 + $0x2680] sm:$0xff] }
 0x3b0   : > { %12312 = vmatpush1.bf16.msra.mxu1 %v15601_v42  ;;  %11821 = vmatprep.subr.bf16.mxu0 %v15608_v43  ;;  %v15633_v42 = vcombine.low %v3389_v18, %v3393_v21  ;;  %v15640_v43 = vcombine.high %v3396_v58, %v3400_v35  ;;  %v3424_v24 = vld [vmem:[%s16919_s27 + $0x26a0] sm:$0xff]  ;;  %v3421_v18 = vld [vmem:[%s16919_s27 + $0x2688] sm:$0xff] }
 0x3b1   : > { %12313 = vmatprep.subr.bf16.mxu1 %v15610_v33  ;;  %v15642_v33 = vcombine.high %v3397_v37, %v3401_v7  ;;  %v3425_v21 = vld [vmem:[%s16919_s27 + $0x26a8] sm:$0xff] }
 0x3b3   : > { %11822 = vmatpush1.bf16.msra.mxu0 %v15607_v19  ;;  %v15639_v19 = vcombine.low %v3396_v58, %v3400_v35  ;;  %v3428_v58 = vld [vmem:[%s16919_s27 + $0x26c0] sm:$0xff] }
 0x3b4   : > { %12314 = vmatpush1.bf16.msra.mxu1 %v15609_v22  ;;  %11823 = vmatprep.subr.bf16.mxu0 %v15616_v53  ;;  %v15641_v22 = vcombine.low %v3397_v37, %v3401_v7  ;;  %v15648_v53 = vcombine.high %v3404_v46, %v3408_v14  ;;  %v3432_v35 = vld [vmem:[%s16919_s27 + $0x26e0] sm:$0xff]  ;;  %v3429_v37 = vld [vmem:[%s16919_s27 + $0x26c8] sm:$0xff] }
 0x3b5   : > { %12315 = vmatprep.subr.bf16.mxu1 %v15618_v20  ;;  %v15650_v20 = vcombine.high %v3405_v48, %v3409_v10  ;;  %v3433_v7 = vld [vmem:[%s16919_s27 + $0x26e8] sm:$0xff] }
 0x3b7   : > { %11824 = vmatpush1.bf16.msra.mxu0 %v15615_v8  ;;  %v15647_v8 = vcombine.low %v3404_v46, %v3408_v14  ;;  %v3436_v46 = vld [vmem:[%s16919_s27 + $0x2700] sm:$0xff] }
 0x3b8   : > { %12316 = vmatpush1.bf16.msra.mxu1 %v15617_v11  ;;  %11825 = vmatprep.subr.bf16.mxu0 %v15624_v61  ;;  %v15649_v11 = vcombine.low %v3405_v48, %v3409_v10  ;;  %v15656_v61 = vcombine.high %v3412_v59, %v3416_v49  ;;  %v3440_v14 = vld [vmem:[%s16919_s27 + $0x2720] sm:$0xff]  ;;  %v3437_v48 = vld [vmem:[%s16919_s27 + $0x2708] sm:$0xff] }
 0x3b9   : > { %12317 = vmatprep.subr.bf16.mxu1 %v15626_v13  ;;  %v15658_v13 = vcombine.high %v3413_v4, %v3417_v3  ;;  %v3441_v10 = vld [vmem:[%s16919_s27 + $0x2728] sm:$0xff] }
 0x3bb   : > { %11826 = vmatpush1.bf16.msra.mxu0 %v15623_v23  ;;  %v15655_v23 = vcombine.low %v3412_v59, %v3416_v49  ;;  %v3444_v59 = vld [vmem:[%s16919_s27 + $0x2740] sm:$0xff] }
 0x3bc   : > { %12318 = vmatpush1.bf16.msra.mxu1 %v15625_v27  ;;  %11827 = vmatprep.subr.bf16.mxu0 %v15632_v26  ;;  %v15657_v27 = vcombine.low %v3413_v4, %v3417_v3  ;;  %v15664_v26 = vcombine.high %v3420_v15, %v3424_v24  ;;  %v3448_v49 = vld [vmem:[%s16919_s27 + $0x2760] sm:$0xff]  ;;  %v3445_v4 = vld [vmem:[%s16919_s27 + $0x2748] sm:$0xff] }
 0x3bd   : > { %12319 = vmatprep.subr.bf16.mxu1 %v15634_v31  ;;  %v15666_v31 = vcombine.high %v3421_v18, %v3425_v21  ;;  %v3449_v3 = vld [vmem:[%s16919_s27 + $0x2768] sm:$0xff] }
 0x3bf   : > { %11828 = vmatpush1.bf16.msra.mxu0 %v15631_v39  ;;  %v15663_v39 = vcombine.low %v3420_v15, %v3424_v24  ;;  %v3452_v15 = vld [vmem:[%s16919_s27 + $0x2780] sm:$0xff] }
 0x3c0   : > { %12320 = vmatpush1.bf16.msra.mxu1 %v15633_v42  ;;  %11829 = vmatprep.subr.bf16.mxu0 %v15640_v43  ;;  %v15665_v42 = vcombine.low %v3421_v18, %v3425_v21  ;;  %v15672_v43 = vcombine.high %v3428_v58, %v3432_v35  ;;  %v3456_v24 = vld [vmem:[%s16919_s27 + $0x27a0] sm:$0xff]  ;;  %v3453_v18 = vld [vmem:[%s16919_s27 + $0x2788] sm:$0xff] }
 0x3c1   : > { %12321 = vmatprep.subr.bf16.mxu1 %v15642_v33  ;;  %v15674_v33 = vcombine.high %v3429_v37, %v3433_v7  ;;  %v3457_v21 = vld [vmem:[%s16919_s27 + $0x27a8] sm:$0xff] }
 0x3c3   : > { %11830 = vmatpush1.bf16.msra.mxu0 %v15639_v19  ;;  %v15671_v19 = vcombine.low %v3428_v58, %v3432_v35  ;;  %v3460_v58 = vld [vmem:[%s16919_s27 + $0x27c0] sm:$0xff] }
 0x3c4   : > { %12322 = vmatpush1.bf16.msra.mxu1 %v15641_v22  ;;  %11831 = vmatprep.subr.bf16.mxu0 %v15648_v53  ;;  %v15673_v22 = vcombine.low %v3429_v37, %v3433_v7  ;;  %v15680_v53 = vcombine.high %v3436_v46, %v3440_v14  ;;  %v3464_v35 = vld [vmem:[%s16919_s27 + $0x27e0] sm:$0xff]  ;;  %v3461_v37 = vld [vmem:[%s16919_s27 + $0x27c8] sm:$0xff] }
 0x3c5   : > { %12323 = vmatprep.subr.bf16.mxu1 %v15650_v20  ;;  %v15682_v20 = vcombine.high %v3437_v48, %v3441_v10  ;;  %v3465_v7 = vld [vmem:[%s16919_s27 + $0x27e8] sm:$0xff] }
 0x3c7   : > { %11832 = vmatpush1.bf16.msra.mxu0 %v15647_v8  ;;  %v15679_v8 = vcombine.low %v3436_v46, %v3440_v14  ;;  %v3468_v46 = vld [vmem:[%s16919_s27 + $0x2800] sm:$0xff] }
 0x3c8   : > { %12324 = vmatpush1.bf16.msra.mxu1 %v15649_v11  ;;  %11833 = vmatprep.subr.bf16.mxu0 %v15656_v61  ;;  %v15681_v11 = vcombine.low %v3437_v48, %v3441_v10  ;;  %v15688_v61 = vcombine.high %v3444_v59, %v3448_v49  ;;  %v3472_v14 = vld [vmem:[%s16919_s27 + $0x2820] sm:$0xff]  ;;  %v3469_v48 = vld [vmem:[%s16919_s27 + $0x2808] sm:$0xff] }
 0x3c9   : > { %12325 = vmatprep.subr.bf16.mxu1 %v15658_v13  ;;  %v15690_v13 = vcombine.high %v3445_v4, %v3449_v3  ;;  %v3473_v10 = vld [vmem:[%s16919_s27 + $0x2828] sm:$0xff] }
 0x3cb   : > { %11834 = vmatpush1.bf16.msra.mxu0 %v15655_v23  ;;  %v15687_v23 = vcombine.low %v3444_v59, %v3448_v49  ;;  %v15714_v59 = vcombine.high %v3469_v48, %v3473_v10  ;;  %v2161_v49 = vmax.f32 %v17322_v41, 0.0 }
 0x3cc   : > { %12326 = vmatpush1.bf16.msra.mxu1 %v15657_v27  ;;  %11835 = vmatprep.subr.bf16.mxu0 %v15664_v26  ;;  %v15689_v27 = vcombine.low %v3445_v4, %v3449_v3  ;;  %v15696_v26 = vcombine.high %v3452_v15, %v3456_v24  ;;  %v3476_v4 = vld [vmem:[%s16919_s27 + $0x2840] sm:$0xff] }
 0x3cd   : > { %12327 = vmatprep.subr.bf16.mxu1 %v15666_v31  ;;  %v15698_v31 = vcombine.high %v3453_v18, %v3457_v21  ;;  %v3480_v3 = vld [vmem:[%s16919_s27 + $0x2860] sm:$0xff] }
 0x3cf   : > { %11836 = vmatpush1.bf16.msra.mxu0 %v15663_v39  ;;  %v15695_v39 = vcombine.low %v3452_v15, %v3456_v24  ;;  %v15720_v15 = vcombine.high %v3476_v4, %v3480_v3  ;;  %v3484_v24 = vld [vmem:[%s16919_s27 + $0x2880] sm:$0xff] }
 0x3d0   : > { %12328 = vmatpush1.bf16.msra.mxu1 %v15665_v42  ;;  %11837 = vmatprep.subr.bf16.mxu0 %v15672_v43  ;;  %v15697_v42 = vcombine.low %v3453_v18, %v3457_v21  ;;  %v15704_v43 = vcombine.high %v3460_v58, %v3464_v35  ;;  %v3488_v18 = vld [vmem:[%s16919_s27 + $0x28a0] sm:$0xff]  ;;  %v17825_v21 = vpack.c.bf16 %v2161_v49, %v2161_v49 }
 0x3d1   : > { %12329 = vmatprep.subr.bf16.mxu1 %v15674_v33  ;;  %v15706_v33 = vcombine.high %v3461_v37, %v3465_v7 }
 0x3d3   : > { %11838 = vmatpush1.bf16.msra.mxu0 %v15671_v19  ;;  %v15703_v19 = vcombine.low %v3460_v58, %v3464_v35  ;;  %v15728_v58 = vcombine.high %v3484_v24, %v3488_v18 }
 0x3d4   : > { %12330 = vmatpush1.bf16.msra.mxu1 %v15673_v22  ;;  %11839 = vmatprep.subr.bf16.mxu0 %v15680_v53  ;;  %v2158_v22 = vmax.f32 %v17264_v16, 0.0  ;;  %v15705_v53 = vcombine.low %v3461_v37, %v3465_v7  ;;  %v15713_v16 = vcombine.low %v3469_v48, %v3473_v10  ;;  %v3492_v37 = vld [vmem:[%s16919_s27 + $0x28c0] sm:$0xff] }
 0x3d5   : > { %12331 = vmatprep.subr.bf16.mxu1 %v15682_v20  ;;  %v15712_v20 = vcombine.high %v3468_v46, %v3472_v14  ;;  %v3496_v7 = vld [vmem:[%s16919_s27 + $0x28e0] sm:$0xff] }
 0x3d6   : > { %v3500_v48 = vld [vmem:[%s16919_s27 + $0x2900] sm:$0xff] }
 0x3d7   : > { %11840 = vmatpush1.bf16.msra.mxu0 %v15679_v8  ;;  %v15711_v8 = vcombine.low %v3468_v46, %v3472_v14  ;;  %v15736_v46 = vcombine.high %v3492_v37, %v3496_v7  ;;  %v3504_v10 = vld [vmem:[%s16919_s27 + $0x2920] sm:$0xff] }
 0x3d8   : > { %12332 = vmatpush1.bf16.msra.mxu1 %v15681_v11  ;;  %11841 = vmatprep.subr.bf16.mxu0 %v15688_v61  ;;  %v3477_v11 = vld [vmem:[%s16919_s27 + $0x2848] sm:$0xff] }
 0x3d9   : > { %12333 = vmatprep.subr.bf16.mxu1 %v15690_v13  ;;  %v3481_v61 = vld [vmem:[%s16919_s27 + $0x2868] sm:$0xff]  ;;  %v17821_v13 = vpack.c.bf16 %v2158_v22, %v2158_v22 }
 0x3da   : > { %v15722_v41 = vcombine.high %v3477_v11, %v3481_v61  ;;  %v3505_v22 = vld [vmem:[%s16919_s27 + $0x2928] sm:$0xff] }
 0x3db   : > { %11842 = vmatpush1.bf16.msra.mxu0 %v15687_v23  ;;  %v3485_v23 = vld [vmem:[%s16919_s27 + $0x2888] sm:$0xff] }
 0x3dc   : > { %12334 = vmatpush1.bf16.msra.mxu1 %v15689_v27  ;;  %11843 = vmatprep.subr.bf16.mxu0 %v15696_v26  ;;  %v3489_v27 = vld [vmem:[%s16919_s27 + $0x28a8] sm:$0xff]  ;;  %v15719_v26 = vcombine.low %v3476_v4, %v3480_v3  ;;  %v3508_v4 = vld [vmem:[%s16919_s27 + $0x2940] sm:$0xff] }
 0x3dd   : > { %12335 = vmatprep.subr.bf16.mxu1 %v15698_v31  ;;  %v15721_v31 = vcombine.low %v3477_v11, %v3481_v61  ;;  %v15730_v35 = vcombine.high %v3485_v23, %v3489_v27  ;;  %v3512_v3 = vld [vmem:[%s16919_s27 + $0x2960] sm:$0xff]  ;;  %v3513_v11 = vld [vmem:[%s16919_s27 + $0x2968] sm:$0xff]  ;;  %v15743_v61 = vcombine.low %v3500_v48, %v3504_v10 }
 0x3df   : > { %11844 = vmatpush1.bf16.msra.mxu0 %v15695_v39  ;;  %v3493_v39 = vld [vmem:[%s16919_s27 + $0x28c8] sm:$0xff] }
 0x3e0   : > { %12336 = vmatpush1.bf16.msra.mxu1 %v15697_v42  ;;  %11845 = vmatprep.subr.bf16.mxu0 %v15704_v43  ;;  %v3497_v42 = vld [vmem:[%s16919_s27 + $0x28e8] sm:$0xff]  ;;  %v15727_v43 = vcombine.low %v3484_v24, %v3488_v18  ;;  %v3516_v18 = vld [vmem:[%s16919_s27 + $0x2980] sm:$0xff] }
 0x3e1   : > { %12337 = vmatprep.subr.bf16.mxu1 %v15706_v33  ;;  %v15729_v33 = vcombine.low %v3485_v23, %v3489_v27  ;;  %v15738_v14 = vcombine.high %v3493_v39, %v3497_v42  ;;  %v3517_v23 = vld [vmem:[%s16919_s27 + $0x2988] sm:$0xff] }
 0x3e2   : > { %v3521_v27 = vld [vmem:[%s16919_s27 + $0x29a8] sm:$0xff] }
 0x3e3   : > { %11846 = vmatpush1.bf16.msra.mxu0 %v15703_v19  ;;  %v3501_v19 = vld [vmem:[%s16919_s27 + $0x2908] sm:$0xff] }
 0x3e4   : > { %12338 = vmatpush1.bf16.msra.mxu1 %v15705_v53  ;;  %11856 = vmatprep.subr.bf16.mxu0 %v15712_v20  ;;  %v15735_v53 = vcombine.low %v3492_v37, %v3496_v7  ;;  %v15737_v20 = vcombine.low %v3493_v39, %v3497_v42  ;;  %v15746_v49 = vcombine.high %v3501_v19, %v3505_v22  ;;  %v3524_v37 = vld [vmem:[%s16919_s27 + $0x29c0] sm:$0xff]  ;;  %v3525_v39 = vld [vmem:[%s16919_s27 + $0x29c8] sm:$0xff] }
 0x3e5   : > { %12348 = vmatprep.subr.bf16.mxu1 %v15714_v59  ;;  %v15744_v59 = vcombine.high %v3500_v48, %v3504_v10  ;;  %v3528_v7 = vld [vmem:[%s16919_s27 + $0x29e0] sm:$0xff]  ;;  %v3529_v42 = vld [vmem:[%s16919_s27 + $0x29e8] sm:$0xff] }
 0x3e6   : > { %11848 = vmatmul.mubr.bf16.vlgmr.msra.gmra.mrb[24].mxu0 %v17821_v13  ;;  %v3532_v48 = vld [vmem:[%s16919_s27 + $0x2a00] sm:$0xff] }
 0x3e7   : > { %12340 = vmatmul.mubr.bf16.vlgmr.msra.gmra.mrb[24].mxu1 %v17821_v13  ;;  %11857 = vmatpush1.bf16.msra.mxu0 %v15711_v8  ;;  %v3509_v8 = vld [vmem:[%s16919_s27 + $0x2948] sm:$0xff]  ;;  %v3536_v10 = vld [vmem:[%s16919_s27 + $0x2a20] sm:$0xff] }
 0x3e8   : > { %11888 = vmatprep.mubr.bf16.mxu0 %v17825_v21  ;;  %12349 = vmatpush1.bf16.msra.mxu1 %v15713_v16  ;;  %v15745_v16 = vcombine.low %v3501_v19, %v3505_v22  ;;  %v15754_v24 = vcombine.high %v3509_v8, %v3513_v11  ;;  %v3533_v19 = vld [vmem:[%s16919_s27 + $0x2a08] sm:$0xff] }
 0x3e9   : > { %12380 = vmatprep.mubr.bf16.mxu1 %v17825_v21  ;;  %11858 = vmatprep.subr.bf16.mxu0 %v15720_v15  ;;  %v15752_v15 = vcombine.high %v3508_v4, %v3512_v3  ;;  %v3537_v22 = vld [vmem:[%s16919_s27 + $0x2a28] sm:$0xff] }
 0x3ea   : > { %12350 = vmatprep.subr.bf16.mxu1 %v15722_v41  ;;  %v3520_v41 = vld [vmem:[%s16919_s27 + $0x29a0] sm:$0xff] }
 0x3eb   : > { %11859 = vmatpush1.bf16.msra.mxu0 %v15719_v26  ;;  %v15751_v26 = vcombine.low %v3508_v4, %v3512_v3  ;;  %v3540_v4 = vld [vmem:[%s16919_s27 + $0x2a40] sm:$0xff] }
 0x3ec   : > { %12351 = vmatpush1.bf16.msra.mxu1 %v15721_v31  ;;  %11860 = vmatprep.subr.bf16.mxu0 %v15728_v58  ;;  %v15753_v31 = vcombine.low %v3509_v8, %v3513_v11  ;;  %v15760_v58 = vcombine.high %v3516_v18, %v3520_v41  ;;  %v3544_v3 = vld [vmem:[%s16919_s27 + $0x2a60] sm:$0xff]  ;;  %v3541_v8 = vld [vmem:[%s16919_s27 + $0x2a48] sm:$0xff] }
 0x3ed   : > { %12352 = vmatprep.subr.bf16.mxu1 %v15730_v35  ;;  %v15762_v35 = vcombine.high %v3517_v23, %v3521_v27  ;;  %v3545_v11 = vld [vmem:[%s16919_s27 + $0x2a68] sm:$0xff] }
 0x3ef   : > { %11861 = vmatpush1.bf16.msra.mxu0 %v15727_v43  ;;  %v15759_v43 = vcombine.low %v3516_v18, %v3520_v41  ;;  %v3548_v18 = vld [vmem:[%s16919_s27 + $0x2a80] sm:$0xff] }
 0x3f0   : > { %12353 = vmatpush1.bf16.msra.mxu1 %v15729_v33  ;;  %11862 = vmatprep.subr.bf16.mxu0 %v15736_v46  ;;  %v15761_v33 = vcombine.low %v3517_v23, %v3521_v27  ;;  %v15768_v46 = vcombine.high %v3524_v37, %v3528_v7  ;;  %v3552_v41 = vld [vmem:[%s16919_s27 + $0x2aa0] sm:$0xff]  ;;  %v3549_v23 = vld [vmem:[%s16919_s27 + $0x2a88] sm:$0xff] }
 0x3f1   : > { %12354 = vmatprep.subr.bf16.mxu1 %v15738_v14  ;;  %v15770_v14 = vcombine.high %v3525_v39, %v3529_v42  ;;  %v3553_v27 = vld [vmem:[%s16919_s27 + $0x2aa8] sm:$0xff] }
 0x3f3   : > { %11863 = vmatpush1.bf16.msra.mxu0 %v15735_v53  ;;  %v15767_v53 = vcombine.low %v3524_v37, %v3528_v7  ;;  %v3556_v37 = vld [vmem:[%s16919_s27 + $0x2ac0] sm:$0xff] }
 0x3f4   : > { %12355 = vmatpush1.bf16.msra.mxu1 %v15737_v20  ;;  %11864 = vmatprep.subr.bf16.mxu0 %v15744_v59  ;;  %v15769_v20 = vcombine.low %v3525_v39, %v3529_v42  ;;  %v15776_v59 = vcombine.high %v3532_v48, %v3536_v10  ;;  %v3560_v7 = vld [vmem:[%s16919_s27 + $0x2ae0] sm:$0xff]  ;;  %v3557_v39 = vld [vmem:[%s16919_s27 + $0x2ac8] sm:$0xff] }
 0x3f5   : > { %12356 = vmatprep.subr.bf16.mxu1 %v15746_v49  ;;  %v15778_v49 = vcombine.high %v3533_v19, %v3537_v22  ;;  %v3561_v42 = vld [vmem:[%s16919_s27 + $0x2ae8] sm:$0xff] }
 0x3f7   : > { %11865 = vmatpush1.bf16.msra.mxu0 %v15743_v61  ;;  %v15775_v61 = vcombine.low %v3532_v48, %v3536_v10  ;;  %v3564_v48 = vld [vmem:[%s16919_s27 + $0x2b00] sm:$0xff] }
 0x3f8   : > { %12357 = vmatpush1.bf16.msra.mxu1 %v15745_v16  ;;  %11866 = vmatprep.subr.bf16.mxu0 %v15752_v15  ;;  %v15777_v16 = vcombine.low %v3533_v19, %v3537_v22  ;;  %v15784_v15 = vcombine.high %v3540_v4, %v3544_v3  ;;  %v3568_v10 = vld [vmem:[%s16919_s27 + $0x2b20] sm:$0xff]  ;;  %v3565_v19 = vld [vmem:[%s16919_s27 + $0x2b08] sm:$0xff] }
 0x3f9   : > { %12358 = vmatprep.subr.bf16.mxu1 %v15754_v24  ;;  %v15786_v24 = vcombine.high %v3541_v8, %v3545_v11  ;;  %v3569_v22 = vld [vmem:[%s16919_s27 + $0x2b28] sm:$0xff] }
 0x3fb   : > { %11867 = vmatpush1.bf16.msra.mxu0 %v15751_v26  ;;  %v15783_v26 = vcombine.low %v3540_v4, %v3544_v3  ;;  %v3572_v4 = vld [vmem:[%s16919_s27 + $0x2b40] sm:$0xff] }
 0x3fc   : > { %12359 = vmatpush1.bf16.msra.mxu1 %v15753_v31  ;;  %11868 = vmatprep.subr.bf16.mxu0 %v15760_v58  ;;  %v15785_v31 = vcombine.low %v3541_v8, %v3545_v11  ;;  %v15792_v58 = vcombine.high %v3548_v18, %v3552_v41  ;;  %v3576_v3 = vld [vmem:[%s16919_s27 + $0x2b60] sm:$0xff]  ;;  %v3573_v8 = vld [vmem:[%s16919_s27 + $0x2b48] sm:$0xff] }
 0x3fd   : > { %12360 = vmatprep.subr.bf16.mxu1 %v15762_v35  ;;  %v15794_v35 = vcombine.high %v3549_v23, %v3553_v27  ;;  %v3577_v11 = vld [vmem:[%s16919_s27 + $0x2b68] sm:$0xff] }
 0x3ff   : > { %11869 = vmatpush1.bf16.msra.mxu0 %v15759_v43  ;;  %v15791_v43 = vcombine.low %v3548_v18, %v3552_v41  ;;  %v3580_v18 = vld [vmem:[%s16919_s27 + $0x2b80] sm:$0xff] }
 0x400   : > { %12361 = vmatpush1.bf16.msra.mxu1 %v15761_v33  ;;  %11870 = vmatprep.subr.bf16.mxu0 %v15768_v46  ;;  %v15793_v33 = vcombine.low %v3549_v23, %v3553_v27  ;;  %v15800_v46 = vcombine.high %v3556_v37, %v3560_v7  ;;  %v3584_v41 = vld [vmem:[%s16919_s27 + $0x2ba0] sm:$0xff]  ;;  %v3581_v23 = vld [vmem:[%s16919_s27 + $0x2b88] sm:$0xff] }
 0x401   : > { %12362 = vmatprep.subr.bf16.mxu1 %v15770_v14  ;;  %v15802_v14 = vcombine.high %v3557_v39, %v3561_v42  ;;  %v3585_v27 = vld [vmem:[%s16919_s27 + $0x2ba8] sm:$0xff] }
 0x403   : > { %11871 = vmatpush1.bf16.msra.mxu0 %v15767_v53  ;;  %v15799_v53 = vcombine.low %v3556_v37, %v3560_v7  ;;  %v3588_v37 = vld [vmem:[%s16919_s27 + $0x2bc0] sm:$0xff] }
 0x404   : > { %12363 = vmatpush1.bf16.msra.mxu1 %v15769_v20  ;;  %11872 = vmatprep.subr.bf16.mxu0 %v15776_v59  ;;  %v15801_v20 = vcombine.low %v3557_v39, %v3561_v42  ;;  %v15808_v59 = vcombine.high %v3564_v48, %v3568_v10  ;;  %v3592_v7 = vld [vmem:[%s16919_s27 + $0x2be0] sm:$0xff]  ;;  %v3589_v39 = vld [vmem:[%s16919_s27 + $0x2bc8] sm:$0xff] }
 0x405   : > { %12364 = vmatprep.subr.bf16.mxu1 %v15778_v49  ;;  %v15810_v49 = vcombine.high %v3565_v19, %v3569_v22  ;;  %v3593_v42 = vld [vmem:[%s16919_s27 + $0x2be8] sm:$0xff] }
 0x407   : > { %11873 = vmatpush1.bf16.msra.mxu0 %v15775_v61  ;;  %v15807_v61 = vcombine.low %v3564_v48, %v3568_v10  ;;  %v3596_v48 = vld [vmem:[%s16919_s27 + $0x2c00] sm:$0xff] }
 0x408   : > { %12365 = vmatpush1.bf16.msra.mxu1 %v15777_v16  ;;  %11874 = vmatprep.subr.bf16.mxu0 %v15784_v15  ;;  %v15809_v16 = vcombine.low %v3565_v19, %v3569_v22  ;;  %v15816_v15 = vcombine.high %v3572_v4, %v3576_v3  ;;  %v3600_v10 = vld [vmem:[%s16919_s27 + $0x2c20] sm:$0xff]  ;;  %v3597_v19 = vld [vmem:[%s16919_s27 + $0x2c08] sm:$0xff] }
 0x409   : > { %12366 = vmatprep.subr.bf16.mxu1 %v15786_v24  ;;  %v15818_v24 = vcombine.high %v3573_v8, %v3577_v11  ;;  %v3601_v22 = vld [vmem:[%s16919_s27 + $0x2c28] sm:$0xff] }
 0x40b   : > { %11875 = vmatpush1.bf16.msra.mxu0 %v15783_v26  ;;  %v15815_v26 = vcombine.low %v3572_v4, %v3576_v3  ;;  %v15842_v4 = vcombine.high %v3597_v19, %v3601_v22  ;;  %v2163_v3 = vmax.f32 %v17324_v44, 0.0 }
 0x40c   : > { %12367 = vmatpush1.bf16.msra.mxu1 %v15785_v31  ;;  %11876 = vmatprep.subr.bf16.mxu0 %v15792_v58  ;;  %v15817_v31 = vcombine.low %v3573_v8, %v3577_v11  ;;  %v15824_v58 = vcombine.high %v3580_v18, %v3584_v41  ;;  %v3604_v8 = vld [vmem:[%s16919_s27 + $0x2c40] sm:$0xff] }
 0x40d   : > { %12368 = vmatprep.subr.bf16.mxu1 %v15794_v35  ;;  %v15826_v35 = vcombine.high %v3581_v23, %v3585_v27  ;;  %v3608_v11 = vld [vmem:[%s16919_s27 + $0x2c60] sm:$0xff] }
 0x40f   : > { %11877 = vmatpush1.bf16.msra.mxu0 %v15791_v43  ;;  %v15823_v43 = vcombine.low %v3580_v18, %v3584_v41  ;;  %v15848_v18 = vcombine.high %v3604_v8, %v3608_v11  ;;  %v3612_v41 = vld [vmem:[%s16919_s27 + $0x2c80] sm:$0xff] }
 0x410   : > { %12369 = vmatpush1.bf16.msra.mxu1 %v15793_v33  ;;  %11878 = vmatprep.subr.bf16.mxu0 %v15800_v46  ;;  %v15825_v33 = vcombine.low %v3581_v23, %v3585_v27  ;;  %v15832_v46 = vcombine.high %v3588_v37, %v3592_v7  ;;  %v3616_v23 = vld [vmem:[%s16919_s27 + $0x2ca0] sm:$0xff]  ;;  %v17899_v27 = vpack.c.bf16 %v2163_v3, %v2163_v3 }
 0x411   : > { %12370 = vmatprep.subr.bf16.mxu1 %v15802_v14  ;;  %v15834_v14 = vcombine.high %v3589_v39, %v3593_v42 }
 0x413   : > { %11879 = vmatpush1.bf16.msra.mxu0 %v15799_v53  ;;  %v15831_v53 = vcombine.low %v3588_v37, %v3592_v7  ;;  %v15856_v37 = vcombine.high %v3612_v41, %v3616_v23 }
 0x414   : > { %12371 = vmatpush1.bf16.msra.mxu1 %v15801_v20  ;;  %11880 = vmatprep.subr.bf16.mxu0 %v15808_v59  ;;  %v2160_v20 = vmax.f32 %v17316_v12, 0.0  ;;  %v15833_v59 = vcombine.low %v3589_v39, %v3593_v42  ;;  %v15841_v12 = vcombine.low %v3597_v19, %v3601_v22  ;;  %v3620_v39 = vld [vmem:[%s16919_s27 + $0x2cc0] sm:$0xff] }
 0x415   : > { %12372 = vmatprep.subr.bf16.mxu1 %v15810_v49  ;;  %v15840_v49 = vcombine.high %v3596_v48, %v3600_v10  ;;  %v3624_v42 = vld [vmem:[%s16919_s27 + $0x2ce0] sm:$0xff] }
 0x416   : > { %v3628_v19 = vld [vmem:[%s16919_s27 + $0x2d00] sm:$0xff] }
 0x417   : > { %11881 = vmatpush1.bf16.msra.mxu0 %v15807_v61  ;;  %v15839_v61 = vcombine.low %v3596_v48, %v3600_v10  ;;  %v15864_v48 = vcombine.high %v3620_v39, %v3624_v42  ;;  %v3632_v22 = vld [vmem:[%s16919_s27 + $0x2d20] sm:$0xff] }
 0x418   : > { %12373 = vmatpush1.bf16.msra.mxu1 %v15809_v16  ;;  %11882 = vmatprep.subr.bf16.mxu0 %v15816_v15  ;;  %v3605_v16 = vld [vmem:[%s16919_s27 + $0x2c48] sm:$0xff] }
 0x419   : > { %12374 = vmatprep.subr.bf16.mxu1 %v15818_v24  ;;  %v3609_v15 = vld [vmem:[%s16919_s27 + $0x2c68] sm:$0xff]  ;;  %v17895_v24 = vpack.c.bf16 %v2160_v20, %v2160_v20 }
 0x41a   : > { %v15850_v44 = vcombine.high %v3605_v16, %v3609_v15  ;;  %v3633_v20 = vld [vmem:[%s16919_s27 + $0x2d28] sm:$0xff] }
 0x41b   : > { %11883 = vmatpush1.bf16.msra.mxu0 %v15815_v26  ;;  %v3613_v26 = vld [vmem:[%s16919_s27 + $0x2c88] sm:$0xff] }
 0x41c   : > { %12375 = vmatpush1.bf16.msra.mxu1 %v15817_v31  ;;  %11884 = vmatprep.subr.bf16.mxu0 %v15824_v58  ;;  %v3617_v31 = vld [vmem:[%s16919_s27 + $0x2ca8] sm:$0xff]  ;;  %v15847_v58 = vcombine.low %v3604_v8, %v3608_v11  ;;  %v3636_v8 = vld [vmem:[%s16919_s27 + $0x2d40] sm:$0xff] }
 0x41d   : > { %12376 = vmatprep.subr.bf16.mxu1 %v15826_v35  ;;  %v15849_v35 = vcombine.low %v3605_v16, %v3609_v15  ;;  %v15858_v7 = vcombine.high %v3613_v26, %v3617_v31  ;;  %v3640_v11 = vld [vmem:[%s16919_s27 + $0x2d60] sm:$0xff]  ;;  %v3641_v16 = vld [vmem:[%s16919_s27 + $0x2d68] sm:$0xff]  ;;  %v15871_v15 = vcombine.low %v3628_v19, %v3632_v22 }
 0x41f   : > { %11885 = vmatpush1.bf16.msra.mxu0 %v15823_v43  ;;  %v3621_v43 = vld [vmem:[%s16919_s27 + $0x2cc8] sm:$0xff] }
 0x420   : > { %12377 = vmatpush1.bf16.msra.mxu1 %v15825_v33  ;;  %11886 = vmatprep.subr.bf16.mxu0 %v15832_v46  ;;  %v3625_v33 = vld [vmem:[%s16919_s27 + $0x2ce8] sm:$0xff]  ;;  %v15855_v46 = vcombine.low %v3612_v41, %v3616_v23  ;;  %v3644_v23 = vld [vmem:[%s16919_s27 + $0x2d80] sm:$0xff] }
 0x421   : > { %12378 = vmatprep.subr.bf16.mxu1 %v15834_v14  ;;  %v15857_v14 = vcombine.low %v3613_v26, %v3617_v31  ;;  %v15866_v10 = vcombine.high %v3621_v43, %v3625_v33  ;;  %v3645_v26 = vld [vmem:[%s16919_s27 + $0x2d88] sm:$0xff] }
 0x422   : > { %v3649_v31 = vld [vmem:[%s16919_s27 + $0x2da8] sm:$0xff] }
 0x423   : > { %11887 = vmatpush1.bf16.msra.mxu0 %v15831_v53  ;;  %v3629_v53 = vld [vmem:[%s16919_s27 + $0x2d08] sm:$0xff] }
 0x424   : > { %12379 = vmatpush1.bf16.msra.mxu1 %v15833_v59  ;;  %11897 = vmatprep.subr.bf16.mxu0 %v15840_v49  ;;  %v15863_v59 = vcombine.low %v3620_v39, %v3624_v42  ;;  %v15865_v49 = vcombine.low %v3621_v43, %v3625_v33  ;;  %v15874_v3 = vcombine.high %v3629_v53, %v3633_v20  ;;  %v3652_v39 = vld [vmem:[%s16919_s27 + $0x2dc0] sm:$0xff]  ;;  %v3653_v43 = vld [vmem:[%s16919_s27 + $0x2dc8] sm:$0xff] }
 0x425   : > { %12389 = vmatprep.subr.bf16.mxu1 %v15842_v4  ;;  %v15872_v4 = vcombine.high %v3628_v19, %v3632_v22  ;;  %v3656_v42 = vld [vmem:[%s16919_s27 + $0x2de0] sm:$0xff]  ;;  %v3657_v33 = vld [vmem:[%s16919_s27 + $0x2de8] sm:$0xff] }
 0x426   : > { %11889 = vmatmul.mubr.bf16.vlgmr.msra.gmra.mrb[24].mxu0 %v17895_v24  ;;  %v3660_v19 = vld [vmem:[%s16919_s27 + $0x2e00] sm:$0xff] }
 0x427   : > { %12381 = vmatmul.mubr.bf16.vlgmr.msra.gmra.mrb[24].mxu1 %v17895_v24  ;;  %11898 = vmatpush1.bf16.msra.mxu0 %v15839_v61  ;;  %v3637_v61 = vld [vmem:[%s16919_s27 + $0x2d48] sm:$0xff]  ;;  %v3664_v22 = vld [vmem:[%s16919_s27 + $0x2e20] sm:$0xff] }
 0x428   : > { %11929 = vmatprep.mubr.bf16.mxu0 %v17899_v27  ;;  %12390 = vmatpush1.bf16.msra.mxu1 %v15841_v12  ;;  %v15873_v12 = vcombine.low %v3629_v53, %v3633_v20  ;;  %v15882_v41 = vcombine.high %v3637_v61, %v3641_v16  ;;  %v3661_v53 = vld [vmem:[%s16919_s27 + $0x2e08] sm:$0xff] }
 0x429   : > { %12421 = vmatprep.mubr.bf16.mxu1 %v17899_v27  ;;  %11899 = vmatprep.subr.bf16.mxu0 %v15848_v18  ;;  %v15880_v18 = vcombine.high %v3636_v8, %v3640_v11  ;;  %v3665_v20 = vld [vmem:[%s16919_s27 + $0x2e28] sm:$0xff] }
 0x42a   : > { %12391 = vmatprep.subr.bf16.mxu1 %v15850_v44  ;;  %v3648_v44 = vld [vmem:[%s16919_s27 + $0x2da0] sm:$0xff] }
 0x42b   : > { %11900 = vmatpush1.bf16.msra.mxu0 %v15847_v58  ;;  %v15879_v58 = vcombine.low %v3636_v8, %v3640_v11  ;;  %v3668_v8 = vld [vmem:[%s16919_s27 + $0x2e40] sm:$0xff] }
 0x42c   : > { %12392 = vmatpush1.bf16.msra.mxu1 %v15849_v35  ;;  %11901 = vmatprep.subr.bf16.mxu0 %v15856_v37  ;;  %v15881_v35 = vcombine.low %v3637_v61, %v3641_v16  ;;  %v15888_v37 = vcombine.high %v3644_v23, %v3648_v44  ;;  %v3672_v11 = vld [vmem:[%s16919_s27 + $0x2e60] sm:$0xff]  ;;  %v3669_v61 = vld [vmem:[%s16919_s27 + $0x2e48] sm:$0xff] }
 0x42d   : > { %12393 = vmatprep.subr.bf16.mxu1 %v15858_v7  ;;  %v15890_v7 = vcombine.high %v3645_v26, %v3649_v31  ;;  %v3673_v16 = vld [vmem:[%s16919_s27 + $0x2e68] sm:$0xff] }
 0x42f   : > { %11902 = vmatpush1.bf16.msra.mxu0 %v15855_v46  ;;  %v15887_v46 = vcombine.low %v3644_v23, %v3648_v44  ;;  %v3676_v23 = vld [vmem:[%s16919_s27 + $0x2e80] sm:$0xff] }
 0x430   : > { %12394 = vmatpush1.bf16.msra.mxu1 %v15857_v14  ;;  %11903 = vmatprep.subr.bf16.mxu0 %v15864_v48  ;;  %v15889_v14 = vcombine.low %v3645_v26, %v3649_v31  ;;  %v15896_v48 = vcombine.high %v3652_v39, %v3656_v42  ;;  %v3680_v44 = vld [vmem:[%s16919_s27 + $0x2ea0] sm:$0xff]  ;;  %v3677_v26 = vld [vmem:[%s16919_s27 + $0x2e88] sm:$0xff] }
 0x431   : > { %12395 = vmatprep.subr.bf16.mxu1 %v15866_v10  ;;  %v15898_v10 = vcombine.high %v3653_v43, %v3657_v33  ;;  %v3681_v31 = vld [vmem:[%s16919_s27 + $0x2ea8] sm:$0xff] }
 0x433   : > { %11904 = vmatpush1.bf16.msra.mxu0 %v15863_v59  ;;  %v15895_v59 = vcombine.low %v3652_v39, %v3656_v42  ;;  %v3684_v39 = vld [vmem:[%s16919_s27 + $0x2ec0] sm:$0xff] }
 0x434   : > { %12396 = vmatpush1.bf16.msra.mxu1 %v15865_v49  ;;  %11905 = vmatprep.subr.bf16.mxu0 %v15872_v4  ;;  %v15897_v49 = vcombine.low %v3653_v43, %v3657_v33  ;;  %v15904_v4 = vcombine.high %v3660_v19, %v3664_v22  ;;  %v3688_v42 = vld [vmem:[%s16919_s27 + $0x2ee0] sm:$0xff]  ;;  %v3685_v43 = vld [vmem:[%s16919_s27 + $0x2ec8] sm:$0xff] }
 0x435   : > { %12397 = vmatprep.subr.bf16.mxu1 %v15874_v3  ;;  %v15906_v3 = vcombine.high %v3661_v53, %v3665_v20  ;;  %v3689_v33 = vld [vmem:[%s16919_s27 + $0x2ee8] sm:$0xff] }
 0x437   : > { %11906 = vmatpush1.bf16.msra.mxu0 %v15871_v15  ;;  %v15903_v15 = vcombine.low %v3660_v19, %v3664_v22  ;;  %v3692_v19 = vld [vmem:[%s16919_s27 + $0x2f00] sm:$0xff] }
 0x438   : > { %12398 = vmatpush1.bf16.msra.mxu1 %v15873_v12  ;;  %11907 = vmatprep.subr.bf16.mxu0 %v15880_v18  ;;  %v15905_v12 = vcombine.low %v3661_v53, %v3665_v20  ;;  %v15912_v18 = vcombine.high %v3668_v8, %v3672_v11  ;;  %v3696_v22 = vld [vmem:[%s16919_s27 + $0x2f20] sm:$0xff]  ;;  %v3693_v53 = vld [vmem:[%s16919_s27 + $0x2f08] sm:$0xff] }
 0x439   : > { %12399 = vmatprep.subr.bf16.mxu1 %v15882_v41  ;;  %v15914_v41 = vcombine.high %v3669_v61, %v3673_v16  ;;  %v3697_v20 = vld [vmem:[%s16919_s27 + $0x2f28] sm:$0xff] }
 0x43b   : > { %11908 = vmatpush1.bf16.msra.mxu0 %v15879_v58  ;;  %v15911_v58 = vcombine.low %v3668_v8, %v3672_v11  ;;  %v3700_v8 = vld [vmem:[%s16919_s27 + $0x2f40] sm:$0xff] }
 0x43c   : > { %12400 = vmatpush1.bf16.msra.mxu1 %v15881_v35  ;;  %11909 = vmatprep.subr.bf16.mxu0 %v15888_v37  ;;  %v15913_v35 = vcombine.low %v3669_v61, %v3673_v16  ;;  %v15920_v37 = vcombine.high %v3676_v23, %v3680_v44  ;;  %v3704_v11 = vld [vmem:[%s16919_s27 + $0x2f60] sm:$0xff]  ;;  %v3701_v61 = vld [vmem:[%s16919_s27 + $0x2f48] sm:$0xff] }
 0x43d   : > { %12401 = vmatprep.subr.bf16.mxu1 %v15890_v7  ;;  %v15922_v7 = vcombine.high %v3677_v26, %v3681_v31  ;;  %v3705_v16 = vld [vmem:[%s16919_s27 + $0x2f68] sm:$0xff] }
 0x43f   : > { %11910 = vmatpush1.bf16.msra.mxu0 %v15887_v46  ;;  %v15919_v46 = vcombine.low %v3676_v23, %v3680_v44  ;;  %v3708_v23 = vld [vmem:[%s16919_s27 + $0x2f80] sm:$0xff] }
 0x440   : > { %12402 = vmatpush1.bf16.msra.mxu1 %v15889_v14  ;;  %11911 = vmatprep.subr.bf16.mxu0 %v15896_v48  ;;  %v15921_v14 = vcombine.low %v3677_v26, %v3681_v31  ;;  %v15928_v48 = vcombine.high %v3684_v39, %v3688_v42  ;;  %v3712_v44 = vld [vmem:[%s16919_s27 + $0x2fa0] sm:$0xff]  ;;  %v3709_v26 = vld [vmem:[%s16919_s27 + $0x2f88] sm:$0xff] }
 0x441   : > { %12403 = vmatprep.subr.bf16.mxu1 %v15898_v10  ;;  %v15930_v10 = vcombine.high %v3685_v43, %v3689_v33  ;;  %v3713_v31 = vld [vmem:[%s16919_s27 + $0x2fa8] sm:$0xff] }
 0x443   : > { %11912 = vmatpush1.bf16.msra.mxu0 %v15895_v59  ;;  %v15927_v59 = vcombine.low %v3684_v39, %v3688_v42  ;;  %v3716_v39 = vld [vmem:[%s16919_s27 + $0x2fc0] sm:$0xff] }
 0x444   : > { %12404 = vmatpush1.bf16.msra.mxu1 %v15897_v49  ;;  %11913 = vmatprep.subr.bf16.mxu0 %v15904_v4  ;;  %v15929_v49 = vcombine.low %v3685_v43, %v3689_v33  ;;  %v15936_v4 = vcombine.high %v3692_v19, %v3696_v22  ;;  %v3720_v42 = vld [vmem:[%s16919_s27 + $0x2fe0] sm:$0xff]  ;;  %v3717_v43 = vld [vmem:[%s16919_s27 + $0x2fc8] sm:$0xff] }
 0x445   : > { %12405 = vmatprep.subr.bf16.mxu1 %v15906_v3  ;;  %v15938_v3 = vcombine.high %v3693_v53, %v3697_v20  ;;  %v3721_v33 = vld [vmem:[%s16919_s27 + $0x2fe8] sm:$0xff] }
 0x447   : > { %11914 = vmatpush1.bf16.msra.mxu0 %v15903_v15  ;;  %v15935_v15 = vcombine.low %v3692_v19, %v3696_v22  ;;  %v2190_v19 = vld [vmem:[%s16919_s27 + $0x10] sm:$0xff] }
 0x448   : > { %12406 = vmatpush1.bf16.msra.mxu1 %v15905_v12  ;;  %11915 = vmatprep.subr.bf16.mxu0 %v15912_v18  ;;  %v15937_v12 = vcombine.low %v3693_v53, %v3697_v20  ;;  %v15944_v18 = vcombine.high %v3700_v8, %v3704_v11  ;;  %v2194_v22 = vld [vmem:[%s16919_s27 + $0x30] sm:$0xff]  ;;  %v2191_v53 = vld [vmem:[%s16919_s27 + $0x18] sm:$0xff] }
 0x449   : > { %12407 = vmatprep.subr.bf16.mxu1 %v15914_v41  ;;  %v15946_v41 = vcombine.high %v3701_v61, %v3705_v16  ;;  %v2195_v20 = vld [vmem:[%s16919_s27 + $0x38] sm:$0xff] }
 0x44b   : > { %11916 = vmatpush1.bf16.msra.mxu0 %v15911_v58  ;;  %v15943_v58 = vcombine.low %v3700_v8, %v3704_v11  ;;  %v14438_v8 = vcombine.high %v2191_v53, %v2195_v20  ;;  %v2198_v11 = vld [vmem:[%s16919_s27 + $0x50] sm:$0xff] }
 0x44c   : > { %12408 = vmatpush1.bf16.msra.mxu1 %v15913_v35  ;;  %11917 = vmatprep.subr.bf16.mxu0 %v15920_v37  ;;  %v15945_v35 = vcombine.low %v3701_v61, %v3705_v16  ;;  %v15952_v37 = vcombine.high %v3708_v23, %v3712_v44  ;;  %v2202_v61 = vld [vmem:[%s16919_s27 + $0x70] sm:$0xff]  ;;  %v14435_v16 = vcombine.low %v2190_v19, %v2194_v22 }
 0x44d   : > { %12409 = vmatprep.subr.bf16.mxu1 %v15922_v7  ;;  %v15954_v7 = vcombine.high %v3709_v26, %v3713_v31 }
 0x44f   : > { %11918 = vmatpush1.bf16.msra.mxu0 %v15919_v46  ;;  %v15951_v46 = vcombine.low %v3708_v23, %v3712_v44  ;;  %v2206_v23 = vld [vmem:[%s16919_s27 + $0x90] sm:$0xff] }
 0x450   : > { %12410 = vmatpush1.bf16.msra.mxu1 %v15921_v14  ;;  %11919 = vmatprep.subr.bf16.mxu0 %v15928_v48  ;;  %v15953_v14 = vcombine.low %v3709_v26, %v3713_v31  ;;  %v15960_v48 = vcombine.high %v3716_v39, %v3720_v42  ;;  %v2210_v44 = vld [vmem:[%s16919_s27 + $0xb0] sm:$0xff]  ;;  %v2207_v31 = vld [vmem:[%s16919_s27 + $0x98] sm:$0xff] }
 0x451   : > { %12411 = vmatprep.subr.bf16.mxu1 %v15930_v10  ;;  %v15962_v10 = vcombine.high %v3717_v43, %v3721_v33 }
 0x453   : > { %11920 = vmatpush1.bf16.msra.mxu0 %v15927_v59  ;;  %v15959_v59 = vcombine.low %v3716_v39, %v3720_v42  ;;  %v2214_v42 = vld [vmem:[%s16919_s27 + $0xd0] sm:$0xff] }
 0x454   : > { %12412 = vmatpush1.bf16.msra.mxu1 %v15929_v49  ;;  %11921 = vmatprep.subr.bf16.mxu0 %v15936_v4  ;;  %v2162_v49 = vmax.f32 %v17320_v0, 0.0  ;;  %v15961_v4 = vcombine.low %v3717_v43, %v3721_v33  ;;  %v14437_v0 = vcombine.low %v2191_v53, %v2195_v20  ;;  %v2218_v43 = vld [vmem:[%s16919_s27 + $0xf0] sm:$0xff]  ;;  %v2215_v33 = vld [vmem:[%s16919_s27 + $0xd8] sm:$0xff] }
 0x455   : > { %12413 = vmatprep.subr.bf16.mxu1 %v15938_v3  ;;  %v14436_v3 = vcombine.high %v2190_v19, %v2194_v22  ;;  %v2222_v19 = vld [vmem:[%s16919_s27 + $0x110] sm:$0xff]  ;;  %v2223_v53 = vld [vmem:[%s16919_s27 + $0x118] sm:$0xff] }
 0x456   : > { %v2226_v22 = vld [vmem:[%s16919_s27 + $0x130] sm:$0xff]  ;;  %v2227_v20 = vld [vmem:[%s16919_s27 + $0x138] sm:$0xff] }
 0x457   : > { %11922 = vmatpush1.bf16.msra.mxu0 %v15935_v15  ;;  %v2199_v15 = vld [vmem:[%s16919_s27 + $0x58] sm:$0xff] }
 0x458   : > { %12414 = vmatpush1.bf16.msra.mxu1 %v15937_v12  ;;  %11923 = vmatprep.subr.bf16.mxu0 %v15944_v18  ;;  %v2203_v12 = vld [vmem:[%s16919_s27 + $0x78] sm:$0xff]  ;;  %v17968_v18 = vpack.c.bf16 %v2162_v49, %v2162_v49 }
 0x459   : > { %12415 = vmatprep.subr.bf16.mxu1 %v15946_v41  ;;  %v14444_v41 = vcombine.high %v2198_v11, %v2202_v61  ;;  %v14446_v26 = vcombine.high %v2199_v15, %v2203_v12 }
 0x45b   : > { %11924 = vmatpush1.bf16.msra.mxu0 %v15943_v58  ;;  %v2211_v58 = vld [vmem:[%s16919_s27 + $0xb8] sm:$0xff] }
 0x45c   : > { %12416 = vmatpush1.bf16.msra.mxu1 %v15945_v35  ;;  %11925 = vmatprep.subr.bf16.mxu0 %v15952_v37  ;;  %v14443_v35 = vcombine.low %v2198_v11, %v2202_v61  ;;  %v14445_v37 = vcombine.low %v2199_v15, %v2203_v12  ;;  %v14454_v39 = vcombine.high %v2207_v31, %v2211_v58  ;;  %v2234_v11 = vld [vmem:[%s16919_s27 + $0x170] sm:$0xff]  ;;  %v2231_v61 = vld [vmem:[%s16919_s27 + $0x158] sm:$0xff] }
 0x45d   : > { %12417 = vmatprep.subr.bf16.mxu1 %v15954_v7  ;;  %v14452_v7 = vcombine.high %v2206_v23, %v2210_v44  ;;  %v14467_v15 = vcombine.low %v2222_v19, %v2226_v22  ;;  %v14469_v12 = vcombine.low %v2223_v53, %v2227_v20 }
 0x45f   : > { %11926 = vmatpush1.bf16.msra.mxu0 %v15951_v46  ;;  %v2219_v46 = vld [vmem:[%s16919_s27 + $0xf8] sm:$0xff] }
 0x460   : > { %12418 = vmatpush1.bf16.msra.mxu1 %v15953_v14  ;;  %11927 = vmatprep.subr.bf16.mxu0 %v15960_v48  ;;  %v14451_v14 = vcombine.low %v2206_v23, %v2210_v44  ;;  %v14453_v48 = vcombine.low %v2207_v31, %v2211_v58  ;;  %v14461_v49 = vcombine.low %v2215_v33, %v2219_v46  ;;  %v2238_v23 = vld [vmem:[%s16919_s27 + $0x190] sm:$0xff]  ;;  %v2243_v31 = vld [vmem:[%s16919_s27 + $0x1b8] sm:$0xff] }
 0x461   : > { %12419 = vmatprep.subr.bf16.mxu1 %v15962_v10  ;;  %v14460_v10 = vcombine.high %v2214_v42, %v2218_v43  ;;  %v2242_v44 = vld [vmem:[%s16919_s27 + $0x1b0] sm:$0xff] }
 0x463   : > { %11928 = vmatpush1.bf16.msra.mxu0 %v15959_v59  ;;  %v14459_v59 = vcombine.low %v2214_v42, %v2218_v43  ;;  %v2250_v42 = vld [vmem:[%s16919_s27 + $0x1f0] sm:$0xff]  ;;  %v2247_v43 = vld [vmem:[%s16919_s27 + $0x1d8] sm:$0xff] }
 0x464   : > { %12420 = vmatpush1.bf16.msra.mxu1 %v15961_v4  ;;  %12430 = vmatprep.subr.bf16.mxu0 %v14436_v3  ;;  %v14468_v4 = vcombine.high %v2222_v19, %v2226_v22  ;;  %v14470_v3 = vcombine.high %v2223_v53, %v2227_v20  ;;  %v2258_v19 = vld [vmem:[%s16919_s27 + $0x230] sm:$0xff]  ;;  %v2255_v22 = vld [vmem:[%s16919_s27 + $0x218] sm:$0xff] }
 0x465   : > { %12922 = vmatprep.subr.bf16.mxu1 %v14438_v8  ;;  %v2230_v8 = vld [vmem:[%s16919_s27 + $0x150] sm:$0xff]  ;;  %v2259_v53 = vld [vmem:[%s16919_s27 + $0x238] sm:$0xff] }
 0x466   : > { %11930 = vmatmul.mubr.bf16.vlgmr.msra.gmra.mrb[24].mxu0 %v17968_v18  ;;  %v14475_v58 = vcombine.low %v2230_v8, %v2234_v11 }
 0x467   : > { %12422 = vmatmul.mubr.bf16.vlgmr.msra.gmra.mrb[24].mxu1 %v17968_v18  ;;  %12431 = vmatpush1.bf16.msra.mxu0 %v14435_v16  ;;  %v2235_v16 = vld [vmem:[%s16919_s27 + $0x178] sm:$0xff] }
 0x468   : > { %12462 = vmatprep.mubr.bf16.mxu0 %v17050_v38  ;;  %12923 = vmatpush1.bf16.msra.mxu1 %v14437_v0  ;;  %v14476_v0 = vcombine.high %v2230_v8, %v2234_v11  ;;  %v2266_v8 = vld [vmem:[%s16919_s27 + $0x270] sm:$0xff]  ;;  %v2263_v11 = vld [vmem:[%s16919_s27 + $0x258] sm:$0xff] }
 0x469   : > { %12954 = vmatprep.mubr.bf16.mxu1 %v17050_v38  ;;  %12432 = vmatprep.subr.bf16.mxu0 %v14444_v41  ;;  %v14462_v38 = vcombine.high %v2215_v33, %v2219_v46  ;;  %v14478_v41 = vcombine.high %v2231_v61, %v2235_v16  ;;  %v2251_v33 = vld [vmem:[%s16919_s27 + $0x1f8] sm:$0xff]  ;;  %v14483_v46 = vcombine.low %v2238_v23, %v2242_v44 }
 0x46a   : > { %12924 = vmatprep.subr.bf16.mxu1 %v14446_v26  ;;  %v2239_v26 = vld [vmem:[%s16919_s27 + $0x198] sm:$0xff] }
 0x46b   : > { %12433 = vmatpush1.bf16.msra.mxu0 %v14443_v35  ;;  %v14477_v35 = vcombine.low %v2231_v61, %v2235_v16  ;;  %v2267_v61 = vld [vmem:[%s16919_s27 + $0x278] sm:$0xff] }
 0x46c   : > { %12925 = vmatpush1.bf16.msra.mxu1 %v14445_v37  ;;  %12434 = vmatprep.subr.bf16.mxu0 %v14452_v7  ;;  %v14484_v37 = vcombine.high %v2238_v23, %v2242_v44  ;;  %v14486_v7 = vcombine.high %v2239_v26, %v2243_v31  ;;  %v2274_v23 = vld [vmem:[%s16919_s27 + $0x2b0] sm:$0xff]  ;;  %v2271_v44 = vld [vmem:[%s16919_s27 + $0x298] sm:$0xff] }
 0x46d   : > { %12926 = vmatprep.subr.bf16.mxu1 %v14454_v39  ;;  %v2246_v39 = vld [vmem:[%s16919_s27 + $0x1d0] sm:$0xff] }
 0x46e   : > { %v14491_v20 = vcombine.low %v2246_v39, %v2250_v42 }
 0x46f   : > { %12435 = vmatpush1.bf16.msra.mxu0 %v14451_v14  ;;  %v14485_v14 = vcombine.low %v2239_v26, %v2243_v31  ;;  %v2275_v26 = vld [vmem:[%s16919_s27 + $0x2b8] sm:$0xff] }
 0x470   : > { %12927 = vmatpush1.bf16.msra.mxu1 %v14453_v48  ;;  %12436 = vmatprep.subr.bf16.mxu0 %v14460_v10  ;;  %v14492_v48 = vcombine.high %v2246_v39, %v2250_v42  ;;  %v14494_v10 = vcombine.high %v2247_v43, %v2251_v33  ;;  %v2282_v39 = vld [vmem:[%s16919_s27 + $0x2f0] sm:$0xff]  ;;  %v2279_v42 = vld [vmem:[%s16919_s27 + $0x2d8] sm:$0xff] }
 0x471   : > { %12928 = vmatprep.subr.bf16.mxu1 %v14462_v38  ;;  %v2254_v38 = vld [vmem:[%s16919_s27 + $0x210] sm:$0xff] }
 0x472   : > { %v14499_v16 = vcombine.low %v2254_v38, %v2258_v19 }
 0x473   : > { %12437 = vmatpush1.bf16.msra.mxu0 %v14459_v59  ;;  %v14493_v59 = vcombine.low %v2247_v43, %v2251_v33  ;;  %v2283_v43 = vld [vmem:[%s16919_s27 + $0x2f8] sm:$0xff] }
 0x474   : > { %12929 = vmatpush1.bf16.msra.mxu1 %v14461_v49  ;;  %12438 = vmatprep.subr.bf16.mxu0 %v14468_v4  ;;  %v14500_v49 = vcombine.high %v2254_v38, %v2258_v19  ;;  %v14502_v4 = vcombine.high %v2255_v22, %v2259_v53  ;;  %v2290_v38 = vld [vmem:[%s16919_s27 + $0x330] sm:$0xff]  ;;  %v2287_v19 = vld [vmem:[%s16919_s27 + $0x318] sm:$0xff] }
 0x475   : > { %12930 = vmatprep.subr.bf16.mxu1 %v14470_v3  ;;  %v2262_v3 = vld [vmem:[%s16919_s27 + $0x250] sm:$0xff] }
 0x476   : > { %v14507_v31 = vcombine.low %v2262_v3, %v2266_v8 }
 0x477   : > { %12439 = vmatpush1.bf16.msra.mxu0 %v14467_v15  ;;  %v14501_v15 = vcombine.low %v2255_v22, %v2259_v53  ;;  %v2291_v22 = vld [vmem:[%s16919_s27 + $0x338] sm:$0xff] }
 0x478   : > { %12931 = vmatpush1.bf16.msra.mxu1 %v14469_v12  ;;  %12440 = vmatprep.subr.bf16.mxu0 %v14476_v0  ;;  %v14508_v12 = vcombine.high %v2262_v3, %v2266_v8  ;;  %v14510_v0 = vcombine.high %v2263_v11, %v2267_v61  ;;  %v2298_v3 = vld [vmem:[%s16919_s27 + $0x370] sm:$0xff]  ;;  %v2295_v8 = vld [vmem:[%s16919_s27 + $0x358] sm:$0xff] }
 0x479   : > { %12932 = vmatprep.subr.bf16.mxu1 %v14478_v41  ;;  %v2270_v41 = vld [vmem:[%s16919_s27 + $0x290] sm:$0xff] }
 0x47a   : > { %v14515_v33 = vcombine.low %v2270_v41, %v2274_v23 }
 0x47b   : > { %12441 = vmatpush1.bf16.msra.mxu0 %v14475_v58  ;;  %v14509_v58 = vcombine.low %v2263_v11, %v2267_v61  ;;  %v2299_v11 = vld [vmem:[%s16919_s27 + $0x378] sm:$0xff] }
 0x47c   : > { %12933 = vmatpush1.bf16.msra.mxu1 %v14477_v35  ;;  %12442 = vmatprep.subr.bf16.mxu0 %v14484_v37  ;;  %v14516_v35 = vcombine.high %v2270_v41, %v2274_v23  ;;  %v14518_v37 = vcombine.high %v2271_v44, %v2275_v26  ;;  %v2306_v41 = vld [vmem:[%s16919_s27 + $0x3b0] sm:$0xff]  ;;  %v2303_v23 = vld [vmem:[%s16919_s27 + $0x398] sm:$0xff] }
 0x47d   : > { %12934 = vmatprep.subr.bf16.mxu1 %v14486_v7  ;;  %v2278_v7 = vld [vmem:[%s16919_s27 + $0x2d0] sm:$0xff] }
 0x47e   : > { %v14523_v53 = vcombine.low %v2278_v7, %v2282_v39 }
 0x47f   : > { %12443 = vmatpush1.bf16.msra.mxu0 %v14483_v46  ;;  %v14517_v46 = vcombine.low %v2271_v44, %v2275_v26  ;;  %v2307_v44 = vld [vmem:[%s16919_s27 + $0x3b8] sm:$0xff] }
 0x480   : > { %12935 = vmatpush1.bf16.msra.mxu1 %v14485_v14  ;;  %12444 = vmatprep.subr.bf16.mxu0 %v14492_v48  ;;  %v14524_v14 = vcombine.high %v2278_v7, %v2282_v39  ;;  %v14526_v48 = vcombine.high %v2279_v42, %v2283_v43  ;;  %v2314_v7 = vld [vmem:[%s16919_s27 + $0x3f0] sm:$0xff]  ;;  %v2311_v39 = vld [vmem:[%s16919_s27 + $0x3d8] sm:$0xff] }
 0x481   : > { %12936 = vmatprep.subr.bf16.mxu1 %v14494_v10  ;;  %v2286_v10 = vld [vmem:[%s16919_s27 + $0x310] sm:$0xff] }
 0x482   : > { %v14531_v61 = vcombine.low %v2286_v10, %v2290_v38 }
 0x483   : > { %12445 = vmatpush1.bf16.msra.mxu0 %v14491_v20  ;;  %v14525_v20 = vcombine.low %v2279_v42, %v2283_v43  ;;  %v2315_v42 = vld [vmem:[%s16919_s27 + $0x3f8] sm:$0xff] }
 0x484   : > { %12937 = vmatpush1.bf16.msra.mxu1 %v14493_v59  ;;  %12446 = vmatprep.subr.bf16.mxu0 %v14500_v49  ;;  %v14532_v59 = vcombine.high %v2286_v10, %v2290_v38  ;;  %v14534_v49 = vcombine.high %v2287_v19, %v2291_v22  ;;  %v2322_v10 = vld [vmem:[%s16919_s27 + $0x430] sm:$0xff]  ;;  %v2319_v38 = vld [vmem:[%s16919_s27 + $0x418] sm:$0xff] }
 0x485   : > { %12938 = vmatprep.subr.bf16.mxu1 %v14502_v4  ;;  %v2294_v4 = vld [vmem:[%s16919_s27 + $0x350] sm:$0xff] }
 0x486   : > { %v14539_v26 = vcombine.low %v2294_v4, %v2298_v3 }
 0x487   : > { %12447 = vmatpush1.bf16.msra.mxu0 %v14499_v16  ;;  %v14533_v16 = vcombine.low %v2287_v19, %v2291_v22  ;;  %v2323_v19 = vld [vmem:[%s16919_s27 + $0x438] sm:$0xff] }
 0x488   : > { %12939 = vmatpush1.bf16.msra.mxu1 %v14501_v15  ;;  %12448 = vmatprep.subr.bf16.mxu0 %v14508_v12  ;;  %v14540_v15 = vcombine.high %v2294_v4, %v2298_v3  ;;  %v14542_v12 = vcombine.high %v2295_v8, %v2299_v11  ;;  %v2330_v4 = vld [vmem:[%s16919_s27 + $0x470] sm:$0xff] }
 0x489   : > { %12940 = vmatprep.subr.bf16.mxu1 %v14510_v0  ;;  %v2302_v0 = vld [vmem:[%s16919_s27 + $0x390] sm:$0xff] }
 0x48a   : > { %v14547_v43 = vcombine.low %v2302_v0, %v2306_v41 }
 0x48b   : > { %12449 = vmatpush1.bf16.msra.mxu0 %v14507_v31  ;;  %v14541_v31 = vcombine.low %v2295_v8, %v2299_v11  ;;  %v2327_v8 = vld [vmem:[%s16919_s27 + $0x458] sm:$0xff] }
 0x48c   : > { %12941 = vmatpush1.bf16.msra.mxu1 %v14509_v58  ;;  %12450 = vmatprep.subr.bf16.mxu0 %v14516_v35  ;;  %v14548_v58 = vcombine.high %v2302_v0, %v2306_v41  ;;  %v14550_v35 = vcombine.high %v2303_v23, %v2307_v44  ;;  %v2331_v11 = vld [vmem:[%s16919_s27 + $0x478] sm:$0xff] }
 0x48d   : > { %12942 = vmatprep.subr.bf16.mxu1 %v14518_v37  ;;  %v2310_v37 = vld [vmem:[%s16919_s27 + $0x3d0] sm:$0xff]  ;;  %v14574_v0 = vcombine.high %v2327_v8, %v2331_v11  ;;  %v2335_v41 = vld [vmem:[%s16919_s27 + $0x498] sm:$0xff] }
 0x48e   : > { %v14555_v22 = vcombine.low %v2310_v37, %v2314_v7 }
 0x48f   : > { %12451 = vmatpush1.bf16.msra.mxu0 %v14515_v33  ;;  %v14549_v33 = vcombine.low %v2303_v23, %v2307_v44  ;;  %v2339_v23 = vld [vmem:[%s16919_s27 + $0x4b8] sm:$0xff] }
 0x490   : > { %12943 = vmatpush1.bf16.msra.mxu1 %v14517_v46  ;;  %12452 = vmatprep.subr.bf16.mxu0 %v14524_v14  ;;  %v14556_v46 = vcombine.high %v2310_v37, %v2314_v7  ;;  %v14558_v14 = vcombine.high %v2311_v39, %v2315_v42  ;;  %v2346_v37 = vld [vmem:[%s16919_s27 + $0x4f0] sm:$0xff]  ;;  %v2343_v7 = vld [vmem:[%s16919_s27 + $0x4d8] sm:$0xff] }
 0x491   : > { %12944 = vmatprep.subr.bf16.mxu1 %v14526_v48  ;;  %v2318_v48 = vld [vmem:[%s16919_s27 + $0x410] sm:$0xff] }
 0x492   : > { %v14563_v3 = vcombine.low %v2318_v48, %v2322_v10 }
 0x493   : > { %12453 = vmatpush1.bf16.msra.mxu0 %v14523_v53  ;;  %v14557_v53 = vcombine.low %v2311_v39, %v2315_v42  ;;  %v14581_v42 = vcombine.low %v2335_v41, %v2339_v23 }
 0x494   : > { %12945 = vmatpush1.bf16.msra.mxu1 %v14525_v20  ;;  %12454 = vmatprep.subr.bf16.mxu0 %v14532_v59  ;;  %v14564_v20 = vcombine.high %v2318_v48, %v2322_v10  ;;  %v14566_v59 = vcombine.high %v2319_v38, %v2323_v19  ;;  %v2355_v48 = vld [vmem:[%s16919_s27 + $0x538] sm:$0xff] }
 0x495   : > { %12946 = vmatprep.subr.bf16.mxu1 %v14534_v49  ;;  %v2326_v49 = vld [vmem:[%s16919_s27 + $0x450] sm:$0xff] }
 0x496   : > { %v14571_v44 = vcombine.low %v2326_v49, %v2330_v4 }
 0x497   : > { %12455 = vmatpush1.bf16.msra.mxu0 %v14531_v61  ;;  %v14565_v61 = vcombine.low %v2319_v38, %v2323_v19 }
 0x498   : > { %12947 = vmatpush1.bf16.msra.mxu1 %v14533_v16  ;;  %12456 = vmatprep.subr.bf16.mxu0 %v14540_v15  ;;  %v14572_v16 = vcombine.high %v2326_v49, %v2330_v4  ;;  %v2334_v15 = vld [vmem:[%s16919_s27 + $0x490] sm:$0xff]  ;;  %v2363_v49 = vld [vmem:[%s16919_s27 + $0x578] sm:$0xff] }
 0x499   : > { %12948 = vmatprep.subr.bf16.mxu1 %v14542_v12  ;;  %v2338_v12 = vld [vmem:[%s16919_s27 + $0x4b0] sm:$0xff] }
 0x49a   : > { %v14579_v39 = vcombine.low %v2334_v15, %v2338_v12 }
 0x49b   : > { %12457 = vmatpush1.bf16.msra.mxu0 %v14539_v26  ;;  %v14573_v26 = vcombine.low %v2327_v8, %v2331_v11 }
 0x49c   : > { %12949 = vmatpush1.bf16.msra.mxu1 %v14541_v31  ;;  %12458 = vmatprep.subr.bf16.mxu0 %v14548_v58  ;;  %v14580_v31 = vcombine.high %v2334_v15, %v2338_v12  ;;  %v14582_v58 = vcombine.high %v2335_v41, %v2339_v23  ;;  %v2367_v15 = vld [vmem:[%s16919_s27 + $0x598] sm:$0xff] }
 0x49d   : > { %12950 = vmatprep.subr.bf16.mxu1 %v14550_v35  ;;  %v2342_v35 = vld [vmem:[%s16919_s27 + $0x4d0] sm:$0xff]  ;;  %v2371_v12 = vld [vmem:[%s16919_s27 + $0x5b8] sm:$0xff] }
 0x49e   : > { %v14587_v10 = vcombine.low %v2342_v35, %v2346_v37 }
 0x49f   : > { %12459 = vmatpush1.bf16.msra.mxu0 %v14547_v43  ;;  %v14588_v43 = vcombine.high %v2342_v35, %v2346_v37  ;;  %v2379_v35 = vld [vmem:[%s16919_s27 + $0x5f8] sm:$0xff] }
 0x4a0   : > { %12951 = vmatpush1.bf16.msra.mxu1 %v14549_v33  ;;  %12460 = vmatprep.subr.bf16.mxu0 %v14556_v46  ;;  %v2350_v33 = vld [vmem:[%s16919_s27 + $0x510] sm:$0xff] }
 0x4a1   : > { %12952 = vmatprep.subr.bf16.mxu1 %v14558_v14  ;;  %v2354_v46 = vld [vmem:[%s16919_s27 + $0x530] sm:$0xff]  ;;  %v2351_v14 = vld [vmem:[%s16919_s27 + $0x518] sm:$0xff] }
 0x4a2   : > { %v14596_v19 = vcombine.high %v2350_v33, %v2354_v46  ;;  %v14595_v4 = vcombine.low %v2350_v33, %v2354_v46  ;;  %v2387_v33 = vld [vmem:[%s16919_s27 + $0x638] sm:$0xff] }
 0x4a3   : > { %12461 = vmatpush1.bf16.msra.mxu0 %v14555_v22  ;;  %v14598_v22 = vcombine.high %v2351_v14, %v2355_v48 }
 0x4a4   : > { %12953 = vmatpush1.bf16.msra.mxu1 %v14557_v53  ;;  %12471 = vmatprep.subr.bf16.mxu0 %v14564_v20  ;;  %v2358_v53 = vld [vmem:[%s16919_s27 + $0x550] sm:$0xff] }
 0x4a5   : > { %12963 = vmatprep.subr.bf16.mxu1 %v14566_v59  ;;  %v2362_v20 = vld [vmem:[%s16919_s27 + $0x570] sm:$0xff]  ;;  %v2359_v59 = vld [vmem:[%s16919_s27 + $0x558] sm:$0xff] }
 0x4a6   : > { %12463 = vmatmul.mubr.bf16.vlgmr.msra.gmra.mrb[28].mxu0 %v17058_v50  ;;  %v14604_v8 = vcombine.high %v2358_v53, %v2362_v20  ;;  %v14606_v11 = vcombine.high %v2359_v59, %v2363_v49  ;;  %v14605_v41 = vcombine.low %v2359_v59, %v2363_v49 }
 0x4a7   : > { %12955 = vmatmul.mubr.bf16.vlgmr.msra.gmra.mrb[28].mxu1 %v17058_v50  ;;  %12472 = vmatpush1.bf16.msra.mxu0 %v14563_v3  ;;  %v2347_v50 = vld [vmem:[%s16919_s27 + $0x4f8] sm:$0xff]  ;;  %v14597_v3 = vcombine.low %v2351_v14, %v2355_v48 }
 0x4a8   : > { %12503 = vmatprep.mubr.bf16.mxu0 %v17062_v55  ;;  %12964 = vmatpush1.bf16.msra.mxu1 %v14565_v61  ;;  %v14589_v38 = vcombine.low %v2343_v7, %v2347_v50  ;;  %v2366_v61 = vld [vmem:[%s16919_s27 + $0x590] sm:$0xff] }
 0x4a9   : > { %12995 = vmatprep.mubr.bf16.mxu1 %v17062_v55  ;;  %12473 = vmatprep.subr.bf16.mxu0 %v14572_v16  ;;  %v14590_v55 = vcombine.high %v2343_v7, %v2347_v50  ;;  %v2370_v16 = vld [vmem:[%s16919_s27 + $0x5b0] sm:$0xff]  ;;  %v14613_v7 = vcombine.low %v2367_v15, %v2371_v12 }
 0x4aa   : > { %12965 = vmatprep.subr.bf16.mxu1 %v14574_v0  ;;  %v14603_v0 = vcombine.low %v2358_v53, %v2362_v20  ;;  %v14612_v23 = vcombine.high %v2366_v61, %v2370_v16  ;;  %v14611_v37 = vcombine.low %v2366_v61, %v2370_v16  ;;  %v2395_v53 = vld [vmem:[%s16919_s27 + $0x678] sm:$0xff] }
 0x4ab   : > { %12474 = vmatpush1.bf16.msra.mxu0 %v14571_v44  ;;  %v14614_v44 = vcombine.high %v2367_v15, %v2371_v12  ;;  %v2403_v61 = vld [vmem:[%s16919_s27 + $0x6b8] sm:$0xff] }
 0x4ac   : > { %12966 = vmatpush1.bf16.msra.mxu1 %v14573_v26  ;;  %12475 = vmatprep.subr.bf16.mxu0 %v14580_v31  ;;  %v2374_v26 = vld [vmem:[%s16919_s27 + $0x5d0] sm:$0xff] }
 0x4ad   : > { %12967 = vmatprep.subr.bf16.mxu1 %v14582_v58  ;;  %v2378_v31 = vld [vmem:[%s16919_s27 + $0x5f0] sm:$0xff]  ;;  %v2375_v58 = vld [vmem:[%s16919_s27 + $0x5d8] sm:$0xff] }
 0x4ae   : > { %v14620_v50 = vcombine.high %v2374_v26, %v2378_v31  ;;  %v14619_v46 = vcombine.low %v2374_v26, %v2378_v31  ;;  %v14621_v14 = vcombine.low %v2375_v58, %v2379_v35  ;;  %v2411_v26 = vld [vmem:[%s16919_s27 + $0x6f8] sm:$0xff] }
 0x4af   : > { %12476 = vmatpush1.bf16.msra.mxu0 %v14579_v39  ;;  %v14622_v39 = vcombine.high %v2375_v58, %v2379_v35 }
 0x4b0   : > { %12968 = vmatpush1.bf16.msra.mxu1 %v14581_v42  ;;  %12477 = vmatprep.subr.bf16.mxu0 %v14588_v43  ;;  %v2382_v42 = vld [vmem:[%s16919_s27 + $0x610] sm:$0xff] }
 0x4b1   : > { %12969 = vmatprep.subr.bf16.mxu1 %v14590_v55  ;;  %v2386_v43 = vld [vmem:[%s16919_s27 + $0x630] sm:$0xff]  ;;  %v2383_v55 = vld [vmem:[%s16919_s27 + $0x618] sm:$0xff] }
 0x4b2   : > { %v14628_v48 = vcombine.high %v2382_v42, %v2386_v43  ;;  %v14627_v20 = vcombine.low %v2382_v42, %v2386_v43  ;;  %v14629_v59 = vcombine.low %v2383_v55, %v2387_v33  ;;  %v2419_v42 = vld [vmem:[%s16919_s27 + $0x738] sm:$0xff] }
 0x4b3   : > { %12478 = vmatpush1.bf16.msra.mxu0 %v14587_v10  ;;  %v14630_v10 = vcombine.high %v2383_v55, %v2387_v33 }
 0x4b4   : > { %12970 = vmatpush1.bf16.msra.mxu1 %v14589_v38  ;;  %12479 = vmatprep.subr.bf16.mxu0 %v14596_v19  ;;  %v2390_v38 = vld [vmem:[%s16919_s27 + $0x650] sm:$0xff] }
 0x4b5   : > { %12971 = vmatprep.subr.bf16.mxu1 %v14598_v22  ;;  %v2394_v19 = vld [vmem:[%s16919_s27 + $0x670] sm:$0xff]  ;;  %v2391_v22 = vld [vmem:[%s16919_s27 + $0x658] sm:$0xff] }
 0x4b6   : > { %v14636_v49 = vcombine.high %v2390_v38, %v2394_v19  ;;  %v14635_v16 = vcombine.low %v2390_v38, %v2394_v19  ;;  %v14637_v15 = vcombine.low %v2391_v22, %v2395_v53  ;;  %v2427_v38 = vld [vmem:[%s16919_s27 + $0x778] sm:$0xff] }
 0x4b7   : > { %12480 = vmatpush1.bf16.msra.mxu0 %v14595_v4  ;;  %v14638_v4 = vcombine.high %v2391_v22, %v2395_v53 }
 0x4b8   : > { %12972 = vmatpush1.bf16.msra.mxu1 %v14597_v3  ;;  %12481 = vmatprep.subr.bf16.mxu0 %v14604_v8  ;;  %v2398_v3 = vld [vmem:[%s16919_s27 + $0x690] sm:$0xff] }
 0x4b9   : > { %12973 = vmatprep.subr.bf16.mxu1 %v14606_v11  ;;  %v2402_v8 = vld [vmem:[%s16919_s27 + $0x6b0] sm:$0xff]  ;;  %v2399_v11 = vld [vmem:[%s16919_s27 + $0x698] sm:$0xff] }
 0x4ba   : > { %v14644_v12 = vcombine.high %v2398_v3, %v2402_v8  ;;  %v14643_v31 = vcombine.low %v2398_v3, %v2402_v8  ;;  %v14645_v58 = vcombine.low %v2399_v11, %v2403_v61  ;;  %v2435_v3 = vld [vmem:[%s16919_s27 + $0x7b8] sm:$0xff] }
 0x4bb   : > { %12482 = vmatpush1.bf16.msra.mxu0 %v14603_v0  ;;  %v14646_v0 = vcombine.high %v2399_v11, %v2403_v61 }
 0x4bc   : > { %12974 = vmatpush1.bf16.msra.mxu1 %v14605_v41  ;;  %12483 = vmatprep.subr.bf16.mxu0 %v14612_v23  ;;  %v2406_v41 = vld [vmem:[%s16919_s27 + $0x6d0] sm:$0xff] }
 0x4bd   : > { %12975 = vmatprep.subr.bf16.mxu1 %v14614_v44  ;;  %v2410_v23 = vld [vmem:[%s16919_s27 + $0x6f0] sm:$0xff]  ;;  %v2407_v44 = vld [vmem:[%s16919_s27 + $0x6d8] sm:$0xff] }
 0x4be   : > { %v14652_v35 = vcombine.high %v2406_v41, %v2410_v23  ;;  %v14651_v43 = vcombine.low %v2406_v41, %v2410_v23  ;;  %v14653_v55 = vcombine.low %v2407_v44, %v2411_v26  ;;  %v2443_v41 = vld [vmem:[%s16919_s27 + $0x7f8] sm:$0xff] }
 0x4bf   : > { %12484 = vmatpush1.bf16.msra.mxu0 %v14611_v37  ;;  %v14654_v37 = vcombine.high %v2407_v44, %v2411_v26 }
 0x4c0   : > { %12976 = vmatpush1.bf16.msra.mxu1 %v14613_v7  ;;  %12485 = vmatprep.subr.bf16.mxu0 %v14620_v50  ;;  %v2414_v7 = vld [vmem:[%s16919_s27 + $0x710] sm:$0xff] }
 0x4c1   : > { %12977 = vmatprep.subr.bf16.mxu1 %v14622_v39  ;;  %v2418_v50 = vld [vmem:[%s16919_s27 + $0x730] sm:$0xff]  ;;  %v2415_v39 = vld [vmem:[%s16919_s27 + $0x718] sm:$0xff] }
 0x4c2   : > { %v14660_v33 = vcombine.high %v2414_v7, %v2418_v50  ;;  %v14659_v19 = vcombine.low %v2414_v7, %v2418_v50  ;;  %v14661_v22 = vcombine.low %v2415_v39, %v2419_v42  ;;  %v2451_v7 = vld [vmem:[%s16919_s27 + $0x838] sm:$0xff] }
 0x4c3   : > { %12486 = vmatpush1.bf16.msra.mxu0 %v14619_v46  ;;  %v14662_v46 = vcombine.high %v2415_v39, %v2419_v42 }
 0x4c4   : > { %12978 = vmatpush1.bf16.msra.mxu1 %v14621_v14  ;;  %12487 = vmatprep.subr.bf16.mxu0 %v14628_v48  ;;  %v2422_v14 = vld [vmem:[%s16919_s27 + $0x750] sm:$0xff] }
 0x4c5   : > { %12979 = vmatprep.subr.bf16.mxu1 %v14630_v10  ;;  %v2426_v48 = vld [vmem:[%s16919_s27 + $0x770] sm:$0xff]  ;;  %v2423_v10 = vld [vmem:[%s16919_s27 + $0x758] sm:$0xff] }
 0x4c6   : > { %v14668_v53 = vcombine.high %v2422_v14, %v2426_v48  ;;  %v14667_v8 = vcombine.low %v2422_v14, %v2426_v48  ;;  %v14669_v11 = vcombine.low %v2423_v10, %v2427_v38  ;;  %v2455_v14 = vld [vmem:[%s16919_s27 + $0x858] sm:$0xff] }
 0x4c7   : > { %12488 = vmatpush1.bf16.msra.mxu0 %v14627_v20  ;;  %v14670_v20 = vcombine.high %v2423_v10, %v2427_v38  ;;  %v2459_v48 = vld [vmem:[%s16919_s27 + $0x878] sm:$0xff] }
 0x4c8   : > { %12980 = vmatpush1.bf16.msra.mxu1 %v14629_v59  ;;  %12489 = vmatprep.subr.bf16.mxu0 %v14636_v49  ;;  %v2430_v59 = vld [vmem:[%s16919_s27 + $0x790] sm:$0xff] }
 0x4c9   : > { %12981 = vmatprep.subr.bf16.mxu1 %v14638_v4  ;;  %v2434_v49 = vld [vmem:[%s16919_s27 + $0x7b0] sm:$0xff]  ;;  %v2431_v4 = vld [vmem:[%s16919_s27 + $0x798] sm:$0xff] }
 0x4ca   : > { %v14676_v61 = vcombine.high %v2430_v59, %v2434_v49  ;;  %v14675_v23 = vcombine.low %v2430_v59, %v2434_v49  ;;  %v14677_v44 = vcombine.low %v2431_v4, %v2435_v3  ;;  %v2467_v59 = vld [vmem:[%s16919_s27 + $0x8b8] sm:$0xff] }
 0x4cb   : > { %12490 = vmatpush1.bf16.msra.mxu0 %v14635_v16  ;;  %v14678_v16 = vcombine.high %v2431_v4, %v2435_v3  ;;  %v14701_v4 = vcombine.low %v2455_v14, %v2459_v48 }
 0x4cc   : > { %12982 = vmatpush1.bf16.msra.mxu1 %v14637_v15  ;;  %12491 = vmatprep.subr.bf16.mxu0 %v14644_v12  ;;  %v2438_v15 = vld [vmem:[%s16919_s27 + $0x7d0] sm:$0xff] }
 0x4cd   : > { %12983 = vmatprep.subr.bf16.mxu1 %v14646_v0  ;;  %v2442_v12 = vld [vmem:[%s16919_s27 + $0x7f0] sm:$0xff]  ;;  %v2439_v0 = vld [vmem:[%s16919_s27 + $0x7d8] sm:$0xff] }
 0x4ce   : > { %v14684_v26 = vcombine.high %v2438_v15, %v2442_v12  ;;  %v14683_v50 = vcombine.low %v2438_v15, %v2442_v12  ;;  %v14685_v39 = vcombine.low %v2439_v0, %v2443_v41 }
 0x4cf   : > { %12492 = vmatpush1.bf16.msra.mxu0 %v14643_v31  ;;  %v14686_v31 = vcombine.high %v2439_v0, %v2443_v41  ;;  %v2478_v41 = vld [vmem:[%s16919_s27 + $0x910] sm:$0xff] }
 0x4d0   : > { %12984 = vmatpush1.bf16.msra.mxu1 %v14645_v58  ;;  %12493 = vmatprep.subr.bf16.mxu0 %v14652_v35  ;;  %v2446_v58 = vld [vmem:[%s16919_s27 + $0x810] sm:$0xff] }
 0x4d1   : > { %12985 = vmatprep.subr.bf16.mxu1 %v14654_v37  ;;  %v2450_v35 = vld [vmem:[%s16919_s27 + $0x830] sm:$0xff]  ;;  %v2447_v37 = vld [vmem:[%s16919_s27 + $0x818] sm:$0xff] }
 0x4d2   : > { %v14692_v42 = vcombine.high %v2446_v58, %v2450_v35  ;;  %v14693_v10 = vcombine.low %v2447_v37, %v2451_v7 }
 0x4d3   : > { %12494 = vmatpush1.bf16.msra.mxu0 %v14651_v43  ;;  %v14694_v43 = vcombine.high %v2447_v37, %v2451_v7  ;;  %v2486_v7 = vld [vmem:[%s16919_s27 + $0x950] sm:$0xff] }
 0x4d4   : > { %12986 = vmatpush1.bf16.msra.mxu1 %v14653_v55  ;;  %12495 = vmatprep.subr.bf16.mxu0 %v14660_v33  ;;  %v2454_v55 = vld [vmem:[%s16919_s27 + $0x850] sm:$0xff] }
 0x4d5   : > { %12987 = vmatprep.subr.bf16.mxu1 %v14662_v46  ;;  %v2458_v33 = vld [vmem:[%s16919_s27 + $0x870] sm:$0xff]  ;;  %v14691_v46 = vcombine.low %v2446_v58, %v2450_v35 }
 0x4d6   : > { %v14700_v38 = vcombine.high %v2454_v55, %v2458_v33  ;;  %v14699_v49 = vcombine.low %v2454_v55, %v2458_v33 }
 0x4d7   : > { %12496 = vmatpush1.bf16.msra.mxu0 %v14659_v19  ;;  %v2462_v19 = vld [vmem:[%s16919_s27 + $0x890] sm:$0xff] }
 0x4d8   : > { %12988 = vmatpush1.bf16.msra.mxu1 %v14661_v22  ;;  %12497 = vmatprep.subr.bf16.mxu0 %v14668_v53  ;;  %v2466_v22 = vld [vmem:[%s16919_s27 + $0x8b0] sm:$0xff]  ;;  %v14702_v53 = vcombine.high %v2455_v14, %v2459_v48 }
 0x4d9   : > { %12989 = vmatprep.subr.bf16.mxu1 %v14670_v20  ;;  %v2463_v20 = vld [vmem:[%s16919_s27 + $0x898] sm:$0xff]  ;;  %v14708_v3 = vcombine.high %v2462_v19, %v2466_v22  ;;  %v14707_v15 = vcombine.low %v2462_v19, %v2466_v22  ;;  %v2494_v14 = vld [vmem:[%s16919_s27 + $0x990] sm:$0xff] }
 0x4da   : > { %v14709_v12 = vcombine.low %v2463_v20, %v2467_v59  ;;  %v2498_v48 = vld [vmem:[%s16919_s27 + $0x9b0] sm:$0xff] }
 0x4db   : > { %12498 = vmatpush1.bf16.msra.mxu0 %v14667_v8  ;;  %v14710_v8 = vcombine.high %v2463_v20, %v2467_v59  ;;  %v2502_v59 = vld [vmem:[%s16919_s27 + $0x9d0] sm:$0xff] }
 0x4dc   : > { %12990 = vmatpush1.bf16.msra.mxu1 %v14669_v11  ;;  %12499 = vmatprep.subr.bf16.mxu0 %v14676_v61  ;;  %v2470_v11 = vld [vmem:[%s16919_s27 + $0x8d0] sm:$0xff] }
 0x4dd   : > { %12991 = vmatprep.subr.bf16.mxu1 %v14678_v16  ;;  %v2474_v61 = vld [vmem:[%s16919_s27 + $0x8f0] sm:$0xff]  ;;  %v2471_v16 = vld [vmem:[%s16919_s27 + $0x8d8] sm:$0xff] }
 0x4de   : > { %v14716_v0 = vcombine.high %v2470_v11, %v2474_v61 }
 0x4df   : > { %12500 = vmatpush1.bf16.msra.mxu0 %v14675_v23  ;;  %v2482_v23 = vld [vmem:[%s16919_s27 + $0x930] sm:$0xff] }
 0x4e0   : > { %12992 = vmatpush1.bf16.msra.mxu1 %v14677_v44  ;;  %12501 = vmatprep.subr.bf16.mxu0 %v14684_v26  ;;  %v2479_v44 = vld [vmem:[%s16919_s27 + $0x918] sm:$0xff]  ;;  %v14724_v35 = vcombine.high %v2478_v41, %v2482_v23 }
 0x4e1   : > { %12993 = vmatprep.subr.bf16.mxu1 %v14686_v31  ;;  %v2483_v26 = vld [vmem:[%s16919_s27 + $0x938] sm:$0xff]  ;;  %v14715_v31 = vcombine.low %v2470_v11, %v2474_v61 }
 0x4e2   : > { %v14726_v37 = vcombine.high %v2479_v44, %v2483_v26  ;;  %v14725_v55 = vcombine.low %v2479_v44, %v2483_v26  ;;  %v2518_v26 = vld [vmem:[%s16919_s27 + $0xa50] sm:$0xff] }
 0x4e3   : > { %12502 = vmatpush1.bf16.msra.mxu0 %v14683_v50  ;;  %v2490_v50 = vld [vmem:[%s16919_s27 + $0x970] sm:$0xff] }
 0x4e4   : > { %12994 = vmatpush1.bf16.msra.mxu1 %v14685_v39  ;;  %12512 = vmatprep.subr.bf16.mxu0 %v14692_v42  ;;  %v2487_v39 = vld [vmem:[%s16919_s27 + $0x958] sm:$0xff]  ;;  %v14732_v33 = vcombine.high %v2486_v7, %v2490_v50  ;;  %v14731_v19 = vcombine.low %v2486_v7, %v2490_v50 }
 0x4e5   : > { %13004 = vmatprep.subr.bf16.mxu1 %v14694_v43  ;;  %v2491_v42 = vld [vmem:[%s16919_s27 + $0x978] sm:$0xff]  ;;  %v14723_v43 = vcombine.low %v2478_v41, %v2482_v23 }
 0x4e6   : > { %12504 = vmatmul.mubr.bf16.vlgmr.msra.gmra.mrb[28].mxu0 %v17174_v5  ;;  %v14733_v22 = vcombine.low %v2487_v39, %v2491_v42 }
 0x4e7   : > { %12996 = vmatmul.mubr.bf16.vlgmr.msra.gmra.mrb[28].mxu1 %v17174_v5  ;;  %12513 = vmatpush1.bf16.msra.mxu0 %v14691_v46  ;;  %v2475_v5 = vld [vmem:[%s16919_s27 + $0x8f8] sm:$0xff]  ;;  %v14734_v46 = vcombine.high %v2487_v39, %v2491_v42  ;;  %v2526_v42 = vld [vmem:[%s16919_s27 + $0xa90] sm:$0xff] }
 0x4e8   : > { %12544 = vmatprep.mubr.bf16.mxu0 %v17178_v9  ;;  %13005 = vmatpush1.bf16.msra.mxu1 %v14693_v10  ;;  %v14717_v58 = vcombine.low %v2471_v16, %v2475_v5  ;;  %v2495_v10 = vld [vmem:[%s16919_s27 + $0x998] sm:$0xff] }
 0x4e9   : > { %13036 = vmatprep.mubr.bf16.mxu1 %v17178_v9  ;;  %12514 = vmatprep.subr.bf16.mxu0 %v14700_v38  ;;  %v14718_v9 = vcombine.high %v2471_v16, %v2475_v5  ;;  %v2499_v38 = vld [vmem:[%s16919_s27 + $0x9b8] sm:$0xff]  ;;  %v2510_v5 = vld [vmem:[%s16919_s27 + $0xa10] sm:$0xff] }
 0x4ea   : > { %13006 = vmatprep.subr.bf16.mxu1 %v14702_v53  ;;  %v14740_v53 = vcombine.high %v2494_v14, %v2498_v48  ;;  %v14742_v20 = vcombine.high %v2495_v10, %v2499_v38  ;;  %v14741_v11 = vcombine.low %v2495_v10, %v2499_v38  ;;  %v2534_v38 = vld [vmem:[%s16919_s27 + $0xad0] sm:$0xff] }
 0x4eb   : > { %12515 = vmatpush1.bf16.msra.mxu0 %v14699_v49  ;;  %v2506_v49 = vld [vmem:[%s16919_s27 + $0x9f0] sm:$0xff] }
 0x4ec   : > { %13007 = vmatpush1.bf16.msra.mxu1 %v14701_v4  ;;  %12516 = vmatprep.subr.bf16.mxu0 %v14708_v3  ;;  %v2503_v4 = vld [vmem:[%s16919_s27 + $0x9d8] sm:$0xff]  ;;  %v14748_v61 = vcombine.high %v2502_v59, %v2506_v49 }
 0x4ed   : > { %13008 = vmatprep.subr.bf16.mxu1 %v14710_v8  ;;  %v2507_v3 = vld [vmem:[%s16919_s27 + $0x9f8] sm:$0xff]  ;;  %v14739_v8 = vcombine.low %v2494_v14, %v2498_v48 }
 0x4ee   : > { %v14750_v16 = vcombine.high %v2503_v4, %v2507_v3  ;;  %v14749_v41 = vcombine.low %v2503_v4, %v2507_v3  ;;  %v2542_v3 = vld [vmem:[%s16919_s27 + $0xb10] sm:$0xff] }
 0x4ef   : > { %12517 = vmatpush1.bf16.msra.mxu0 %v14707_v15  ;;  %v2514_v15 = vld [vmem:[%s16919_s27 + $0xa30] sm:$0xff] }
 0x4f0   : > { %13009 = vmatpush1.bf16.msra.mxu1 %v14709_v12  ;;  %12518 = vmatprep.subr.bf16.mxu0 %v14716_v0  ;;  %v2511_v12 = vld [vmem:[%s16919_s27 + $0xa18] sm:$0xff]  ;;  %v14756_v23 = vcombine.high %v2510_v5, %v2514_v15 }
 0x4f1   : > { %13010 = vmatprep.subr.bf16.mxu1 %v14718_v9  ;;  %v2515_v0 = vld [vmem:[%s16919_s27 + $0xa38] sm:$0xff]  ;;  %v14747_v9 = vcombine.low %v2502_v59, %v2506_v49 }
 0x4f2   : > { %v14758_v44 = vcombine.high %v2511_v12, %v2515_v0  ;;  %v14757_v7 = vcombine.low %v2511_v12, %v2515_v0  ;;  %v2550_v0 = vld [vmem:[%s16919_s27 + $0xb50] sm:$0xff] }
 0x4f3   : > { %12519 = vmatpush1.bf16.msra.mxu0 %v14715_v31  ;;  %v2522_v31 = vld [vmem:[%s16919_s27 + $0xa70] sm:$0xff] }
 0x4f4   : > { %13011 = vmatpush1.bf16.msra.mxu1 %v14717_v58  ;;  %12520 = vmatprep.subr.bf16.mxu0 %v14724_v35  ;;  %v2519_v58 = vld [vmem:[%s16919_s27 + $0xa58] sm:$0xff]  ;;  %v14764_v50 = vcombine.high %v2518_v26, %v2522_v31 }
 0x4f5   : > { %13012 = vmatprep.subr.bf16.mxu1 %v14726_v37  ;;  %v2523_v35 = vld [vmem:[%s16919_s27 + $0xa78] sm:$0xff]  ;;  %v14755_v37 = vcombine.low %v2510_v5, %v2514_v15 }
 0x4f6   : > { %v14766_v39 = vcombine.high %v2519_v58, %v2523_v35  ;;  %v14765_v14 = vcombine.low %v2519_v58, %v2523_v35  ;;  %v2558_v35 = vld [vmem:[%s16919_s27 + $0xb90] sm:$0xff] }
 0x4f7   : > { %12521 = vmatpush1.bf16.msra.mxu0 %v14723_v43  ;;  %v2530_v43 = vld [vmem:[%s16919_s27 + $0xab0] sm:$0xff] }
 0x4f8   : > { %13013 = vmatpush1.bf16.msra.mxu1 %v14725_v55  ;;  %12522 = vmatprep.subr.bf16.mxu0 %v14732_v33  ;;  %v2527_v55 = vld [vmem:[%s16919_s27 + $0xa98] sm:$0xff]  ;;  %v14772_v48 = vcombine.high %v2526_v42, %v2530_v43 }
 0x4f9   : > { %13014 = vmatprep.subr.bf16.mxu1 %v14734_v46  ;;  %v2531_v33 = vld [vmem:[%s16919_s27 + $0xab8] sm:$0xff]  ;;  %v14763_v46 = vcombine.low %v2518_v26, %v2522_v31 }
 0x4fa   : > { %v14774_v10 = vcombine.high %v2527_v55, %v2531_v33  ;;  %v14773_v59 = vcombine.low %v2527_v55, %v2531_v33  ;;  %v2566_v33 = vld [vmem:[%s16919_s27 + $0xbd0] sm:$0xff] }
 0x4fb   : > { %12523 = vmatpush1.bf16.msra.mxu0 %v14731_v19  ;;  %v2538_v19 = vld [vmem:[%s16919_s27 + $0xaf0] sm:$0xff] }
 0x4fc   : > { %13015 = vmatpush1.bf16.msra.mxu1 %v14733_v22  ;;  %12524 = vmatprep.subr.bf16.mxu0 %v14740_v53  ;;  %v2535_v22 = vld [vmem:[%s16919_s27 + $0xad8] sm:$0xff]  ;;  %v14780_v49 = vcombine.high %v2534_v38, %v2538_v19 }
 0x4fd   : > { %13016 = vmatprep.subr.bf16.mxu1 %v14742_v20  ;;  %v2539_v53 = vld [vmem:[%s16919_s27 + $0xaf8] sm:$0xff]  ;;  %v14771_v20 = vcombine.low %v2526_v42, %v2530_v43 }
 0x4fe   : > { %v14782_v4 = vcombine.high %v2535_v22, %v2539_v53  ;;  %v14781_v5 = vcombine.low %v2535_v22, %v2539_v53  ;;  %v2574_v53 = vld [vmem:[%s16919_s27 + $0xc10] sm:$0xff] }
 0x4ff   : > { %12525 = vmatpush1.bf16.msra.mxu0 %v14739_v8  ;;  %v2546_v8 = vld [vmem:[%s16919_s27 + $0xb30] sm:$0xff] }
 0x500   : > { %13017 = vmatpush1.bf16.msra.mxu1 %v14741_v11  ;;  %12526 = vmatprep.subr.bf16.mxu0 %v14748_v61  ;;  %v2543_v11 = vld [vmem:[%s16919_s27 + $0xb18] sm:$0xff]  ;;  %v14788_v15 = vcombine.high %v2542_v3, %v2546_v8 }
 0x501   : > { %13018 = vmatprep.subr.bf16.mxu1 %v14750_v16  ;;  %v2547_v61 = vld [vmem:[%s16919_s27 + $0xb38] sm:$0xff]  ;;  %v14779_v16 = vcombine.low %v2534_v38, %v2538_v19 }
 0x502   : > { %v14790_v12 = vcombine.high %v2543_v11, %v2547_v61  ;;  %v14789_v26 = vcombine.low %v2543_v11, %v2547_v61  ;;  %v2582_v61 = vld [vmem:[%s16919_s27 + $0xc50] sm:$0xff] }
 0x503   : > { %12527 = vmatpush1.bf16.msra.mxu0 %v14747_v9  ;;  %v2554_v9 = vld [vmem:[%s16919_s27 + $0xb70] sm:$0xff] }
 0x504   : > { %13019 = vmatpush1.bf16.msra.mxu1 %v14749_v41  ;;  %12528 = vmatprep.subr.bf16.mxu0 %v14756_v23  ;;  %v2551_v41 = vld [vmem:[%s16919_s27 + $0xb58] sm:$0xff]  ;;  %v14796_v31 = vcombine.high %v2550_v0, %v2554_v9 }
 0x505   : > { %13020 = vmatprep.subr.bf16.mxu1 %v14758_v44  ;;  %v2555_v23 = vld [vmem:[%s16919_s27 + $0xb78] sm:$0xff]  ;;  %v14787_v44 = vcombine.low %v2542_v3, %v2546_v8 }
 0x506   : > { %v14798_v58 = vcombine.high %v2551_v41, %v2555_v23  ;;  %v14797_v42 = vcombine.low %v2551_v41, %v2555_v23  ;;  %v2590_v41 = vld [vmem:[%s16919_s27 + $0xc90] sm:$0xff] }
 0x507   : > { %12529 = vmatpush1.bf16.msra.mxu0 %v14755_v37  ;;  %v2562_v37 = vld [vmem:[%s16919_s27 + $0xbb0] sm:$0xff] }
 0x508   : > { %13021 = vmatpush1.bf16.msra.mxu1 %v14757_v7  ;;  %12530 = vmatprep.subr.bf16.mxu0 %v14764_v50  ;;  %v2559_v7 = vld [vmem:[%s16919_s27 + $0xb98] sm:$0xff]  ;;  %v14804_v43 = vcombine.high %v2558_v35, %v2562_v37  ;;  %v2594_v23 = vld [vmem:[%s16919_s27 + $0xcb0] sm:$0xff] }
 0x509   : > { %13022 = vmatprep.subr.bf16.mxu1 %v14766_v39  ;;  %v2563_v50 = vld [vmem:[%s16919_s27 + $0xbb8] sm:$0xff]  ;;  %v14795_v39 = vcombine.low %v2550_v0, %v2554_v9 }
 0x50a   : > { %v14806_v55 = vcombine.high %v2559_v7, %v2563_v50  ;;  %v14805_v38 = vcombine.low %v2559_v7, %v2563_v50  ;;  %v2598_v50 = vld [vmem:[%s16919_s27 + $0xcd0] sm:$0xff] }
 0x50b   : > { %12531 = vmatpush1.bf16.msra.mxu0 %v14763_v46  ;;  %v2570_v46 = vld [vmem:[%s16919_s27 + $0xbf0] sm:$0xff] }
 0x50c   : > { %13023 = vmatpush1.bf16.msra.mxu1 %v14765_v14  ;;  %12532 = vmatprep.subr.bf16.mxu0 %v14772_v48  ;;  %v2567_v14 = vld [vmem:[%s16919_s27 + $0xbd8] sm:$0xff]  ;;  %v14812_v19 = vcombine.high %v2566_v33, %v2570_v46 }
 0x50d   : > { %13024 = vmatprep.subr.bf16.mxu1 %v14774_v10  ;;  %v2571_v48 = vld [vmem:[%s16919_s27 + $0xbf8] sm:$0xff]  ;;  %v14803_v10 = vcombine.low %v2558_v35, %v2562_v37  ;;  %v14836_v37 = vcombine.high %v2590_v41, %v2594_v23 }
 0x50e   : > { %v14814_v22 = vcombine.high %v2567_v14, %v2571_v48  ;;  %v14813_v3 = vcombine.low %v2567_v14, %v2571_v48  ;;  %v2610_v14 = vld [vmem:[%s16919_s27 + $0xd30] sm:$0xff]  ;;  %v2607_v48 = vld [vmem:[%s16919_s27 + $0xd18] sm:$0xff] }
 0x50f   : > { %12533 = vmatpush1.bf16.msra.mxu0 %v14771_v20  ;;  %v2578_v20 = vld [vmem:[%s16919_s27 + $0xc30] sm:$0xff] }
 0x510   : > { %13025 = vmatpush1.bf16.msra.mxu1 %v14773_v59  ;;  %12534 = vmatprep.subr.bf16.mxu0 %v14780_v49  ;;  %v2575_v59 = vld [vmem:[%s16919_s27 + $0xc18] sm:$0xff]  ;;  %v14820_v8 = vcombine.high %v2574_v53, %v2578_v20 }
 0x511   : > { %13026 = vmatprep.subr.bf16.mxu1 %v14782_v4  ;;  %v2579_v49 = vld [vmem:[%s16919_s27 + $0xc38] sm:$0xff]  ;;  %v14811_v4 = vcombine.low %v2566_v33, %v2570_v46  ;;  %v2606_v46 = vld [vmem:[%s16919_s27 + $0xd10] sm:$0xff] }
 0x512   : > { %v14822_v11 = vcombine.high %v2575_v59, %v2579_v49  ;;  %v14821_v0 = vcombine.low %v2575_v59, %v2579_v49  ;;  %v2618_v59 = vld [vmem:[%s16919_s27 + $0xd70] sm:$0xff]  ;;  %v2615_v49 = vld [vmem:[%s16919_s27 + $0xd58] sm:$0xff] }
 0x513   : > { %12535 = vmatpush1.bf16.msra.mxu0 %v14779_v16  ;;  %v2586_v16 = vld [vmem:[%s16919_s27 + $0xc70] sm:$0xff] }
 0x514   : > { %13027 = vmatpush1.bf16.msra.mxu1 %v14781_v5  ;;  %12536 = vmatprep.subr.bf16.mxu0 %v14788_v15  ;;  %v14819_v5 = vcombine.low %v2574_v53, %v2578_v20  ;;  %v2583_v15 = vld [vmem:[%s16919_s27 + $0xc58] sm:$0xff]  ;;  %v14828_v9 = vcombine.high %v2582_v61, %v2586_v16  ;;  %v2614_v20 = vld [vmem:[%s16919_s27 + $0xd50] sm:$0xff] }
 0x515   : > { %13028 = vmatprep.subr.bf16.mxu1 %v14790_v12  ;;  %v2587_v12 = vld [vmem:[%s16919_s27 + $0xc78] sm:$0xff] }
 0x516   : > { %v14829_v35 = vcombine.low %v2583_v15, %v2587_v12 }
 0x517   : > { %12537 = vmatpush1.bf16.msra.mxu0 %v14787_v44  ;;  %v14830_v44 = vcombine.high %v2583_v15, %v2587_v12  ;;  %v2623_v15 = vld [vmem:[%s16919_s27 + $0xd98] sm:$0xff] }
 0x518   : > { %13029 = vmatpush1.bf16.msra.mxu1 %v14789_v26  ;;  %12538 = vmatprep.subr.bf16.mxu0 %v14796_v31  ;;  %v2591_v26 = vld [vmem:[%s16919_s27 + $0xc98] sm:$0xff] }
 0x519   : > { %13030 = vmatprep.subr.bf16.mxu1 %v14798_v58  ;;  %v2595_v31 = vld [vmem:[%s16919_s27 + $0xcb8] sm:$0xff]  ;;  %v14827_v58 = vcombine.low %v2582_v61, %v2586_v16  ;;  %v2622_v16 = vld [vmem:[%s16919_s27 + $0xd90] sm:$0xff] }
 0x51a   : > { %v14838_v7 = vcombine.high %v2591_v26, %v2595_v31  ;;  %v2627_v12 = vld [vmem:[%s16919_s27 + $0xdb8] sm:$0xff] }
 0x51b   : > { %12539 = vmatpush1.bf16.msra.mxu0 %v14795_v39  ;;  %v2602_v39 = vld [vmem:[%s16919_s27 + $0xcf0] sm:$0xff] }
 0x51c   : > { %13031 = vmatpush1.bf16.msra.mxu1 %v14797_v42  ;;  %12540 = vmatprep.subr.bf16.mxu0 %v14804_v43  ;;  %v2599_v42 = vld [vmem:[%s16919_s27 + $0xcd8] sm:$0xff]  ;;  %v14835_v43 = vcombine.low %v2590_v41, %v2594_v23  ;;  %v14844_v33 = vcombine.high %v2598_v50, %v2602_v39 }
 0x51d   : > { %13032 = vmatprep.subr.bf16.mxu1 %v14806_v55  ;;  %v14837_v55 = vcombine.low %v2591_v26, %v2595_v31  ;;  %v2630_v26 = vld [vmem:[%s16919_s27 + $0xdd0] sm:$0xff] }
 0x51e   : > { %v2634_v31 = vld [vmem:[%s16919_s27 + $0xdf0] sm:$0xff] }
 0x51f   : > { %12541 = vmatpush1.bf16.msra.mxu0 %v14803_v10  ;;  %v2611_v10 = vld [vmem:[%s16919_s27 + $0xd38] sm:$0xff] }
 0x520   : > { %13033 = vmatpush1.bf16.msra.mxu1 %v14805_v38  ;;  %12542 = vmatprep.subr.bf16.mxu0 %v14812_v19  ;;  %v14843_v38 = vcombine.low %v2598_v50, %v2602_v39  ;;  %v14854_v53 = vcombine.high %v2607_v48, %v2611_v10 }
 0x521   : > { %13034 = vmatprep.subr.bf16.mxu1 %v14814_v22  ;;  %v14852_v22 = vcombine.high %v2606_v46, %v2610_v14 }
 0x523   : > { %12543 = vmatpush1.bf16.msra.mxu0 %v14811_v4  ;;  %v2619_v4 = vld [vmem:[%s16919_s27 + $0xd78] sm:$0xff] }
 0x524   : > { %13035 = vmatpush1.bf16.msra.mxu1 %v14813_v3  ;;  %12553 = vmatprep.subr.bf16.mxu0 %v14820_v8  ;;  %v14851_v3 = vcombine.low %v2606_v46, %v2610_v14  ;;  %v14853_v8 = vcombine.low %v2607_v48, %v2611_v10  ;;  %v14862_v61 = vcombine.high %v2615_v49, %v2619_v4  ;;  %v2638_v14 = vld [vmem:[%s16919_s27 + $0xe10] sm:$0xff]  ;;  %v2639_v10 = vld [vmem:[%s16919_s27 + $0xe18] sm:$0xff] }
 0x525   : > { %13045 = vmatprep.subr.bf16.mxu1 %v14822_v11  ;;  %v14860_v11 = vcombine.high %v2614_v20, %v2618_v59  ;;  %v2642_v48 = vld [vmem:[%s16919_s27 + $0xe30] sm:$0xff] }
 0x526   : > { %12545 = vmatmul.mubr.bf16.vlgmr.msra.gmra.mrb[28].mxu0 %v17278_v62 }
 0x527   : > { %13037 = vmatmul.mubr.bf16.vlgmr.msra.gmra.mrb[28].mxu1 %v17278_v62  ;;  %12554 = vmatpush1.bf16.msra.mxu0 %v14819_v5  ;;  %v2603_v62 = vld [vmem:[%s16919_s27 + $0xcf8] sm:$0xff]  ;;  %v2626_v5 = vld [vmem:[%s16919_s27 + $0xdb0] sm:$0xff] }
 0x528   : > { %12585 = vmatprep.mubr.bf16.mxu0 %v17282_v6  ;;  %13046 = vmatpush1.bf16.msra.mxu1 %v14821_v0  ;;  %v14845_v19 = vcombine.low %v2599_v42, %v2603_v62  ;;  %v14859_v0 = vcombine.low %v2614_v20, %v2618_v59  ;;  %v14868_v41 = vcombine.high %v2622_v16, %v2626_v5  ;;  %v2646_v59 = vld [vmem:[%s16919_s27 + $0xe50] sm:$0xff] }
 0x529   : > { %13077 = vmatprep.mubr.bf16.mxu1 %v17282_v6  ;;  %12555 = vmatprep.subr.bf16.mxu0 %v14828_v9  ;;  %v14846_v6 = vcombine.high %v2599_v42, %v2603_v62  ;;  %v14861_v9 = vcombine.low %v2615_v49, %v2619_v4  ;;  %v14867_v42 = vcombine.low %v2622_v16, %v2626_v5  ;;  %v2650_v49 = vld [vmem:[%s16919_s27 + $0xe70] sm:$0xff]  ;;  %v2647_v4 = vld [vmem:[%s16919_s27 + $0xe58] sm:$0xff] }
 0x52a   : > { %13047 = vmatprep.subr.bf16.mxu1 %v14830_v44  ;;  %v14870_v44 = vcombine.high %v2623_v15, %v2627_v12  ;;  %v2654_v5 = vld [vmem:[%s16919_s27 + $0xe90] sm:$0xff] }
 0x52b   : > { %12556 = vmatpush1.bf16.msra.mxu0 %v14827_v58 }
 0x52c   : > { %13048 = vmatpush1.bf16.msra.mxu1 %v14829_v35  ;;  %12557 = vmatprep.subr.bf16.mxu0 %v14836_v37  ;;  %v2631_v37 = vld [vmem:[%s16919_s27 + $0xdd8] sm:$0xff] }
 0x52d   : > { %13049 = vmatprep.subr.bf16.mxu1 %v14838_v7  ;;  %v2635_v7 = vld [vmem:[%s16919_s27 + $0xdf8] sm:$0xff] }
 0x52e   : > { %v14878_v46 = vcombine.high %v2631_v37, %v2635_v7 }
 0x52f   : > { %12558 = vmatpush1.bf16.msra.mxu0 %v14835_v43 }
 0x530   : > { %13050 = vmatpush1.bf16.msra.mxu1 %v14837_v55  ;;  %12559 = vmatprep.subr.bf16.mxu0 %v14844_v33  ;;  %v14869_v55 = vcombine.low %v2623_v15, %v2627_v12  ;;  %v14876_v33 = vcombine.high %v2630_v26, %v2634_v31  ;;  %v2658_v15 = vld [vmem:[%s16919_s27 + $0xeb0] sm:$0xff]  ;;  %v2655_v12 = vld [vmem:[%s16919_s27 + $0xe98] sm:$0xff] }
 0x531   : > { %13051 = vmatprep.subr.bf16.mxu1 %v14846_v6 }
 0x533   : > { %12560 = vmatpush1.bf16.msra.mxu0 %v14843_v38  ;;  %v2643_v38 = vld [vmem:[%s16919_s27 + $0xe38] sm:$0xff] }
 0x534   : > { %13052 = vmatpush1.bf16.msra.mxu1 %v14845_v19  ;;  %12561 = vmatprep.subr.bf16.mxu0 %v14852_v22  ;;  %v14875_v19 = vcombine.low %v2630_v26, %v2634_v31  ;;  %v14877_v22 = vcombine.low %v2631_v37, %v2635_v7  ;;  %v14886_v20 = vcombine.high %v2639_v10, %v2643_v38  ;;  %v2662_v31 = vld [vmem:[%s16919_s27 + $0xed0] sm:$0xff]  ;;  %v2663_v7 = vld [vmem:[%s16919_s27 + $0xed8] sm:$0xff] }
 0x535   : > { %13053 = vmatprep.subr.bf16.mxu1 %v14854_v53  ;;  %v14884_v53 = vcombine.high %v2638_v14, %v2642_v48  ;;  %v2666_v37 = vld [vmem:[%s16919_s27 + $0xef0] sm:$0xff] }
 0x537   : > { %12562 = vmatpush1.bf16.msra.mxu0 %v14851_v3  ;;  %v2651_v3 = vld [vmem:[%s16919_s27 + $0xe78] sm:$0xff] }
 0x538   : > { %13054 = vmatpush1.bf16.msra.mxu1 %v14853_v8  ;;  %12563 = vmatprep.subr.bf16.mxu0 %v14860_v11  ;;  %v14883_v8 = vcombine.low %v2638_v14, %v2642_v48  ;;  %v14885_v11 = vcombine.low %v2639_v10, %v2643_v38  ;;  %v14894_v16 = vcombine.high %v2647_v4, %v2651_v3  ;;  %v2675_v14 = vld [vmem:[%s16919_s27 + $0xf38] sm:$0xff] }
 0x539   : > { %v18198_v23 = vpop.f32.mrb[24].mxu0  ;;  %13055 = vmatprep.subr.bf16.mxu1 %v14862_v61  ;;  %v14892_v61 = vcombine.high %v2646_v59, %v2650_v49  ;;  %v14907_v48 = vcombine.low %v2662_v31, %v2666_v37 }
 0x53a   : > { %v18202_v58 = vpop.f32.mrb[24].mxu1  ;;  %v18204_v35 = vpop.f32.mrb[25].mxu0 }
 0x53b   : > { %v18208_v50 = vpop.f32.mrb[25].mxu1  ;;  %v11935_v39 = vpop.f32.mrb[26].mxu0  ;;  %12564 = vmatpush1.bf16.msra.mxu0 %v14859_v0  ;;  %v2659_v0 = vld [vmem:[%s16919_s27 + $0xeb8] sm:$0xff] }
 0x53c   : > { %v12427_v62 = vpop.f32.mrb[26].mxu1  ;;  %13056 = vmatpush1.bf16.msra.mxu1 %v14861_v9  ;;  %v11936_v43 = vpop.f32.mrb[27].mxu0  ;;  %12565 = vmatprep.subr.bf16.mxu0 %v14868_v41  ;;  %v14891_v9 = vcombine.low %v2646_v59, %v2650_v49  ;;  %v14893_v41 = vcombine.low %v2647_v4, %v2651_v3  ;;  %v14902_v26 = vcombine.high %v2655_v12, %v2659_v0  ;;  %v2667_v39 = vld [vmem:[%s16919_s27 + $0xef8] sm:$0xff] }
 0x53d   : > { %v12428_v6 = vpop.f32.mrb[27].mxu1  ;;  %13057 = vmatprep.subr.bf16.mxu1 %v14870_v44  ;;  %v14900_v44 = vcombine.high %v2654_v5, %v2658_v15  ;;  %v14901_v62 = vcombine.low %v2655_v12, %v2659_v0  ;;  %v14908_v43 = vcombine.high %v2662_v31, %v2666_v37  ;;  %v14909_v10 = vcombine.low %v2663_v7, %v2667_v39  ;;  %v2683_v59 = vld [vmem:[%s16919_s27 + $0xf78] sm:$0xff] }
 0x53e   : > { %v2674_v6 = vld [vmem:[%s16919_s27 + $0xf30] sm:$0xff]  ;;  %v2699_v31 = vld [vmem:[%s16919_s27 + $0xff8] sm:$0xff] }
 0x53f   : > { %12566 = vmatpush1.bf16.msra.mxu0 %v14867_v42  ;;  %v14899_v42 = vcombine.low %v2654_v5, %v2658_v15  ;;  %v2691_v5 = vld [vmem:[%s16919_s27 + $0xfb8] sm:$0xff] }
 0x540   : > { %13058 = vmatpush1.bf16.msra.mxu1 %v14869_v55  ;;  %12567 = vmatprep.subr.bf16.mxu0 %v14876_v33  ;;  %v14910_v55 = vcombine.high %v2663_v7, %v2667_v39  ;;  %v2670_v33 = vld [vmem:[%s16919_s27 + $0xf10] sm:$0xff] }
 0x541   : > { %13059 = vmatprep.subr.bf16.mxu1 %v14878_v46  ;;  %v2671_v46 = vld [vmem:[%s16919_s27 + $0xf18] sm:$0xff]  ;;  %v14916_v38 = vcombine.high %v2670_v33, %v2674_v6  ;;  %v14915_v49 = vcombine.low %v2670_v33, %v2674_v6 }
 0x542   : > { %v14917_v4 = vcombine.low %v2671_v46, %v2675_v14  ;;  %v2707_v33 = vld [vmem:[%s16919_s27 + $0x1038] sm:$0xff] }
 0x543   : > { %12568 = vmatpush1.bf16.msra.mxu0 %v14875_v19  ;;  %v14918_v19 = vcombine.high %v2671_v46, %v2675_v14 }
 0x544   : > { %13060 = vmatpush1.bf16.msra.mxu1 %v14877_v22  ;;  %12569 = vmatprep.subr.bf16.mxu0 %v14884_v53  ;;  %v2678_v22 = vld [vmem:[%s16919_s27 + $0xf50] sm:$0xff] }
 0x545   : > { %13061 = vmatprep.subr.bf16.mxu1 %v14886_v20  ;;  %v2682_v53 = vld [vmem:[%s16919_s27 + $0xf70] sm:$0xff]  ;;  %v2679_v20 = vld [vmem:[%s16919_s27 + $0xf58] sm:$0xff] }
 0x546   : > { %v14924_v3 = vcombine.high %v2678_v22, %v2682_v53  ;;  %v14923_v15 = vcombine.low %v2678_v22, %v2682_v53  ;;  %v14925_v12 = vcombine.low %v2679_v20, %v2683_v59  ;;  %v2711_v22 = vld [vmem:[%s16919_s27 + $0x1058] sm:$0xff] }
 0x547   : > { %12570 = vmatpush1.bf16.msra.mxu0 %v14883_v8  ;;  %v14926_v8 = vcombine.high %v2679_v20, %v2683_v59  ;;  %v2715_v53 = vld [vmem:[%s16919_s27 + $0x1078] sm:$0xff] }
 0x548   : > { %13062 = vmatpush1.bf16.msra.mxu1 %v14885_v11  ;;  %12571 = vmatprep.subr.bf16.mxu0 %v14892_v61  ;;  %v2686_v11 = vld [vmem:[%s16919_s27 + $0xf90] sm:$0xff] }
 0x549   : > { %13063 = vmatprep.subr.bf16.mxu1 %v14894_v16  ;;  %v2690_v61 = vld [vmem:[%s16919_s27 + $0xfb0] sm:$0xff]  ;;  %v2687_v16 = vld [vmem:[%s16919_s27 + $0xf98] sm:$0xff] }
 0x54a   : > { %v14932_v0 = vcombine.high %v2686_v11, %v2690_v61  ;;  %v14931_v37 = vcombine.low %v2686_v11, %v2690_v61  ;;  %v14933_v7 = vcombine.low %v2687_v16, %v2691_v5  ;;  %v2723_v11 = vld [vmem:[%s16919_s27 + $0x10b8] sm:$0xff] }
 0x54b   : > { %12572 = vmatpush1.bf16.msra.mxu0 %v14891_v9  ;;  %v14934_v9 = vcombine.high %v2687_v16, %v2691_v5  ;;  %v14957_v16 = vcombine.low %v2711_v22, %v2715_v53 }
 0x54c   : > { %13064 = vmatpush1.bf16.msra.mxu1 %v14893_v41  ;;  %12573 = vmatprep.subr.bf16.mxu0 %v14900_v44  ;;  %v2694_v41 = vld [vmem:[%s16919_s27 + $0xfd0] sm:$0xff] }
 0x54d   : > { %13065 = vmatprep.subr.bf16.mxu1 %v14902_v26  ;;  %v2698_v44 = vld [vmem:[%s16919_s27 + $0xff0] sm:$0xff]  ;;  %v2695_v26 = vld [vmem:[%s16919_s27 + $0xfd8] sm:$0xff] }
 0x54e   : > { %v14940_v39 = vcombine.high %v2694_v41, %v2698_v44  ;;  %v14939_v6 = vcombine.low %v2694_v41, %v2698_v44  ;;  %v14941_v46 = vcombine.low %v2695_v26, %v2699_v31 }
 0x54f   : > { %12574 = vmatpush1.bf16.msra.mxu0 %v14899_v42  ;;  %v14942_v42 = vcombine.high %v2695_v26, %v2699_v31  ;;  %v2734_v31 = vld [vmem:[%s16919_s27 + $0x1110] sm:$0xff] }
 0x550   : > { %13066 = vmatpush1.bf16.msra.mxu1 %v14901_v62  ;;  %12575 = vmatprep.subr.bf16.mxu0 %v14908_v43  ;;  %v2702_v62 = vld [vmem:[%s16919_s27 + $0x1010] sm:$0xff] }
 0x551   : > { %13067 = vmatprep.subr.bf16.mxu1 %v14910_v55  ;;  %v2706_v43 = vld [vmem:[%s16919_s27 + $0x1030] sm:$0xff]  ;;  %v2703_v55 = vld [vmem:[%s16919_s27 + $0x1018] sm:$0xff] }
 0x552   : > { %v14948_v14 = vcombine.high %v2702_v62, %v2706_v43  ;;  %v14949_v20 = vcombine.low %v2703_v55, %v2707_v33 }
 0x553   : > { %12576 = vmatpush1.bf16.msra.mxu0 %v14907_v48  ;;  %v14950_v48 = vcombine.high %v2703_v55, %v2707_v33  ;;  %v2742_v33 = vld [vmem:[%s16919_s27 + $0x1150] sm:$0xff] }
 0x554   : > { %13068 = vmatpush1.bf16.msra.mxu1 %v14909_v10  ;;  %12577 = vmatprep.subr.bf16.mxu0 %v14916_v38  ;;  %v2710_v10 = vld [vmem:[%s16919_s27 + $0x1050] sm:$0xff] }
 0x555   : > { %13069 = vmatprep.subr.bf16.mxu1 %v14918_v19  ;;  %v2714_v38 = vld [vmem:[%s16919_s27 + $0x1070] sm:$0xff]  ;;  %v14947_v19 = vcombine.low %v2702_v62, %v2706_v43 }
 0x556   : > { %v14956_v59 = vcombine.high %v2710_v10, %v2714_v38  ;;  %v14955_v61 = vcombine.low %v2710_v10, %v2714_v38 }
 0x557   : > { %12578 = vmatpush1.bf16.msra.mxu0 %v14915_v49  ;;  %v2718_v49 = vld [vmem:[%s16919_s27 + $0x1090] sm:$0xff] }
 0x558   : > { %13070 = vmatpush1.bf16.msra.mxu1 %v14917_v4  ;;  %12579 = vmatprep.subr.bf16.mxu0 %v14924_v3  ;;  %v2722_v4 = vld [vmem:[%s16919_s27 + $0x10b0] sm:$0xff]  ;;  %v14958_v3 = vcombine.high %v2711_v22, %v2715_v53 }
 0x559   : > { %13071 = vmatprep.subr.bf16.mxu1 %v14926_v8  ;;  %v2719_v8 = vld [vmem:[%s16919_s27 + $0x1098] sm:$0xff]  ;;  %v14964_v5 = vcombine.high %v2718_v49, %v2722_v4  ;;  %v14963_v41 = vcombine.low %v2718_v49, %v2722_v4  ;;  %v2750_v22 = vld [vmem:[%s16919_s27 + $0x1190] sm:$0xff] }
 0x55a   : > { %v14965_v44 = vcombine.low %v2719_v8, %v2723_v11  ;;  %v2754_v53 = vld [vmem:[%s16919_s27 + $0x11b0] sm:$0xff] }
 0x55b   : > { %12580 = vmatpush1.bf16.msra.mxu0 %v14923_v15  ;;  %v14966_v15 = vcombine.high %v2719_v8, %v2723_v11  ;;  %v2758_v11 = vld [vmem:[%s16919_s27 + $0x11d0] sm:$0xff] }
 0x55c   : > { %13072 = vmatpush1.bf16.msra.mxu1 %v14925_v12  ;;  %12581 = vmatprep.subr.bf16.mxu0 %v14932_v0  ;;  %v2726_v12 = vld [vmem:[%s16919_s27 + $0x10d0] sm:$0xff] }
 0x55d   : > { %13073 = vmatprep.subr.bf16.mxu1 %v14934_v9  ;;  %v2730_v0 = vld [vmem:[%s16919_s27 + $0x10f0] sm:$0xff]  ;;  %v2727_v9 = vld [vmem:[%s16919_s27 + $0x10d8] sm:$0xff] }
 0x55e   : > { %v14972_v26 = vcombine.high %v2726_v12, %v2730_v0 }
 0x55f   : > { %12582 = vmatpush1.bf16.msra.mxu0 %v14931_v37  ;;  %v2738_v37 = vld [vmem:[%s16919_s27 + $0x1130] sm:$0xff] }
 0x560   : > { %13074 = vmatpush1.bf16.msra.mxu1 %v14933_v7  ;;  %12583 = vmatprep.subr.bf16.mxu0 %v14940_v39  ;;  %v2735_v7 = vld [vmem:[%s16919_s27 + $0x1118] sm:$0xff]  ;;  %v14980_v43 = vcombine.high %v2734_v31, %v2738_v37 }
 0x561   : > { %13075 = vmatprep.subr.bf16.mxu1 %v14942_v42  ;;  %v2739_v39 = vld [vmem:[%s16919_s27 + $0x1138] sm:$0xff]  ;;  %v14971_v42 = vcombine.low %v2726_v12, %v2730_v0 }
 0x562   : > { %v14982_v55 = vcombine.high %v2735_v7, %v2739_v39  ;;  %v14981_v10 = vcombine.low %v2735_v7, %v2739_v39  ;;  %v2774_v39 = vld [vmem:[%s16919_s27 + $0x1250] sm:$0xff] }
 0x563   : > { %12584 = vmatpush1.bf16.msra.mxu0 %v14939_v6  ;;  %v2746_v6 = vld [vmem:[%s16919_s27 + $0x1170] sm:$0xff] }
 0x564   : > { %13076 = vmatpush1.bf16.msra.mxu1 %v14941_v46  ;;  %12594 = vmatprep.subr.bf16.mxu0 %v14948_v14  ;;  %v2743_v46 = vld [vmem:[%s16919_s27 + $0x1158] sm:$0xff]  ;;  %v14988_v38 = vcombine.high %v2742_v33, %v2746_v6  ;;  %v14987_v49 = vcombine.low %v2742_v33, %v2746_v6 }
 0x565   : > { %13086 = vmatprep.subr.bf16.mxu1 %v14950_v48  ;;  %v2747_v14 = vld [vmem:[%s16919_s27 + $0x1178] sm:$0xff]  ;;  %v14979_v48 = vcombine.low %v2734_v31, %v2738_v37 }
 0x566   : > { %12586 = vmatmul.mubr.bf16.vlgmr.msra.gmra.mrb[28].mxu0 %v17370_v34  ;;  %v14989_v4 = vcombine.low %v2743_v46, %v2747_v14 }
 0x567   : > { %13078 = vmatmul.mubr.bf16.vlgmr.msra.gmra.mrb[28].mxu1 %v17370_v34  ;;  %12595 = vmatpush1.bf16.msra.mxu0 %v14947_v19  ;;  %v2731_v34 = vld [vmem:[%s16919_s27 + $0x10f8] sm:$0xff]  ;;  %v14990_v19 = vcombine.high %v2743_v46, %v2747_v14  ;;  %v2782_v14 = vld [vmem:[%s16919_s27 + $0x1290] sm:$0xff] }
 0x568   : > { %12626 = vmatprep.mubr.bf16.mxu0 %v17374_v40  ;;  %13087 = vmatpush1.bf16.msra.mxu1 %v14949_v20  ;;  %v14973_v62 = vcombine.low %v2727_v9, %v2731_v34  ;;  %v2751_v20 = vld [vmem:[%s16919_s27 + $0x1198] sm:$0xff] }
 0x569   : > { %13118 = vmatprep.mubr.bf16.mxu1 %v17374_v40  ;;  %12596 = vmatprep.subr.bf16.mxu0 %v14956_v59  ;;  %v14974_v40 = vcombine.high %v2727_v9, %v2731_v34  ;;  %v2755_v59 = vld [vmem:[%s16919_s27 + $0x11b8] sm:$0xff]  ;;  %v2766_v34 = vld [vmem:[%s16919_s27 + $0x1210] sm:$0xff] }
 0x56a   : > { %13088 = vmatprep.subr.bf16.mxu1 %v14958_v3  ;;  %v14996_v3 = vcombine.high %v2750_v22, %v2754_v53  ;;  %v14998_v8 = vcombine.high %v2751_v20, %v2755_v59  ;;  %v14997_v12 = vcombine.low %v2751_v20, %v2755_v59  ;;  %v2790_v59 = vld [vmem:[%s16919_s27 + $0x12d0] sm:$0xff] }
 0x56b   : > { %12597 = vmatpush1.bf16.msra.mxu0 %v14955_v61  ;;  %v2762_v61 = vld [vmem:[%s16919_s27 + $0x11f0] sm:$0xff] }
 0x56c   : > { %13089 = vmatpush1.bf16.msra.mxu1 %v14957_v16  ;;  %12598 = vmatprep.subr.bf16.mxu0 %v14964_v5  ;;  %v2759_v16 = vld [vmem:[%s16919_s27 + $0x11d8] sm:$0xff]  ;;  %v15004_v0 = vcombine.high %v2758_v11, %v2762_v61 }
 0x56d   : > { %13090 = vmatprep.subr.bf16.mxu1 %v14966_v15  ;;  %v2763_v5 = vld [vmem:[%s16919_s27 + $0x11f8] sm:$0xff]  ;;  %v14995_v15 = vcombine.low %v2750_v22, %v2754_v53 }
 0x56e   : > { %v15006_v9 = vcombine.high %v2759_v16, %v2763_v5  ;;  %v15005_v31 = vcombine.low %v2759_v16, %v2763_v5  ;;  %v2798_v5 = vld [vmem:[%s16919_s27 + $0x1310] sm:$0xff] }
 0x56f   : > { %12599 = vmatpush1.bf16.msra.mxu0 %v14963_v41  ;;  %v2770_v41 = vld [vmem:[%s16919_s27 + $0x1230] sm:$0xff] }
 0x570   : > { %13091 = vmatpush1.bf16.msra.mxu1 %v14965_v44  ;;  %12600 = vmatprep.subr.bf16.mxu0 %v14972_v26  ;;  %v2767_v44 = vld [vmem:[%s16919_s27 + $0x1218] sm:$0xff]  ;;  %v15012_v37 = vcombine.high %v2766_v34, %v2770_v41 }
 0x571   : > { %13092 = vmatprep.subr.bf16.mxu1 %v14974_v40  ;;  %v2771_v26 = vld [vmem:[%s16919_s27 + $0x1238] sm:$0xff]  ;;  %v15003_v40 = vcombine.low %v2758_v11, %v2762_v61 }
 0x572   : > { %v15014_v7 = vcombine.high %v2767_v44, %v2771_v26  ;;  %v15013_v33 = vcombine.low %v2767_v44, %v2771_v26  ;;  %v2806_v26 = vld [vmem:[%s16919_s27 + $0x1350] sm:$0xff] }
 0x573   : > { %12601 = vmatpush1.bf16.msra.mxu0 %v14971_v42  ;;  %v2778_v42 = vld [vmem:[%s16919_s27 + $0x1270] sm:$0xff] }
 0x574   : > { %13093 = vmatpush1.bf16.msra.mxu1 %v14973_v62  ;;  %12602 = vmatprep.subr.bf16.mxu0 %v14980_v43  ;;  %v2775_v62 = vld [vmem:[%s16919_s27 + $0x1258] sm:$0xff]  ;;  %v15020_v6 = vcombine.high %v2774_v39, %v2778_v42 }
 0x575   : > { %13094 = vmatprep.subr.bf16.mxu1 %v14982_v55  ;;  %v2779_v43 = vld [vmem:[%s16919_s27 + $0x1278] sm:$0xff]  ;;  %v15011_v55 = vcombine.low %v2766_v34, %v2770_v41 }
 0x576   : > { %v15022_v46 = vcombine.high %v2775_v62, %v2779_v43  ;;  %v15021_v22 = vcombine.low %v2775_v62, %v2779_v43  ;;  %v2814_v43 = vld [vmem:[%s16919_s27 + $0x1390] sm:$0xff] }
 0x577   : > { %12603 = vmatpush1.bf16.msra.mxu0 %v14979_v48  ;;  %v2786_v48 = vld [vmem:[%s16919_s27 + $0x12b0] sm:$0xff] }
 0x578   : > { %13095 = vmatpush1.bf16.msra.mxu1 %v14981_v10  ;;  %12604 = vmatprep.subr.bf16.mxu0 %v14988_v38  ;;  %v2783_v10 = vld [vmem:[%s16919_s27 + $0x1298] sm:$0xff]  ;;  %v15028_v53 = vcombine.high %v2782_v14, %v2786_v48 }
 0x579   : > { %13096 = vmatprep.subr.bf16.mxu1 %v14990_v19  ;;  %v2787_v38 = vld [vmem:[%s16919_s27 + $0x12b8] sm:$0xff]  ;;  %v15019_v19 = vcombine.low %v2774_v39, %v2778_v42 }
 0x57a   : > { %v15030_v20 = vcombine.high %v2783_v10, %v2787_v38  ;;  %v15029_v11 = vcombine.low %v2783_v10, %v2787_v38  ;;  %v2822_v38 = vld [vmem:[%s16919_s27 + $0x13d0] sm:$0xff] }
 0x57b   : > { %12605 = vmatpush1.bf16.msra.mxu0 %v14987_v49  ;;  %v2794_v49 = vld [vmem:[%s16919_s27 + $0x12f0] sm:$0xff] }
 0x57c   : > { %13097 = vmatpush1.bf16.msra.mxu1 %v14989_v4  ;;  %12606 = vmatprep.subr.bf16.mxu0 %v14996_v3  ;;  %v2791_v4 = vld [vmem:[%s16919_s27 + $0x12d8] sm:$0xff]  ;;  %v15036_v61 = vcombine.high %v2790_v59, %v2794_v49 }
 0x57d   : > { %13098 = vmatprep.subr.bf16.mxu1 %v14998_v8  ;;  %v2795_v3 = vld [vmem:[%s16919_s27 + $0x12f8] sm:$0xff]  ;;  %v15027_v8 = vcombine.low %v2782_v14, %v2786_v48 }
 0x57e   : > { %v15038_v16 = vcombine.high %v2791_v4, %v2795_v3  ;;  %v15037_v34 = vcombine.low %v2791_v4, %v2795_v3  ;;  %v2830_v3 = vld [vmem:[%s16919_s27 + $0x1410] sm:$0xff] }
 0x57f   : > { %12607 = vmatpush1.bf16.msra.mxu0 %v14995_v15  ;;  %v2802_v15 = vld [vmem:[%s16919_s27 + $0x1330] sm:$0xff] }
 0x580   : > { %13099 = vmatpush1.bf16.msra.mxu1 %v14997_v12  ;;  %12608 = vmatprep.subr.bf16.mxu0 %v15004_v0  ;;  %v2799_v12 = vld [vmem:[%s16919_s27 + $0x1318] sm:$0xff]  ;;  %v15044_v41 = vcombine.high %v2798_v5, %v2802_v15 }
 0x581   : > { %13100 = vmatprep.subr.bf16.mxu1 %v15006_v9  ;;  %v2803_v0 = vld [vmem:[%s16919_s27 + $0x1338] sm:$0xff]  ;;  %v15035_v9 = vcombine.low %v2790_v59, %v2794_v49 }
 0x582   : > { %v15046_v44 = vcombine.high %v2799_v12, %v2803_v0  ;;  %v15045_v39 = vcombine.low %v2799_v12, %v2803_v0  ;;  %v2838_v0 = vld [vmem:[%s16919_s27 + $0x1450] sm:$0xff] }
 0x583   : > { %12609 = vmatpush1.bf16.msra.mxu0 %v15003_v40  ;;  %v2810_v40 = vld [vmem:[%s16919_s27 + $0x1370] sm:$0xff] }
 0x584   : > { %13101 = vmatpush1.bf16.msra.mxu1 %v15005_v31  ;;  %12610 = vmatprep.subr.bf16.mxu0 %v15012_v37  ;;  %v2807_v31 = vld [vmem:[%s16919_s27 + $0x1358] sm:$0xff]  ;;  %v15052_v42 = vcombine.high %v2806_v26, %v2810_v40 }
 0x585   : > { %13102 = vmatprep.subr.bf16.mxu1 %v15014_v7  ;;  %v2811_v37 = vld [vmem:[%s16919_s27 + $0x1378] sm:$0xff]  ;;  %v15043_v7 = vcombine.low %v2798_v5, %v2802_v15 }
 0x586   : > { %v15054_v62 = vcombine.high %v2807_v31, %v2811_v37  ;;  %v15053_v14 = vcombine.low %v2807_v31, %v2811_v37  ;;  %v2846_v31 = vld [vmem:[%s16919_s27 + $0x1490] sm:$0xff] }
 0x587   : > { %12611 = vmatpush1.bf16.msra.mxu0 %v15011_v55  ;;  %v2818_v55 = vld [vmem:[%s16919_s27 + $0x13b0] sm:$0xff] }
 0x588   : > { %13103 = vmatpush1.bf16.msra.mxu1 %v15013_v33  ;;  %12612 = vmatprep.subr.bf16.mxu0 %v15020_v6  ;;  %v2815_v33 = vld [vmem:[%s16919_s27 + $0x1398] sm:$0xff]  ;;  %v15060_v48 = vcombine.high %v2814_v43, %v2818_v55  ;;  %v2850_v37 = vld [vmem:[%s16919_s27 + $0x14b0] sm:$0xff] }
 0x589   : > { %13104 = vmatprep.subr.bf16.mxu1 %v15022_v46  ;;  %v2819_v6 = vld [vmem:[%s16919_s27 + $0x13b8] sm:$0xff]  ;;  %v15051_v46 = vcombine.low %v2806_v26, %v2810_v40 }
 0x58a   : > { %v15062_v10 = vcombine.high %v2815_v33, %v2819_v6  ;;  %v15061_v59 = vcombine.low %v2815_v33, %v2819_v6  ;;  %v2854_v6 = vld [vmem:[%s16919_s27 + $0x14d0] sm:$0xff] }
 0x58b   : > { %12613 = vmatpush1.bf16.msra.mxu0 %v15019_v19  ;;  %v2826_v19 = vld [vmem:[%s16919_s27 + $0x13f0] sm:$0xff] }
 0x58c   : > { %13105 = vmatpush1.bf16.msra.mxu1 %v15021_v22  ;;  %12614 = vmatprep.subr.bf16.mxu0 %v15028_v53  ;;  %v2823_v22 = vld [vmem:[%s16919_s27 + $0x13d8] sm:$0xff]  ;;  %v15068_v49 = vcombine.high %v2822_v38, %v2826_v19 }
 0x58d   : > { %13106 = vmatprep.subr.bf16.mxu1 %v15030_v20  ;;  %v2827_v53 = vld [vmem:[%s16919_s27 + $0x13f8] sm:$0xff]  ;;  %v15059_v20 = vcombine.low %v2814_v43, %v2818_v55  ;;  %v15092_v55 = vcombine.high %v2846_v31, %v2850_v37 }
 0x58e   : > { %v15070_v4 = vcombine.high %v2823_v22, %v2827_v53  ;;  %v15069_v5 = vcombine.low %v2823_v22, %v2827_v53  ;;  %v2866_v22 = vld [vmem:[%s16919_s27 + $0x1530] sm:$0xff]  ;;  %v2863_v53 = vld [vmem:[%s16919_s27 + $0x1518] sm:$0xff] }
 0x58f   : > { %12615 = vmatpush1.bf16.msra.mxu0 %v15027_v8  ;;  %v2834_v8 = vld [vmem:[%s16919_s27 + $0x1430] sm:$0xff] }
 0x590   : > { %13107 = vmatpush1.bf16.msra.mxu1 %v15029_v11  ;;  %12616 = vmatprep.subr.bf16.mxu0 %v15036_v61  ;;  %v2831_v11 = vld [vmem:[%s16919_s27 + $0x1418] sm:$0xff]  ;;  %v15076_v15 = vcombine.high %v2830_v3, %v2834_v8 }
 0x591   : > { %13108 = vmatprep.subr.bf16.mxu1 %v15038_v16  ;;  %v2835_v61 = vld [vmem:[%s16919_s27 + $0x1438] sm:$0xff]  ;;  %v15067_v16 = vcombine.low %v2822_v38, %v2826_v19  ;;  %v2862_v19 = vld [vmem:[%s16919_s27 + $0x1510] sm:$0xff] }
 0x592   : > { %v15078_v12 = vcombine.high %v2831_v11, %v2835_v61  ;;  %v15077_v26 = vcombine.low %v2831_v11, %v2835_v61  ;;  %v2874_v11 = vld [vmem:[%s16919_s27 + $0x1570] sm:$0xff]  ;;  %v2871_v61 = vld [vmem:[%s16919_s27 + $0x1558] sm:$0xff] }
 0x593   : > { %12617 = vmatpush1.bf16.msra.mxu0 %v15035_v9  ;;  %v2842_v9 = vld [vmem:[%s16919_s27 + $0x1470] sm:$0xff] }
 0x594   : > { %13109 = vmatpush1.bf16.msra.mxu1 %v15037_v34  ;;  %12618 = vmatprep.subr.bf16.mxu0 %v15044_v41  ;;  %v15075_v34 = vcombine.low %v2830_v3, %v2834_v8  ;;  %v2839_v41 = vld [vmem:[%s16919_s27 + $0x1458] sm:$0xff]  ;;  %v15084_v40 = vcombine.high %v2838_v0, %v2842_v9  ;;  %v2870_v8 = vld [vmem:[%s16919_s27 + $0x1550] sm:$0xff] }
 0x595   : > { %13110 = vmatprep.subr.bf16.mxu1 %v15046_v44  ;;  %v2843_v44 = vld [vmem:[%s16919_s27 + $0x1478] sm:$0xff] }
 0x596   : > { %v15085_v43 = vcombine.low %v2839_v41, %v2843_v44 }
 0x597   : > { %12619 = vmatpush1.bf16.msra.mxu0 %v15043_v7  ;;  %v15086_v7 = vcombine.high %v2839_v41, %v2843_v44  ;;  %v2879_v41 = vld [vmem:[%s16919_s27 + $0x1598] sm:$0xff] }
 0x598   : > { %13111 = vmatpush1.bf16.msra.mxu1 %v15045_v39  ;;  %12620 = vmatprep.subr.bf16.mxu0 %v15052_v42  ;;  %v2847_v39 = vld [vmem:[%s16919_s27 + $0x1498] sm:$0xff] }
 0x599   : > { %13112 = vmatprep.subr.bf16.mxu1 %v15054_v62  ;;  %v2851_v42 = vld [vmem:[%s16919_s27 + $0x14b8] sm:$0xff]  ;;  %v15083_v62 = vcombine.low %v2838_v0, %v2842_v9  ;;  %v2878_v9 = vld [vmem:[%s16919_s27 + $0x1590] sm:$0xff] }
 0x59a   : > { %v15094_v33 = vcombine.high %v2847_v39, %v2851_v42  ;;  %v2883_v44 = vld [vmem:[%s16919_s27 + $0x15b8] sm:$0xff] }
 0x59b   : > { %12621 = vmatpush1.bf16.msra.mxu0 %v15051_v46  ;;  %v2858_v46 = vld [vmem:[%s16919_s27 + $0x14f0] sm:$0xff] }
 0x59c   : > { %13113 = vmatpush1.bf16.msra.mxu1 %v15053_v14  ;;  %12622 = vmatprep.subr.bf16.mxu0 %v15060_v48  ;;  %v2855_v14 = vld [vmem:[%s16919_s27 + $0x14d8] sm:$0xff]  ;;  %v15091_v48 = vcombine.low %v2846_v31, %v2850_v37  ;;  %v15100_v38 = vcombine.high %v2854_v6, %v2858_v46  ;;  %v15126_v37 = vcombine.high %v2879_v41, %v2883_v44 }
 0x59d   : > { %13114 = vmatprep.subr.bf16.mxu1 %v15062_v10  ;;  %v15093_v10 = vcombine.low %v2847_v39, %v2851_v42  ;;  %v2890_v39 = vld [vmem:[%s16919_s27 + $0x15f0] sm:$0xff]  ;;  %v2887_v42 = vld [vmem:[%s16919_s27 + $0x15d8] sm:$0xff] }
 0x59f   : > { %12623 = vmatpush1.bf16.msra.mxu0 %v15059_v20  ;;  %v2867_v20 = vld [vmem:[%s16919_s27 + $0x1538] sm:$0xff] }
 0x5a0   : > { %13115 = vmatpush1.bf16.msra.mxu1 %v15061_v59  ;;  %12624 = vmatprep.subr.bf16.mxu0 %v15068_v49  ;;  %v15099_v59 = vcombine.low %v2854_v6, %v2858_v46  ;;  %v15110_v3 = vcombine.high %v2863_v53, %v2867_v20  ;;  %v2894_v46 = vld [vmem:[%s16919_s27 + $0x1610] sm:$0xff] }
 0x5a1   : > { %13116 = vmatprep.subr.bf16.mxu1 %v15070_v4  ;;  %v15108_v4 = vcombine.high %v2862_v19, %v2866_v22 }
 0x5a3   : > { %12625 = vmatpush1.bf16.msra.mxu0 %v15067_v16  ;;  %v2875_v16 = vld [vmem:[%s16919_s27 + $0x1578] sm:$0xff] }
 0x5a4   : > { %13117 = vmatpush1.bf16.msra.mxu1 %v15069_v5  ;;  %12635 = vmatprep.subr.bf16.mxu0 %v15076_v15  ;;  %v15107_v5 = vcombine.low %v2862_v19, %v2866_v22  ;;  %v15109_v15 = vcombine.low %v2863_v53, %v2867_v20  ;;  %v15118_v0 = vcombine.high %v2871_v61, %v2875_v16  ;;  %v2902_v22 = vld [vmem:[%s16919_s27 + $0x1650] sm:$0xff]  ;;  %v2903_v20 = vld [vmem:[%s16919_s27 + $0x1658] sm:$0xff] }
 0x5a5   : > { %13127 = vmatprep.subr.bf16.mxu1 %v15078_v12  ;;  %v15116_v12 = vcombine.high %v2870_v8, %v2874_v11  ;;  %v2906_v53 = vld [vmem:[%s16919_s27 + $0x1670] sm:$0xff] }
 0x5a6   : > { %12627 = vmatmul.mubr.bf16.vlgmr.msra.gmra.mrb[28].mxu0 %v17445_v52 }
 0x5a7   : > { %13119 = vmatmul.mubr.bf16.vlgmr.msra.gmra.mrb[28].mxu1 %v17445_v52  ;;  %12636 = vmatpush1.bf16.msra.mxu0 %v15075_v34  ;;  %v2859_v52 = vld [vmem:[%s16919_s27 + $0x14f8] sm:$0xff]  ;;  %v2882_v34 = vld [vmem:[%s16919_s27 + $0x15b0] sm:$0xff] }
 0x5a8   : > { %12667 = vmatprep.mubr.bf16.mxu0 %v17449_v47  ;;  %13128 = vmatpush1.bf16.msra.mxu1 %v15077_v26  ;;  %v15101_v49 = vcombine.low %v2855_v14, %v2859_v52  ;;  %v15115_v26 = vcombine.low %v2870_v8, %v2874_v11  ;;  %v15124_v31 = vcombine.high %v2878_v9, %v2882_v34  ;;  %v2910_v11 = vld [vmem:[%s16919_s27 + $0x1690] sm:$0xff] }
 0x5a9   : > { %13159 = vmatprep.mubr.bf16.mxu1 %v17449_v47  ;;  %12637 = vmatprep.subr.bf16.mxu0 %v15084_v40  ;;  %v15102_v47 = vcombine.high %v2855_v14, %v2859_v52  ;;  %v15117_v40 = vcombine.low %v2871_v61, %v2875_v16  ;;  %v2898_v14 = vld [vmem:[%s16919_s27 + $0x1630] sm:$0xff]  ;;  %v2895_v52 = vld [vmem:[%s16919_s27 + $0x1618] sm:$0xff] }
 0x5aa   : > { %13129 = vmatprep.subr.bf16.mxu1 %v15086_v7  ;;  %v2886_v7 = vld [vmem:[%s16919_s27 + $0x15d0] sm:$0xff]  ;;  %v2911_v16 = vld [vmem:[%s16919_s27 + $0x1698] sm:$0xff] }
 0x5ab   : > { %12638 = vmatpush1.bf16.msra.mxu0 %v15083_v62  ;;  %v2891_v62 = vld [vmem:[%s16919_s27 + $0x15f8] sm:$0xff]  ;;  %v2914_v61 = vld [vmem:[%s16919_s27 + $0x16b0] sm:$0xff] }
 0x5ac   : > { %13130 = vmatpush1.bf16.msra.mxu1 %v15085_v43  ;;  %12639 = vmatprep.subr.bf16.mxu0 %v15092_v55  ;;  %v15123_v43 = vcombine.low %v2878_v9, %v2882_v34  ;;  %v15125_v55 = vcombine.low %v2879_v41, %v2883_v44  ;;  %v15134_v6 = vcombine.high %v2887_v42, %v2891_v62  ;;  %v2918_v34 = vld [vmem:[%s16919_s27 + $0x16d0] sm:$0xff]  ;;  %v2919_v44 = vld [vmem:[%s16919_s27 + $0x16d8] sm:$0xff] }
 0x5ad   : > { %13131 = vmatprep.subr.bf16.mxu1 %v15094_v33  ;;  %v15132_v33 = vcombine.high %v2886_v7, %v2890_v39  ;;  %v2922_v41 = vld [vmem:[%s16919_s27 + $0x16f0] sm:$0xff] }
 0x5af   : > { %12640 = vmatpush1.bf16.msra.mxu0 %v15091_v48  ;;  %v2899_v48 = vld [vmem:[%s16919_s27 + $0x1638] sm:$0xff] }
 0x5b0   : > { %13132 = vmatpush1.bf16.msra.mxu1 %v15093_v10  ;;  %12641 = vmatprep.subr.bf16.mxu0 %v15100_v38  ;;  %v15131_v10 = vcombine.low %v2886_v7, %v2890_v39  ;;  %v15133_v38 = vcombine.low %v2887_v42, %v2891_v62  ;;  %v15142_v19 = vcombine.high %v2895_v52, %v2899_v48  ;;  %v2926_v39 = vld [vmem:[%s16919_s27 + $0x1710] sm:$0xff]  ;;  %v2927_v62 = vld [vmem:[%s16919_s27 + $0x1718] sm:$0xff] }
 0x5b1   : > { %13133 = vmatprep.subr.bf16.mxu1 %v15102_v47  ;;  %v15140_v47 = vcombine.high %v2894_v46, %v2898_v14  ;;  %v2930_v42 = vld [vmem:[%s16919_s27 + $0x1730] sm:$0xff] }
 0x5b3   : > { %12642 = vmatpush1.bf16.msra.mxu0 %v15099_v59  ;;  %v2907_v59 = vld [vmem:[%s16919_s27 + $0x1678] sm:$0xff] }
 0x5b4   : > { %13134 = vmatpush1.bf16.msra.mxu1 %v15101_v49  ;;  %12643 = vmatprep.subr.bf16.mxu0 %v15108_v4  ;;  %v15139_v49 = vcombine.low %v2894_v46, %v2898_v14  ;;  %v15141_v4 = vcombine.low %v2895_v52, %v2899_v48  ;;  %v15150_v8 = vcombine.high %v2903_v20, %v2907_v59  ;;  %v2934_v14 = vld [vmem:[%s16919_s27 + $0x1750] sm:$0xff]  ;;  %v2935_v48 = vld [vmem:[%s16919_s27 + $0x1758] sm:$0xff] }
 0x5b5   : > { %13135 = vmatprep.subr.bf16.mxu1 %v15110_v3  ;;  %v15148_v3 = vcombine.high %v2902_v22, %v2906_v53  ;;  %v2938_v52 = vld [vmem:[%s16919_s27 + $0x1770] sm:$0xff] }
 0x5b7   : > { %12644 = vmatpush1.bf16.msra.mxu0 %v15107_v5  ;;  %v2915_v5 = vld [vmem:[%s16919_s27 + $0x16b8] sm:$0xff] }
 0x5b8   : > { %13136 = vmatpush1.bf16.msra.mxu1 %v15109_v15  ;;  %12645 = vmatprep.subr.bf16.mxu0 %v15116_v12  ;;  %v15147_v15 = vcombine.low %v2902_v22, %v2906_v53  ;;  %v15149_v12 = vcombine.low %v2903_v20, %v2907_v59  ;;  %v15158_v9 = vcombine.high %v2911_v16, %v2915_v5  ;;  %v2942_v53 = vld [vmem:[%s16919_s27 + $0x1790] sm:$0xff]  ;;  %v2943_v59 = vld [vmem:[%s16919_s27 + $0x1798] sm:$0xff] }
 0x5b9   : > { %13137 = vmatprep.subr.bf16.mxu1 %v15118_v0  ;;  %v15156_v0 = vcombine.high %v2910_v11, %v2914_v61  ;;  %v2946_v20 = vld [vmem:[%s16919_s27 + $0x17b0] sm:$0xff] }
 0x5bb   : > { %12646 = vmatpush1.bf16.msra.mxu0 %v15115_v26  ;;  %v2923_v26 = vld [vmem:[%s16919_s27 + $0x16f8] sm:$0xff] }
 0x5bc   : > { %13138 = vmatpush1.bf16.msra.mxu1 %v15117_v40  ;;  %12647 = vmatprep.subr.bf16.mxu0 %v15124_v31  ;;  %v15155_v40 = vcombine.low %v2910_v11, %v2914_v61  ;;  %v15157_v31 = vcombine.low %v2911_v16, %v2915_v5  ;;  %v15166_v7 = vcombine.high %v2919_v44, %v2923_v26  ;;  %v2950_v61 = vld [vmem:[%s16919_s27 + $0x17d0] sm:$0xff]  ;;  %v2951_v5 = vld [vmem:[%s16919_s27 + $0x17d8] sm:$0xff] }
 0x5bd   : > { %13139 = vmatprep.subr.bf16.mxu1 %v15126_v37  ;;  %v15164_v37 = vcombine.high %v2918_v34, %v2922_v41  ;;  %v2954_v16 = vld [vmem:[%s16919_s27 + $0x17f0] sm:$0xff] }
 0x5bf   : > { %12648 = vmatpush1.bf16.msra.mxu0 %v15123_v43  ;;  %v2931_v43 = vld [vmem:[%s16919_s27 + $0x1738] sm:$0xff] }
 0x5c0   : > { %13140 = vmatpush1.bf16.msra.mxu1 %v15125_v55  ;;  %12649 = vmatprep.subr.bf16.mxu0 %v15132_v33  ;;  %v15163_v55 = vcombine.low %v2918_v34, %v2922_v41  ;;  %v15165_v33 = vcombine.low %v2919_v44, %v2923_v26  ;;  %v15174_v46 = vcombine.high %v2927_v62, %v2931_v43  ;;  %v2958_v41 = vld [vmem:[%s16919_s27 + $0x1810] sm:$0xff]  ;;  %v2959_v26 = vld [vmem:[%s16919_s27 + $0x1818] sm:$0xff] }
 0x5c1   : > { %13141 = vmatprep.subr.bf16.mxu1 %v15134_v6  ;;  %v15172_v6 = vcombine.high %v2926_v39, %v2930_v42  ;;  %v2962_v44 = vld [vmem:[%s16919_s27 + $0x1830] sm:$0xff] }
 0x5c3   : > { %12650 = vmatpush1.bf16.msra.mxu0 %v15131_v10  ;;  %v2939_v10 = vld [vmem:[%s16919_s27 + $0x1778] sm:$0xff] }
 0x5c4   : > { %13142 = vmatpush1.bf16.msra.mxu1 %v15133_v38  ;;  %12651 = vmatprep.subr.bf16.mxu0 %v15140_v47  ;;  %v15171_v38 = vcombine.low %v2926_v39, %v2930_v42  ;;  %v15173_v47 = vcombine.low %v2927_v62, %v2931_v43  ;;  %v15182_v22 = vcombine.high %v2935_v48, %v2939_v10  ;;  %v2966_v42 = vld [vmem:[%s16919_s27 + $0x1850] sm:$0xff] }
 0x5c5   : > { %13143 = vmatprep.subr.bf16.mxu1 %v15142_v19  ;;  %v15180_v19 = vcombine.high %v2934_v14, %v2938_v52  ;;  %v2970_v62 = vld [vmem:[%s16919_s27 + $0x1870] sm:$0xff]  ;;  %v15203_v43 = vcombine.low %v2958_v41, %v2962_v44 }
 0x5c7   : > { %12652 = vmatpush1.bf16.msra.mxu0 %v15139_v49  ;;  %v2947_v49 = vld [vmem:[%s16919_s27 + $0x17b8] sm:$0xff] }
 0x5c8   : > { %13144 = vmatpush1.bf16.msra.mxu1 %v15141_v4  ;;  %12653 = vmatprep.subr.bf16.mxu0 %v15148_v3  ;;  %v15179_v4 = vcombine.low %v2934_v14, %v2938_v52  ;;  %v15181_v3 = vcombine.low %v2935_v48, %v2939_v10  ;;  %v15190_v11 = vcombine.high %v2943_v59, %v2947_v49  ;;  %v2974_v14 = vld [vmem:[%s16919_s27 + $0x1890] sm:$0xff]  ;;  %v2975_v10 = vld [vmem:[%s16919_s27 + $0x1898] sm:$0xff] }
 0x5c9   : > { %13145 = vmatprep.subr.bf16.mxu1 %v15150_v8  ;;  %v15188_v8 = vcombine.high %v2942_v53, %v2946_v20  ;;  %v2978_v52 = vld [vmem:[%s16919_s27 + $0x18b0] sm:$0xff] }
 0x5cb   : > { %12654 = vmatpush1.bf16.msra.mxu0 %v15147_v15  ;;  %v2955_v15 = vld [vmem:[%s16919_s27 + $0x17f8] sm:$0xff] }
 0x5cc   : > { %13146 = vmatpush1.bf16.msra.mxu1 %v15149_v12  ;;  %12655 = vmatprep.subr.bf16.mxu0 %v15156_v0  ;;  %v15187_v12 = vcombine.low %v2942_v53, %v2946_v20  ;;  %v15189_v0 = vcombine.low %v2943_v59, %v2947_v49  ;;  %v15198_v34 = vcombine.high %v2951_v5, %v2955_v15  ;;  %v2982_v20 = vld [vmem:[%s16919_s27 + $0x18d0] sm:$0xff]  ;;  %v2983_v49 = vld [vmem:[%s16919_s27 + $0x18d8] sm:$0xff] }
 0x5cd   : > { %13147 = vmatprep.subr.bf16.mxu1 %v15158_v9  ;;  %v15196_v9 = vcombine.high %v2950_v61, %v2954_v16  ;;  %v2986_v59 = vld [vmem:[%s16919_s27 + $0x18f0] sm:$0xff] }
 0x5cf   : > { %12656 = vmatpush1.bf16.msra.mxu0 %v15155_v40  ;;  %v2963_v40 = vld [vmem:[%s16919_s27 + $0x1838] sm:$0xff] }
 0x5d0   : > { %13148 = vmatpush1.bf16.msra.mxu1 %v15157_v31  ;;  %12657 = vmatprep.subr.bf16.mxu0 %v15164_v37  ;;  %v15195_v31 = vcombine.low %v2950_v61, %v2954_v16  ;;  %v15197_v37 = vcombine.low %v2951_v5, %v2955_v15  ;;  %v15206_v39 = vcombine.high %v2959_v26, %v2963_v40  ;;  %v2994_v61 = vld [vmem:[%s16919_s27 + $0x1930] sm:$0xff]  ;;  %v2991_v16 = vld [vmem:[%s16919_s27 + $0x1918] sm:$0xff] }
 0x5d1   : > { %13149 = vmatprep.subr.bf16.mxu1 %v15166_v7  ;;  %v15204_v7 = vcombine.high %v2958_v41, %v2962_v44  ;;  %v2995_v5 = vld [vmem:[%s16919_s27 + $0x1938] sm:$0xff]  ;;  %v15227_v15 = vcombine.low %v2982_v20, %v2986_v59  ;;  %v3002_v41 = vld [vmem:[%s16919_s27 + $0x1970] sm:$0xff] }
 0x5d2   : > { %v2999_v44 = vld [vmem:[%s16919_s27 + $0x1958] sm:$0xff] }
 0x5d3   : > { %12658 = vmatpush1.bf16.msra.mxu0 %v15163_v55  ;;  %v2967_v55 = vld [vmem:[%s16919_s27 + $0x1858] sm:$0xff] }
 0x5d4   : > { %13150 = vmatpush1.bf16.msra.mxu1 %v15165_v33  ;;  %12659 = vmatprep.subr.bf16.mxu0 %v15172_v6  ;;  %v2971_v33 = vld [vmem:[%s16919_s27 + $0x1878] sm:$0xff]  ;;  %v15205_v6 = vcombine.low %v2959_v26, %v2963_v40 }
 0x5d5   : > { %13151 = vmatprep.subr.bf16.mxu1 %v15174_v46  ;;  %v15212_v46 = vcombine.high %v2966_v42, %v2970_v62  ;;  %v15214_v48 = vcombine.high %v2967_v55, %v2971_v33  ;;  %v3003_v26 = vld [vmem:[%s16919_s27 + $0x1978] sm:$0xff] }
 0x5d7   : > { %12660 = vmatpush1.bf16.msra.mxu0 %v15171_v38  ;;  %v2979_v38 = vld [vmem:[%s16919_s27 + $0x18b8] sm:$0xff] }
 0x5d8   : > { %13152 = vmatpush1.bf16.msra.mxu1 %v15173_v47  ;;  %12661 = vmatprep.subr.bf16.mxu0 %v15180_v19  ;;  %v15211_v47 = vcombine.low %v2966_v42, %v2970_v62  ;;  %v15213_v19 = vcombine.low %v2967_v55, %v2971_v33  ;;  %v15222_v53 = vcombine.high %v2975_v10, %v2979_v38  ;;  %v3010_v42 = vld [vmem:[%s16919_s27 + $0x19b0] sm:$0xff]  ;;  %v3007_v62 = vld [vmem:[%s16919_s27 + $0x1998] sm:$0xff] }
 0x5d9   : > { %13153 = vmatprep.subr.bf16.mxu1 %v15182_v22  ;;  %v15220_v22 = vcombine.high %v2974_v14, %v2978_v52  ;;  %v15245_v33 = vcombine.low %v2999_v44, %v3003_v26 }
 0x5db   : > { %12662 = vmatpush1.bf16.msra.mxu0 %v15179_v4  ;;  %v15219_v4 = vcombine.low %v2974_v14, %v2978_v52  ;;  %v3014_v14 = vld [vmem:[%s16919_s27 + $0x19d0] sm:$0xff] }
 0x5dc   : > { %13154 = vmatpush1.bf16.msra.mxu1 %v15181_v3  ;;  %12663 = vmatprep.subr.bf16.mxu0 %v15188_v8  ;;  %v15221_v3 = vcombine.low %v2975_v10, %v2979_v38  ;;  %v15228_v8 = vcombine.high %v2982_v20, %v2986_v59  ;;  %v3018_v52 = vld [vmem:[%s16919_s27 + $0x19f0] sm:$0xff]  ;;  %v3019_v10 = vld [vmem:[%s16919_s27 + $0x19f8] sm:$0xff] }
 0x5dd   : > { %13155 = vmatprep.subr.bf16.mxu1 %v15190_v11  ;;  %v2990_v11 = vld [vmem:[%s16919_s27 + $0x1910] sm:$0xff]  ;;  %v3023_v59 = vld [vmem:[%s16919_s27 + $0x1a18] sm:$0xff] }
 0x5de   : > { %v15235_v40 = vcombine.low %v2990_v11, %v2994_v61  ;;  %v3026_v20 = vld [vmem:[%s16919_s27 + $0x1a30] sm:$0xff] }
 0x5df   : > { %12664 = vmatpush1.bf16.msra.mxu0 %v15187_v12 }
 0x5e0   : > { %13156 = vmatpush1.bf16.msra.mxu1 %v15189_v0  ;;  %12665 = vmatprep.subr.bf16.mxu0 %v15196_v9  ;;  %v15236_v0 = vcombine.high %v2990_v11, %v2994_v61  ;;  %v15238_v9 = vcombine.high %v2991_v16, %v2995_v5  ;;  %v3034_v11 = vld [vmem:[%s16919_s27 + $0x1a70] sm:$0xff]  ;;  %v3031_v61 = vld [vmem:[%s16919_s27 + $0x1a58] sm:$0xff] }
 0x5e1   : > { %13157 = vmatprep.subr.bf16.mxu1 %v15198_v34  ;;  %v2998_v34 = vld [vmem:[%s16919_s27 + $0x1950] sm:$0xff] }
 0x5e2   : > { %v15243_v55 = vcombine.low %v2998_v34, %v3002_v41 }
 0x5e3   : > { %12666 = vmatpush1.bf16.msra.mxu0 %v15195_v31  ;;  %v15237_v31 = vcombine.low %v2991_v16, %v2995_v5  ;;  %v3035_v16 = vld [vmem:[%s16919_s27 + $0x1a78] sm:$0xff] }
 0x5e4   : > { %13158 = vmatpush1.bf16.msra.mxu1 %v15197_v37  ;;  %12676 = vmatprep.subr.bf16.mxu0 %v15204_v7  ;;  %v15244_v37 = vcombine.high %v2998_v34, %v3002_v41  ;;  %v15246_v7 = vcombine.high %v2999_v44, %v3003_v26  ;;  %v3042_v34 = vld [vmem:[%s16919_s27 + $0x1ab0] sm:$0xff]  ;;  %v3039_v41 = vld [vmem:[%s16919_s27 + $0x1a98] sm:$0xff] }
 0x5e5   : > { %13168 = vmatprep.subr.bf16.mxu1 %v15206_v39  ;;  %v3006_v39 = vld [vmem:[%s16919_s27 + $0x1990] sm:$0xff]  ;;  %v3043_v44 = vld [vmem:[%s16919_s27 + $0x1ab8] sm:$0xff] }
 0x5e6   : > { %12668 = vmatmul.mubr.bf16.vlgmr.msra.gmra.mrb[28].mxu0 %v17519_v45  ;;  %v15251_v38 = vcombine.low %v3006_v39, %v3010_v42 }
 0x5e7   : > { %13160 = vmatmul.mubr.bf16.vlgmr.msra.gmra.mrb[28].mxu1 %v17519_v45  ;;  %12677 = vmatpush1.bf16.msra.mxu0 %v15203_v43  ;;  %v2987_v45 = vld [vmem:[%s16919_s27 + $0x18f8] sm:$0xff] }
 0x5e8   : > { %12708 = vmatprep.mubr.bf16.mxu0 %v17523_v51  ;;  %13169 = vmatpush1.bf16.msra.mxu1 %v15205_v6  ;;  %v15229_v12 = vcombine.low %v2983_v49, %v2987_v45  ;;  %v3011_v43 = vld [vmem:[%s16919_s27 + $0x19b8] sm:$0xff]  ;;  %v15252_v6 = vcombine.high %v3006_v39, %v3010_v42  ;;  %v3050_v39 = vld [vmem:[%s16919_s27 + $0x1af0] sm:$0xff] }
 0x5e9   : > { %13200 = vmatprep.mubr.bf16.mxu1 %v17523_v51  ;;  %12678 = vmatprep.subr.bf16.mxu0 %v15212_v46  ;;  %v15230_v51 = vcombine.high %v2983_v49, %v2987_v45  ;;  %v15254_v46 = vcombine.high %v3007_v62, %v3011_v43  ;;  %v3027_v49 = vld [vmem:[%s16919_s27 + $0x1a38] sm:$0xff]  ;;  %v15259_v45 = vcombine.low %v3014_v14, %v3018_v52 }
 0x5ea   : > { %13170 = vmatprep.subr.bf16.mxu1 %v15214_v48  ;;  %v3015_v48 = vld [vmem:[%s16919_s27 + $0x19d8] sm:$0xff] }
 0x5eb   : > { %12679 = vmatpush1.bf16.msra.mxu0 %v15211_v47  ;;  %v15253_v47 = vcombine.low %v3007_v62, %v3011_v43  ;;  %v3047_v42 = vld [vmem:[%s16919_s27 + $0x1ad8] sm:$0xff] }
 0x5ec   : > { %13171 = vmatpush1.bf16.msra.mxu1 %v15213_v19  ;;  %12680 = vmatprep.subr.bf16.mxu0 %v15220_v22  ;;  %v15260_v19 = vcombine.high %v3014_v14, %v3018_v52  ;;  %v15262_v22 = vcombine.high %v3015_v48, %v3019_v10  ;;  %v3051_v62 = vld [vmem:[%s16919_s27 + $0x1af8] sm:$0xff]  ;;  %v3058_v14 = vld [vmem:[%s16919_s27 + $0x1b30] sm:$0xff] }
 0x5ed   : > { %13172 = vmatprep.subr.bf16.mxu1 %v15222_v53  ;;  %v3022_v53 = vld [vmem:[%s16919_s27 + $0x1a10] sm:$0xff]  ;;  %v3055_v52 = vld [vmem:[%s16919_s27 + $0x1b18] sm:$0xff] }
 0x5ee   : > { %v15267_v5 = vcombine.low %v3022_v53, %v3026_v20 }
 0x5ef   : > { %12681 = vmatpush1.bf16.msra.mxu0 %v15219_v4  ;;  %v15261_v4 = vcombine.low %v3015_v48, %v3019_v10  ;;  %v3059_v48 = vld [vmem:[%s16919_s27 + $0x1b38] sm:$0xff] }
 0x5f0   : > { %13173 = vmatpush1.bf16.msra.mxu1 %v15221_v3  ;;  %12682 = vmatprep.subr.bf16.mxu0 %v15228_v8  ;;  %v15268_v3 = vcombine.high %v3022_v53, %v3026_v20  ;;  %v15270_v8 = vcombine.high %v3023_v59, %v3027_v49  ;;  %v3066_v53 = vld [vmem:[%s16919_s27 + $0x1b70] sm:$0xff]  ;;  %v3063_v20 = vld [vmem:[%s16919_s27 + $0x1b58] sm:$0xff] }
 0x5f1   : > { %13174 = vmatprep.subr.bf16.mxu1 %v15230_v51  ;;  %v3030_v51 = vld [vmem:[%s16919_s27 + $0x1a50] sm:$0xff] }
 0x5f2   : > { %v15275_v26 = vcombine.low %v3030_v51, %v3034_v11 }
 0x5f3   : > { %12683 = vmatpush1.bf16.msra.mxu0 %v15227_v15  ;;  %v15269_v15 = vcombine.low %v3023_v59, %v3027_v49  ;;  %v3067_v59 = vld [vmem:[%s16919_s27 + $0x1b78] sm:$0xff] }
 0x5f4   : > { %13175 = vmatpush1.bf16.msra.mxu1 %v15229_v12  ;;  %12684 = vmatprep.subr.bf16.mxu0 %v15236_v0  ;;  %v15276_v12 = vcombine.high %v3030_v51, %v3034_v11  ;;  %v15278_v0 = vcombine.high %v3031_v61, %v3035_v16  ;;  %v3074_v51 = vld [vmem:[%s16919_s27 + $0x1bb0] sm:$0xff]  ;;  %v3071_v11 = vld [vmem:[%s16919_s27 + $0x1b98] sm:$0xff] }
 0x5f5   : > { %13176 = vmatprep.subr.bf16.mxu1 %v15238_v9  ;;  %v3038_v9 = vld [vmem:[%s16919_s27 + $0x1a90] sm:$0xff] }
 0x5f6   : > { %v15283_v43 = vcombine.low %v3038_v9, %v3042_v34 }
 0x5f7   : > { %12685 = vmatpush1.bf16.msra.mxu0 %v15235_v40  ;;  %v15277_v40 = vcombine.low %v3031_v61, %v3035_v16  ;;  %v3075_v61 = vld [vmem:[%s16919_s27 + $0x1bb8] sm:$0xff] }
 0x5f8   : > { %13177 = vmatpush1.bf16.msra.mxu1 %v15237_v31  ;;  %12686 = vmatprep.subr.bf16.mxu0 %v15244_v37  ;;  %v15284_v31 = vcombine.high %v3038_v9, %v3042_v34  ;;  %v15286_v37 = vcombine.high %v3039_v41, %v3043_v44  ;;  %v3082_v9 = vld [vmem:[%s16919_s27 + $0x1bf0] sm:$0xff]  ;;  %v3079_v34 = vld [vmem:[%s16919_s27 + $0x1bd8] sm:$0xff] }
 0x5f9   : > { %13178 = vmatprep.subr.bf16.mxu1 %v15246_v7  ;;  %v3046_v7 = vld [vmem:[%s16919_s27 + $0x1ad0] sm:$0xff] }
 0x5fa   : > { %v15291_v10 = vcombine.low %v3046_v7, %v3050_v39 }
 0x5fb   : > { %12687 = vmatpush1.bf16.msra.mxu0 %v15243_v55  ;;  %v15285_v55 = vcombine.low %v3039_v41, %v3043_v44  ;;  %v3083_v41 = vld [vmem:[%s16919_s27 + $0x1bf8] sm:$0xff] }
 0x5fc   : > { %13179 = vmatpush1.bf16.msra.mxu1 %v15245_v33  ;;  %12688 = vmatprep.subr.bf16.mxu0 %v15252_v6  ;;  %v15292_v33 = vcombine.high %v3046_v7, %v3050_v39  ;;  %v15294_v6 = vcombine.high %v3047_v42, %v3051_v62  ;;  %v3090_v7 = vld [vmem:[%s16919_s27 + $0x1c30] sm:$0xff]  ;;  %v3087_v39 = vld [vmem:[%s16919_s27 + $0x1c18] sm:$0xff] }
 0x5fd   : > { %13180 = vmatprep.subr.bf16.mxu1 %v15254_v46  ;;  %v3054_v46 = vld [vmem:[%s16919_s27 + $0x1b10] sm:$0xff] }
 0x5fe   : > { %v15299_v49 = vcombine.low %v3054_v46, %v3058_v14 }
 0x5ff   : > { %12689 = vmatpush1.bf16.msra.mxu0 %v15251_v38  ;;  %v15293_v38 = vcombine.low %v3047_v42, %v3051_v62  ;;  %v3091_v42 = vld [vmem:[%s16919_s27 + $0x1c38] sm:$0xff] }
 0x600   : > { %13181 = vmatpush1.bf16.msra.mxu1 %v15253_v47  ;;  %12690 = vmatprep.subr.bf16.mxu0 %v15260_v19  ;;  %v15300_v47 = vcombine.high %v3054_v46, %v3058_v14  ;;  %v15302_v19 = vcombine.high %v3055_v52, %v3059_v48  ;;  %v3098_v46 = vld [vmem:[%s16919_s27 + $0x1c70] sm:$0xff] }
 0x601   : > { %13182 = vmatprep.subr.bf16.mxu1 %v15262_v22  ;;  %v3062_v22 = vld [vmem:[%s16919_s27 + $0x1b50] sm:$0xff] }
 0x602   : > { %v15307_v16 = vcombine.low %v3062_v22, %v3066_v53 }
 0x603   : > { %12691 = vmatpush1.bf16.msra.mxu0 %v15259_v45  ;;  %v15301_v45 = vcombine.low %v3055_v52, %v3059_v48  ;;  %v3095_v52 = vld [vmem:[%s16919_s27 + $0x1c58] sm:$0xff] }
 0x604   : > { %13183 = vmatpush1.bf16.msra.mxu1 %v15261_v4  ;;  %12692 = vmatprep.subr.bf16.mxu0 %v15268_v3  ;;  %v15308_v4 = vcombine.high %v3062_v22, %v3066_v53  ;;  %v15310_v3 = vcombine.high %v3063_v20, %v3067_v59  ;;  %v3099_v48 = vld [vmem:[%s16919_s27 + $0x1c78] sm:$0xff] }
 0x605   : > { %13184 = vmatprep.subr.bf16.mxu1 %v15270_v8  ;;  %v3070_v8 = vld [vmem:[%s16919_s27 + $0x1b90] sm:$0xff]  ;;  %v15342_v22 = vcombine.high %v3095_v52, %v3099_v48  ;;  %v3103_v53 = vld [vmem:[%s16919_s27 + $0x1c98] sm:$0xff] }
 0x606   : > { %v15315_v44 = vcombine.low %v3070_v8, %v3074_v51 }
 0x607   : > { %12693 = vmatpush1.bf16.msra.mxu0 %v15267_v5  ;;  %v15309_v5 = vcombine.low %v3063_v20, %v3067_v59  ;;  %v3107_v20 = vld [vmem:[%s16919_s27 + $0x1cb8] sm:$0xff] }
 0x608   : > { %13185 = vmatpush1.bf16.msra.mxu1 %v15269_v15  ;;  %12694 = vmatprep.subr.bf16.mxu0 %v15276_v12  ;;  %v15316_v15 = vcombine.high %v3070_v8, %v3074_v51  ;;  %v15318_v12 = vcombine.high %v3071_v11, %v3075_v61  ;;  %v3114_v8 = vld [vmem:[%s16919_s27 + $0x1cf0] sm:$0xff]  ;;  %v3111_v51 = vld [vmem:[%s16919_s27 + $0x1cd8] sm:$0xff] }
 0x609   : > { %13186 = vmatprep.subr.bf16.mxu1 %v15278_v0  ;;  %v3078_v0 = vld [vmem:[%s16919_s27 + $0x1bd0] sm:$0xff] }
 0x60a   : > { %v15323_v62 = vcombine.low %v3078_v0, %v3082_v9 }
 0x60b   : > { %12695 = vmatpush1.bf16.msra.mxu0 %v15275_v26  ;;  %v15317_v26 = vcombine.low %v3071_v11, %v3075_v61  ;;  %v15349_v61 = vcombine.low %v3103_v53, %v3107_v20 }
 0x60c   : > { %13187 = vmatpush1.bf16.msra.mxu1 %v15277_v40  ;;  %12696 = vmatprep.subr.bf16.mxu0 %v15284_v31  ;;  %v15324_v40 = vcombine.high %v3078_v0, %v3082_v9  ;;  %v15326_v31 = vcombine.high %v3079_v34, %v3083_v41  ;;  %v3123_v0 = vld [vmem:[%s16919_s27 + $0x1d38] sm:$0xff] }
 0x60d   : > { %13188 = vmatprep.subr.bf16.mxu1 %v15286_v37  ;;  %v3086_v37 = vld [vmem:[%s16919_s27 + $0x1c10] sm:$0xff] }
 0x60e   : > { %v15331_v14 = vcombine.low %v3086_v37, %v3090_v7 }
 0x60f   : > { %12697 = vmatpush1.bf16.msra.mxu0 %v15283_v43  ;;  %v15325_v43 = vcombine.low %v3079_v34, %v3083_v41 }
 0x610   : > { %13189 = vmatpush1.bf16.msra.mxu1 %v15285_v55  ;;  %12698 = vmatprep.subr.bf16.mxu0 %v15292_v33  ;;  %v15332_v55 = vcombine.high %v3086_v37, %v3090_v7  ;;  %v15334_v33 = vcombine.high %v3087_v39, %v3091_v42  ;;  %v3131_v37 = vld [vmem:[%s16919_s27 + $0x1d78] sm:$0xff] }
 0x611   : > { %13190 = vmatprep.subr.bf16.mxu1 %v15294_v6  ;;  %v3094_v6 = vld [vmem:[%s16919_s27 + $0x1c50] sm:$0xff] }
 0x612   : > { %v15339_v59 = vcombine.low %v3094_v6, %v3098_v46 }
 0x613   : > { %12699 = vmatpush1.bf16.msra.mxu0 %v15291_v10  ;;  %v15333_v10 = vcombine.low %v3087_v39, %v3091_v42 }
 0x614   : > { %13191 = vmatpush1.bf16.msra.mxu1 %v15293_v38  ;;  %12700 = vmatprep.subr.bf16.mxu0 %v15300_v47  ;;  %v15340_v38 = vcombine.high %v3094_v6, %v3098_v46  ;;  %v3102_v47 = vld [vmem:[%s16919_s27 + $0x1c90] sm:$0xff]  ;;  %v3139_v6 = vld [vmem:[%s16919_s27 + $0x1db8] sm:$0xff] }
 0x615   : > { %13192 = vmatprep.subr.bf16.mxu1 %v15302_v19  ;;  %v3106_v19 = vld [vmem:[%s16919_s27 + $0x1cb0] sm:$0xff] }
 0x616   : > { %v15347_v11 = vcombine.low %v3102_v47, %v3106_v19 }
 0x617   : > { %12701 = vmatpush1.bf16.msra.mxu0 %v15299_v49  ;;  %v15341_v49 = vcombine.low %v3095_v52, %v3099_v48 }
 0x618   : > { %13193 = vmatpush1.bf16.msra.mxu1 %v15301_v45  ;;  %12702 = vmatprep.subr.bf16.mxu0 %v15308_v4  ;;  %v15348_v45 = vcombine.high %v3102_v47, %v3106_v19  ;;  %v15350_v4 = vcombine.high %v3103_v53, %v3107_v20  ;;  %v3143_v47 = vld [vmem:[%s16919_s27 + $0x1dd8] sm:$0xff] }
 0x619   : > { %13194 = vmatprep.subr.bf16.mxu1 %v15310_v3  ;;  %v3110_v3 = vld [vmem:[%s16919_s27 + $0x1cd0] sm:$0xff]  ;;  %v3147_v19 = vld [vmem:[%s16919_s27 + $0x1df8] sm:$0xff] }
 0x61a   : > { %v15355_v9 = vcombine.low %v3110_v3, %v3114_v8 }
 0x61b   : > { %12703 = vmatpush1.bf16.msra.mxu0 %v15307_v16  ;;  %v15356_v16 = vcombine.high %v3110_v3, %v3114_v8  ;;  %v3155_v3 = vld [vmem:[%s16919_s27 + $0x1e38] sm:$0xff] }
 0x61c   : > { %13195 = vmatpush1.bf16.msra.mxu1 %v15309_v5  ;;  %12704 = vmatprep.subr.bf16.mxu0 %v15316_v15  ;;  %v3118_v5 = vld [vmem:[%s16919_s27 + $0x1d10] sm:$0xff] }
 0x61d   : > { %13196 = vmatprep.subr.bf16.mxu1 %v15318_v12  ;;  %v3122_v15 = vld [vmem:[%s16919_s27 + $0x1d30] sm:$0xff]  ;;  %v3119_v12 = vld [vmem:[%s16919_s27 + $0x1d18] sm:$0xff] }
 0x61e   : > { %v15364_v41 = vcombine.high %v3118_v5, %v3122_v15  ;;  %v15363_v7 = vcombine.low %v3118_v5, %v3122_v15  ;;  %v15365_v39 = vcombine.low %v3119_v12, %v3123_v0  ;;  %v3163_v5 = vld [vmem:[%s16919_s27 + $0x1e78] sm:$0xff] }
 0x61f   : > { %12705 = vmatpush1.bf16.msra.mxu0 %v15315_v44  ;;  %v15366_v44 = vcombine.high %v3119_v12, %v3123_v0 }
 0x620   : > { %13197 = vmatpush1.bf16.msra.mxu1 %v15317_v26  ;;  %12706 = vmatprep.subr.bf16.mxu0 %v15324_v40  ;;  %v3126_v26 = vld [vmem:[%s16919_s27 + $0x1d50] sm:$0xff] }
 0x621   : > { %13198 = vmatprep.subr.bf16.mxu1 %v15326_v31  ;;  %v3130_v40 = vld [vmem:[%s16919_s27 + $0x1d70] sm:$0xff]  ;;  %v3127_v31 = vld [vmem:[%s16919_s27 + $0x1d58] sm:$0xff] }
 0x622   : > { %v15372_v42 = vcombine.high %v3126_v26, %v3130_v40  ;;  %v15371_v46 = vcombine.low %v3126_v26, %v3130_v40  ;;  %v3171_v26 = vld [vmem:[%s16919_s27 + $0x1eb8] sm:$0xff] }
 0x623   : > { %12707 = vmatpush1.bf16.msra.mxu0 %v15323_v62  ;;  %v15374_v62 = vcombine.high %v3127_v31, %v3131_v37 }
 0x624   : > { %13199 = vmatpush1.bf16.msra.mxu1 %v15325_v43  ;;  %12717 = vmatprep.subr.bf16.mxu0 %v15332_v55  ;;  %v3134_v43 = vld [vmem:[%s16919_s27 + $0x1d90] sm:$0xff] }
 0x625   : > { %13209 = vmatprep.subr.bf16.mxu1 %v15334_v33  ;;  %v3138_v55 = vld [vmem:[%s16919_s27 + $0x1db0] sm:$0xff]  ;;  %v3135_v33 = vld [vmem:[%s16919_s27 + $0x1d98] sm:$0xff] }
 0x626   : > { %12709 = vmatmul.mubr.bf16.vlgmr.msra.gmra.mrb[28].mxu0 %v17593_v36  ;;  %v15380_v52 = vcombine.high %v3134_v43, %v3138_v55  ;;  %v15382_v48 = vcombine.high %v3135_v33, %v3139_v6  ;;  %v15381_v53 = vcombine.low %v3135_v33, %v3139_v6 }
 0x627   : > { %13201 = vmatmul.mubr.bf16.vlgmr.msra.gmra.mrb[28].mxu1 %v17593_v36  ;;  %12718 = vmatpush1.bf16.msra.mxu0 %v15331_v14  ;;  %v3115_v36 = vld [vmem:[%s16919_s27 + $0x1cf8] sm:$0xff]  ;;  %v15373_v14 = vcombine.low %v3127_v31, %v3131_v37 }
 0x628   : > { %12749 = vmatprep.mubr.bf16.mxu0 %v17597_v54  ;;  %13210 = vmatpush1.bf16.msra.mxu1 %v15333_v10  ;;  %v15357_v34 = vcombine.low %v3111_v51, %v3115_v36  ;;  %v3142_v10 = vld [vmem:[%s16919_s27 + $0x1dd0] sm:$0xff] }
 0x629   : > { %13241 = vmatprep.mubr.bf16.mxu1 %v17597_v54  ;;  %12719 = vmatprep.subr.bf16.mxu0 %v15340_v38  ;;  %v15358_v54 = vcombine.high %v3111_v51, %v3115_v36  ;;  %v3146_v38 = vld [vmem:[%s16919_s27 + $0x1df0] sm:$0xff]  ;;  %v15389_v51 = vcombine.low %v3143_v47, %v3147_v19 }
 0x62a   : > { %13211 = vmatprep.subr.bf16.mxu1 %v15342_v22  ;;  %v15379_v22 = vcombine.low %v3134_v43, %v3138_v55  ;;  %v15388_v20 = vcombine.high %v3142_v10, %v3146_v38  ;;  %v15387_v8 = vcombine.low %v3142_v10, %v3146_v38  ;;  %v3179_v43 = vld [vmem:[%s16919_s27 + $0x1ef8] sm:$0xff] }
 0x62b   : > { %12720 = vmatpush1.bf16.msra.mxu0 %v15339_v59  ;;  %v15390_v59 = vcombine.high %v3143_v47, %v3147_v19  ;;  %v3187_v10 = vld [vmem:[%s16919_s27 + $0x1f38] sm:$0xff] }
 0x62c   : > { %13212 = vmatpush1.bf16.msra.mxu1 %v15341_v49  ;;  %12721 = vmatprep.subr.bf16.mxu0 %v15348_v45  ;;  %v3150_v49 = vld [vmem:[%s16919_s27 + $0x1e10] sm:$0xff] }
 0x62d   : > { %13213 = vmatprep.subr.bf16.mxu1 %v15350_v4  ;;  %v3154_v45 = vld [vmem:[%s16919_s27 + $0x1e30] sm:$0xff]  ;;  %v3151_v4 = vld [vmem:[%s16919_s27 + $0x1e18] sm:$0xff] }
 0x62e   : > { %v15396_v36 = vcombine.high %v3150_v49, %v3154_v45  ;;  %v15395_v15 = vcombine.low %v3150_v49, %v3154_v45  ;;  %v15397_v12 = vcombine.low %v3151_v4, %v3155_v3  ;;  %v3195_v49 = vld [vmem:[%s16919_s27 + $0x1f78] sm:$0xff] }
 0x62f   : > { %12722 = vmatpush1.bf16.msra.mxu0 %v15347_v11  ;;  %v15398_v11 = vcombine.high %v3151_v4, %v3155_v3 }
 0x630   : > { %13214 = vmatpush1.bf16.msra.mxu1 %v15349_v61  ;;  %12723 = vmatprep.subr.bf16.mxu0 %v15356_v16  ;;  %v3158_v61 = vld [vmem:[%s16919_s27 + $0x1e50] sm:$0xff] }
 0x631   : > { %13215 = vmatprep.subr.bf16.mxu1 %v15358_v54  ;;  %v3162_v16 = vld [vmem:[%s16919_s27 + $0x1e70] sm:$0xff]  ;;  %v3159_v54 = vld [vmem:[%s16919_s27 + $0x1e58] sm:$0xff] }
 0x632   : > { %v15404_v0 = vcombine.high %v3158_v61, %v3162_v16  ;;  %v15403_v40 = vcombine.low %v3158_v61, %v3162_v16  ;;  %v15405_v31 = vcombine.low %v3159_v54, %v3163_v5  ;;  %v3203_v61 = vld [vmem:[%s16919_s27 + $0x1fb8] sm:$0xff] }
 0x633   : > { %12724 = vmatpush1.bf16.msra.mxu0 %v15355_v9  ;;  %v15406_v9 = vcombine.high %v3159_v54, %v3163_v5 }
 0x634   : > { %13216 = vmatpush1.bf16.msra.mxu1 %v15357_v34  ;;  %12725 = vmatprep.subr.bf16.mxu0 %v15364_v41  ;;  %v3166_v34 = vld [vmem:[%s16919_s27 + $0x1e90] sm:$0xff] }
 0x635   : > { %13217 = vmatprep.subr.bf16.mxu1 %v15366_v44  ;;  %v3170_v41 = vld [vmem:[%s16919_s27 + $0x1eb0] sm:$0xff]  ;;  %v3167_v44 = vld [vmem:[%s16919_s27 + $0x1e98] sm:$0xff] }
 0x636   : > { %v15412_v37 = vcombine.high %v3166_v34, %v3170_v41  ;;  %v15411_v55 = vcombine.low %v3166_v34, %v3170_v41  ;;  %v15413_v33 = vcombine.low %v3167_v44, %v3171_v26  ;;  %v3211_v34 = vld [vmem:[%s16919_s27 + $0x1ff8] sm:$0xff] }
 0x637   : > { %12726 = vmatpush1.bf16.msra.mxu0 %v15363_v7  ;;  %v15414_v7 = vcombine.high %v3167_v44, %v3171_v26 }
 0x638   : > { %13218 = vmatpush1.bf16.msra.mxu1 %v15365_v39  ;;  %12727 = vmatprep.subr.bf16.mxu0 %v15372_v42  ;;  %v3174_v39 = vld [vmem:[%s16919_s27 + $0x1ed0] sm:$0xff] }
 0x639   : > { %13219 = vmatprep.subr.bf16.mxu1 %v15374_v62  ;;  %v3178_v42 = vld [vmem:[%s16919_s27 + $0x1ef0] sm:$0xff]  ;;  %v3175_v62 = vld [vmem:[%s16919_s27 + $0x1ed8] sm:$0xff] }
 0x63a   : > { %v15420_v6 = vcombine.high %v3174_v39, %v3178_v42  ;;  %v15419_v38 = vcombine.low %v3174_v39, %v3178_v42  ;;  %v15421_v47 = vcombine.low %v3175_v62, %v3179_v43  ;;  %v3219_v39 = vld [vmem:[%s16919_s27 + $0x2038] sm:$0xff] }
 0x63b   : > { %12728 = vmatpush1.bf16.msra.mxu0 %v15371_v46  ;;  %v15422_v46 = vcombine.high %v3175_v62, %v3179_v43 }
 0x63c   : > { %13220 = vmatpush1.bf16.msra.mxu1 %v15373_v14  ;;  %12729 = vmatprep.subr.bf16.mxu0 %v15380_v52  ;;  %v3182_v14 = vld [vmem:[%s16919_s27 + $0x1f10] sm:$0xff] }
 0x63d   : > { %13221 = vmatprep.subr.bf16.mxu1 %v15382_v48  ;;  %v3186_v52 = vld [vmem:[%s16919_s27 + $0x1f30] sm:$0xff]  ;;  %v3183_v48 = vld [vmem:[%s16919_s27 + $0x1f18] sm:$0xff] }
 0x63e   : > { %v15428_v19 = vcombine.high %v3182_v14, %v3186_v52  ;;  %v15427_v45 = vcombine.low %v3182_v14, %v3186_v52  ;;  %v15429_v4 = vcombine.low %v3183_v48, %v3187_v10  ;;  %v3223_v14 = vld [vmem:[%s16919_s27 + $0x2058] sm:$0xff] }
 0x63f   : > { %12730 = vmatpush1.bf16.msra.mxu0 %v15379_v22  ;;  %v15430_v22 = vcombine.high %v3183_v48, %v3187_v10  ;;  %v3227_v52 = vld [vmem:[%s16919_s27 + $0x2078] sm:$0xff] }
 0x640   : > { %13222 = vmatpush1.bf16.msra.mxu1 %v15381_v53  ;;  %12731 = vmatprep.subr.bf16.mxu0 %v15388_v20  ;;  %v3190_v53 = vld [vmem:[%s16919_s27 + $0x1f50] sm:$0xff] }
 0x641   : > { %13223 = vmatprep.subr.bf16.mxu1 %v15390_v59  ;;  %v3194_v20 = vld [vmem:[%s16919_s27 + $0x1f70] sm:$0xff]  ;;  %v3191_v59 = vld [vmem:[%s16919_s27 + $0x1f58] sm:$0xff] }
 0x642   : > { %v15436_v3 = vcombine.high %v3190_v53, %v3194_v20  ;;  %v15435_v16 = vcombine.low %v3190_v53, %v3194_v20  ;;  %v15437_v54 = vcombine.low %v3191_v59, %v3195_v49  ;;  %v3235_v53 = vld [vmem:[%s16919_s27 + $0x20b8] sm:$0xff] }
 0x643   : > { %12732 = vmatpush1.bf16.msra.mxu0 %v15387_v8  ;;  %v15438_v8 = vcombine.high %v3191_v59, %v3195_v49  ;;  %v15469_v59 = vcombine.low %v3223_v14, %v3227_v52 }
 0x644   : > { %13224 = vmatpush1.bf16.msra.mxu1 %v15389_v51  ;;  %12733 = vmatprep.subr.bf16.mxu0 %v15396_v36  ;;  %v3198_v51 = vld [vmem:[%s16919_s27 + $0x1f90] sm:$0xff] }
 0x645   : > { %13225 = vmatprep.subr.bf16.mxu1 %v15398_v11  ;;  %v3202_v36 = vld [vmem:[%s16919_s27 + $0x1fb0] sm:$0xff]  ;;  %v3199_v11 = vld [vmem:[%s16919_s27 + $0x1f98] sm:$0xff] }
 0x646   : > { %v15444_v5 = vcombine.high %v3198_v51, %v3202_v36  ;;  %v15443_v41 = vcombine.low %v3198_v51, %v3202_v36  ;;  %v15445_v44 = vcombine.low %v3199_v11, %v3203_v61 }
 0x647   : > { %12734 = vmatpush1.bf16.msra.mxu0 %v15395_v15  ;;  %v15446_v15 = vcombine.high %v3199_v11, %v3203_v61  ;;  %v3246_v61 = vld [vmem:[%s16919_s27 + $0x2110] sm:$0xff] }
 0x648   : > { %13226 = vmatpush1.bf16.msra.mxu1 %v15397_v12  ;;  %12735 = vmatprep.subr.bf16.mxu0 %v15404_v0  ;;  %v3206_v12 = vld [vmem:[%s16919_s27 + $0x1fd0] sm:$0xff] }
 0x649   : > { %13227 = vmatprep.subr.bf16.mxu1 %v15406_v9  ;;  %v3210_v0 = vld [vmem:[%s16919_s27 + $0x1ff0] sm:$0xff]  ;;  %v3207_v9 = vld [vmem:[%s16919_s27 + $0x1fd8] sm:$0xff] }
 0x64a   : > { %v15452_v26 = vcombine.high %v3206_v12, %v3210_v0  ;;  %v15451_v42 = vcombine.low %v3206_v12, %v3210_v0  ;;  %v15453_v62 = vcombine.low %v3207_v9, %v3211_v34 }
 0x64b   : > { %12736 = vmatpush1.bf16.msra.mxu0 %v15403_v40  ;;  %v15454_v40 = vcombine.high %v3207_v9, %v3211_v34  ;;  %v3254_v34 = vld [vmem:[%s16919_s27 + $0x2150] sm:$0xff] }
 0x64c   : > { %13228 = vmatpush1.bf16.msra.mxu1 %v15405_v31  ;;  %12737 = vmatprep.subr.bf16.mxu0 %v15412_v37  ;;  %v3214_v31 = vld [vmem:[%s16919_s27 + $0x2010] sm:$0xff] }
 0x64d   : > { %13229 = vmatprep.subr.bf16.mxu1 %v15414_v7  ;;  %v3218_v37 = vld [vmem:[%s16919_s27 + $0x2030] sm:$0xff]  ;;  %v3215_v7 = vld [vmem:[%s16919_s27 + $0x2018] sm:$0xff] }
 0x64e   : > { %v15460_v43 = vcombine.high %v3214_v31, %v3218_v37  ;;  %v15461_v48 = vcombine.low %v3215_v7, %v3219_v39 }
 0x64f   : > { %12738 = vmatpush1.bf16.msra.mxu0 %v15411_v55  ;;  %v15462_v55 = vcombine.high %v3215_v7, %v3219_v39  ;;  %v3262_v39 = vld [vmem:[%s16919_s27 + $0x2190] sm:$0xff] }
 0x650   : > { %13230 = vmatpush1.bf16.msra.mxu1 %v15413_v33  ;;  %12739 = vmatprep.subr.bf16.mxu0 %v15420_v6  ;;  %v3222_v33 = vld [vmem:[%s16919_s27 + $0x2050] sm:$0xff] }
 0x651   : > { %13231 = vmatprep.subr.bf16.mxu1 %v15422_v46  ;;  %v3226_v6 = vld [vmem:[%s16919_s27 + $0x2070] sm:$0xff]  ;;  %v15459_v46 = vcombine.low %v3214_v31, %v3218_v37 }
 0x652   : > { %v15468_v10 = vcombine.high %v3222_v33, %v3226_v6  ;;  %v15467_v20 = vcombine.low %v3222_v33, %v3226_v6 }
 0x653   : > { %12740 = vmatpush1.bf16.msra.mxu0 %v15419_v38  ;;  %v3230_v38 = vld [vmem:[%s16919_s27 + $0x2090] sm:$0xff] }
 0x654   : > { %13232 = vmatpush1.bf16.msra.mxu1 %v15421_v47  ;;  %12741 = vmatprep.subr.bf16.mxu0 %v15428_v19  ;;  %v3234_v47 = vld [vmem:[%s16919_s27 + $0x20b0] sm:$0xff]  ;;  %v15470_v19 = vcombine.high %v3223_v14, %v3227_v52 }
 0x655   : > { %13233 = vmatprep.subr.bf16.mxu1 %v15430_v22  ;;  %v3231_v22 = vld [vmem:[%s16919_s27 + $0x2098] sm:$0xff]  ;;  %v15476_v49 = vcombine.high %v3230_v38, %v3234_v47  ;;  %v15475_v51 = vcombine.low %v3230_v38, %v3234_v47  ;;  %v3270_v14 = vld [vmem:[%s16919_s27 + $0x21d0] sm:$0xff] }
 0x656   : > { %v15477_v36 = vcombine.low %v3231_v22, %v3235_v53  ;;  %v3274_v52 = vld [vmem:[%s16919_s27 + $0x21f0] sm:$0xff] }
 0x657   : > { %12742 = vmatpush1.bf16.msra.mxu0 %v15427_v45  ;;  %v15478_v45 = vcombine.high %v3231_v22, %v3235_v53  ;;  %v3278_v53 = vld [vmem:[%s16919_s27 + $0x2210] sm:$0xff] }
 0x658   : > { %13234 = vmatpush1.bf16.msra.mxu1 %v15429_v4  ;;  %12743 = vmatprep.subr.bf16.mxu0 %v15436_v3  ;;  %v3238_v4 = vld [vmem:[%s16919_s27 + $0x20d0] sm:$0xff] }
 0x659   : > { %13235 = vmatprep.subr.bf16.mxu1 %v15438_v8  ;;  %v3242_v3 = vld [vmem:[%s16919_s27 + $0x20f0] sm:$0xff]  ;;  %v3239_v8 = vld [vmem:[%s16919_s27 + $0x20d8] sm:$0xff] }
 0x65a   : > { %v15484_v11 = vcombine.high %v3238_v4, %v3242_v3 }
 0x65b   : > { %12744 = vmatpush1.bf16.msra.mxu0 %v15435_v16  ;;  %v3250_v16 = vld [vmem:[%s16919_s27 + $0x2130] sm:$0xff] }
 0x65c   : > { %13236 = vmatpush1.bf16.msra.mxu1 %v15437_v54  ;;  %12745 = vmatprep.subr.bf16.mxu0 %v15444_v5  ;;  %v3247_v54 = vld [vmem:[%s16919_s27 + $0x2118] sm:$0xff]  ;;  %v15492_v0 = vcombine.high %v3246_v61, %v3250_v16 }
 0x65d   : > { %13237 = vmatprep.subr.bf16.mxu1 %v15446_v15  ;;  %v3251_v5 = vld [vmem:[%s16919_s27 + $0x2138] sm:$0xff]  ;;  %v15483_v15 = vcombine.low %v3238_v4, %v3242_v3 }
 0x65e   : > { %v15494_v9 = vcombine.high %v3247_v54, %v3251_v5  ;;  %v15493_v31 = vcombine.low %v3247_v54, %v3251_v5  ;;  %v3294_v5 = vld [vmem:[%s16919_s27 + $0x2290] sm:$0xff] }
 0x65f   : > { %12746 = vmatpush1.bf16.msra.mxu0 %v15443_v41  ;;  %v3258_v41 = vld [vmem:[%s16919_s27 + $0x2170] sm:$0xff] }
 0x660   : > { %13238 = vmatpush1.bf16.msra.mxu1 %v15445_v44  ;;  %12747 = vmatprep.subr.bf16.mxu0 %v15452_v26  ;;  %v3255_v44 = vld [vmem:[%s16919_s27 + $0x2158] sm:$0xff]  ;;  %v15500_v37 = vcombine.high %v3254_v34, %v3258_v41 }
 0x661   : > { %13239 = vmatprep.subr.bf16.mxu1 %v15454_v40  ;;  %v3259_v26 = vld [vmem:[%s16919_s27 + $0x2178] sm:$0xff]  ;;  %v15491_v40 = vcombine.low %v3246_v61, %v3250_v16 }
 0x662   : > { %v15502_v7 = vcombine.high %v3255_v44, %v3259_v26  ;;  %v15501_v33 = vcombine.low %v3255_v44, %v3259_v26  ;;  %v3302_v26 = vld [vmem:[%s16919_s27 + $0x22d0] sm:$0xff] }
 0x663   : > { %12748 = vmatpush1.bf16.msra.mxu0 %v15451_v42  ;;  %v3266_v42 = vld [vmem:[%s16919_s27 + $0x21b0] sm:$0xff] }
 0x664   : > { %13240 = vmatpush1.bf16.msra.mxu1 %v15453_v62  ;;  %12758 = vmatprep.subr.bf16.mxu0 %v15460_v43  ;;  %v3263_v62 = vld [vmem:[%s16919_s27 + $0x2198] sm:$0xff]  ;;  %v15508_v6 = vcombine.high %v3262_v39, %v3266_v42  ;;  %v15507_v38 = vcombine.low %v3262_v39, %v3266_v42 }
 0x665   : > { %13250 = vmatprep.subr.bf16.mxu1 %v15462_v55  ;;  %v3267_v43 = vld [vmem:[%s16919_s27 + $0x21b8] sm:$0xff]  ;;  %v15499_v55 = vcombine.low %v3254_v34, %v3258_v41 }
 0x666   : > { %12750 = vmatmul.mubr.bf16.vlgmr.msra.gmra.mrb[28].mxu0 %v17671_v28  ;;  %v15509_v47 = vcombine.low %v3263_v62, %v3267_v43 }
 0x667   : > { %13242 = vmatmul.mubr.bf16.vlgmr.msra.gmra.mrb[28].mxu1 %v17671_v28  ;;  %12759 = vmatpush1.bf16.msra.mxu0 %v15459_v46  ;;  %v3243_v28 = vld [vmem:[%s16919_s27 + $0x20f8] sm:$0xff]  ;;  %v15510_v46 = vcombine.high %v3263_v62, %v3267_v43  ;;  %v3310_v43 = vld [vmem:[%s16919_s27 + $0x2310] sm:$0xff] }
 0x668   : > { %12790 = vmatprep.mubr.bf16.mxu0 %v17675_v63  ;;  %13251 = vmatpush1.bf16.msra.mxu1 %v15461_v48  ;;  %v15485_v12 = vcombine.low %v3239_v8, %v3243_v28  ;;  %v3271_v48 = vld [vmem:[%s16919_s27 + $0x21d8] sm:$0xff] }
 0x669   : > { %13282 = vmatprep.mubr.bf16.mxu1 %v17675_v63  ;;  %12760 = vmatprep.subr.bf16.mxu0 %v15468_v10  ;;  %v15486_v63 = vcombine.high %v3239_v8, %v3243_v28  ;;  %v3275_v10 = vld [vmem:[%s16919_s27 + $0x21f8] sm:$0xff]  ;;  %v3286_v28 = vld [vmem:[%s16919_s27 + $0x2250] sm:$0xff] }
 0x66a   : > { %13252 = vmatprep.subr.bf16.mxu1 %v15470_v19  ;;  %v15516_v19 = vcombine.high %v3270_v14, %v3274_v52  ;;  %v15518_v22 = vcombine.high %v3271_v48, %v3275_v10  ;;  %v15517_v4 = vcombine.low %v3271_v48, %v3275_v10  ;;  %v3318_v10 = vld [vmem:[%s16919_s27 + $0x2350] sm:$0xff] }
 0x66b   : > { %12761 = vmatpush1.bf16.msra.mxu0 %v15467_v20  ;;  %v3282_v20 = vld [vmem:[%s16919_s27 + $0x2230] sm:$0xff] }
 0x66c   : > { %13253 = vmatpush1.bf16.msra.mxu1 %v15469_v59  ;;  %12762 = vmatprep.subr.bf16.mxu0 %v15476_v49  ;;  %v3279_v59 = vld [vmem:[%s16919_s27 + $0x2218] sm:$0xff]  ;;  %v15524_v3 = vcombine.high %v3278_v53, %v3282_v20 }
 0x66d   : > { %13254 = vmatprep.subr.bf16.mxu1 %v15478_v45  ;;  %v3283_v49 = vld [vmem:[%s16919_s27 + $0x2238] sm:$0xff]  ;;  %v15515_v45 = vcombine.low %v3270_v14, %v3274_v52 }
 0x66e   : > { %v15526_v8 = vcombine.high %v3279_v59, %v3283_v49  ;;  %v15525_v61 = vcombine.low %v3279_v59, %v3283_v49  ;;  %v3326_v49 = vld [vmem:[%s16919_s27 + $0x2390] sm:$0xff] }
 0x66f   : > { %12763 = vmatpush1.bf16.msra.mxu0 %v15475_v51  ;;  %v3290_v51 = vld [vmem:[%s16919_s27 + $0x2270] sm:$0xff] }
 0x670   : > { %13255 = vmatpush1.bf16.msra.mxu1 %v15477_v36  ;;  %12764 = vmatprep.subr.bf16.mxu0 %v15484_v11  ;;  %v3287_v36 = vld [vmem:[%s16919_s27 + $0x2258] sm:$0xff]  ;;  %v15532_v16 = vcombine.high %v3286_v28, %v3290_v51 }
 0x671   : > { %13256 = vmatprep.subr.bf16.mxu1 %v15486_v63  ;;  %v3291_v11 = vld [vmem:[%s16919_s27 + $0x2278] sm:$0xff]  ;;  %v15523_v63 = vcombine.low %v3278_v53, %v3282_v20 }
 0x672   : > { %v15534_v54 = vcombine.high %v3287_v36, %v3291_v11  ;;  %v15533_v34 = vcombine.low %v3287_v36, %v3291_v11  ;;  %v3334_v11 = vld [vmem:[%s16919_s27 + $0x23d0] sm:$0xff] }
 0x673   : > { %12765 = vmatpush1.bf16.msra.mxu0 %v15483_v15  ;;  %v3298_v15 = vld [vmem:[%s16919_s27 + $0x22b0] sm:$0xff] }
 0x674   : > { %13257 = vmatpush1.bf16.msra.mxu1 %v15485_v12  ;;  %12766 = vmatprep.subr.bf16.mxu0 %v15492_v0  ;;  %v3295_v12 = vld [vmem:[%s16919_s27 + $0x2298] sm:$0xff]  ;;  %v15540_v41 = vcombine.high %v3294_v5, %v3298_v15 }
 0x675   : > { %13258 = vmatprep.subr.bf16.mxu1 %v15494_v9  ;;  %v3299_v0 = vld [vmem:[%s16919_s27 + $0x22b8] sm:$0xff]  ;;  %v15531_v9 = vcombine.low %v3286_v28, %v3290_v51 }
 0x676   : > { %v15542_v44 = vcombine.high %v3295_v12, %v3299_v0  ;;  %v15541_v39 = vcombine.low %v3295_v12, %v3299_v0  ;;  %v3342_v0 = vld [vmem:[%s16919_s27 + $0x2410] sm:$0xff] }
 0x677   : > { %12767 = vmatpush1.bf16.msra.mxu0 %v15491_v40  ;;  %v3306_v40 = vld [vmem:[%s16919_s27 + $0x22f0] sm:$0xff] }
 0x678   : > { %13259 = vmatpush1.bf16.msra.mxu1 %v15493_v31  ;;  %12768 = vmatprep.subr.bf16.mxu0 %v15500_v37  ;;  %v3303_v31 = vld [vmem:[%s16919_s27 + $0x22d8] sm:$0xff]  ;;  %v15548_v42 = vcombine.high %v3302_v26, %v3306_v40 }
 0x679   : > { %13260 = vmatprep.subr.bf16.mxu1 %v15502_v7  ;;  %v3307_v37 = vld [vmem:[%s16919_s27 + $0x22f8] sm:$0xff]  ;;  %v15539_v7 = vcombine.low %v3294_v5, %v3298_v15 }
 0x67a   : > { %v15550_v62 = vcombine.high %v3303_v31, %v3307_v37  ;;  %v15549_v14 = vcombine.low %v3303_v31, %v3307_v37  ;;  %v3350_v37 = vld [vmem:[%s16919_s27 + $0x2450] sm:$0xff] }
 0x67b   : > { %12769 = vmatpush1.bf16.msra.mxu0 %v15499_v55  ;;  %v3314_v55 = vld [vmem:[%s16919_s27 + $0x2330] sm:$0xff] }
 0x67c   : > { %13261 = vmatpush1.bf16.msra.mxu1 %v15501_v33  ;;  %12770 = vmatprep.subr.bf16.mxu0 %v15508_v6  ;;  %v3311_v33 = vld [vmem:[%s16919_s27 + $0x2318] sm:$0xff]  ;;  %v15556_v52 = vcombine.high %v3310_v43, %v3314_v55 }
 0x67d   : > { %13262 = vmatprep.subr.bf16.mxu1 %v15510_v46  ;;  %v3315_v6 = vld [vmem:[%s16919_s27 + $0x2338] sm:$0xff]  ;;  %v15547_v46 = vcombine.low %v3302_v26, %v3306_v40 }
 0x67e   : > { %v15558_v48 = vcombine.high %v3311_v33, %v3315_v6  ;;  %v15557_v53 = vcombine.low %v3311_v33, %v3315_v6  ;;  %v3358_v33 = vld [vmem:[%s16919_s27 + $0x2490] sm:$0xff] }
 0x67f   : > { %12771 = vmatpush1.bf16.msra.mxu0 %v15507_v38  ;;  %v3322_v38 = vld [vmem:[%s16919_s27 + $0x2370] sm:$0xff] }
 0x680   : > { %13263 = vmatpush1.bf16.msra.mxu1 %v15509_v47  ;;  %12772 = vmatprep.subr.bf16.mxu0 %v15516_v19  ;;  %v3319_v47 = vld [vmem:[%s16919_s27 + $0x2358] sm:$0xff]  ;;  %v15564_v20 = vcombine.high %v3318_v10, %v3322_v38  ;;  %v3362_v6 = vld [vmem:[%s16919_s27 + $0x24b0] sm:$0xff] }
 0x681   : > { %13264 = vmatprep.subr.bf16.mxu1 %v15518_v22  ;;  %v3323_v19 = vld [vmem:[%s16919_s27 + $0x2378] sm:$0xff]  ;;  %v15555_v22 = vcombine.low %v3310_v43, %v3314_v55 }
 0x682   : > { %v15566_v59 = vcombine.high %v3319_v47, %v3323_v19  ;;  %v15565_v28 = vcombine.low %v3319_v47, %v3323_v19  ;;  %v3366_v19 = vld [vmem:[%s16919_s27 + $0x24d0] sm:$0xff] }
 0x683   : > { %12773 = vmatpush1.bf16.msra.mxu0 %v15515_v45  ;;  %v3330_v45 = vld [vmem:[%s16919_s27 + $0x23b0] sm:$0xff] }
 0x684   : > { %13265 = vmatpush1.bf16.msra.mxu1 %v15517_v4  ;;  %12774 = vmatprep.subr.bf16.mxu0 %v15524_v3  ;;  %v3327_v4 = vld [vmem:[%s16919_s27 + $0x2398] sm:$0xff]  ;;  %v15572_v51 = vcombine.high %v3326_v49, %v3330_v45 }
 0x685   : > { %13266 = vmatprep.subr.bf16.mxu1 %v15526_v8  ;;  %v3331_v3 = vld [vmem:[%s16919_s27 + $0x23b8] sm:$0xff]  ;;  %v15563_v8 = vcombine.low %v3318_v10, %v3322_v38  ;;  %v15604_v38 = vcombine.high %v3358_v33, %v3362_v6 }
 0x686   : > { %v15574_v36 = vcombine.high %v3327_v4, %v3331_v3  ;;  %v15573_v5 = vcombine.low %v3327_v4, %v3331_v3  ;;  %v3378_v4 = vld [vmem:[%s16919_s27 + $0x2530] sm:$0xff]  ;;  %v3375_v3 = vld [vmem:[%s16919_s27 + $0x2518] sm:$0xff] }
 0x687   : > { %12775 = vmatpush1.bf16.msra.mxu0 %v15523_v63  ;;  %v3338_v63 = vld [vmem:[%s16919_s27 + $0x23f0] sm:$0xff] }
 0x688   : > { %13267 = vmatpush1.bf16.msra.mxu1 %v15525_v61  ;;  %12776 = vmatprep.subr.bf16.mxu0 %v15532_v16  ;;  %v3335_v61 = vld [vmem:[%s16919_s27 + $0x23d8] sm:$0xff]  ;;  %v15580_v15 = vcombine.high %v3334_v11, %v3338_v63 }
 0x689   : > { %13268 = vmatprep.subr.bf16.mxu1 %v15534_v54  ;;  %v3339_v16 = vld [vmem:[%s16919_s27 + $0x23f8] sm:$0xff]  ;;  %v15571_v54 = vcombine.low %v3326_v49, %v3330_v45  ;;  %v3374_v45 = vld [vmem:[%s16919_s27 + $0x2510] sm:$0xff] }
 0x68a   : > { %v15582_v12 = vcombine.high %v3335_v61, %v3339_v16  ;;  %v15581_v26 = vcombine.low %v3335_v61, %v3339_v16  ;;  %v3386_v61 = vld [vmem:[%s16919_s27 + $0x2570] sm:$0xff]  ;;  %v3383_v16 = vld [vmem:[%s16919_s27 + $0x2558] sm:$0xff] }
 0x68b   : > { %12777 = vmatpush1.bf16.msra.mxu0 %v15531_v9  ;;  %v3346_v9 = vld [vmem:[%s16919_s27 + $0x2430] sm:$0xff] }
 0x68c   : > { %13269 = vmatpush1.bf16.msra.mxu1 %v15533_v34  ;;  %12778 = vmatprep.subr.bf16.mxu0 %v15540_v41  ;;  %v3343_v34 = vld [vmem:[%s16919_s27 + $0x2418] sm:$0xff]  ;;  %v15588_v40 = vcombine.high %v3342_v0, %v3346_v9 }
 0x68d   : > { %13270 = vmatprep.subr.bf16.mxu1 %v15542_v44  ;;  %v3347_v41 = vld [vmem:[%s16919_s27 + $0x2438] sm:$0xff]  ;;  %v15579_v44 = vcombine.low %v3334_v11, %v3338_v63  ;;  %v3382_v63 = vld [vmem:[%s16919_s27 + $0x2550] sm:$0xff] }
 0x68e   : > { %v15590_v31 = vcombine.high %v3343_v34, %v3347_v41  ;;  %v15589_v43 = vcombine.low %v3343_v34, %v3347_v41  ;;  %v3394_v34 = vld [vmem:[%s16919_s27 + $0x25b0] sm:$0xff]  ;;  %v3391_v41 = vld [vmem:[%s16919_s27 + $0x2598] sm:$0xff] }
 0x68f   : > { %12779 = vmatpush1.bf16.msra.mxu0 %v15539_v7  ;;  %v3354_v7 = vld [vmem:[%s16919_s27 + $0x2470] sm:$0xff] }
 0x690   : > { %13271 = vmatpush1.bf16.msra.mxu1 %v15541_v39  ;;  %12780 = vmatprep.subr.bf16.mxu0 %v15548_v42  ;;  %v15587_v39 = vcombine.low %v3342_v0, %v3346_v9  ;;  %v3351_v42 = vld [vmem:[%s16919_s27 + $0x2458] sm:$0xff]  ;;  %v15596_v55 = vcombine.high %v3350_v37, %v3354_v7  ;;  %v3390_v9 = vld [vmem:[%s16919_s27 + $0x2590] sm:$0xff] }
 0x691   : > { %13272 = vmatprep.subr.bf16.mxu1 %v15550_v62  ;;  %v3355_v62 = vld [vmem:[%s16919_s27 + $0x2478] sm:$0xff] }
 0x692   : > { %v15597_v10 = vcombine.low %v3351_v42, %v3355_v62 }
 0x693   : > { %12781 = vmatpush1.bf16.msra.mxu0 %v15547_v46  ;;  %v15598_v46 = vcombine.high %v3351_v42, %v3355_v62  ;;  %v3399_v42 = vld [vmem:[%s16919_s27 + $0x25d8] sm:$0xff] }
 0x694   : > { %13273 = vmatpush1.bf16.msra.mxu1 %v15549_v14  ;;  %12782 = vmatprep.subr.bf16.mxu0 %v15556_v52  ;;  %v3359_v14 = vld [vmem:[%s16919_s27 + $0x2498] sm:$0xff] }
 0x695   : > { %13274 = vmatprep.subr.bf16.mxu1 %v15558_v48  ;;  %v3363_v52 = vld [vmem:[%s16919_s27 + $0x24b8] sm:$0xff]  ;;  %v15595_v48 = vcombine.low %v3350_v37, %v3354_v7  ;;  %v3398_v7 = vld [vmem:[%s16919_s27 + $0x25d0] sm:$0xff] }
 0x696   : > { %v15606_v47 = vcombine.high %v3359_v14, %v3363_v52  ;;  %v3403_v62 = vld [vmem:[%s16919_s27 + $0x25f8] sm:$0xff] }
 0x697   : > { %12783 = vmatpush1.bf16.msra.mxu0 %v15555_v22  ;;  %v3370_v22 = vld [vmem:[%s16919_s27 + $0x24f0] sm:$0xff] }
 0x698   : > { %13275 = vmatpush1.bf16.msra.mxu1 %v15557_v53  ;;  %12784 = vmatprep.subr.bf16.mxu0 %v15564_v20  ;;  %v3367_v53 = vld [vmem:[%s16919_s27 + $0x24d8] sm:$0xff]  ;;  %v15603_v20 = vcombine.low %v3358_v33, %v3362_v6  ;;  %v15612_v49 = vcombine.high %v3366_v19, %v3370_v22  ;;  %v15646_v6 = vcombine.high %v3399_v42, %v3403_v62 }
 0x699   : > { %13276 = vmatprep.subr.bf16.mxu1 %v15566_v59  ;;  %v15605_v59 = vcombine.low %v3359_v14, %v3363_v52  ;;  %v3410_v14 = vld [vmem:[%s16919_s27 + $0x2630] sm:$0xff]  ;;  %v3407_v52 = vld [vmem:[%s16919_s27 + $0x2618] sm:$0xff] }
 0x69b   : > { %12785 = vmatpush1.bf16.msra.mxu0 %v15563_v8  ;;  %v3379_v8 = vld [vmem:[%s16919_s27 + $0x2538] sm:$0xff] }
 0x69c   : > { %13277 = vmatpush1.bf16.msra.mxu1 %v15565_v28  ;;  %12786 = vmatprep.subr.bf16.mxu0 %v15572_v51  ;;  %v15611_v28 = vcombine.low %v3366_v19, %v3370_v22  ;;  %v15622_v11 = vcombine.high %v3375_v3, %v3379_v8  ;;  %v3414_v22 = vld [vmem:[%s16919_s27 + $0x2650] sm:$0xff] }
 0x69d   : > { %13278 = vmatprep.subr.bf16.mxu1 %v15574_v36  ;;  %v15620_v36 = vcombine.high %v3374_v45, %v3378_v4 }
 0x69f   : > { %12787 = vmatpush1.bf16.msra.mxu0 %v15571_v54  ;;  %v3387_v54 = vld [vmem:[%s16919_s27 + $0x2578] sm:$0xff] }
 0x6a0   : > { %13279 = vmatpush1.bf16.msra.mxu1 %v15573_v5  ;;  %12788 = vmatprep.subr.bf16.mxu0 %v15580_v15  ;;  %v15619_v5 = vcombine.low %v3374_v45, %v3378_v4  ;;  %v15621_v15 = vcombine.low %v3375_v3, %v3379_v8  ;;  %v15630_v0 = vcombine.high %v3383_v16, %v3387_v54  ;;  %v3422_v4 = vld [vmem:[%s16919_s27 + $0x2690] sm:$0xff]  ;;  %v3423_v8 = vld [vmem:[%s16919_s27 + $0x2698] sm:$0xff] }
 0x6a1   : > { %13280 = vmatprep.subr.bf16.mxu1 %v15582_v12  ;;  %v15628_v12 = vcombine.high %v3382_v63, %v3386_v61  ;;  %v3426_v3 = vld [vmem:[%s16919_s27 + $0x26b0] sm:$0xff] }
 0x6a3   : > { %12789 = vmatpush1.bf16.msra.mxu0 %v15579_v44  ;;  %v3395_v44 = vld [vmem:[%s16919_s27 + $0x25b8] sm:$0xff] }
 0x6a4   : > { %13281 = vmatpush1.bf16.msra.mxu1 %v15581_v26  ;;  %12799 = vmatprep.subr.bf16.mxu0 %v15588_v40  ;;  %v15627_v26 = vcombine.low %v3382_v63, %v3386_v61  ;;  %v15629_v40 = vcombine.low %v3383_v16, %v3387_v54  ;;  %v15638_v37 = vcombine.high %v3391_v41, %v3395_v44  ;;  %v3430_v61 = vld [vmem:[%s16919_s27 + $0x26d0] sm:$0xff]  ;;  %v3431_v54 = vld [vmem:[%s16919_s27 + $0x26d8] sm:$0xff] }
 0x6a5   : > { %13291 = vmatprep.subr.bf16.mxu1 %v15590_v31  ;;  %v15636_v31 = vcombine.high %v3390_v9, %v3394_v34  ;;  %v3434_v16 = vld [vmem:[%s16919_s27 + $0x26f0] sm:$0xff] }
 0x6a6   : > { %12791 = vmatmul.mubr.bf16.vlgmr.msra.gmra.mrb[28].mxu0 %v17747_v1 }
 0x6a7   : > { %13283 = vmatmul.mubr.bf16.vlgmr.msra.gmra.mrb[28].mxu1 %v17747_v1  ;;  %12800 = vmatpush1.bf16.msra.mxu0 %v15587_v39  ;;  %v3371_v1 = vld [vmem:[%s16919_s27 + $0x24f8] sm:$0xff]  ;;  %v3402_v39 = vld [vmem:[%s16919_s27 + $0x25f0] sm:$0xff] }
 0x6a8   : > { %12831 = vmatprep.mubr.bf16.mxu0 %v17751_v17  ;;  %13292 = vmatpush1.bf16.msra.mxu1 %v15589_v43  ;;  %v15613_v51 = vcombine.low %v3367_v53, %v3371_v1  ;;  %v15635_v43 = vcombine.low %v3390_v9, %v3394_v34  ;;  %v15644_v33 = vcombine.high %v3398_v7, %v3402_v39  ;;  %v3438_v34 = vld [vmem:[%s16919_s27 + $0x2710] sm:$0xff] }
 0x6a9   : > { %13323 = vmatprep.mubr.bf16.mxu1 %v17751_v17  ;;  %12801 = vmatprep.subr.bf16.mxu0 %v15596_v55  ;;  %v15614_v17 = vcombine.high %v3367_v53, %v3371_v1  ;;  %v15637_v55 = vcombine.low %v3391_v41, %v3395_v44  ;;  %v3418_v53 = vld [vmem:[%s16919_s27 + $0x2670] sm:$0xff]  ;;  %v3415_v1 = vld [vmem:[%s16919_s27 + $0x2658] sm:$0xff] }
 0x6aa   : > { %13293 = vmatprep.subr.bf16.mxu1 %v15598_v46  ;;  %v3406_v46 = vld [vmem:[%s16919_s27 + $0x2610] sm:$0xff]  ;;  %v3439_v44 = vld [vmem:[%s16919_s27 + $0x2718] sm:$0xff] }
 0x6ab   : > { %12802 = vmatpush1.bf16.msra.mxu0 %v15595_v48  ;;  %v3411_v48 = vld [vmem:[%s16919_s27 + $0x2638] sm:$0xff]  ;;  %v3442_v41 = vld [vmem:[%s16919_s27 + $0x2730] sm:$0xff] }
 0x6ac   : > { %13294 = vmatpush1.bf16.msra.mxu1 %v15597_v10  ;;  %12803 = vmatprep.subr.bf16.mxu0 %v15604_v38  ;;  %v15643_v10 = vcombine.low %v3398_v7, %v3402_v39  ;;  %v15645_v38 = vcombine.low %v3399_v42, %v3403_v62  ;;  %v15654_v19 = vcombine.high %v3407_v52, %v3411_v48  ;;  %v3446_v39 = vld [vmem:[%s16919_s27 + $0x2750] sm:$0xff]  ;;  %v3447_v62 = vld [vmem:[%s16919_s27 + $0x2758] sm:$0xff] }
 0x6ad   : > { %13295 = vmatprep.subr.bf16.mxu1 %v15606_v47  ;;  %v15652_v47 = vcombine.high %v3406_v46, %v3410_v14  ;;  %v3450_v42 = vld [vmem:[%s16919_s27 + $0x2770] sm:$0xff] }
 0x6af   : > { %12804 = vmatpush1.bf16.msra.mxu0 %v15603_v20  ;;  %v3419_v20 = vld [vmem:[%s16919_s27 + $0x2678] sm:$0xff] }
 0x6b0   : > { %13296 = vmatpush1.bf16.msra.mxu1 %v15605_v59  ;;  %12805 = vmatprep.subr.bf16.mxu0 %v15612_v49  ;;  %v15651_v59 = vcombine.low %v3406_v46, %v3410_v14  ;;  %v15653_v49 = vcombine.low %v3407_v52, %v3411_v48  ;;  %v15662_v45 = vcombine.high %v3415_v1, %v3419_v20  ;;  %v3454_v14 = vld [vmem:[%s16919_s27 + $0x2790] sm:$0xff]  ;;  %v3455_v48 = vld [vmem:[%s16919_s27 + $0x2798] sm:$0xff] }
 0x6b1   : > { %13297 = vmatprep.subr.bf16.mxu1 %v15614_v17  ;;  %v15660_v17 = vcombine.high %v3414_v22, %v3418_v53  ;;  %v3458_v52 = vld [vmem:[%s16919_s27 + $0x27b0] sm:$0xff] }
 0x6b3   : > { %12806 = vmatpush1.bf16.msra.mxu0 %v15611_v28  ;;  %v3427_v28 = vld [vmem:[%s16919_s27 + $0x26b8] sm:$0xff] }
 0x6b4   : > { %13298 = vmatpush1.bf16.msra.mxu1 %v15613_v51  ;;  %12807 = vmatprep.subr.bf16.mxu0 %v15620_v36  ;;  %v15659_v51 = vcombine.low %v3414_v22, %v3418_v53  ;;  %v15661_v36 = vcombine.low %v3415_v1, %v3419_v20  ;;  %v15670_v63 = vcombine.high %v3423_v8, %v3427_v28  ;;  %v3462_v53 = vld [vmem:[%s16919_s27 + $0x27d0] sm:$0xff]  ;;  %v3463_v20 = vld [vmem:[%s16919_s27 + $0x27d8] sm:$0xff] }
 0x6b5   : > { %13299 = vmatprep.subr.bf16.mxu1 %v15622_v11  ;;  %v15668_v11 = vcombine.high %v3422_v4, %v3426_v3  ;;  %v3466_v1 = vld [vmem:[%s16919_s27 + $0x27f0] sm:$0xff] }
 0x6b7   : > { %12808 = vmatpush1.bf16.msra.mxu0 %v15619_v5  ;;  %v3435_v5 = vld [vmem:[%s16919_s27 + $0x26f8] sm:$0xff] }
 0x6b8   : > { %13300 = vmatpush1.bf16.msra.mxu1 %v15621_v15  ;;  %12809 = vmatprep.subr.bf16.mxu0 %v15628_v12  ;;  %v15667_v15 = vcombine.low %v3422_v4, %v3426_v3  ;;  %v15669_v12 = vcombine.low %v3423_v8, %v3427_v28  ;;  %v15678_v9 = vcombine.high %v3431_v54, %v3435_v5  ;;  %v3470_v3 = vld [vmem:[%s16919_s27 + $0x2810] sm:$0xff]  ;;  %v3471_v28 = vld [vmem:[%s16919_s27 + $0x2818] sm:$0xff] }
 0x6b9   : > { %13301 = vmatprep.subr.bf16.mxu1 %v15630_v0  ;;  %v15676_v0 = vcombine.high %v3430_v61, %v3434_v16  ;;  %v3474_v8 = vld [vmem:[%s16919_s27 + $0x2830] sm:$0xff] }
 0x6bb   : > { %12810 = vmatpush1.bf16.msra.mxu0 %v15627_v26  ;;  %v3443_v26 = vld [vmem:[%s16919_s27 + $0x2738] sm:$0xff] }
 0x6bc   : > { %13302 = vmatpush1.bf16.msra.mxu1 %v15629_v40  ;;  %12811 = vmatprep.subr.bf16.mxu0 %v15636_v31  ;;  %v15675_v40 = vcombine.low %v3430_v61, %v3434_v16  ;;  %v15677_v31 = vcombine.low %v3431_v54, %v3435_v5  ;;  %v15686_v7 = vcombine.high %v3439_v44, %v3443_v26  ;;  %v3478_v16 = vld [vmem:[%s16919_s27 + $0x2850] sm:$0xff] }
 0x6bd   : > { %13303 = vmatprep.subr.bf16.mxu1 %v15638_v37  ;;  %v15684_v37 = vcombine.high %v3438_v34, %v3442_v41  ;;  %v3482_v54 = vld [vmem:[%s16919_s27 + $0x2870] sm:$0xff]  ;;  %v15715_v5 = vcombine.low %v3470_v3, %v3474_v8 }
 0x6bf   : > { %12812 = vmatpush1.bf16.msra.mxu0 %v15635_v43  ;;  %v3451_v43 = vld [vmem:[%s16919_s27 + $0x2778] sm:$0xff] }
 0x6c0   : > { %13304 = vmatpush1.bf16.msra.mxu1 %v15637_v55  ;;  %12813 = vmatprep.subr.bf16.mxu0 %v15644_v33  ;;  %v15683_v55 = vcombine.low %v3438_v34, %v3442_v41  ;;  %v15685_v33 = vcombine.low %v3439_v44, %v3443_v26  ;;  %v15694_v46 = vcombine.high %v3447_v62, %v3451_v43  ;;  %v3486_v34 = vld [vmem:[%s16919_s27 + $0x2890] sm:$0xff]  ;;  %v3487_v44 = vld [vmem:[%s16919_s27 + $0x2898] sm:$0xff] }
 0x6c1   : > { %13305 = vmatprep.subr.bf16.mxu1 %v15646_v6  ;;  %v15692_v6 = vcombine.high %v3446_v39, %v3450_v42  ;;  %v3490_v41 = vld [vmem:[%s16919_s27 + $0x28b0] sm:$0xff] }
 0x6c3   : > { %12814 = vmatpush1.bf16.msra.mxu0 %v15643_v10  ;;  %v3459_v10 = vld [vmem:[%s16919_s27 + $0x27b8] sm:$0xff] }
 0x6c4   : > { %13306 = vmatpush1.bf16.msra.mxu1 %v15645_v38  ;;  %12815 = vmatprep.subr.bf16.mxu0 %v15652_v47  ;;  %v15691_v38 = vcombine.low %v3446_v39, %v3450_v42  ;;  %v15693_v47 = vcombine.low %v3447_v62, %v3451_v43  ;;  %v15702_v22 = vcombine.high %v3455_v48, %v3459_v10  ;;  %v3498_v42 = vld [vmem:[%s16919_s27 + $0x28f0] sm:$0xff]  ;;  %v3495_v43 = vld [vmem:[%s16919_s27 + $0x28d8] sm:$0xff] }
 0x6c5   : > { %13307 = vmatprep.subr.bf16.mxu1 %v15654_v19  ;;  %v15700_v19 = vcombine.high %v3454_v14, %v3458_v52  ;;  %v15732_v39 = vcombine.high %v3486_v34, %v3490_v41 }
 0x6c7   : > { %12816 = vmatpush1.bf16.msra.mxu0 %v15651_v59  ;;  %v3467_v59 = vld [vmem:[%s16919_s27 + $0x27f8] sm:$0xff] }
 0x6c8   : > { %13308 = vmatpush1.bf16.msra.mxu1 %v15653_v49  ;;  %12817 = vmatprep.subr.bf16.mxu0 %v15660_v17  ;;  %v15699_v49 = vcombine.low %v3454_v14, %v3458_v52  ;;  %v15701_v17 = vcombine.low %v3455_v48, %v3459_v10  ;;  %v15710_v4 = vcombine.high %v3463_v20, %v3467_v59  ;;  %v3506_v14 = vld [vmem:[%s16919_s27 + $0x2930] sm:$0xff]  ;;  %v3503_v52 = vld [vmem:[%s16919_s27 + $0x2918] sm:$0xff] }
 0x6c9   : > { %13309 = vmatprep.subr.bf16.mxu1 %v15662_v45  ;;  %v15708_v45 = vcombine.high %v3462_v53, %v3466_v1  ;;  %v3507_v48 = vld [vmem:[%s16919_s27 + $0x2938] sm:$0xff] }
 0x6cb   : > { %12818 = vmatpush1.bf16.msra.mxu0 %v15659_v51  ;;  %v3475_v51 = vld [vmem:[%s16919_s27 + $0x2838] sm:$0xff] }
 0x6cc   : > { %13310 = vmatpush1.bf16.msra.mxu1 %v15661_v36  ;;  %12819 = vmatprep.subr.bf16.mxu0 %v15668_v11  ;;  %v15707_v36 = vcombine.low %v3462_v53, %v3466_v1  ;;  %v15709_v11 = vcombine.low %v3463_v20, %v3467_v59  ;;  %v15718_v61 = vcombine.high %v3471_v28, %v3475_v51  ;;  %v3511_v1 = vld [vmem:[%s16919_s27 + $0x2958] sm:$0xff] }
 0x6cd   : > { %13311 = vmatprep.subr.bf16.mxu1 %v15670_v63  ;;  %v15716_v63 = vcombine.high %v3470_v3, %v3474_v8  ;;  %v15750_v53 = vcombine.high %v3503_v52, %v3507_v48  ;;  %v3515_v20 = vld [vmem:[%s16919_s27 + $0x2978] sm:$0xff] }
 0x6ce   : > { %v15758_v3 = vcombine.high %v3511_v1, %v3515_v20  ;;  %v3519_v8 = vld [vmem:[%s16919_s27 + $0x2998] sm:$0xff] }
 0x6cf   : > { %12820 = vmatpush1.bf16.msra.mxu0 %v15667_v15  ;;  %v3479_v15 = vld [vmem:[%s16919_s27 + $0x2858] sm:$0xff] }
 0x6d0   : > { %13312 = vmatpush1.bf16.msra.mxu1 %v15669_v12  ;;  %12821 = vmatprep.subr.bf16.mxu0 %v15676_v0  ;;  %v3483_v12 = vld [vmem:[%s16919_s27 + $0x2878] sm:$0xff]  ;;  %v15717_v0 = vcombine.low %v3471_v28, %v3475_v51 }
 0x6d1   : > { %13313 = vmatprep.subr.bf16.mxu1 %v15678_v9  ;;  %v15724_v9 = vcombine.high %v3478_v16, %v3482_v54  ;;  %v15726_v26 = vcombine.high %v3479_v15, %v3483_v12  ;;  %v3523_v28 = vld [vmem:[%s16919_s27 + $0x29b8] sm:$0xff] }
 0x6d3   : > { %12822 = vmatpush1.bf16.msra.mxu0 %v15675_v40  ;;  %v3491_v40 = vld [vmem:[%s16919_s27 + $0x28b8] sm:$0xff] }
 0x6d4   : > { %13314 = vmatpush1.bf16.msra.mxu1 %v15677_v31  ;;  %12823 = vmatprep.subr.bf16.mxu0 %v15684_v37  ;;  %v15723_v31 = vcombine.low %v3478_v16, %v3482_v54  ;;  %v3494_v37 = vld [vmem:[%s16919_s27 + $0x28d0] sm:$0xff]  ;;  %v15734_v62 = vcombine.high %v3487_v44, %v3491_v40  ;;  %v15766_v16 = vcombine.high %v3519_v8, %v3523_v28  ;;  %v3527_v54 = vld [vmem:[%s16919_s27 + $0x29d8] sm:$0xff] }
 0x6d5   : > { %13315 = vmatprep.subr.bf16.mxu1 %v15686_v7  ;;  %v15725_v7 = vcombine.low %v3479_v15, %v3483_v12  ;;  %v15739_v10 = vcombine.low %v3494_v37, %v3498_v42  ;;  %v3534_v12 = vld [vmem:[%s16919_s27 + $0x2a10] sm:$0xff] }
 0x6d7   : > { %12824 = vmatpush1.bf16.msra.mxu0 %v15683_v55  ;;  %v15731_v55 = vcombine.low %v3486_v34, %v3490_v41  ;;  %v3538_v34 = vld [vmem:[%s16919_s27 + $0x2a30] sm:$0xff] }
 0x6d8   : > { %13316 = vmatpush1.bf16.msra.mxu1 %v15685_v33  ;;  %12825 = vmatprep.subr.bf16.mxu0 %v15692_v6  ;;  %v3502_v33 = vld [vmem:[%s16919_s27 + $0x2910] sm:$0xff]  ;;  %v15733_v6 = vcombine.low %v3487_v44, %v3491_v40  ;;  %v3535_v44 = vld [vmem:[%s16919_s27 + $0x2a18] sm:$0xff] }
 0x6d9   : > { %13317 = vmatprep.subr.bf16.mxu1 %v15694_v46  ;;  %v15740_v46 = vcombine.high %v3494_v37, %v3498_v42  ;;  %v15747_v59 = vcombine.low %v3502_v33, %v3506_v14 }
 0x6db   : > { %12826 = vmatpush1.bf16.msra.mxu0 %v15691_v38  ;;  %v3510_v38 = vld [vmem:[%s16919_s27 + $0x2950] sm:$0xff] }
 0x6dc   : > { %13318 = vmatpush1.bf16.msra.mxu1 %v15693_v47  ;;  %12827 = vmatprep.subr.bf16.mxu0 %v15700_v19  ;;  %v15748_v19 = vcombine.high %v3502_v33, %v3506_v14  ;;  %v3554_v33 = vld [vmem:[%s16919_s27 + $0x2ab0] sm:$0xff]  ;;  %v3551_v14 = vld [vmem:[%s16919_s27 + $0x2a98] sm:$0xff] }
 0x6dd   : > { %13319 = vmatprep.subr.bf16.mxu1 %v15702_v22  ;;  %v3514_v22 = vld [vmem:[%s16919_s27 + $0x2970] sm:$0xff] }
 0x6de   : > { %v15755_v51 = vcombine.low %v3510_v38, %v3514_v22 }
 0x6df   : > { %12828 = vmatpush1.bf16.msra.mxu0 %v15699_v49  ;;  %v3518_v49 = vld [vmem:[%s16919_s27 + $0x2990] sm:$0xff] }
 0x6e0   : > { %13320 = vmatpush1.bf16.msra.mxu1 %v15701_v17  ;;  %12829 = vmatprep.subr.bf16.mxu0 %v15708_v45  ;;  %v15749_v17 = vcombine.low %v3503_v52, %v3507_v48  ;;  %v15756_v45 = vcombine.high %v3510_v38, %v3514_v22  ;;  %v3555_v52 = vld [vmem:[%s16919_s27 + $0x2ab8] sm:$0xff] }
 0x6e1   : > { %13321 = vmatprep.subr.bf16.mxu1 %v15710_v4  ;;  %v3522_v4 = vld [vmem:[%s16919_s27 + $0x29b0] sm:$0xff]  ;;  %v15798_v22 = vcombine.high %v3551_v14, %v3555_v52 }
 0x6e2   : > { %v15763_v15 = vcombine.low %v3518_v49, %v3522_v4 }
 0x6e3   : > { %12830 = vmatpush1.bf16.msra.mxu0 %v15707_v36  ;;  %v3526_v36 = vld [vmem:[%s16919_s27 + $0x29d0] sm:$0xff] }
 0x6e4   : > { %13322 = vmatpush1.bf16.msra.mxu1 %v15709_v11  ;;  %12840 = vmatprep.subr.bf16.mxu0 %v15716_v63  ;;  %v15757_v11 = vcombine.low %v3511_v1, %v3515_v20  ;;  %v15764_v63 = vcombine.high %v3518_v49, %v3522_v4  ;;  %v3563_v1 = vld [vmem:[%s16919_s27 + $0x2af8] sm:$0xff]  ;;  %v15797_v49 = vcombine.low %v3551_v14, %v3555_v52 }
 0x6e5   : > { %13332 = vmatprep.subr.bf16.mxu1 %v15718_v61  ;;  %v3530_v61 = vld [vmem:[%s16919_s27 + $0x29f0] sm:$0xff] }
 0x6e6   : > { %12832 = vmatmul.mubr.bf16.vlgmr.msra.gmra.mrb[28].mxu0 %v17821_v13  ;;  %v15771_v40 = vcombine.low %v3526_v36, %v3530_v61 }
 0x6e7   : > { %13324 = vmatmul.mubr.bf16.vlgmr.msra.gmra.mrb[28].mxu1 %v17821_v13  ;;  %12841 = vmatpush1.bf16.msra.mxu0 %v15715_v5  ;;  %v3499_v13 = vld [vmem:[%s16919_s27 + $0x28f8] sm:$0xff] }
 0x6e8   : > { %12872 = vmatprep.mubr.bf16.mxu0 %v17825_v21  ;;  %13333 = vmatpush1.bf16.msra.mxu1 %v15717_v0  ;;  %v15741_v47 = vcombine.low %v3495_v43, %v3499_v13  ;;  %v3531_v5 = vld [vmem:[%s16919_s27 + $0x29f8] sm:$0xff]  ;;  %v15765_v0 = vcombine.low %v3519_v8, %v3523_v28 }
 0x6e9   : > { %13364 = vmatprep.mubr.bf16.mxu1 %v17825_v21  ;;  %12842 = vmatprep.subr.bf16.mxu0 %v15724_v9  ;;  %v15742_v21 = vcombine.high %v3495_v43, %v3499_v13  ;;  %v15772_v9 = vcombine.high %v3526_v36, %v3530_v61  ;;  %v15774_v41 = vcombine.high %v3527_v54, %v3531_v5  ;;  %v3547_v43 = vld [vmem:[%s16919_s27 + $0x2a78] sm:$0xff] }
 0x6ea   : > { %13334 = vmatprep.subr.bf16.mxu1 %v15726_v26  ;;  %v3539_v26 = vld [vmem:[%s16919_s27 + $0x2a38] sm:$0xff]  ;;  %v15773_v37 = vcombine.low %v3527_v54, %v3531_v5  ;;  %v15779_v13 = vcombine.low %v3534_v12, %v3538_v34 }
 0x6eb   : > { %12843 = vmatpush1.bf16.msra.mxu0 %v15723_v31  ;;  %v3542_v31 = vld [vmem:[%s16919_s27 + $0x2a50] sm:$0xff]  ;;  %v15782_v42 = vcombine.high %v3535_v44, %v3539_v26  ;;  %v3571_v8 = vld [vmem:[%s16919_s27 + $0x2b38] sm:$0xff] }
 0x6ec   : > { %13335 = vmatpush1.bf16.msra.mxu1 %v15725_v7  ;;  %12844 = vmatprep.subr.bf16.mxu0 %v15732_v39  ;;  %v15780_v7 = vcombine.high %v3534_v12, %v3538_v34  ;;  %v3546_v39 = vld [vmem:[%s16919_s27 + $0x2a70] sm:$0xff]  ;;  %v3579_v54 = vld [vmem:[%s16919_s27 + $0x2b78] sm:$0xff] }
 0x6ed   : > { %13336 = vmatprep.subr.bf16.mxu1 %v15734_v62  ;;  %v3543_v62 = vld [vmem:[%s16919_s27 + $0x2a58] sm:$0xff]  ;;  %v15787_v48 = vcombine.low %v3542_v31, %v3546_v39 }
 0x6ee   : > { %v15789_v38 = vcombine.low %v3543_v62, %v3547_v43 }
 0x6ef   : > { %12845 = vmatpush1.bf16.msra.mxu0 %v15731_v55  ;;  %v3550_v55 = vld [vmem:[%s16919_s27 + $0x2a90] sm:$0xff] }
 0x6f0   : > { %13337 = vmatpush1.bf16.msra.mxu1 %v15733_v6  ;;  %12846 = vmatprep.subr.bf16.mxu0 %v15740_v46  ;;  %v15781_v6 = vcombine.low %v3535_v44, %v3539_v26  ;;  %v15788_v46 = vcombine.high %v3542_v31, %v3546_v39  ;;  %v15795_v20 = vcombine.low %v3550_v55, %v3554_v33  ;;  %v3587_v44 = vld [vmem:[%s16919_s27 + $0x2bb8] sm:$0xff] }
 0x6f1   : > { %13338 = vmatprep.subr.bf16.mxu1 %v15742_v21  ;;  %v15790_v21 = vcombine.high %v3543_v62, %v3547_v43  ;;  %v3595_v62 = vld [vmem:[%s16919_s27 + $0x2bf8] sm:$0xff] }
 0x6f3   : > { %12847 = vmatpush1.bf16.msra.mxu0 %v15739_v10  ;;  %v3558_v10 = vld [vmem:[%s16919_s27 + $0x2ad0] sm:$0xff] }
 0x6f4   : > { %13339 = vmatpush1.bf16.msra.mxu1 %v15741_v47  ;;  %12848 = vmatprep.subr.bf16.mxu0 %v15748_v19  ;;  %v15796_v47 = vcombine.high %v3550_v55, %v3554_v33  ;;  %v3562_v19 = vld [vmem:[%s16919_s27 + $0x2af0] sm:$0xff] }
 0x6f5   : > { %13340 = vmatprep.subr.bf16.mxu1 %v15750_v53  ;;  %v3559_v53 = vld [vmem:[%s16919_s27 + $0x2ad8] sm:$0xff]  ;;  %v15803_v28 = vcombine.low %v3558_v10, %v3562_v19  ;;  %v3602_v55 = vld [vmem:[%s16919_s27 + $0x2c30] sm:$0xff] }
 0x6f6   : > { %v15806_v4 = vcombine.high %v3559_v53, %v3563_v1  ;;  %v15805_v36 = vcombine.low %v3559_v53, %v3563_v1  ;;  %v3607_v53 = vld [vmem:[%s16919_s27 + $0x2c58] sm:$0xff] }
 0x6f7   : > { %12849 = vmatpush1.bf16.msra.mxu0 %v15747_v59  ;;  %v3566_v59 = vld [vmem:[%s16919_s27 + $0x2b10] sm:$0xff]  ;;  %v3611_v1 = vld [vmem:[%s16919_s27 + $0x2c78] sm:$0xff] }
 0x6f8   : > { %13341 = vmatpush1.bf16.msra.mxu1 %v15749_v17  ;;  %12850 = vmatprep.subr.bf16.mxu0 %v15756_v45  ;;  %v15804_v17 = vcombine.high %v3558_v10, %v3562_v19  ;;  %v3570_v45 = vld [vmem:[%s16919_s27 + $0x2b30] sm:$0xff] }
 0x6f9   : > { %13342 = vmatprep.subr.bf16.mxu1 %v15758_v3  ;;  %v3567_v3 = vld [vmem:[%s16919_s27 + $0x2b18] sm:$0xff]  ;;  %v15811_v5 = vcombine.low %v3566_v59, %v3570_v45 }
 0x6fa   : > { %v15814_v61 = vcombine.high %v3567_v3, %v3571_v8  ;;  %v15813_v12 = vcombine.low %v3567_v3, %v3571_v8  ;;  %v3619_v3 = vld [vmem:[%s16919_s27 + $0x2cb8] sm:$0xff] }
 0x6fb   : > { %12851 = vmatpush1.bf16.msra.mxu0 %v15755_v51  ;;  %v3574_v51 = vld [vmem:[%s16919_s27 + $0x2b50] sm:$0xff] }
 0x6fc   : > { %13343 = vmatpush1.bf16.msra.mxu1 %v15757_v11  ;;  %12852 = vmatprep.subr.bf16.mxu0 %v15764_v63  ;;  %v15812_v11 = vcombine.high %v3566_v59, %v3570_v45  ;;  %v3578_v63 = vld [vmem:[%s16919_s27 + $0x2b70] sm:$0xff]  ;;  %v15854_v45 = vcombine.high %v3607_v53, %v3611_v1 }
 0x6fd   : > { %13344 = vmatprep.subr.bf16.mxu1 %v15766_v16  ;;  %v3575_v16 = vld [vmem:[%s16919_s27 + $0x2b58] sm:$0xff]  ;;  %v15819_v26 = vcombine.low %v3574_v51, %v3578_v63 }
 0x6fe   : > { %v15822_v34 = vcombine.high %v3575_v16, %v3579_v54  ;;  %v15821_v31 = vcombine.low %v3575_v16, %v3579_v54 }
 0x6ff   : > { %12853 = vmatpush1.bf16.msra.mxu0 %v15763_v15  ;;  %v3582_v15 = vld [vmem:[%s16919_s27 + $0x2b90] sm:$0xff] }
 0x700   : > { %13345 = vmatpush1.bf16.msra.mxu1 %v15765_v0  ;;  %12854 = vmatprep.subr.bf16.mxu0 %v15772_v9  ;;  %v15820_v0 = vcombine.high %v3574_v51, %v3578_v63  ;;  %v3586_v9 = vld [vmem:[%s16919_s27 + $0x2bb0] sm:$0xff] }
 0x701   : > { %13346 = vmatprep.subr.bf16.mxu1 %v15774_v41  ;;  %v3583_v41 = vld [vmem:[%s16919_s27 + $0x2b98] sm:$0xff]  ;;  %v15827_v43 = vcombine.low %v3582_v15, %v3586_v9  ;;  %v3626_v63 = vld [vmem:[%s16919_s27 + $0x2cf0] sm:$0xff] }
 0x702   : > { %v15830_v39 = vcombine.high %v3583_v41, %v3587_v44  ;;  %v15829_v33 = vcombine.low %v3583_v41, %v3587_v44 }
 0x703   : > { %12855 = vmatpush1.bf16.msra.mxu0 %v15771_v40  ;;  %v3590_v40 = vld [vmem:[%s16919_s27 + $0x2bd0] sm:$0xff] }
 0x704   : > { %13347 = vmatpush1.bf16.msra.mxu1 %v15773_v37  ;;  %12856 = vmatprep.subr.bf16.mxu0 %v15780_v7  ;;  %v15828_v37 = vcombine.high %v3582_v15, %v3586_v9  ;;  %v3594_v7 = vld [vmem:[%s16919_s27 + $0x2bf0] sm:$0xff]  ;;  %v3635_v9 = vld [vmem:[%s16919_s27 + $0x2d38] sm:$0xff] }
 0x705   : > { %13348 = vmatprep.subr.bf16.mxu1 %v15782_v42  ;;  %v3591_v42 = vld [vmem:[%s16919_s27 + $0x2bd8] sm:$0xff]  ;;  %v15835_v52 = vcombine.low %v3590_v40, %v3594_v7  ;;  %v3630_v15 = vld [vmem:[%s16919_s27 + $0x2d10] sm:$0xff] }
 0x706   : > { %v15838_v14 = vcombine.high %v3591_v42, %v3595_v62 }
 0x707   : > { %12857 = vmatpush1.bf16.msra.mxu0 %v15779_v13  ;;  %v3598_v13 = vld [vmem:[%s16919_s27 + $0x2c10] sm:$0xff] }
 0x708   : > { %13349 = vmatpush1.bf16.msra.mxu1 %v15781_v6  ;;  %12858 = vmatprep.subr.bf16.mxu0 %v15788_v46  ;;  %v15836_v6 = vcombine.high %v3590_v40, %v3594_v7  ;;  %v3599_v46 = vld [vmem:[%s16919_s27 + $0x2c18] sm:$0xff]  ;;  %v15844_v10 = vcombine.high %v3598_v13, %v3602_v55  ;;  %v3638_v40 = vld [vmem:[%s16919_s27 + $0x2d50] sm:$0xff] }
 0x709   : > { %13350 = vmatprep.subr.bf16.mxu1 %v15790_v21  ;;  %v3603_v21 = vld [vmem:[%s16919_s27 + $0x2c38] sm:$0xff] }
 0x70a   : > { %v15846_v19 = vcombine.high %v3599_v46, %v3603_v21  ;;  %v3643_v7 = vld [vmem:[%s16919_s27 + $0x2d78] sm:$0xff] }
 0x70b   : > { %12859 = vmatpush1.bf16.msra.mxu0 %v15787_v48  ;;  %v15837_v48 = vcombine.low %v3591_v42, %v3595_v62 }
 0x70c   : > { %13351 = vmatpush1.bf16.msra.mxu1 %v15789_v38  ;;  %12860 = vmatprep.subr.bf16.mxu0 %v15796_v47  ;;  %v3606_v38 = vld [vmem:[%s16919_s27 + $0x2c50] sm:$0xff] }
 0x70d   : > { %13352 = vmatprep.subr.bf16.mxu1 %v15798_v22  ;;  %v3610_v47 = vld [vmem:[%s16919_s27 + $0x2c70] sm:$0xff]  ;;  %v15843_v22 = vcombine.low %v3598_v13, %v3602_v55 }
 0x70e   : > { %v15852_v59 = vcombine.high %v3606_v38, %v3610_v47  ;;  %v15851_v8 = vcombine.low %v3606_v38, %v3610_v47  ;;  %v3646_v13 = vld [vmem:[%s16919_s27 + $0x2d90] sm:$0xff]  ;;  %v3655_v38 = vld [vmem:[%s16919_s27 + $0x2dd8] sm:$0xff] }
 0x70f   : > { %12861 = vmatpush1.bf16.msra.mxu0 %v15795_v20  ;;  %v15845_v20 = vcombine.low %v3599_v46, %v3603_v21  ;;  %v3650_v55 = vld [vmem:[%s16919_s27 + $0x2db0] sm:$0xff]  ;;  %v3659_v47 = vld [vmem:[%s16919_s27 + $0x2df8] sm:$0xff] }
 0x710   : > { %13353 = vmatpush1.bf16.msra.mxu1 %v15797_v49  ;;  %12862 = vmatprep.subr.bf16.mxu0 %v15804_v17  ;;  %v3614_v49 = vld [vmem:[%s16919_s27 + $0x2c90] sm:$0xff]  ;;  %v15892_v21 = vcombine.high %v3646_v13, %v3650_v55 }
 0x711   : > { %13354 = vmatprep.subr.bf16.mxu1 %v15806_v4  ;;  %v3618_v17 = vld [vmem:[%s16919_s27 + $0x2cb0] sm:$0xff]  ;;  %v3615_v4 = vld [vmem:[%s16919_s27 + $0x2c98] sm:$0xff] }
 0x712   : > { %v15860_v51 = vcombine.high %v3614_v49, %v3618_v17  ;;  %v15859_v16 = vcombine.low %v3614_v49, %v3618_v17  ;;  %v15861_v54 = vcombine.low %v3615_v4, %v3619_v3  ;;  %v3663_v49 = vld [vmem:[%s16919_s27 + $0x2e18] sm:$0xff] }
 0x713   : > { %12863 = vmatpush1.bf16.msra.mxu0 %v15803_v28  ;;  %v15853_v28 = vcombine.low %v3607_v53, %v3611_v1  ;;  %v15902_v1 = vcombine.high %v3655_v38, %v3659_v47  ;;  %v3667_v17 = vld [vmem:[%s16919_s27 + $0x2e38] sm:$0xff] }
 0x714   : > { %13355 = vmatpush1.bf16.msra.mxu1 %v15805_v36  ;;  %12864 = vmatprep.subr.bf16.mxu0 %v15812_v11  ;;  %v15862_v36 = vcombine.high %v3615_v4, %v3619_v3  ;;  %v3622_v11 = vld [vmem:[%s16919_s27 + $0x2cd0] sm:$0xff]  ;;  %v15901_v4 = vcombine.low %v3655_v38, %v3659_v47 }
 0x715   : > { %13356 = vmatprep.subr.bf16.mxu1 %v15814_v61  ;;  %v3623_v61 = vld [vmem:[%s16919_s27 + $0x2cd8] sm:$0xff] }
 0x717   : > { %12865 = vmatpush1.bf16.msra.mxu0 %v15811_v5  ;;  %v15868_v5 = vcombine.high %v3622_v11, %v3626_v63 }
 0x718   : > { %13357 = vmatpush1.bf16.msra.mxu1 %v15813_v12  ;;  %12866 = vmatprep.subr.bf16.mxu0 %v15820_v0  ;;  %v3634_v12 = vld [vmem:[%s16919_s27 + $0x2d30] sm:$0xff]  ;;  %v3631_v0 = vld [vmem:[%s16919_s27 + $0x2d18] sm:$0xff] }
 0x719   : > { %13358 = vmatprep.subr.bf16.mxu1 %v15822_v34  ;;  %v15867_v34 = vcombine.low %v3622_v11, %v3626_v63  ;;  %v15876_v44 = vcombine.high %v3630_v15, %v3634_v12  ;;  %v15877_v42 = vcombine.low %v3631_v0, %v3635_v9  ;;  %v3675_v11 = vld [vmem:[%s16919_s27 + $0x2e78] sm:$0xff] }
 0x71b   : > { %12867 = vmatpush1.bf16.msra.mxu0 %v15819_v26  ;;  %v15878_v26 = vcombine.high %v3631_v0, %v3635_v9 }
 0x71c   : > { %13359 = vmatpush1.bf16.msra.mxu1 %v15821_v31  ;;  %12868 = vmatprep.subr.bf16.mxu0 %v15828_v37  ;;  %v3642_v31 = vld [vmem:[%s16919_s27 + $0x2d70] sm:$0xff]  ;;  %v3639_v37 = vld [vmem:[%s16919_s27 + $0x2d58] sm:$0xff] }
 0x71d   : > { %13360 = vmatprep.subr.bf16.mxu1 %v15830_v39  ;;  %v15875_v39 = vcombine.low %v3630_v15, %v3634_v12  ;;  %v15884_v62 = vcombine.high %v3638_v40, %v3642_v31  ;;  %v15883_v46 = vcombine.low %v3638_v40, %v3642_v31  ;;  %v3683_v15 = vld [vmem:[%s16919_s27 + $0x2eb8] sm:$0xff] }
 0x71e   : > { %v3691_v40 = vld [vmem:[%s16919_s27 + $0x2ef8] sm:$0xff] }
 0x71f   : > { %12869 = vmatpush1.bf16.msra.mxu0 %v15827_v43  ;;  %v15886_v43 = vcombine.high %v3639_v37, %v3643_v7 }
 0x720   : > { %13361 = vmatpush1.bf16.msra.mxu1 %v15829_v33  ;;  %12870 = vmatprep.subr.bf16.mxu0 %v15836_v6  ;;  %v3647_v33 = vld [vmem:[%s16919_s27 + $0x2d98] sm:$0xff] }
 0x721   : > { %13362 = vmatprep.subr.bf16.mxu1 %v15838_v14  ;;  %v3651_v6 = vld [vmem:[%s16919_s27 + $0x2db8] sm:$0xff]  ;;  %v15885_v14 = vcombine.low %v3639_v37, %v3643_v7 }
 0x723   : > { %12871 = vmatpush1.bf16.msra.mxu0 %v15835_v52  ;;  %v15894_v52 = vcombine.high %v3647_v33, %v3651_v6 }
 0x724   : > { %13363 = vmatpush1.bf16.msra.mxu1 %v15837_v48  ;;  %12881 = vmatprep.subr.bf16.mxu0 %v15844_v10  ;;  %v3654_v48 = vld [vmem:[%s16919_s27 + $0x2dd0] sm:$0xff] }
 0x725   : > { %13373 = vmatprep.subr.bf16.mxu1 %v15846_v19  ;;  %v3658_v10 = vld [vmem:[%s16919_s27 + $0x2df0] sm:$0xff]  ;;  %v15891_v19 = vcombine.low %v3646_v13, %v3650_v55  ;;  %v3699_v13 = vld [vmem:[%s16919_s27 + $0x2f38] sm:$0xff] }
 0x726   : > { %12873 = vmatmul.mubr.bf16.vlgmr.msra.gmra.mrb[28].mxu0 %v17895_v24  ;;  %v15900_v53 = vcombine.high %v3654_v48, %v3658_v10 }
 0x727   : > { %13365 = vmatmul.mubr.bf16.vlgmr.msra.gmra.mrb[28].mxu1 %v17895_v24  ;;  %12882 = vmatpush1.bf16.msra.mxu0 %v15843_v22  ;;  %v3627_v24 = vld [vmem:[%s16919_s27 + $0x2cf8] sm:$0xff]  ;;  %v15893_v22 = vcombine.low %v3647_v33, %v3651_v6 }
 0x728   : > { %12913 = vmatprep.mubr.bf16.mxu0 %v17899_v27  ;;  %13374 = vmatpush1.bf16.msra.mxu1 %v15845_v20  ;;  %v15869_v41 = vcombine.low %v3623_v61, %v3627_v24  ;;  %v3662_v20 = vld [vmem:[%s16919_s27 + $0x2e10] sm:$0xff] }
 0x729   : > { %13405 = vmatprep.mubr.bf16.mxu1 %v17899_v27  ;;  %12883 = vmatprep.subr.bf16.mxu0 %v15852_v59  ;;  %v15870_v27 = vcombine.high %v3623_v61, %v3627_v24  ;;  %v3666_v59 = vld [vmem:[%s16919_s27 + $0x2e30] sm:$0xff]  ;;  %v15909_v61 = vcombine.low %v3663_v49, %v3667_v17 }
 0x72a   : > { %13375 = vmatprep.subr.bf16.mxu1 %v15854_v45  ;;  %v15899_v45 = vcombine.low %v3654_v48, %v3658_v10  ;;  %v15908_v3 = vcombine.high %v3662_v20, %v3666_v59  ;;  %v15907_v63 = vcombine.low %v3662_v20, %v3666_v59  ;;  %v3707_v48 = vld [vmem:[%s16919_s27 + $0x2f78] sm:$0xff]  ;;  %v18786_v59 = vld [vmem:[%s316_s20] sm:$0xff] }
 0x72b   : > { %12884 = vmatpush1.bf16.msra.mxu0 %v15851_v8  ;;  %v15910_v8 = vcombine.high %v3663_v49, %v3667_v17  ;;  %v3715_v20 = vld [vmem:[%s16919_s27 + $0x2fb8] sm:$0xff] }
 0x72c   : > { %13376 = vmatpush1.bf16.msra.mxu1 %v15853_v28  ;;  %12885 = vmatprep.subr.bf16.mxu0 %v15860_v51  ;;  %v3670_v28 = vld [vmem:[%s16919_s27 + $0x2e50] sm:$0xff] }
 0x72d   : > { %13377 = vmatprep.subr.bf16.mxu1 %v15862_v36  ;;  %v3674_v51 = vld [vmem:[%s16919_s27 + $0x2e70] sm:$0xff]  ;;  %v3671_v36 = vld [vmem:[%s16919_s27 + $0x2e58] sm:$0xff] }
 0x72e   : > { %v15916_v24 = vcombine.high %v3670_v28, %v3674_v51  ;;  %v15915_v12 = vcombine.low %v3670_v28, %v3674_v51  ;;  %v15917_v0 = vcombine.low %v3671_v36, %v3675_v11  ;;  %v11413_v28 = vrot.slane %v18786_v59, %v17018_v57  ;;  %v3719_v51 = vld [vmem:[%s16919_s27 + $0x2fd8] sm:$0xff] }
 0x72f   : > { %12886 = vmatpush1.bf16.msra.mxu0 %v15859_v16  ;;  %v15918_v16 = vcombine.high %v3671_v36, %v3675_v11  ;;  %v3723_v36 = vld [vmem:[%s16919_s27 + $0x2ff8] sm:$0xff]  ;;  %v11421_v11 = vrot.slane %v18786_v59, %v17028_v2 }
 0x730   : > { %13378 = vmatpush1.bf16.msra.mxu1 %v15861_v54  ;;  %12887 = vmatprep.subr.bf16.mxu0 %v15868_v5  ;;  %v3678_v54 = vld [vmem:[%s16919_s27 + $0x2e90] sm:$0xff]  ;;  %v15965_v2 = vcombine.low %v3719_v51, %v3723_v36 }
 0x731   : > { %13379 = vmatprep.subr.bf16.mxu1 %v15870_v27  ;;  %v3682_v5 = vld [vmem:[%s16919_s27 + $0x2eb0] sm:$0xff]  ;;  %v3679_v27 = vld [vmem:[%s16919_s27 + $0x2e98] sm:$0xff]  ;;  %v16127_v57 = vadd.f32 %v18208_v50, %v11421_v11 }
 0x732   : > { %v15924_v9 = vcombine.high %v3678_v54, %v3682_v5  ;;  %v15923_v31 = vcombine.low %v3678_v54, %v3682_v5  ;;  %v15925_v37 = vcombine.low %v3679_v27, %v3683_v15  ;;  %v16125_v54 = vadd.f32 %v18204_v35, %v11413_v28  ;;  %v16391_v35 = vld [vmem:[%s18664_s21 + $0x80] sm:$0xff]   ;;  %v16392_v50 = vld [vmem:[%s18664_s21 + $0x48] sm:$0xff]  }
 0x733   : > { %12888 = vmatpush1.bf16.msra.mxu0 %v15867_v34  ;;  %v15926_v34 = vcombine.high %v3679_v27, %v3683_v15  ;;  %v16388_v27 = vld [vmem:[%s18664_s21 + $0x40] sm:$0xff]   ;;  %v16424_v28 = vld [vmem:[%s18664_s21 + $0x148] sm:$0xff]  }
 0x734   : > { %13380 = vmatpush1.bf16.msra.mxu1 %v15869_v41  ;;  %12889 = vmatprep.subr.bf16.mxu0 %v15876_v44  ;;  %v3686_v41 = vld [vmem:[%s16919_s27 + $0x2ed0] sm:$0xff]  ;;  %v16426_v11 = vld [vmem:[%s18664_s21 + $0x108] sm:$0xff]  }
 0x735   : > { %13381 = vmatprep.subr.bf16.mxu1 %v15878_v26  ;;  %v3690_v44 = vld [vmem:[%s16919_s27 + $0x2ef0] sm:$0xff]  ;;  %v3687_v26 = vld [vmem:[%s16919_s27 + $0x2ed8] sm:$0xff] }
 0x736   : > { %v15932_v7 = vcombine.high %v3686_v41, %v3690_v44  ;;  %v15931_v55 = vcombine.low %v3686_v41, %v3690_v44  ;;  %v15933_v33 = vcombine.low %v3687_v26, %v3691_v40  ;;  %v16389_v15 = vld [vmem:[%s18664_s21 + $0xc0] sm:$0xff]   ;;  %v16393_v41 = vld [vmem:[%s18664_s21 + $0xc8] sm:$0xff]  }
 0x737   : > { %12890 = vmatpush1.bf16.msra.mxu0 %v15875_v39  ;;  %v15934_v39 = vcombine.high %v3687_v26, %v3691_v40  ;;  %v16394_v26 = vld [vmem:[%s18664_s21 + $0x8] sm:$0xff]  }
 0x738   : > { %13382 = vmatpush1.bf16.msra.mxu1 %v15877_v42  ;;  %12891 = vmatprep.subr.bf16.mxu0 %v15884_v62  ;;  %v3694_v42 = vld [vmem:[%s16919_s27 + $0x2f10] sm:$0xff]  ;;  %v16395_v40 = vld [vmem:[%s18664_s21 + $0x88] sm:$0xff]  }
 0x739   : > { %13383 = vmatprep.subr.bf16.mxu1 %v15886_v43  ;;  %v3698_v62 = vld [vmem:[%s16919_s27 + $0x2f30] sm:$0xff]  ;;  %v3695_v43 = vld [vmem:[%s16919_s27 + $0x2f18] sm:$0xff] }
 0x73a   : > { %v15940_v6 = vcombine.high %v3694_v42, %v3698_v62  ;;  %v15939_v10 = vcombine.low %v3694_v42, %v3698_v62  ;;  %v15941_v38 = vcombine.low %v3695_v43, %v3699_v13  ;;  %v16401_v42 = vld [vmem:[%s18664_s21 + $0xd8] sm:$0xff]  }
 0x73b   : > { %12892 = vmatpush1.bf16.msra.mxu0 %v15883_v46  ;;  %v15942_v46 = vcombine.high %v3695_v43, %v3699_v13  ;;  %v16402_v62 = vld [vmem:[%s18664_s21 + $0x18] sm:$0xff]   ;;  %v16404_v13 = vld [vmem:[%s18664_s21 + $0x60] sm:$0xff]  }
 0x73c   : > { %13384 = vmatpush1.bf16.msra.mxu1 %v15885_v14  ;;  %12893 = vmatprep.subr.bf16.mxu0 %v15892_v21  ;;  %v3702_v14 = vld [vmem:[%s16919_s27 + $0x2f50] sm:$0xff]  ;;  %v16403_v43 = vld [vmem:[%s18664_s21 + $0x98] sm:$0xff]  }
 0x73d   : > { %13385 = vmatprep.subr.bf16.mxu1 %v15894_v52  ;;  %v3706_v21 = vld [vmem:[%s16919_s27 + $0x2f70] sm:$0xff]  ;;  %v3703_v52 = vld [vmem:[%s16919_s27 + $0x2f58] sm:$0xff] }
 0x73e   : > { %v15948_v47 = vcombine.high %v3702_v14, %v3706_v21  ;;  %v15947_v49 = vcombine.low %v3702_v14, %v3706_v21  ;;  %v15949_v17 = vcombine.low %v3703_v52, %v3707_v48  ;;  %v16409_v14 = vld [vmem:[%s18664_s21 + $0xe8] sm:$0xff]  }
 0x73f   : > { %12894 = vmatpush1.bf16.msra.mxu0 %v15891_v19  ;;  %v15950_v19 = vcombine.high %v3703_v52, %v3707_v48  ;;  %v16410_v21 = vld [vmem:[%s18664_s21 + $0x28] sm:$0xff]   ;;  %v11409_v52 = vrot.slane %v18786_v59, %v17023_v60  ;;  %v16415_v60 = vld [vmem:[%s18664_s21 + $0xb0] sm:$0xff]  }
 0x740   : > { %13386 = vmatpush1.bf16.msra.mxu1 %v15893_v22  ;;  %12895 = vmatprep.subr.bf16.mxu0 %v15900_v53  ;;  %v3710_v22 = vld [vmem:[%s16919_s27 + $0x2f90] sm:$0xff]  ;;  %v16411_v48 = vld [vmem:[%s18664_s21 + $0xa8] sm:$0xff]  }
 0x741   : > { %13387 = vmatprep.subr.bf16.mxu1 %v15902_v1  ;;  %v3714_v53 = vld [vmem:[%s16919_s27 + $0x2fb0] sm:$0xff]  ;;  %v3711_v1 = vld [vmem:[%s16919_s27 + $0x2f98] sm:$0xff] }
 0x743   : > { %12896 = vmatpush1.bf16.msra.mxu0 %v15899_v45  ;;  %v15956_v45 = vcombine.high %v3710_v22, %v3714_v53 }
 0x744   : > { %13388 = vmatpush1.bf16.msra.mxu1 %v15901_v4  ;;  %12897 = vmatprep.subr.bf16.mxu0 %v15908_v3  ;;  %v15958_v4 = vcombine.high %v3711_v1, %v3715_v20  ;;  %v3718_v3 = vld [vmem:[%s16919_s27 + $0x2fd0] sm:$0xff] }
 0x745   : > { %13389 = vmatprep.subr.bf16.mxu1 %v15910_v8  ;;  %v3722_v8 = vld [vmem:[%s16919_s27 + $0x2ff0] sm:$0xff] }
 0x746   : > { %v15963_v5 = vcombine.low %v3718_v3, %v3722_v8 }
 0x747   : > { %12898 = vmatpush1.bf16.msra.mxu0 %v15907_v63  ;;  %v15955_v63 = vcombine.low %v3710_v22, %v3714_v53  ;;  %v16124_v22 = vadd.f32 %v18198_v23, %v11409_v52  ;;  %v16416_v53 = vld [vmem:[%s18664_s21 + $0x78] sm:$0xff]   ;;  %v16420_v23 = vld [vmem:[%s18664_s21 + $0x140] sm:$0xff]  }
 0x748   : > { %13390 = vmatpush1.bf16.msra.mxu1 %v15909_v61  ;;  %12899 = vmatprep.subr.bf16.mxu0 %v15916_v24  ;;  %v15957_v61 = vcombine.low %v3711_v1, %v3715_v20  ;;  %v15964_v24 = vcombine.high %v3718_v3, %v3722_v8  ;;  %v16417_v20 = vld [vmem:[%s18664_s21 + $0xf8] sm:$0xff]   ;;  %v16422_v3 = vld [vmem:[%s18664_s21 + $0x100] sm:$0xff]  }
 0x749   : > { %13391 = vmatprep.subr.bf16.mxu1 %v15918_v16  ;;  %v15966_v16 = vcombine.high %v3719_v51, %v3723_v36  ;;  %v16423_v8 = vld [vmem:[%s18664_s21 + $0x180] sm:$0xff]   ;;  %v16425_v36 = vld [vmem:[%s18664_s21 + $0x1c8] sm:$0xff]  }
 0x74b   : > { %12900 = vmatpush1.bf16.msra.mxu0 %v15915_v12  ;;  %v13415_v12 = vmax.f32 %v16125_v54, 0.0  ;;  %v16431_v54 = vld [vmem:[%s18664_s21 + $0x190] sm:$0xff]  }
 0x74c   : > { %13392 = vmatpush1.bf16.msra.mxu1 %v15917_v0  ;;  %12901 = vmatprep.subr.bf16.mxu0 %v15924_v9  ;;  %v13417_v0 = vmax.f32 %v16127_v57, 0.0  ;;  %v16390_v9 = vld [vmem:[%s18664_s21] sm:$0xff]   ;;  %v16432_v57 = vld [vmem:[%s18664_s21 + $0x158] sm:$0xff]  }
 0x74d   : > { %13393 = vmatprep.subr.bf16.mxu1 %v15926_v34  ;;  %v13423_v34 = vpack.c.bf16 %v13415_v12, %v13415_v12  ;;  %v16437_v12 = vld [vmem:[%s18664_s21 + $0x1e0] sm:$0xff]  }
 0x74e   : > { %v13425_v44 = vpack.c.bf16 %v13417_v0, %v13417_v0  ;;  %v16438_v0 = vld [vmem:[%s18664_s21 + $0x120] sm:$0xff]  }
 0x74f   : > { %12902 = vmatpush1.bf16.msra.mxu0 %v15923_v31  ;;  %v16396_v31 = vld [vmem:[%s18664_s21 + $0x50] sm:$0xff]  }
 0x750   : > { %13394 = vmatpush1.bf16.msra.mxu1 %v15925_v37  ;;  %12903 = vmatprep.subr.bf16.mxu0 %v15932_v7  ;;  %v16397_v37 = vld [vmem:[%s18664_s21 + $0xd0] sm:$0xff]  }
 0x751   : > { %13395 = vmatprep.subr.bf16.mxu1 %v15934_v39  ;;  %v16398_v7 = vld [vmem:[%s18664_s21 + $0x10] sm:$0xff]   ;;  %v16400_v39 = vld [vmem:[%s18664_s21 + $0x58] sm:$0xff]  }
 0x753   : > { %12904 = vmatpush1.bf16.msra.mxu0 %v15931_v55  ;;  %v16405_v55 = vld [vmem:[%s18664_s21 + $0xe0] sm:$0xff]  }
 0x754   : > { %13396 = vmatpush1.bf16.msra.mxu1 %v15933_v33  ;;  %12905 = vmatprep.subr.bf16.mxu0 %v15940_v6  ;;  %v16406_v33 = vld [vmem:[%s18664_s21 + $0x20] sm:$0xff]  }
 0x755   : > { %13397 = vmatprep.subr.bf16.mxu1 %v15942_v46  ;;  %v16407_v6 = vld [vmem:[%s18664_s21 + $0xa0] sm:$0xff]   ;;  %v16408_v46 = vld [vmem:[%s18664_s21 + $0x68] sm:$0xff]  }
 0x757   : > { %12906 = vmatpush1.bf16.msra.mxu0 %v15939_v10  ;;  %v16412_v10 = vld [vmem:[%s18664_s21 + $0x70] sm:$0xff]  }
 0x758   : > { %13398 = vmatpush1.bf16.msra.mxu1 %v15941_v38  ;;  %12907 = vmatprep.subr.bf16.mxu0 %v15948_v47  ;;  %v11417_v38 = vrot.slane %v18786_v59, %v17015_v56  ;;  %v16413_v47 = vld [vmem:[%s18664_s21 + $0xf0] sm:$0xff]   ;;  %v16418_v56 = vld [vmem:[%s18664_s21 + $0x38] sm:$0xff]  }
 0x759   : > { %13399 = vmatprep.subr.bf16.mxu1 %v15950_v19  ;;  %v16414_v19 = vld [vmem:[%s18664_s21 + $0x30] sm:$0xff]  }
 0x75a   : > { %v16126_v1 = vadd.f32 %v18202_v58, %v11417_v38 }
 0x75b   : > { %12908 = vmatpush1.bf16.msra.mxu0 %v15947_v49  ;;  %v13414_v49 = vmax.f32 %v16124_v22, 0.0 }
 0x75c   : > { %13400 = vmatpush1.bf16.msra.mxu1 %v15949_v17  ;;  %12909 = vmatprep.subr.bf16.mxu0 %v15956_v45  ;;  %v16419_v17 = vld [vmem:[%s18664_s21 + $0xb8] sm:$0xff]   ;;  %v13416_v45 = vmax.f32 %v16126_v1, 0.0 }
 0x75d   : > { %13401 = vmatprep.subr.bf16.mxu1 %v15958_v4  ;;  %v16421_v4 = vld [vmem:[%s18664_s21 + $0x1c0] sm:$0xff]   ;;  %v13422_v58 = vpack.c.bf16 %v13414_v49, %v13414_v49 }
 0x75e   : > { %v13424_v51 = vpack.c.bf16 %v13416_v45, %v13416_v45 }
 0x75f   : > { %12910 = vmatpush1.bf16.msra.mxu0 %v15955_v63  ;;  %v16427_v63 = vld [vmem:[%s18664_s21 + $0x188] sm:$0xff]  }
 0x760   : > { %13402 = vmatpush1.bf16.msra.mxu1 %v15957_v61  ;;  %12911 = vmatprep.subr.bf16.mxu0 %v15964_v24  ;;  %v16428_v61 = vld [vmem:[%s18664_s21 + $0x150] sm:$0xff]  }
 0x761   : > { %13403 = vmatprep.subr.bf16.mxu1 %v15966_v16  ;;  %v16429_v24 = vld [vmem:[%s18664_s21 + $0x1d0] sm:$0xff]  }
 0x762   : > { %v16430_v16 = vld [vmem:[%s18664_s21 + $0x110] sm:$0xff]  }
 0x763   : > { %12912 = vmatpush1.bf16.msra.mxu0 %v15963_v5  ;;  %v16433_v5 = vld [vmem:[%s18664_s21 + $0x1d8] sm:$0xff]  }
 0x764   : > { %13404 = vmatpush1.bf16.msra.mxu1 %v15965_v2  ;;  %16036 = vmatprep.subr.bf16.mxu0 %v16388_v27  ;;  %v16434_v2 = vld [vmem:[%s18664_s21 + $0x118] sm:$0xff]  }
 0x765   : > { %16058 = vmatprep.subr.bf16.mxu1 %v16389_v15  ;;  %v16435_v27 = vld [vmem:[%s18664_s21 + $0x198] sm:$0xff]   ;;  %v16436_v15 = vld [vmem:[%s18664_s21 + $0x160] sm:$0xff]  }
 0x766   : > { %12914 = vmatmul.mubr.bf16.vlgmr.msra.gmra.mrb[28].mxu0 %v17968_v18 }
 0x767   : > { %13406 = vmatmul.mubr.bf16.vlgmr.msra.gmra.mrb[28].mxu1 %v17968_v18  ;;  %16037 = vmatpush3.bf16.msra.mxu0 %v16390_v9  ;;  %v16399_v18 = vld [vmem:[%s18664_s21 + $0x90] sm:$0xff]   ;;  %v16439_v9 = vld [vmem:[%s18664_s21 + $0x1a0] sm:$0xff]  }
 0x768   : > { %13974 = vmatprep.mubr.bf16.mxu0 %v13423_v34  ;;  %16059 = vmatpush3.bf16.msra.mxu1 %v16391_v35  ;;  %v16440_v35 = vld [vmem:[%s18664_s21 + $0x168] sm:$0xff]  }
 0x769   : > { %14014 = vmatprep.mubr.bf16.mxu1 %v13425_v44  ;;  %16038 = vmatprep.subr.bf16.mxu0 %v16392_v50  ;;  %v16441_v50 = vld [vmem:[%s18664_s21 + $0x1e8] sm:$0xff]   ;;  %v16444_v44 = vld [vmem:[%s18664_s21 + $0x170] sm:$0xff]  }
 0x76a   : > { %16060 = vmatprep.subr.bf16.mxu1 %v16393_v41  ;;  %v16442_v34 = vld [vmem:[%s18664_s21 + $0x128] sm:$0xff]  }
 0x76b   : > { %16039 = vmatpush3.bf16.msra.mxu0 %v16394_v26  ;;  %v16443_v41 = vld [vmem:[%s18664_s21 + $0x1a8] sm:$0xff]   ;;  %v16445_v26 = vld [vmem:[%s18664_s21 + $0x1f0] sm:$0xff]  }
 0x76c   : > { %16061 = vmatpush3.bf16.msra.mxu1 %v16395_v40  ;;  %16040 = vmatprep.subr.bf16.mxu0 %v16396_v31  ;;  %v16446_v40 = vld [vmem:[%s18664_s21 + $0x130] sm:$0xff]  }
 0x76d   : > { %16062 = vmatprep.subr.bf16.mxu1 %v16397_v37  ;;  %v16447_v31 = vld [vmem:[%s18664_s21 + $0x1b0] sm:$0xff]   ;;  %v16448_v37 = vld [vmem:[%s18664_s21 + $0x178] sm:$0xff]  }
 0x76f   : > { %16041 = vmatpush3.bf16.msra.mxu0 %v16398_v7  ;;  %v16449_v7 = vld [vmem:[%s18664_s21 + $0x1f8] sm:$0xff]  }
 0x770   : > { %16063 = vmatpush3.bf16.msra.mxu1 %v16399_v18  ;;  %16042 = vmatprep.subr.bf16.mxu0 %v16400_v39  ;;  %v16450_v18 = vld [vmem:[%s18664_s21 + $0x138] sm:$0xff]  }
 0x771   : > { %16064 = vmatprep.subr.bf16.mxu1 %v16401_v42  ;;  %v16451_v39 = vld [vmem:[%s18664_s21 + $0x1b8] sm:$0xff]   ;;  %v11425_v42 = vrot.slane %v18786_v59, %v17081_v25 }
 0x773   : > { %16043 = vmatpush3.bf16.msra.mxu0 %v16402_v62  ;;  %v11433_v62 = vrot.slane %v18786_v59, %v17086_v29 }
 0x774   : > { %16065 = vmatpush3.bf16.msra.mxu1 %v16403_v43  ;;  %16044 = vmatprep.subr.bf16.mxu0 %v16404_v13  ;;  %v11429_v43 = vrot.slane %v18786_v59, %v17089_v30  ;;  %v11437_v13 = vrot.slane %v18786_v59, %v17092_v32 }
 0x775   : > { %16066 = vmatprep.subr.bf16.mxu1 %v16405_v55 }
 0x777   : > { %16045 = vmatpush3.bf16.msra.mxu0 %v16406_v33 }
 0x778   : > { %16067 = vmatpush3.bf16.msra.mxu1 %v16407_v6  ;;  %16046 = vmatprep.subr.bf16.mxu0 %v16408_v46 }
 0x779   : > { %16068 = vmatprep.subr.bf16.mxu1 %v16409_v14 }
 0x77b   : > { %16047 = vmatpush3.bf16.msra.mxu0 %v16410_v21 }
 0x77c   : > { %16069 = vmatpush3.bf16.msra.mxu1 %v16411_v48  ;;  %16048 = vmatprep.subr.bf16.mxu0 %v16412_v10 }
 0x77d   : > { %16070 = vmatprep.subr.bf16.mxu1 %v16413_v47 }
 0x77f   : > { %16049 = vmatpush3.bf16.msra.mxu0 %v16414_v19 }
 0x780   : > { %16071 = vmatpush3.bf16.msra.mxu1 %v16415_v60  ;;  %16050 = vmatprep.subr.bf16.mxu0 %v16416_v53 }
 0x781   : > { %16072 = vmatprep.subr.bf16.mxu1 %v16417_v20 }
 0x783   : > { %16051 = vmatpush3.bf16.msra.mxu0 %v16418_v56 }
 0x784   : > { %16073 = vmatpush3.bf16.msra.mxu1 %v16419_v17  ;;  %16080 = vmatprep.subr.bf16.mxu0 %v16420_v23 }
 0x785   : > { %16102 = vmatprep.subr.bf16.mxu1 %v16421_v4 }
 0x786   : > { %13975 = vmatmul.mubr.bf16.vlgmr.msra.gmra.mrb[32].mxu0 %v13422_v58 }
 0x787   : > { %14015 = vmatmul.mubr.bf16.vlgmr.msra.gmra.mrb[32].mxu1 %v13424_v51  ;;  %16081 = vmatpush3.bf16.msra.mxu0 %v16422_v3 }
 0x788   : > { %16103 = vmatpush3.bf16.msra.mxu1 %v16423_v8  ;;  %16082 = vmatprep.subr.bf16.mxu0 %v16424_v28 }
 0x789   : > { %16104 = vmatprep.subr.bf16.mxu1 %v16425_v36 }
 0x78b   : > { %16083 = vmatpush3.bf16.msra.mxu0 %v16426_v11 }
 0x78c   : > { %16105 = vmatpush3.bf16.msra.mxu1 %v16427_v63  ;;  %16084 = vmatprep.subr.bf16.mxu0 %v16428_v61 }
 0x78d   : > { %16106 = vmatprep.subr.bf16.mxu1 %v16429_v24 }
 0x78f   : > { %16085 = vmatpush3.bf16.msra.mxu0 %v16430_v16 }
 0x790   : > { %16107 = vmatpush3.bf16.msra.mxu1 %v16431_v54  ;;  %16086 = vmatprep.subr.bf16.mxu0 %v16432_v57 }
 0x791   : > { %16108 = vmatprep.subr.bf16.mxu1 %v16433_v5 }
 0x793   : > { %16087 = vmatpush3.bf16.msra.mxu0 %v16434_v2 }
 0x794   : > { %16109 = vmatpush3.bf16.msra.mxu1 %v16435_v27  ;;  %16088 = vmatprep.subr.bf16.mxu0 %v16436_v15 }
 0x795   : > { %16110 = vmatprep.subr.bf16.mxu1 %v16437_v12 }
 0x797   : > { %16089 = vmatpush3.bf16.msra.mxu0 %v16438_v0 }
 0x798   : > { %16111 = vmatpush3.bf16.msra.mxu1 %v16439_v9  ;;  %16090 = vmatprep.subr.bf16.mxu0 %v16440_v35 }
 0x799   : > { %16112 = vmatprep.subr.bf16.mxu1 %v16441_v50 }
 0x79b   : > { %16091 = vmatpush3.bf16.msra.mxu0 %v16442_v34 }
 0x79c   : > { %16113 = vmatpush3.bf16.msra.mxu1 %v16443_v41  ;;  %16092 = vmatprep.subr.bf16.mxu0 %v16444_v44 }
 0x79d   : > { %16114 = vmatprep.subr.bf16.mxu1 %v16445_v26 }
 0x79f   : > { %16093 = vmatpush3.bf16.msra.mxu0 %v16446_v40 }
 0x7a0   : > { %16115 = vmatpush3.bf16.msra.mxu1 %v16447_v31  ;;  %16094 = vmatprep.subr.bf16.mxu0 %v16448_v37 }
 0x7a1   : > { %16116 = vmatprep.subr.bf16.mxu1 %v16449_v7 }
 0x7a3   : > { %16095 = vmatpush3.bf16.msra.mxu0 %v16450_v18 }
 0x7a4   : > { %16117 = vmatpush3.bf16.msra.mxu1 %v16451_v39 }
 0x839   : > { %v12915_v55 = vpop.f32.mrb[28].mxu0 }
 0x83a   : > { %v16128_v33 = vadd.f32 %v12915_v55, %v11425_v42  ;;  %v13407_v6 = vpop.f32.mrb[28].mxu1  ;;  %v12917_v46 = vpop.f32.mrb[29].mxu0 }
 0x83b   : > { %v16130_v14 = vadd.f32 %v13407_v6, %v11433_v62  ;;  %v16129_v21 = vadd.f32 %v12917_v46, %v11429_v43  ;;  %v13409_v52 = vpop.f32.mrb[29].mxu1  ;;  %v12919_v48 = vpop.f32.mrb[30].mxu0 }
 0x83c   : > { %v13418_v10 = vmax.f32 %v16128_v33, 0.0  ;;  %v16131_v38 = vadd.f32 %v13409_v52, %v11437_v13  ;;  %v13411_v25 = vpop.f32.mrb[30].mxu1  ;;  %v12920_v47 = vpop.f32.mrb[31].mxu0 }
 0x83d   : > { %v13420_v19 = vmax.f32 %v16130_v14, 0.0  ;;  %v13419_v29 = vmax.f32 %v16129_v21, 0.0  ;;  %v13412_v22 = vpop.f32.mrb[31].mxu1 }
 0x83e   : > { %v13421_v60 = vmax.f32 %v16131_v38, 0.0  ;;  %v13426_v53 = vpack.c.bf16 %v13418_v10, %v13418_v10 }
 0x83f   : > { %v13427_v30 = vpack.c.bf16 %v13419_v29, %v13419_v29  ;;  %v13428_v32 = vpack.c.bf16 %v13420_v19, %v13420_v19 }
 0x840   : > { %v13429_v1 = vpack.c.bf16 %v13421_v60, %v13421_v60 }
 0x841   : > { %14054 = vmatprep.mubr.bf16.mxu0 %v13427_v30 }
 0x842   : > { %14094 = vmatprep.mubr.bf16.mxu1 %v13429_v1  ;;  %14055 = vmatmul.mubr.bf16.vlgmr.msra.gmra.mrb[36].mxu0 %v13426_v53 }
 0x843   : > { %14095 = vmatmul.mubr.bf16.vlgmr.msra.gmra.mrb[36].mxu1 %v13428_v32 }
 0x859   : > { %v16052_v59 = vpop.f32.mrb[32].mxu0 }
 0x85a   : > { %v16074_v20 = vpop.f32.mrb[32].mxu1  ;;  %v16053_v56 = vpop.f32.mrb[33].mxu0 }
 0x85b   : > { %v16054_v49 = vadd.f32 %v16053_v56, %v16052_v59  ;;  %v16075_v17 = vpop.f32.mrb[33].mxu1  ;;  %v16055_v23 = vpop.f32.mrb[34].mxu0 }
 0x85c   : > { %v16076_v45 = vadd.f32 %v16075_v17, %v16074_v20  ;;  %v16077_v4 = vpop.f32.mrb[34].mxu1  ;;  %v16056_v3 = vpop.f32.mrb[35].mxu0 }
 0x85d   : > { %v16078_v58 = vpop.f32.mrb[35].mxu1 }
 0x85e   : > { %v14017_v8 = vadd.f32 %v16076_v45, %v16054_v49 }
 0x915   : > { %v16096_v28 = vpop.f32.mrb[36].mxu0 }
 0x916   : > { %v16118_v51 = vpop.f32.mrb[36].mxu1  ;;  %v16097_v36 = vpop.f32.mrb[37].mxu0 }
 0x917   : > { %v16098_v11 = vadd.f32 %v16097_v36, %v16096_v28  ;;  %v16119_v63 = vpop.f32.mrb[37].mxu1  ;;  %v16099_v61 = vpop.f32.mrb[38].mxu0 }
 0x918   : > { %v16120_v24 = vadd.f32 %v16119_v63, %v16118_v51  ;;  %v16121_v16 = vpop.f32.mrb[38].mxu1  ;;  %v16100_v54 = vpop.f32.mrb[39].mxu0 }
 0x919   : > { %v14057_v57 = vadd.f32 %v16098_v11, %v14017_v8  ;;  %v16122_v5 = vpop.f32.mrb[39].mxu1 }
 0x91b   : > { %v14097_v2 = vadd.f32 %v16120_v24, %v14057_v57 }
 0x91d   : > { %14102 = vst [vmem:[%s367_s16] sm:$0x1] %v14097_v2 }
 0x91e PF: > { %s18936_s13 = sld [smem:[#allocation12_spill]]  ;;  %s18937_s23 = sld [smem:[#allocation13_spill]] }
 0x91f   : > { %p15_p1 = scmp.ge.s32.totalorder %s16715_s26, 4   ;;  %s18938_s21 = smov %s16635_s22 }
 0x920   : > { %s18940_s24 = smov %s16715_s26 }
 0x921   :  { %17 = sbr.rel (!%p15_p1) target bundleno = 3 (0x3), region = 113 }
 0x924   : > { %s18939_s22 = smov %s18936_s13 }
 0x928   :  { %14120 = vsyncpa [#allocation3], 1 }
 0x929   :  { %14122 = vsyncpa [#allocation3 + $0x1], 1 }
 0x92a   :  { %14123 = vsyncpa [#allocation5], 1 }

</bundles_post_ra>
